<compile_context>
chip_gen: v5e
topology: v5e:2x2
jax: 0.10.0
libtpu: 0.0.40
codegen_flags: <defaults>
</compile_context>

<pallas_src>
import jax
import jax.numpy as jnp
from jax.experimental import pallas as pl
from jax.experimental.pallas import tpu as pltpu

N_CLASSES = 2


def _ceil_to(v, m):
    return ((v + m - 1) // m) * m


# -----------------------------------------------------------------------------
# Pallas kernels
# -----------------------------------------------------------------------------
def _conv_relu_pool_kernel(xq_ref, w_ref, b_ref, o_ref):
    """One M-tile of: 2x2/2-maxpool(relu(conv + bias)) for a valid, stride-1 conv.

    xq_ref: (4, tm, K) bf16 -- im2col rows of the 4 conv pixels in each pool window
    w_ref : (K, N)     bf16 -- conv weights flattened as (kh, kw, Cin) x Cout
    b_ref : (1, N)     f32
    o_ref : (tm, N)    bf16 -- one row per pooled output pixel
    """
    nq, tm, K = xq_ref.shape
    # Single MXU matmul over all 4 quad slabs (one RHS staging, one result drain),
    # then a row-split reshape + max realises the 2x2 pool entirely in VMEM.
    y = jnp.dot(xq_ref[...].reshape(nq * tm, K), w_ref[...],
                preferred_element_type=jnp.float32)
    y = jnp.max(y.reshape(nq, tm, -1), axis=0)
    # max-pool commutes with the (monotone, per-channel) bias-add + ReLU epilogue.
    o_ref[...] = jnp.maximum(y + b_ref[...], 0.0).astype(o_ref.dtype)


def _conv3_head_kernel(xq_ref, w3_ref, b3_ref, w1_ref, b1_ref, w2_ref, b2_ref, o_ref):
    """Fused conv3 + ReLU + 2x2 pool + flatten + fc1 + ReLU + fc2 + softmax (all in VMEM).

    xq_ref: (4, G*Bp, K3) bf16 -- quad patch rows, row index = m*Bp + b (m = pooled pixel)
    w3_ref: (K3, C3)      bf16;  b3_ref: (1, C3) f32
    w1_ref: (G*C3, H)     bf16, rows ordered m*C3 + c (NHWC flatten);  b1_ref: (1, H) f32
    w2_ref: (H, NP)       bf16, logits padded to NP lanes;  b2_ref: (1, NP) f32 (-1e30 pads)
    o_ref : (Bp, NP)      f32 softmax probabilities
    """
    nq, M3, K3 = xq_ref.shape
    C3 = w3_ref.shape[1]
    Bp = o_ref.shape[0]
    groups = M3 // Bp                                   # pooled pixels per image (= 4)

    z = jnp.dot(xq_ref[...].reshape(nq * M3, K3), w3_ref[...],
                preferred_element_type=jnp.float32)
    z = jnp.max(z.reshape(nq, M3, C3), axis=0)          # 2x2 max-pool
    pooled = jnp.maximum(z + b3_ref[...], 0.0)          # (M3, C3) f32

    # fc1 on the NHWC flatten without any in-kernel reshape/transpose:
    # flat(b) = concat_m pooled[m*Bp + b]  =>  h = sum_m pooled[m-block] @ w1[m*C3:(m+1)*C3]
    acc = jnp.zeros((Bp, w1_ref.shape[1]), jnp.float32)
    for m in range(groups):
        acc = acc + jnp.dot(pooled[m * Bp:(m + 1) * Bp, :].astype(w1_ref.dtype),
                            w1_ref[m * C3:(m + 1) * C3, :],
                            preferred_element_type=jnp.float32)
    h = jnp.maximum(acc + b1_ref[...], 0.0).astype(w2_ref.dtype)

    logits = jnp.dot(h, w2_ref[...], preferred_element_type=jnp.float32) + b2_ref[...]
    mx = jnp.max(logits, axis=1, keepdims=True)
    e = jnp.exp(logits - mx)                            # padded lanes underflow to exactly 0
    o_ref[...] = e / jnp.sum(e, axis=1, keepdims=True)  # exact softmax


# -----------------------------------------------------------------------------
# im2col glue (XLA) and Pallas wrappers
# -----------------------------------------------------------------------------
def _quad_patches(x, kh, kw, Hp, Wp):
    """Quad patch tensors built directly from strided slices of x (no 25x full-res tensor).

    x: (B, H, W, C) -> list of 4 arrays (B, Hp, Wp, kh*kw*C), quad order d = dy*2 + dx.
    """
    quads = []
    for dy in range(2):
        for dx in range(2):
            cols = [x[:, dy + i: dy + i + 2 * Hp: 2, dx + j: dx + j + 2 * Wp: 2, :]
                    for i in range(kh) for j in range(kw)]
            quads.append(jnp.concatenate(cols, axis=-1))
    return quads


def _pick_tiles(M, tm_target=512):
    grid = max(1, -(-M // tm_target))
    if grid == 1 and M >= 64:
        grid = 2                      # keep v7x's second TensorCore busy on mid-size layers
    tm = -(-M // grid)
    tm = _ceil_to(tm, 128) if tm >= 128 else _ceil_to(tm, 16)
    return grid, tm


def conv_relu_pool(x, wmat, bias, kh=5, kw=5, *, tm_target=512):
    """x: (B, H, W, C) bf16 -> (B, Hp, Wp, Cout) bf16; valid conv + ReLU + 2x2/2 max-pool."""
    B, H, W, C = x.shape
    K, N = wmat.shape
    Ho, Wo = H - kh + 1, W - kw + 1
    Hp, Wp = Ho // 2, Wo // 2                                   # floor-mode pool
    M = B * Hp * Wp

    xq = jnp.stack([q.reshape(M, K) for q in _quad_patches(x, kh, kw, Hp, Wp)], axis=0)

    grid, tm = _pick_tiles(M, tm_target)
    Mp = grid * tm
    if Mp != M:
        xq = jnp.pad(xq, ((0, 0), (0, Mp - M), (0, 0)))

    cost = pl.CostEstimate(flops=2 * 4 * Mp * K * N, transcendentals=0,
                           bytes_accessed=(4 * Mp * K + K * N + Mp * N) * 2 + N * 4)
    out = pl.pallas_call(
        _conv_relu_pool_kernel,
        out_shape=jax.ShapeDtypeStruct((Mp, N), jnp.bfloat16),
        grid=(grid,),
        in_specs=[
            pl.BlockSpec((4, tm, K), lambda i: (0, i, 0)),
            pl.BlockSpec((K, N), lambda i: (0, 0)),
            pl.BlockSpec((1, N), lambda i: (0, 0)),
        ],
        out_specs=pl.BlockSpec((tm, N), lambda i: (i, 0)),
        compiler_params=pltpu.CompilerParams(dimension_semantics=("parallel",)),
        cost_estimate=cost,
    )(xq, wmat, bias)
    return out[:M].reshape(B, Hp, Wp, N)


def conv3_head(x, w3, b3, w1, b1, w2, b2, *, n_out, kh=5, kw=5):
    """Fused conv3 + ReLU + pool + flatten + fc1 + ReLU + fc2 + softmax in ONE pallas_call."""
    B, H, W, C = x.shape
    K, C3 = w3.shape
    Ho, Wo = H - kh + 1, W - kw + 1
    Hp, Wp = Ho // 2, Wo // 2                                   # = 2, 2 for the 50x50 net
    Bp = _ceil_to(max(B, 8), 8)                                 # sublane-aligned batch
    G = Hp * Wp
    M3 = G * Bp

    # quad patch rows ordered pooled-pixel-major (row = m*Bp + b) so the in-kernel fc1 uses
    # only aligned static slices — no reshape/transposes inside the kernel.
    quads = []
    for q in _quad_patches(x, kh, kw, Hp, Wp):                  # each (B, Hp, Wp, K)
        q = jnp.transpose(q, (1, 2, 0, 3)).reshape(G, B, K)
        q = jnp.pad(q, ((0, 0), (0, Bp - B), (0, 0))).reshape(M3, K)
        quads.append(q)
    xq = jnp.stack(quads, axis=0)                               # (4, M3, K)

    Hd = w1.shape[1]
    NP = w2.shape[1]
    cost = pl.CostEstimate(
        flops=2 * (4 * M3 * K * C3 + Bp * G * C3 * Hd + Bp * Hd * NP),
        transcendentals=Bp * NP,
        bytes_accessed=(xq.size + w3.size + w1.size + w2.size) * 2 + Bp * NP * 4)

    out = pl.pallas_call(
        _conv3_head_kernel,
        out_shape=jax.ShapeDtypeStruct((Bp, NP), jnp.float32),
        in_specs=[
            pl.BlockSpec((4, M3, K), lambda: (0, 0, 0)),
            pl.BlockSpec((K, C3), lambda: (0, 0)),
            pl.BlockSpec((1, C3), lambda: (0, 0)),
            pl.BlockSpec((G * C3, Hd), lambda: (0, 0)),
            pl.BlockSpec((1, Hd), lambda: (0, 0)),
            pl.BlockSpec((Hd, NP), lambda: (0, 0)),
            pl.BlockSpec((1, NP), lambda: (0, 0)),
        ],
        out_specs=pl.BlockSpec((Bp, NP), lambda: (0, 0)),
        cost_estimate=cost,
    )(xq, w3, b3, w1, b1, w2, b2)
    return out[:B, :n_out]


# -----------------------------------------------------------------------------
# Forward pass and one-time weight packing
# -----------------------------------------------------------------------------
def net_forward(x, p):
    """Pallas implementation of Net.forward. x: (B, 1, 50, 50) f32 -> (B, 2) f32 probs."""
    x = jnp.transpose(x, (0, 2, 3, 1)).astype(jnp.bfloat16)     # NCHW -> NHWC once
    x = conv_relu_pool(x, p["w1m"], p["b1v"])                   # (B, 23, 23, 32)
    x = conv_relu_pool(x, p["w2m"], p["b2v"])                   # (B, 9, 9, 64)
    return conv3_head(x, p["w3m"], p["b3v"],                    # (B, 2) probabilities
                      p["wf1"], p["bf1"], p["wf2"], p["bf2"], n_out=N_CLASSES)


def prepare_params(params):
    """One-time (outside jit) packing: flatten/permute/pad/cast all weights."""
    def conv_pack(w, b):
        cout, cin, kh, kw = w.shape
        wm = jnp.asarray(w, jnp.float32).transpose(2, 3, 1, 0).reshape(kh * kw * cin, cout)
        return wm.astype(jnp.bfloat16), jnp.asarray(b, jnp.float32).reshape(1, cout)

    w1m, b1v = conv_pack(params["w_conv1"], params["b_conv1"])
    w2m, b2v = conv_pack(params["w_conv2"], params["b_conv2"])
    w3m, b3v = conv_pack(params["w_conv3"], params["b_conv3"])

    # fc1: torch flatten order is (C=128, H=2, W=2); ours is (H, W, C) -> permute rows once.
    # (128, 2, 2) is fixed by the 50x50 input baked into Net (self._to_linear = 512).
    wf1 = jnp.asarray(params["w_fc1"], jnp.float32).T            # (in_chw, out)
    wf1 = wf1.reshape(128, 2, 2, 512).transpose(1, 2, 0, 3).reshape(512, 512)
    wf1 = wf1.astype(jnp.bfloat16)
    bf1 = jnp.asarray(params["b_fc1"], jnp.float32).reshape(1, -1)

    n_cls = params["w_fc2"].shape[0]
    NP = 128                                                     # lane-dense logits
    wf2 = jnp.zeros((512, NP), jnp.float32).at[:, :n_cls].set(
        jnp.asarray(params["w_fc2"], jnp.float32).T).astype(jnp.bfloat16)
    bf2 = jnp.full((1, NP), -1e30, jnp.float32).at[0, :n_cls].set(
        jnp.asarray(params["b_fc2"], jnp.float32))

    return {"w1m": w1m, "b1v": b1v, "w2m": w2m, "b2v": b2v, "w3m": w3m, "b3v": b3v,
            "wf1": wf1, "bf1": bf1, "wf2": wf2, "bf2": bf2}


def init_params(key):
    """Random params in the original PyTorch layouts."""
    ks = jax.random.split(key, 10)
    scale = 0.1
    return {
        "w_conv1": jax.random.normal(ks[0], (32, 1, 5, 5), jnp.float32) * scale,
        "b_conv1": jax.random.normal(ks[1], (32,), jnp.float32) * 0.01,
        "w_conv2": jax.random.normal(ks[2], (64, 32, 5, 5), jnp.float32) * scale,
        "b_conv2": jax.random.normal(ks[3], (64,), jnp.float32) * 0.01,
        "w_conv3": jax.random.normal(ks[4], (128, 64, 5, 5), jnp.float32) * scale,
        "b_conv3": jax.random.normal(ks[5], (128,), jnp.float32) * 0.01,
        # PyTorch nn.Linear stores weight as (out_features, in_features)
        "w_fc1": jax.random.normal(ks[6], (512, 512), jnp.float32) * 0.02,
        "b_fc1": jax.random.normal(ks[7], (512,), jnp.float32) * 0.01,
        "w_fc2": jax.random.normal(ks[8], (2, 512), jnp.float32) * 0.02,
        "b_fc2": jax.random.normal(ks[9], (2,), jnp.float32) * 0.01,
    }


if __name__ == "__main__":
    key = jax.random.PRNGKey(0)
    pkey, xkey = jax.random.split(key)
    params = init_params(pkey)
    packed = prepare_params(params)          # one-time packing, outside the jitted forward

    # Net bakes in 50x50 input (self._to_linear = 128*2*2 = 512); batch = 2.
    x = jax.random.normal(xkey, (2, 1, 50, 50), jnp.float32)

    fwd = jax.jit(net_forward)
    out = jax.block_until_ready(fwd(x, packed))

    assert out.shape == (2, N_CLASSES), out.shape
    assert bool(jnp.all(jnp.isfinite(out))), out
    # exact softmax: rows must sum to ~1
    assert bool(jnp.allclose(jnp.sum(out, axis=1), 1.0, atol=1e-3)), out
    print("KERNEL_OK")
</pallas_src>

<mosaic_0001>
module attributes {stable_mosaic.version = 11 : i64} {
  func.func @_conv_relu_pool_kernel(%arg0: i32, %arg1: memref<4x384x25xbf16, #tpu.memory_space<vmem>>, %arg2: memref<25x32xbf16, #tpu.memory_space<vmem>>, %arg3: memref<1x32xf32, #tpu.memory_space<vmem>>, %arg4: memref<384x32xbf16, #tpu.memory_space<vmem>>) attributes {dimension_semantics = [#tpu.dimension_semantics<parallel>], iteration_bounds = array<i64: 3>, scalar_prefetch = 0 : i64, scratch_operands = 0 : i64, tpu.core_type = #tpu.core_type<tc>, window_params = [{transform_indices = @transform_0, window_bounds = array<i64: 4, 384, 25>}, {pipeline_mode = #tpu.pipeline_mode<synchronous>, transform_indices = @transform_1, window_bounds = array<i64: 25, 32>}, {pipeline_mode = #tpu.pipeline_mode<synchronous>, transform_indices = @transform_2, window_bounds = array<i64: 1, 32>}, {transform_indices = @transform_3, window_bounds = array<i64: 384, 32>}]} {
    %c0 = arith.constant 0 : index
    %c0_0 = arith.constant 0 : index
    %c0_1 = arith.constant 0 : index
    %0 = vector.load %arg1[%c0, %c0_0, %c0_1] : memref<4x384x25xbf16, #tpu.memory_space<vmem>>, vector<4x384x25xbf16>
    %1 = vector.shape_cast %0 : vector<4x384x25xbf16> to vector<1536x25xbf16>
    %c0_2 = arith.constant 0 : index
    %c0_3 = arith.constant 0 : index
    %2 = vector.load %arg2[%c0_2, %c0_3] : memref<25x32xbf16, #tpu.memory_space<vmem>>, vector<25x32xbf16>
    %cst = arith.constant dense<0.000000e+00> : vector<1536x32xf32>
    %3 = tpu.matmul %1, %2, %cst {dimension_numbers = #tpu.dot_dimension_numbers<[1], [0], [0], [1], [0, 0, 1, 1], [], []>} : vector<1536x25xbf16>, vector<25x32xbf16>, vector<1536x32xf32> -> vector<1536x32xf32>
    %4 = vector.shape_cast %3 : vector<1536x32xf32> to vector<4x384x32xf32>
    %cst_4 = arith.constant dense<0xFF800000> : vector<384x32xf32>
    %5 = vector.multi_reduction <maximumf>, %4, %cst_4 [0] : vector<4x384x32xf32> to vector<384x32xf32>
    %c0_5 = arith.constant 0 : index
    %c0_6 = arith.constant 0 : index
    %6 = vector.load %arg3[%c0_5, %c0_6] : memref<1x32xf32, #tpu.memory_space<vmem>>, vector<1x32xf32>
    %7 = vector.broadcast %6 : vector<1x32xf32> to vector<384x32xf32>
    %8 = arith.addf %5, %7 : vector<384x32xf32>
    %cst_7 = arith.constant 0.000000e+00 : f32
    %9 = vector.broadcast %cst_7 : f32 to vector<384x32xf32>
    %10 = arith.maximumf %8, %9 : vector<384x32xf32>
    %11 = arith.truncf %10 : vector<384x32xf32> to vector<384x32xbf16>
    %c0_8 = arith.constant 0 : index
    %c0_9 = arith.constant 0 : index
    %12 = vector.load %arg4[%c0_8, %c0_9] : memref<384x32xbf16, #tpu.memory_space<vmem>>, vector<384x32xbf16>
    tpu.vector_store %arg4[%c0_8, %c0_9], %11 {strides = array<i32>} : memref<384x32xbf16, #tpu.memory_space<vmem>>, vector<384x32xbf16>,
    return
  }
  func.func @transform_0(%arg0: i32) -> (i32, i32, i32) {
    %c0_i32 = arith.constant 0 : i32
    %c0_i32_0 = arith.constant 0 : i32
    %c0_i32_1 = arith.constant 0 : i32
    return %c0_i32, %arg0, %c0_i32_0 : i32, i32, i32
  }
  func.func @transform_1(%arg0: i32) -> (i32, i32) {
    %c0_i32 = arith.constant 0 : i32
    %c0_i32_0 = arith.constant 0 : i32
    %c0_i32_1 = arith.constant 0 : i32
    return %c0_i32, %c0_i32_0 : i32, i32
  }
  func.func @transform_2(%arg0: i32) -> (i32, i32) {
    %c0_i32 = arith.constant 0 : i32
    %c0_i32_0 = arith.constant 0 : i32
    %c0_i32_1 = arith.constant 0 : i32
    return %c0_i32, %c0_i32_0 : i32, i32
  }
  func.func @transform_3(%arg0: i32) -> (i32, i32) {
    %c0_i32 = arith.constant 0 : i32
    %c0_i32_0 = arith.constant 0 : i32
    return %arg0, %c0_i32 : i32, i32
  }
}

module attributes {stable_mosaic.version = 11 : i64} {
  func.func @_conv_relu_pool_kernel(%arg0: i32, %arg1: memref<4x96x800xbf16, #tpu.memory_space<vmem>>, %arg2: memref<800x64xbf16, #tpu.memory_space<vmem>>, %arg3: memref<1x64xf32, #tpu.memory_space<vmem>>, %arg4: memref<96x64xbf16, #tpu.memory_space<vmem>>) attributes {dimension_semantics = [#tpu.dimension_semantics<parallel>], iteration_bounds = array<i64: 2>, scalar_prefetch = 0 : i64, scratch_operands = 0 : i64, tpu.core_type = #tpu.core_type<tc>, window_params = [{transform_indices = @transform_0, window_bounds = array<i64: 4, 96, 800>}, {pipeline_mode = #tpu.pipeline_mode<synchronous>, transform_indices = @transform_1, window_bounds = array<i64: 800, 64>}, {pipeline_mode = #tpu.pipeline_mode<synchronous>, transform_indices = @transform_2, window_bounds = array<i64: 1, 64>}, {transform_indices = @transform_3, window_bounds = array<i64: 96, 64>}]} {
    %c0 = arith.constant 0 : index
    %c0_0 = arith.constant 0 : index
    %c0_1 = arith.constant 0 : index
    %0 = vector.load %arg1[%c0, %c0_0, %c0_1] : memref<4x96x800xbf16, #tpu.memory_space<vmem>>, vector<4x96x800xbf16>
    %1 = vector.shape_cast %0 : vector<4x96x800xbf16> to vector<384x800xbf16>
    %c0_2 = arith.constant 0 : index
    %c0_3 = arith.constant 0 : index
    %2 = vector.load %arg2[%c0_2, %c0_3] : memref<800x64xbf16, #tpu.memory_space<vmem>>, vector<800x64xbf16>
    %cst = arith.constant dense<0.000000e+00> : vector<384x64xf32>
    %3 = tpu.matmul %1, %2, %cst {dimension_numbers = #tpu.dot_dimension_numbers<[1], [0], [0], [1], [0, 0, 1, 1], [], []>} : vector<384x800xbf16>, vector<800x64xbf16>, vector<384x64xf32> -> vector<384x64xf32>
    %4 = vector.shape_cast %3 : vector<384x64xf32> to vector<4x96x64xf32>
    %cst_4 = arith.constant dense<0xFF800000> : vector<96x64xf32>
    %5 = vector.multi_reduction <maximumf>, %4, %cst_4 [0] : vector<4x96x64xf32> to vector<96x64xf32>
    %c0_5 = arith.constant 0 : index
    %c0_6 = arith.constant 0 : index
    %6 = vector.load %arg3[%c0_5, %c0_6] : memref<1x64xf32, #tpu.memory_space<vmem>>, vector<1x64xf32>
    %7 = vector.broadcast %6 : vector<1x64xf32> to vector<96x64xf32>
    %8 = arith.addf %5, %7 : vector<96x64xf32>
    %cst_7 = arith.constant 0.000000e+00 : f32
    %9 = vector.broadcast %cst_7 : f32 to vector<96x64xf32>
    %10 = arith.maximumf %8, %9 : vector<96x64xf32>
    %11 = arith.truncf %10 : vector<96x64xf32> to vector<96x64xbf16>
    %c0_8 = arith.constant 0 : index
    %c0_9 = arith.constant 0 : index
    %12 = vector.load %arg4[%c0_8, %c0_9] : memref<96x64xbf16, #tpu.memory_space<vmem>>, vector<96x64xbf16>
    tpu.vector_store %arg4[%c0_8, %c0_9], %11 {strides = array<i32>} : memref<96x64xbf16, #tpu.memory_space<vmem>>, vector<96x64xbf16>,
    return
  }
  func.func @transform_0(%arg0: i32) -> (i32, i32, i32) {
    %c0_i32 = arith.constant 0 : i32
    %c0_i32_0 = arith.constant 0 : i32
    %c0_i32_1 = arith.constant 0 : i32
    return %c0_i32, %arg0, %c0_i32_0 : i32, i32, i32
  }
  func.func @transform_1(%arg0: i32) -> (i32, i32) {
    %c0_i32 = arith.constant 0 : i32
    %c0_i32_0 = arith.constant 0 : i32
    %c0_i32_1 = arith.constant 0 : i32
    return %c0_i32, %c0_i32_0 : i32, i32
  }
  func.func @transform_2(%arg0: i32) -> (i32, i32) {
    %c0_i32 = arith.constant 0 : i32
    %c0_i32_0 = arith.constant 0 : i32
    %c0_i32_1 = arith.constant 0 : i32
    return %c0_i32, %c0_i32_0 : i32, i32
  }
  func.func @transform_3(%arg0: i32) -> (i32, i32) {
    %c0_i32 = arith.constant 0 : i32
    %c0_i32_0 = arith.constant 0 : i32
    return %arg0, %c0_i32 : i32, i32
  }
}

module attributes {stable_mosaic.version = 11 : i64} {
  func.func @_conv3_head_kernel(%arg0: memref<4x32x1600xbf16, #tpu.memory_space<vmem>>, %arg1: memref<1600x128xbf16, #tpu.memory_space<vmem>>, %arg2: memref<1x128xf32, #tpu.memory_space<vmem>>, %arg3: memref<512x512xbf16, #tpu.memory_space<vmem>>, %arg4: memref<1x512xf32, #tpu.memory_space<vmem>>, %arg5: memref<512x128xbf16, #tpu.memory_space<vmem>>, %arg6: memref<1x128xf32, #tpu.memory_space<vmem>>, %arg7: memref<8x128xf32, #tpu.memory_space<vmem>>) attributes {dimension_semantics = [], scalar_prefetch = 0 : i64, scratch_operands = 0 : i64, tpu.core_type = #tpu.core_type<tc>} {
    %c0 = arith.constant 0 : index
    %c0_0 = arith.constant 0 : index
    %c0_1 = arith.constant 0 : index
    %0 = vector.load %arg0[%c0, %c0_0, %c0_1] : memref<4x32x1600xbf16, #tpu.memory_space<vmem>>, vector<4x32x1600xbf16>
    %1 = vector.shape_cast %0 : vector<4x32x1600xbf16> to vector<128x1600xbf16>
    %c0_2 = arith.constant 0 : index
    %c0_3 = arith.constant 0 : index
    %2 = vector.load %arg1[%c0_2, %c0_3] : memref<1600x128xbf16, #tpu.memory_space<vmem>>, vector<1600x128xbf16>
    %cst = arith.constant dense<0.000000e+00> : vector<128x128xf32>
    %3 = tpu.matmul %1, %2, %cst {dimension_numbers = #tpu.dot_dimension_numbers<[1], [0], [0], [1], [0, 0, 1, 1], [], []>} : vector<128x1600xbf16>, vector<1600x128xbf16>, vector<128x128xf32> -> vector<128x128xf32>
    %4 = vector.shape_cast %3 : vector<128x128xf32> to vector<4x32x128xf32>
    %cst_4 = arith.constant dense<0xFF800000> : vector<32x128xf32>
    %5 = vector.multi_reduction <maximumf>, %4, %cst_4 [0] : vector<4x32x128xf32> to vector<32x128xf32>
    %c0_5 = arith.constant 0 : index
    %c0_6 = arith.constant 0 : index
    %6 = vector.load %arg2[%c0_5, %c0_6] : memref<1x128xf32, #tpu.memory_space<vmem>>, vector<1x128xf32>
    %7 = vector.broadcast %6 : vector<1x128xf32> to vector<32x128xf32>
    %8 = arith.addf %5, %7 : vector<32x128xf32>
    %cst_7 = arith.constant 0.000000e+00 : f32
    %9 = vector.broadcast %cst_7 : f32 to vector<32x128xf32>
    %10 = arith.maximumf %8, %9 : vector<32x128xf32>
    %cst_8 = arith.constant 0.000000e+00 : f32
    %11 = vector.broadcast %cst_8 : f32 to vector<8x512xf32>
    %12 = vector.extract_strided_slice %10 {offsets = [0, 0], sizes = [8, 128], strides = [1, 1]} : vector<32x128xf32> to vector<8x128xf32>
    %13 = arith.truncf %12 : vector<8x128xf32> to vector<8x128xbf16>
    %c0_9 = arith.constant 0 : index
    %c0_10 = arith.constant 0 : index
    %14 = vector.load %arg3[%c0_9, %c0_10] : memref<512x512xbf16, #tpu.memory_space<vmem>>, vector<128x512xbf16>
    %cst_11 = arith.constant dense<0.000000e+00> : vector<8x512xf32>
    %15 = tpu.matmul %13, %14, %cst_11 {dimension_numbers = #tpu.dot_dimension_numbers<[1], [0], [0], [1], [0, 0, 1, 1], [], []>} : vector<8x128xbf16>, vector<128x512xbf16>, vector<8x512xf32> -> vector<8x512xf32>
    %16 = arith.addf %11, %15 : vector<8x512xf32>
    %17 = vector.extract_strided_slice %10 {offsets = [8, 0], sizes = [8, 128], strides = [1, 1]} : vector<32x128xf32> to vector<8x128xf32>
    %18 = arith.truncf %17 : vector<8x128xf32> to vector<8x128xbf16>
    %c128 = arith.constant 128 : index
    %c0_12 = arith.constant 0 : index
    %19 = vector.load %arg3[%c128, %c0_12] : memref<512x512xbf16, #tpu.memory_space<vmem>>, vector<128x512xbf16>
    %cst_13 = arith.constant dense<0.000000e+00> : vector<8x512xf32>
    %20 = tpu.matmul %18, %19, %cst_13 {dimension_numbers = #tpu.dot_dimension_numbers<[1], [0], [0], [1], [0, 0, 1, 1], [], []>} : vector<8x128xbf16>, vector<128x512xbf16>, vector<8x512xf32> -> vector<8x512xf32>
    %21 = arith.addf %16, %20 : vector<8x512xf32>
    %22 = vector.extract_strided_slice %10 {offsets = [16, 0], sizes = [8, 128], strides = [1, 1]} : vector<32x128xf32> to vector<8x128xf32>
    %23 = arith.truncf %22 : vector<8x128xf32> to vector<8x128xbf16>
    %c256 = arith.constant 256 : index
    %c0_14 = arith.constant 0 : index
    %24 = vector.load %arg3[%c256, %c0_14] : memref<512x512xbf16, #tpu.memory_space<vmem>>, vector<128x512xbf16>
    %cst_15 = arith.constant dense<0.000000e+00> : vector<8x512xf32>
    %25 = tpu.matmul %23, %24, %cst_15 {dimension_numbers = #tpu.dot_dimension_numbers<[1], [0], [0], [1], [0, 0, 1, 1], [], []>} : vector<8x128xbf16>, vector<128x512xbf16>, vector<8x512xf32> -> vector<8x512xf32>
    %26 = arith.addf %21, %25 : vector<8x512xf32>
    %27 = vector.extract_strided_slice %10 {offsets = [24, 0], sizes = [8, 128], strides = [1, 1]} : vector<32x128xf32> to vector<8x128xf32>
    %28 = arith.truncf %27 : vector<8x128xf32> to vector<8x128xbf16>
    %c384 = arith.constant 384 : index
    %c0_16 = arith.constant 0 : index
    %29 = vector.load %arg3[%c384, %c0_16] : memref<512x512xbf16, #tpu.memory_space<vmem>>, vector<128x512xbf16>
    %cst_17 = arith.constant dense<0.000000e+00> : vector<8x512xf32>
    %30 = tpu.matmul %28, %29, %cst_17 {dimension_numbers = #tpu.dot_dimension_numbers<[1], [0], [0], [1], [0, 0, 1, 1], [], []>} : vector<8x128xbf16>, vector<128x512xbf16>, vector<8x512xf32> -> vector<8x512xf32>
    %31 = arith.addf %26, %30 : vector<8x512xf32>
    %c0_18 = arith.constant 0 : index
    %c0_19 = arith.constant 0 : index
    %32 = vector.load %arg4[%c0_18, %c0_19] : memref<1x512xf32, #tpu.memory_space<vmem>>, vector<1x512xf32>
    %33 = vector.broadcast %32 : vector<1x512xf32> to vector<8x512xf32>
    %34 = arith.addf %31, %33 : vector<8x512xf32>
    %cst_20 = arith.constant 0.000000e+00 : f32
    %35 = vector.broadcast %cst_20 : f32 to vector<8x512xf32>
    %36 = arith.maximumf %34, %35 : vector<8x512xf32>
    %37 = arith.truncf %36 : vector<8x512xf32> to vector<8x512xbf16>
    %c0_21 = arith.constant 0 : index
    %c0_22 = arith.constant 0 : index
    %38 = vector.load %arg5[%c0_21, %c0_22] : memref<512x128xbf16, #tpu.memory_space<vmem>>, vector<512x128xbf16>
    %cst_23 = arith.constant dense<0.000000e+00> : vector<8x128xf32>
    %39 = tpu.matmul %37, %38, %cst_23 {dimension_numbers = #tpu.dot_dimension_numbers<[1], [0], [0], [1], [0, 0, 1, 1], [], []>} : vector<8x512xbf16>, vector<512x128xbf16>, vector<8x128xf32> -> vector<8x128xf32>
    %c0_24 = arith.constant 0 : index
    %c0_25 = arith.constant 0 : index
    %40 = vector.load %arg6[%c0_24, %c0_25] : memref<1x128xf32, #tpu.memory_space<vmem>>, vector<1x128xf32>
    %41 = vector.broadcast %40 : vector<1x128xf32> to vector<8x128xf32>
    %42 = arith.addf %39, %41 : vector<8x128xf32>
    %cst_26 = arith.constant dense<0xFF800000> : vector<8xf32>
    %43 = vector.multi_reduction <maximumf>, %42, %cst_26 [1] : vector<8x128xf32> to vector<8xf32>
    %44 = vector.shape_cast %43 : vector<8xf32> to vector<8x1xf32>
    %45 = vector.broadcast %44 : vector<8x1xf32> to vector<8x128xf32>
    %46 = arith.subf %42, %45 : vector<8x128xf32>
    %47 = math.exp %46 : vector<8x128xf32>
    %cst_27 = arith.constant dense<0.000000e+00> : vector<8xf32>
    %48 = vector.multi_reduction <add>, %47, %cst_27 [1] : vector<8x128xf32> to vector<8xf32>
    %49 = vector.shape_cast %48 : vector<8xf32> to vector<8x1xf32>
    %50 = vector.broadcast %49 : vector<8x1xf32> to vector<8x128xf32>
    %51 = arith.divf %47, %50 : vector<8x128xf32>
    %c0_28 = arith.constant 0 : index
    %c0_29 = arith.constant 0 : index
    %52 = vector.load %arg7[%c0_28, %c0_29] : memref<8x128xf32, #tpu.memory_space<vmem>>, vector<8x128xf32>
    tpu.vector_store %arg7[%c0_28, %c0_29], %51 {strides = array<i32>} : memref<8x128xf32, #tpu.memory_space<vmem>>, vector<8x128xf32>,
    return
  }
}

</mosaic_0001>

<bundles_post_ra>
// kernel: net_forward.3
= control target key start
LH: loop header
LB: loop body
LE: loop exit
PB: predicated region body
PF: predicated region fallthrough
CT: control target
= control target key end

     0   :  { %s3726_s12 = smov 0   ;;  %s3728_s13 = smov 0   ;;  %s4525_s0 = inlined_call_operand.vmem [shape: bf16[4,1152,25], index: 0, kind: input, shape index: {}]   ;;  %s4526_s1 = inlined_call_operand.vmem [shape: bf16[25,32], index: 1, kind: input, shape index: {}]   ;;  %s4527_s2 = inlined_call_operand.vmem [shape: f32[1,32], index: 2, kind: input, shape index: {}]   ;;  %s4528_s3 = inlined_call_operand.vmem [shape: bf16[1152,32], index: 3, kind: output, shape index: {}]  }
   0x1   :  { %s3730_s14 = smov 0  }
   0x2 LB: > { %s3050_s15 = sadd.s32 4294967295, %s3703_s14   ;;  %s3743_s16 = sadd.s32 1, %s3703_s14   ;;  %s3703_s14 = sphi %s3730_s14, %s4531_s14   ;;  %s3699_s13 = sphi %s3728_s13, %s4530_s13   ;;  %s3695_s12 = sphi %s3726_s12, %s4529_s12  }
   0x3   : > { %s17_s17 = ssub.s32 %s3703_s14, %s3743_s16  ;;  %s20_s18 = sadd.s32 1, %s3699_s13 }
   0x4   : > { %p18_p0 = scmp.eq.s32.totalorder %s17_s17, 0  ;;  %p27_p1 = scmp.ne.s32.totalorder %s3699_s13, %s3695_s12 }
   0x5   : > { %p28_p2 = scmp.eq.s32.totalorder %s3703_s14, 0  ;;  %p3053_p4 = scmp.ge.s32.totalorder %s3703_s14, 3 }
   0x6   : > { %s3752_s19 = scalar_select %p18_p0, %s3699_s13, %s20_s18  }
   0x7   : > { %p29_p3 = por %p28_p2, %p27_p1  ;;  %127 = sbr.rel (%p3053_p4) target bundleno = 113 (0x71), region = 24 }
   0xc   : > { %130 = sbr.rel (!%p29_p3) target bundleno = 113 (0x71), region = 28  ;;  %s132_s20 = sand.u32 (%p29_p3), 1, %s3699_s13  }
   0xd   : > { %s3547_s21 = smul.u32 (%p29_p3), 192, %s3703_s14 }
   0xe   : > { %s3652_s22 = smul.u32 (%p29_p3), 768, %s132_s20 }
   0xf   : > { %s3760_s25 = scalar_lea.vmem (%p29_p3), %s4525_s0, %s3547_s21 }
  0x10   : > { %v154_v0 = vld [vmem:[%s3760_s25] sm:$0xff] (%p29_p3)   ;;  %v158_v1 = vld [vmem:[%s3760_s25 + $0x8] sm:$0xff] (%p29_p3)   ;;  %v162_v2 = vld [vmem:[%s3760_s25 + $0x10] sm:$0xff] (%p29_p3)   ;;  %s3765_s26 = scalar_lea.vmem (%p29_p3), [#allocation2], %s3652_s22 }
  0x11   : > { %155 = vst [vmem:[%s3765_s26] sm:$0xff] %v154_v0   ;;  %v166_v3 = vld [vmem:[%s3760_s25 + $0x18] sm:$0xff]   ;;  %v170_v4 = vld [vmem:[%s3760_s25 + $0x20] sm:$0xff]   ;;  %v174_v5 = vld [vmem:[%s3760_s25 + $0x28] sm:$0xff]  }
  0x12   : > { %159 = vst [vmem:[%s3765_s26 + $0x8] sm:$0xff] %v158_v1   ;;  %v178_v6 = vld [vmem:[%s3760_s25 + $0x30] sm:$0xff]   ;;  %v182_v7 = vld [vmem:[%s3760_s25 + $0x38] sm:$0xff]   ;;  %v186_v8 = vld [vmem:[%s3760_s25 + $0x40] sm:$0xff]  }
  0x13   : > { %163 = vst [vmem:[%s3765_s26 + $0x10] sm:$0xff] %v162_v2   ;;  %v190_v9 = vld [vmem:[%s3760_s25 + $0x48] sm:$0xff]   ;;  %v194_v10 = vld [vmem:[%s3760_s25 + $0x50] sm:$0xff]   ;;  %v198_v11 = vld [vmem:[%s3760_s25 + $0x58] sm:$0xff]  }
  0x14   : > { %167 = vst [vmem:[%s3765_s26 + $0x18] sm:$0xff] %v166_v3   ;;  %v202_v12 = vld [vmem:[%s3760_s25 + $0x60] sm:$0xff]   ;;  %v206_v13 = vld [vmem:[%s3760_s25 + $0x68] sm:$0xff]   ;;  %v210_v14 = vld [vmem:[%s3760_s25 + $0x70] sm:$0xff]  }
  0x15   : > { %171 = vst [vmem:[%s3765_s26 + $0x20] sm:$0xff] %v170_v4   ;;  %v214_v15 = vld [vmem:[%s3760_s25 + $0x78] sm:$0xff]   ;;  %v218_v16 = vld [vmem:[%s3760_s25 + $0x80] sm:$0xff]   ;;  %v222_v17 = vld [vmem:[%s3760_s25 + $0x88] sm:$0xff]  }
  0x16   : > { %175 = vst [vmem:[%s3765_s26 + $0x28] sm:$0xff] %v174_v5   ;;  %v226_v18 = vld [vmem:[%s3760_s25 + $0x90] sm:$0xff]   ;;  %v230_v19 = vld [vmem:[%s3760_s25 + $0x98] sm:$0xff]   ;;  %v234_v20 = vld [vmem:[%s3760_s25 + $0xa0] sm:$0xff]  }
  0x17   : > { %179 = vst [vmem:[%s3765_s26 + $0x30] sm:$0xff] %v178_v6   ;;  %v238_v21 = vld [vmem:[%s3760_s25 + $0xa8] sm:$0xff]   ;;  %v242_v22 = vld [vmem:[%s3760_s25 + $0xb0] sm:$0xff]   ;;  %v246_v23 = vld [vmem:[%s3760_s25 + $0xb8] sm:$0xff]  }
  0x18   : > { %183 = vst [vmem:[%s3765_s26 + $0x38] sm:$0xff] %v182_v7   ;;  %v250_v24 = vld [vmem:[%s3760_s25 + $0x240] sm:$0xff]   ;;  %v254_v25 = vld [vmem:[%s3760_s25 + $0x248] sm:$0xff]   ;;  %v258_v26 = vld [vmem:[%s3760_s25 + $0x250] sm:$0xff]  }
  0x19   : > { %187 = vst [vmem:[%s3765_s26 + $0x40] sm:$0xff] %v186_v8   ;;  %v262_v27 = vld [vmem:[%s3760_s25 + $0x258] sm:$0xff]   ;;  %v266_v28 = vld [vmem:[%s3760_s25 + $0x260] sm:$0xff]   ;;  %v270_v29 = vld [vmem:[%s3760_s25 + $0x268] sm:$0xff]  }
  0x1a   : > { %191 = vst [vmem:[%s3765_s26 + $0x48] sm:$0xff] %v190_v9   ;;  %v274_v30 = vld [vmem:[%s3760_s25 + $0x270] sm:$0xff]   ;;  %v278_v31 = vld [vmem:[%s3760_s25 + $0x278] sm:$0xff]   ;;  %v282_v32 = vld [vmem:[%s3760_s25 + $0x280] sm:$0xff]  }
  0x1b   : > { %195 = vst [vmem:[%s3765_s26 + $0x50] sm:$0xff] %v194_v10   ;;  %v286_v33 = vld [vmem:[%s3760_s25 + $0x288] sm:$0xff]   ;;  %v290_v34 = vld [vmem:[%s3760_s25 + $0x290] sm:$0xff]   ;;  %v294_v35 = vld [vmem:[%s3760_s25 + $0x298] sm:$0xff]  }
  0x1c   : > { %199 = vst [vmem:[%s3765_s26 + $0x58] sm:$0xff] %v198_v11   ;;  %v298_v36 = vld [vmem:[%s3760_s25 + $0x2a0] sm:$0xff]   ;;  %v302_v37 = vld [vmem:[%s3760_s25 + $0x2a8] sm:$0xff]   ;;  %v306_v38 = vld [vmem:[%s3760_s25 + $0x2b0] sm:$0xff]  }
  0x1d   : > { %203 = vst [vmem:[%s3765_s26 + $0x60] sm:$0xff] %v202_v12   ;;  %v310_v39 = vld [vmem:[%s3760_s25 + $0x2b8] sm:$0xff]   ;;  %v314_v40 = vld [vmem:[%s3760_s25 + $0x2c0] sm:$0xff]   ;;  %v318_v41 = vld [vmem:[%s3760_s25 + $0x2c8] sm:$0xff]  }
  0x1e   : > { %207 = vst [vmem:[%s3765_s26 + $0x68] sm:$0xff] %v206_v13   ;;  %v322_v42 = vld [vmem:[%s3760_s25 + $0x2d0] sm:$0xff]   ;;  %v326_v43 = vld [vmem:[%s3760_s25 + $0x2d8] sm:$0xff]   ;;  %v330_v44 = vld [vmem:[%s3760_s25 + $0x2e0] sm:$0xff]  }
  0x1f   : > { %211 = vst [vmem:[%s3765_s26 + $0x70] sm:$0xff] %v210_v14   ;;  %v334_v45 = vld [vmem:[%s3760_s25 + $0x2e8] sm:$0xff]   ;;  %v338_v46 = vld [vmem:[%s3760_s25 + $0x2f0] sm:$0xff]   ;;  %v342_v47 = vld [vmem:[%s3760_s25 + $0x2f8] sm:$0xff]  }
  0x20   : > { %215 = vst [vmem:[%s3765_s26 + $0x78] sm:$0xff] %v214_v15   ;;  %v346_v48 = vld [vmem:[%s3760_s25 + $0x480] sm:$0xff]   ;;  %v350_v49 = vld [vmem:[%s3760_s25 + $0x488] sm:$0xff]   ;;  %v354_v50 = vld [vmem:[%s3760_s25 + $0x490] sm:$0xff]  }
  0x21   : > { %219 = vst [vmem:[%s3765_s26 + $0x80] sm:$0xff] %v218_v16   ;;  %v358_v51 = vld [vmem:[%s3760_s25 + $0x498] sm:$0xff]   ;;  %v362_v52 = vld [vmem:[%s3760_s25 + $0x4a0] sm:$0xff]   ;;  %v366_v53 = vld [vmem:[%s3760_s25 + $0x4a8] sm:$0xff]  }
  0x22   : > { %223 = vst [vmem:[%s3765_s26 + $0x88] sm:$0xff] %v222_v17   ;;  %v370_v54 = vld [vmem:[%s3760_s25 + $0x4b0] sm:$0xff]   ;;  %v374_v55 = vld [vmem:[%s3760_s25 + $0x4b8] sm:$0xff]   ;;  %v378_v56 = vld [vmem:[%s3760_s25 + $0x4c0] sm:$0xff]  }
  0x23   : > { %227 = vst [vmem:[%s3765_s26 + $0x90] sm:$0xff] %v226_v18   ;;  %v382_v57 = vld [vmem:[%s3760_s25 + $0x4c8] sm:$0xff]   ;;  %v386_v58 = vld [vmem:[%s3760_s25 + $0x4d0] sm:$0xff]   ;;  %v390_v59 = vld [vmem:[%s3760_s25 + $0x4d8] sm:$0xff]  }
  0x24   : > { %231 = vst [vmem:[%s3765_s26 + $0x98] sm:$0xff] %v230_v19   ;;  %v394_v60 = vld [vmem:[%s3760_s25 + $0x4e0] sm:$0xff]   ;;  %v398_v61 = vld [vmem:[%s3760_s25 + $0x4e8] sm:$0xff]   ;;  %v402_v62 = vld [vmem:[%s3760_s25 + $0x4f0] sm:$0xff]  }
  0x25   : > { %235 = vst [vmem:[%s3765_s26 + $0xa0] sm:$0xff] %v234_v20   ;;  %v406_v63 = vld [vmem:[%s3760_s25 + $0x4f8] sm:$0xff]   ;;  %v410_v0 = vld [vmem:[%s3760_s25 + $0x500] sm:$0xff]   ;;  %v414_v1 = vld [vmem:[%s3760_s25 + $0x508] sm:$0xff]  }
  0x26   : > { %239 = vst [vmem:[%s3765_s26 + $0xa8] sm:$0xff] %v238_v21   ;;  %v418_v2 = vld [vmem:[%s3760_s25 + $0x510] sm:$0xff]   ;;  %v422_v3 = vld [vmem:[%s3760_s25 + $0x518] sm:$0xff]   ;;  %v426_v4 = vld [vmem:[%s3760_s25 + $0x520] sm:$0xff]  }
  0x27   : > { %243 = vst [vmem:[%s3765_s26 + $0xb0] sm:$0xff] %v242_v22   ;;  %v430_v5 = vld [vmem:[%s3760_s25 + $0x528] sm:$0xff]   ;;  %v434_v6 = vld [vmem:[%s3760_s25 + $0x530] sm:$0xff]   ;;  %v438_v7 = vld [vmem:[%s3760_s25 + $0x538] sm:$0xff]  }
  0x28   : > { %247 = vst [vmem:[%s3765_s26 + $0xb8] sm:$0xff] %v246_v23   ;;  %v442_v8 = vld [vmem:[%s3760_s25 + $0x6c0] sm:$0xff]   ;;  %v446_v9 = vld [vmem:[%s3760_s25 + $0x6c8] sm:$0xff]   ;;  %v450_v10 = vld [vmem:[%s3760_s25 + $0x6d0] sm:$0xff]  }
  0x29   : > { %251 = vst [vmem:[%s3765_s26 + $0xc0] sm:$0xff] %v250_v24   ;;  %v454_v11 = vld [vmem:[%s3760_s25 + $0x6d8] sm:$0xff]   ;;  %v458_v12 = vld [vmem:[%s3760_s25 + $0x6e0] sm:$0xff]   ;;  %v462_v13 = vld [vmem:[%s3760_s25 + $0x6e8] sm:$0xff]  }
  0x2a   : > { %255 = vst [vmem:[%s3765_s26 + $0xc8] sm:$0xff] %v254_v25   ;;  %v466_v14 = vld [vmem:[%s3760_s25 + $0x6f0] sm:$0xff]   ;;  %v470_v15 = vld [vmem:[%s3760_s25 + $0x6f8] sm:$0xff]   ;;  %v474_v16 = vld [vmem:[%s3760_s25 + $0x700] sm:$0xff]  }
  0x2b   : > { %259 = vst [vmem:[%s3765_s26 + $0xd0] sm:$0xff] %v258_v26   ;;  %v478_v17 = vld [vmem:[%s3760_s25 + $0x708] sm:$0xff]   ;;  %v482_v18 = vld [vmem:[%s3760_s25 + $0x710] sm:$0xff]   ;;  %v486_v19 = vld [vmem:[%s3760_s25 + $0x718] sm:$0xff]  }
  0x2c   : > { %263 = vst [vmem:[%s3765_s26 + $0xd8] sm:$0xff] %v262_v27   ;;  %v490_v20 = vld [vmem:[%s3760_s25 + $0x720] sm:$0xff]   ;;  %v494_v21 = vld [vmem:[%s3760_s25 + $0x728] sm:$0xff]   ;;  %v498_v22 = vld [vmem:[%s3760_s25 + $0x730] sm:$0xff]  }
  0x2d   : > { %267 = vst [vmem:[%s3765_s26 + $0xe0] sm:$0xff] %v266_v28   ;;  %v502_v23 = vld [vmem:[%s3760_s25 + $0x738] sm:$0xff]   ;;  %v506_v24 = vld [vmem:[%s3760_s25 + $0x740] sm:$0xff]   ;;  %v510_v25 = vld [vmem:[%s3760_s25 + $0x748] sm:$0xff]  }
  0x2e   : > { %271 = vst [vmem:[%s3765_s26 + $0xe8] sm:$0xff] %v270_v29   ;;  %v514_v26 = vld [vmem:[%s3760_s25 + $0x750] sm:$0xff]   ;;  %v518_v27 = vld [vmem:[%s3760_s25 + $0x758] sm:$0xff]   ;;  %v522_v28 = vld [vmem:[%s3760_s25 + $0x760] sm:$0xff]  }
  0x2f   : > { %275 = vst [vmem:[%s3765_s26 + $0xf0] sm:$0xff] %v274_v30   ;;  %v526_v29 = vld [vmem:[%s3760_s25 + $0x768] sm:$0xff]   ;;  %v530_v30 = vld [vmem:[%s3760_s25 + $0x770] sm:$0xff]  }
  0x30   : > { %279 = vst [vmem:[%s3765_s26 + $0xf8] sm:$0xff] %v278_v31   ;;  %v534_v31 = vld [vmem:[%s3760_s25 + $0x778] sm:$0xff]  }
  0x31   : > { %283 = vst [vmem:[%s3765_s26 + $0x100] sm:$0xff] %v282_v32  }
  0x32   : > { %287 = vst [vmem:[%s3765_s26 + $0x108] sm:$0xff] %v286_v33  }
  0x33   : > { %291 = vst [vmem:[%s3765_s26 + $0x110] sm:$0xff] %v290_v34  }
  0x34   : > { %295 = vst [vmem:[%s3765_s26 + $0x118] sm:$0xff] %v294_v35  }
  0x35   : > { %299 = vst [vmem:[%s3765_s26 + $0x120] sm:$0xff] %v298_v36  }
  0x36   : > { %303 = vst [vmem:[%s3765_s26 + $0x128] sm:$0xff] %v302_v37  }
  0x37   : > { %307 = vst [vmem:[%s3765_s26 + $0x130] sm:$0xff] %v306_v38  }
  0x38   : > { %311 = vst [vmem:[%s3765_s26 + $0x138] sm:$0xff] %v310_v39  }
  0x39   : > { %315 = vst [vmem:[%s3765_s26 + $0x140] sm:$0xff] %v314_v40  }
  0x3a   : > { %319 = vst [vmem:[%s3765_s26 + $0x148] sm:$0xff] %v318_v41  }
  0x3b   : > { %323 = vst [vmem:[%s3765_s26 + $0x150] sm:$0xff] %v322_v42  }
  0x3c   : > { %327 = vst [vmem:[%s3765_s26 + $0x158] sm:$0xff] %v326_v43  }
  0x3d   : > { %331 = vst [vmem:[%s3765_s26 + $0x160] sm:$0xff] %v330_v44  }
  0x3e   : > { %335 = vst [vmem:[%s3765_s26 + $0x168] sm:$0xff] %v334_v45  }
  0x3f   : > { %339 = vst [vmem:[%s3765_s26 + $0x170] sm:$0xff] %v338_v46  }
  0x40   : > { %343 = vst [vmem:[%s3765_s26 + $0x178] sm:$0xff] %v342_v47  }
  0x41   : > { %347 = vst [vmem:[%s3765_s26 + $0x180] sm:$0xff] %v346_v48  }
  0x42   : > { %351 = vst [vmem:[%s3765_s26 + $0x188] sm:$0xff] %v350_v49  }
  0x43   : > { %355 = vst [vmem:[%s3765_s26 + $0x190] sm:$0xff] %v354_v50  }
  0x44   : > { %359 = vst [vmem:[%s3765_s26 + $0x198] sm:$0xff] %v358_v51  }
  0x45   : > { %363 = vst [vmem:[%s3765_s26 + $0x1a0] sm:$0xff] %v362_v52  }
  0x46   : > { %367 = vst [vmem:[%s3765_s26 + $0x1a8] sm:$0xff] %v366_v53  }
  0x47   : > { %371 = vst [vmem:[%s3765_s26 + $0x1b0] sm:$0xff] %v370_v54  }
  0x48   : > { %375 = vst [vmem:[%s3765_s26 + $0x1b8] sm:$0xff] %v374_v55  }
  0x49   : > { %379 = vst [vmem:[%s3765_s26 + $0x1c0] sm:$0xff] %v378_v56  }
  0x4a   : > { %383 = vst [vmem:[%s3765_s26 + $0x1c8] sm:$0xff] %v382_v57  }
  0x4b   : > { %387 = vst [vmem:[%s3765_s26 + $0x1d0] sm:$0xff] %v386_v58  }
  0x4c   : > { %391 = vst [vmem:[%s3765_s26 + $0x1d8] sm:$0xff] %v390_v59  }
  0x4d   : > { %395 = vst [vmem:[%s3765_s26 + $0x1e0] sm:$0xff] %v394_v60  }
  0x4e   : > { %399 = vst [vmem:[%s3765_s26 + $0x1e8] sm:$0xff] %v398_v61  }
  0x4f   : > { %403 = vst [vmem:[%s3765_s26 + $0x1f0] sm:$0xff] %v402_v62  }
  0x50   : > { %407 = vst [vmem:[%s3765_s26 + $0x1f8] sm:$0xff] %v406_v63  }
  0x51   : > { %411 = vst [vmem:[%s3765_s26 + $0x200] sm:$0xff] %v410_v0  }
  0x52   : > { %415 = vst [vmem:[%s3765_s26 + $0x208] sm:$0xff] %v414_v1  }
  0x53   : > { %419 = vst [vmem:[%s3765_s26 + $0x210] sm:$0xff] %v418_v2  }
  0x54   : > { %423 = vst [vmem:[%s3765_s26 + $0x218] sm:$0xff] %v422_v3  }
  0x55   : > { %427 = vst [vmem:[%s3765_s26 + $0x220] sm:$0xff] %v426_v4  }
  0x56   : > { %431 = vst [vmem:[%s3765_s26 + $0x228] sm:$0xff] %v430_v5  }
  0x57   : > { %435 = vst [vmem:[%s3765_s26 + $0x230] sm:$0xff] %v434_v6  }
  0x58   : > { %439 = vst [vmem:[%s3765_s26 + $0x238] sm:$0xff] %v438_v7  }
  0x59   : > { %443 = vst [vmem:[%s3765_s26 + $0x240] sm:$0xff] %v442_v8  }
  0x5a   : > { %447 = vst [vmem:[%s3765_s26 + $0x248] sm:$0xff] %v446_v9  }
  0x5b   : > { %451 = vst [vmem:[%s3765_s26 + $0x250] sm:$0xff] %v450_v10  }
  0x5c   : > { %455 = vst [vmem:[%s3765_s26 + $0x258] sm:$0xff] %v454_v11  }
  0x5d   : > { %459 = vst [vmem:[%s3765_s26 + $0x260] sm:$0xff] %v458_v12  }
  0x5e   : > { %463 = vst [vmem:[%s3765_s26 + $0x268] sm:$0xff] %v462_v13  }
  0x5f   : > { %467 = vst [vmem:[%s3765_s26 + $0x270] sm:$0xff] %v466_v14  }
  0x60   : > { %471 = vst [vmem:[%s3765_s26 + $0x278] sm:$0xff] %v470_v15  }
  0x61   : > { %475 = vst [vmem:[%s3765_s26 + $0x280] sm:$0xff] %v474_v16  }
  0x62   : > { %479 = vst [vmem:[%s3765_s26 + $0x288] sm:$0xff] %v478_v17  }
  0x63   : > { %483 = vst [vmem:[%s3765_s26 + $0x290] sm:$0xff] %v482_v18  }
  0x64   : > { %487 = vst [vmem:[%s3765_s26 + $0x298] sm:$0xff] %v486_v19  }
  0x65   : > { %491 = vst [vmem:[%s3765_s26 + $0x2a0] sm:$0xff] %v490_v20  }
  0x66   : > { %495 = vst [vmem:[%s3765_s26 + $0x2a8] sm:$0xff] %v494_v21  }
  0x67   : > { %499 = vst [vmem:[%s3765_s26 + $0x2b0] sm:$0xff] %v498_v22  }
  0x68   : > { %503 = vst [vmem:[%s3765_s26 + $0x2b8] sm:$0xff] %v502_v23  }
  0x69   : > { %507 = vst [vmem:[%s3765_s26 + $0x2c0] sm:$0xff] %v506_v24  }
  0x6a   : > { %511 = vst [vmem:[%s3765_s26 + $0x2c8] sm:$0xff] %v510_v25  }
  0x6b   : > { %515 = vst [vmem:[%s3765_s26 + $0x2d0] sm:$0xff] %v514_v26  }
  0x6c   : > { %519 = vst [vmem:[%s3765_s26 + $0x2d8] sm:$0xff] %v518_v27  }
  0x6d   : > { %523 = vst [vmem:[%s3765_s26 + $0x2e0] sm:$0xff] %v522_v28  }
  0x6e   : > { %527 = vst [vmem:[%s3765_s26 + $0x2e8] sm:$0xff] %v526_v29  }
  0x6f   : > { %531 = vst [vmem:[%s3765_s26 + $0x2f0] sm:$0xff] %v530_v30  }
  0x70   : > { %535 = vst [vmem:[%s3765_s26 + $0x2f8] sm:$0xff] %v534_v31  }
  0x71 PF: > { %p3055_p5 = scmp.ge.s32.totalorder %s3703_s14, 1  ;;  %p944_p6 = scmp.lt.s32.totalorder %s3703_s14, 4 }
  0x73   : > { %p945_p7 = pnand %p3055_p5, %p944_p6 }
  0x74   : > { %s951_s4 = sand.u32 (!%p945_p7), 1, %s3695_s12   ;;  %s975_s9 = smul.u32 (!%p945_p7), 48, %s3050_s15 }
  0x75   : > { %948 = sbr.rel (%p945_p7) target bundleno = 656 (0x290), region = 69 }
  0x76   : > { %s3653_s5 = smul.u32 (!%p945_p7), 768, %s951_s4  ;;  %p976_p8 = scmp.lt.s32.totalorder (!%p945_p7), %s975_s9, 143 }
  0x78   : > { %s3968_s8 = scalar_lea.vmem (!%p945_p7), [#allocation2], %s3653_s5 }
  0x7a   : > { %v3447_v32 = vld [vmem:[%s4526_s1 + $0x8] sm:$0xf]  ;;  %v3645_v33 = vld [vmem:[%s4526_s1 + $0x8] sm:$0x10]  ;;  %vm1958_vm0 = vcmask 1043456   ;;  %vm1959_vm1 = vcmask 1044480  }
  0x7b   : > { %v3448_v34 = vor.u32 %v3645_v33, %v3447_v32  ;;  %v3705_v35 = vmov 65535   ;;  %v3644_v39 = vld [vmem:[%s4526_s1] sm:$0xff]  ;;  %vm1669_vm2 = vcmask 203776   ;;  %v3549_v44 = vld [vmem:[%s3968_s8 + $0x8] sm:$0xff]  ;;  %v3550_v48 = vld [vmem:[%s3968_s8 + $0x10] sm:$0xff]  ;;  %vm2454_vm3 = vcmask 261120  }
  0x7c   : > { %v1960_v36 = vsel %vm1958_vm0, 4294967295, %v3705_v35  ;;  %v3548_v40 = vld [vmem:[%s3968_s8] sm:$0xff]  ;;  %v3573_v45 = vld [vmem:[%s3968_s8 + $0xc8] sm:$0xff]  ;;  %v3574_v49 = vld [vmem:[%s3968_s8 + $0xd0] sm:$0xff]  ;;  %s4533_s9 = smov (!%p976_p8, %s975_s9), 143  ;;  %vm2939_vm4 = vcmask 257024  }
  0x7d   : > { %v1961_v37 = vsel %vm1959_vm1, %v1960_v36, 0  ;;  %v3572_v41 = vld [vmem:[%s3968_s8 + $0xc0] sm:$0xff]  ;;  %v3597_v46 = vld [vmem:[%s3968_s8 + $0x188] sm:$0xff]  ;;  %v3598_v50 = vld [vmem:[%s3968_s8 + $0x190] sm:$0xff]  ;;  %s3056_s12 = sshll.u32 %s4533_s9, 2 }
  0x7e   : > { %v1963_v38 = vand.u32 %v3448_v34, %v1961_v37  ;;  %v3596_v42 = vld [vmem:[%s3968_s8 + $0x180] sm:$0xff]  ;;  %v3621_v47 = vld [vmem:[%s3968_s8 + $0x248] sm:$0xff]  ;;  %v3622_v51 = vld [vmem:[%s3968_s8 + $0x250] sm:$0xff]  ;;  %s4061_s17 = scalar_lea.vmem %s4528_s3, %s3056_s12 }
  0x7f   : > { %v3620_v43 = vld [vmem:[%s3968_s8 + $0x240] sm:$0xff]  ;;  %v3551_v52 = vld [vmem:[%s3968_s8 + $0x18] sm:$0xff]  ;;  %v3553_v60 = vld [vmem:[%s3968_s8 + $0x28] sm:$0xff] }
  0x80   : > { %1971 = vmatpush.bf16.msra.mxu0 %v1963_v38  ;;  %3646 = vmatpush.bf16.msra.mxu1 %v1963_v38  ;;  %v3575_v53 = vld [vmem:[%s3968_s8 + $0xd8] sm:$0xff]  ;;  %v3552_v56 = vld [vmem:[%s3968_s8 + $0x20] sm:$0xff]  ;;  %v3577_v61 = vld [vmem:[%s3968_s8 + $0xe8] sm:$0xff] }
  0x81   : > { %3647 = vmatpush.bf16.msra.mxu2 %v1963_v38  ;;  %3648 = vmatpush.bf16.msra.mxu3 %v1963_v38  ;;  %v3599_v54 = vld [vmem:[%s3968_s8 + $0x198] sm:$0xff]  ;;  %v3576_v57 = vld [vmem:[%s3968_s8 + $0xe0] sm:$0xff]  ;;  %v3601_v62 = vld [vmem:[%s3968_s8 + $0x1a8] sm:$0xff] }
  0x82   : > { %v3623_v55 = vld [vmem:[%s3968_s8 + $0x258] sm:$0xff]  ;;  %v3600_v58 = vld [vmem:[%s3968_s8 + $0x1a0] sm:$0xff]  ;;  %v3625_v63 = vld [vmem:[%s3968_s8 + $0x268] sm:$0xff] }
  0x83   : > { %v3624_v59 = vld [vmem:[%s3968_s8 + $0x260] sm:$0xff]  ;;  %v3554_v0 = vld [vmem:[%s3968_s8 + $0x30] sm:$0xff]  ;;  %v3555_v4 = vld [vmem:[%s3968_s8 + $0x38] sm:$0xff] }
  0x84   : > { %1972 = vmatpush.bf16.msra.mxu0 %v3644_v39  ;;  %3649 = vmatpush.bf16.msra.mxu1 %v3644_v39  ;;  %v3578_v1 = vld [vmem:[%s3968_s8 + $0xf0] sm:$0xff]  ;;  %v3579_v5 = vld [vmem:[%s3968_s8 + $0xf8] sm:$0xff]  ;;  %v3556_v8 = vld [vmem:[%s3968_s8 + $0x40] sm:$0xff] }
  0x85   : > { %3650 = vmatpush.bf16.msra.mxu2 %v3644_v39  ;;  %3651 = vmatpush.bf16.msra.mxu3 %v3644_v39  ;;  %v3602_v2 = vld [vmem:[%s3968_s8 + $0x1b0] sm:$0xff]  ;;  %v3603_v6 = vld [vmem:[%s3968_s8 + $0x1b8] sm:$0xff]  ;;  %v3580_v9 = vld [vmem:[%s3968_s8 + $0x100] sm:$0xff] }
  0x86   : > { %v3626_v3 = vld [vmem:[%s3968_s8 + $0x270] sm:$0xff]  ;;  %v3627_v7 = vld [vmem:[%s3968_s8 + $0x278] sm:$0xff]  ;;  %v3604_v12 = vld [vmem:[%s3968_s8 + $0x1c0] sm:$0xff] }
  0x87   : > { %3449 = vmatmul.msk.bf16.vlgmr.msra.gmra.mxu0 %vm1669_vm2, %v3548_v40  ;;  %3473 = vmatmul.msk.bf16.vlgmr.msra.gmra.mxu1 %vm1669_vm2, %v3572_v41  ;;  %v3628_v13 = vld [vmem:[%s3968_s8 + $0x280] sm:$0xff]  ;;  %v3557_v33 = vld [vmem:[%s3968_s8 + $0x48] sm:$0xff] }
  0x88   : > { %3497 = vmatmul.msk.bf16.vlgmr.msra.gmra.mxu2 %vm1669_vm2, %v3596_v42  ;;  %3521 = vmatmul.msk.bf16.vlgmr.msra.gmra.mxu3 %vm1669_vm2, %v3620_v43  ;;  %v4051_v24 = vld [vmem:[%s4527_s2] ss:$0 sm:$0xff]  ;;  %v3581_v34 = vld [vmem:[%s3968_s8 + $0x108] sm:$0xff] }
  0x89   : > { %v3605_v38 = vld [vmem:[%s3968_s8 + $0x1c8] sm:$0xff] }
  0x8a   : > { %v3629_v39 = vld [vmem:[%s3968_s8 + $0x288] sm:$0xff] }
  0x97   : > { %3450 = vmatmul.msk.bf16.gmra.mxu0 %vm1669_vm2, %v3549_v44  ;;  %3474 = vmatmul.msk.bf16.gmra.mxu1 %vm1669_vm2, %v3573_v45 }
  0x98   : > { %3498 = vmatmul.msk.bf16.gmra.mxu2 %vm1669_vm2, %v3597_v46  ;;  %3522 = vmatmul.msk.bf16.gmra.mxu3 %vm1669_vm2, %v3621_v47 }
  0xa7   : > { %3451 = vmatmul.msk.bf16.gmra.mxu0 %vm1669_vm2, %v3550_v48  ;;  %3475 = vmatmul.msk.bf16.gmra.mxu1 %vm1669_vm2, %v3574_v49 }
  0xa8   : > { %3499 = vmatmul.msk.bf16.gmra.mxu2 %vm1669_vm2, %v3598_v50  ;;  %3523 = vmatmul.msk.bf16.gmra.mxu3 %vm1669_vm2, %v3622_v51 }
  0xb7   : > { %3452 = vmatmul.msk.bf16.gmra.mxu0 %vm1669_vm2, %v3551_v52  ;;  %3476 = vmatmul.msk.bf16.gmra.mxu1 %vm1669_vm2, %v3575_v53 }
  0xb8   : > { %3500 = vmatmul.msk.bf16.gmra.mxu2 %vm1669_vm2, %v3599_v54  ;;  %3524 = vmatmul.msk.bf16.gmra.mxu3 %vm1669_vm2, %v3623_v55 }
  0xc7   : > { %3453 = vmatmul.msk.bf16.gmra.mxu0 %vm1669_vm2, %v3552_v56  ;;  %3477 = vmatmul.msk.bf16.gmra.mxu1 %vm1669_vm2, %v3576_v57 }
  0xc8   : > { %3501 = vmatmul.msk.bf16.gmra.mxu2 %vm1669_vm2, %v3600_v58  ;;  %3525 = vmatmul.msk.bf16.gmra.mxu3 %vm1669_vm2, %v3624_v59 }
  0xd7   : > { %3454 = vmatmul.msk.bf16.gmra.mxu0 %vm1669_vm2, %v3553_v60  ;;  %3478 = vmatmul.msk.bf16.gmra.mxu1 %vm1669_vm2, %v3577_v61 }
  0xd8   : > { %3502 = vmatmul.msk.bf16.gmra.mxu2 %vm1669_vm2, %v3601_v62  ;;  %3526 = vmatmul.msk.bf16.gmra.mxu3 %vm1669_vm2, %v3625_v63 }
  0xe7   : > { %3455 = vmatmul.msk.bf16.gmra.mxu0 %vm1669_vm2, %v3554_v0  ;;  %3479 = vmatmul.msk.bf16.gmra.mxu1 %vm1669_vm2, %v3578_v1  ;;  %v3558_v1 = vld [vmem:[%s3968_s8 + $0x50] sm:$0xff] }
  0xe8   : > { %3503 = vmatmul.msk.bf16.gmra.mxu2 %vm1669_vm2, %v3602_v2  ;;  %3527 = vmatmul.msk.bf16.gmra.mxu3 %vm1669_vm2, %v3626_v3  ;;  %v3582_v2 = vld [vmem:[%s3968_s8 + $0x110] sm:$0xff] }
  0xf7   : > { %3456 = vmatmul.msk.bf16.gmra.mxu0 %vm1669_vm2, %v3555_v4  ;;  %3480 = vmatmul.msk.bf16.gmra.mxu1 %vm1669_vm2, %v3579_v5 }
  0xf8   : > { %3504 = vmatmul.msk.bf16.gmra.mxu2 %vm1669_vm2, %v3603_v6  ;;  %3528 = vmatmul.msk.bf16.gmra.mxu3 %vm1669_vm2, %v3627_v7  ;;  %v3606_v6 = vld [vmem:[%s3968_s8 + $0x1d0] sm:$0xff] }
  0xf9   : > { %v3630_v7 = vld [vmem:[%s3968_s8 + $0x290] sm:$0xff] }
 0x104   : > { %v1974_v10 = vpop.f32.mrf.mxu0  ;;  %v2094_v11 = vpop.f32.mrf.mxu1 }
 0x105   : > { %v2455_v14 = vsel %vm2454_vm3, %v1974_v10, -inf  ;;  %v2456_v15 = vsel %vm2454_vm3, %v2094_v11, -inf }
 0x106   : > { %v2457_v16 = vmax.f32 %v2455_v14, %v2456_v15 }
 0x107   : > { %3457 = vmatmul.msk.bf16.gmra.mxu0 %vm1669_vm2, %v3556_v8  ;;  %3481 = vmatmul.msk.bf16.gmra.mxu1 %vm1669_vm2, %v3580_v9 }
 0x108   : > { %3505 = vmatmul.msk.bf16.gmra.mxu2 %vm1669_vm2, %v3604_v12  ;;  %3529 = vmatmul.msk.bf16.gmra.mxu3 %vm1669_vm2, %v3628_v13 }
 0x10b   : > { %v2214_v17 = vpop.f32.mrf.mxu2  ;;  %v2334_v18 = vpop.f32.mrf.mxu3 }
 0x10c   : > { %v2458_v19 = vsel %vm2454_vm3, %v2214_v17, -inf  ;;  %v2460_v20 = vsel %vm2454_vm3, %v2334_v18, -inf  ;;  %v1976_v21 = vpop.f32.mrf.mxu0  ;;  %v2096_v22 = vpop.f32.mrf.mxu1 }
 0x10d   : > { %v2459_v23 = vmax.f32 %v2457_v16, %v2458_v19  ;;  %v2462_v26 = vsel %vm2454_vm3, %v1976_v21, -inf  ;;  %v2463_v27 = vsel %vm2454_vm3, %v2096_v22, -inf }
 0x10e   : > { %v2464_v30 = vmax.f32 %v2462_v26, %v2463_v27 }
 0x10f   : > { %v2461_v25 = vmax.f32 %v2459_v23, %v2460_v20 }
 0x111   : > { %v2795_v28 = vadd.f32 %v4051_v24, %v2461_v25 }
 0x113   : > { %v2843_v29 = vmax.f32 %v2795_v28, 0.0  ;;  %v2216_v31 = vpop.f32.mrf.mxu2  ;;  %v2336_v32 = vpop.f32.mrf.mxu3 }
 0x114   : > { %v2465_v35 = vsel %vm2454_vm3, %v2216_v31, -inf  ;;  %v1979_v36 = vpop.f32.mrf.mxu0  ;;  %v2099_v37 = vpop.f32.mrf.mxu1  ;;  %v2467_v42 = vsel %vm2454_vm3, %v2336_v32, -inf }
 0x115   : > { %v2891_v40 = vpack.c.bf16 %v2843_v29, %v2843_v29  ;;  %v2466_v41 = vmax.f32 %v2464_v30, %v2465_v35  ;;  %v2469_v43 = vsel %vm2454_vm3, %v1979_v36, -inf  ;;  %v2470_v44 = vsel %vm2454_vm3, %v2099_v37, -inf  ;;  %v3583_v35 = vld [vmem:[%s3968_s8 + $0x118] sm:$0xff] }
 0x116   : > { %v2471_v47 = vmax.f32 %v2469_v43, %v2470_v44 }
 0x117   : > { %2940 = vst.msk [vmem:[%s4061_s17] sm:$0xf] %vm2939_vm4, %v2891_v40  ;;  %v2468_v45 = vmax.f32 %v2466_v41, %v2467_v42  ;;  %3458 = vmatmul.msk.bf16.gmra.mxu0 %vm1669_vm2, %v3557_v33  ;;  %3482 = vmatmul.msk.bf16.gmra.mxu1 %vm1669_vm2, %v3581_v34  ;;  %v3559_v34 = vld [vmem:[%s3968_s8 + $0x58] sm:$0xff] }
 0x118   : > { %3506 = vmatmul.msk.bf16.gmra.mxu2 %vm1669_vm2, %v3605_v38  ;;  %3530 = vmatmul.msk.bf16.gmra.mxu3 %vm1669_vm2, %v3629_v39  ;;  %v3607_v39 = vld [vmem:[%s3968_s8 + $0x1d8] sm:$0xff] }
 0x119   : > { %v2796_v46 = vadd.f32 %v4051_v24, %v2468_v45  ;;  %v3631_v40 = vld [vmem:[%s3968_s8 + $0x298] sm:$0xff] }
 0x11b   : > { %v2844_v48 = vmax.f32 %v2796_v46, 0.0  ;;  %v2219_v49 = vpop.f32.mrf.mxu2  ;;  %v2339_v50 = vpop.f32.mrf.mxu3 }
 0x11c   : > { %v2472_v51 = vsel %vm2454_vm3, %v2219_v49, -inf  ;;  %v2474_v52 = vsel %vm2454_vm3, %v2339_v50, -inf  ;;  %v1981_v53 = vpop.f32.mrf.mxu0  ;;  %v2101_v54 = vpop.f32.mrf.mxu1 }
 0x11d   : > { %v2892_v55 = vpack.c.bf16 %v2844_v48, %v2844_v48  ;;  %v2473_v56 = vmax.f32 %v2471_v47, %v2472_v51  ;;  %v2476_v58 = vsel %vm2454_vm3, %v1981_v53, -inf  ;;  %v2477_v59 = vsel %vm2454_vm3, %v2101_v54, -inf }
 0x11e   : > { %v2478_v62 = vmax.f32 %v2476_v58, %v2477_v59 }
 0x11f   : > { %2941 = vst.msk [vmem:[%s4061_s17 + $0x4] sm:$0xf] %vm2939_vm4, %v2892_v55  ;;  %v2475_v57 = vmax.f32 %v2473_v56, %v2474_v52 }
 0x121   : > { %v2797_v60 = vadd.f32 %v4051_v24, %v2475_v57 }
 0x123   : > { %v2845_v61 = vmax.f32 %v2797_v60, 0.0  ;;  %v2221_v63 = vpop.f32.mrf.mxu2  ;;  %v2341_v0 = vpop.f32.mrf.mxu3 }
 0x124   : > { %v2479_v3 = vsel %vm2454_vm3, %v2221_v63, -inf  ;;  %v1984_v4 = vpop.f32.mrf.mxu0  ;;  %v2104_v5 = vpop.f32.mrf.mxu1  ;;  %v2481_v10 = vsel %vm2454_vm3, %v2341_v0, -inf }
 0x125   : > { %v2893_v8 = vpack.c.bf16 %v2845_v61, %v2845_v61  ;;  %v2480_v9 = vmax.f32 %v2478_v62, %v2479_v3  ;;  %v2483_v11 = vsel %vm2454_vm3, %v1984_v4, -inf  ;;  %v2484_v12 = vsel %vm2454_vm3, %v2104_v5, -inf  ;;  %v3584_v3 = vld [vmem:[%s3968_s8 + $0x120] sm:$0xff] }
 0x126   : > { %v2485_v15 = vmax.f32 %v2483_v11, %v2484_v12 }
 0x127   : > { %2942 = vst.msk [vmem:[%s4061_s17 + $0x8] sm:$0xf] %vm2939_vm4, %v2893_v8  ;;  %v2482_v13 = vmax.f32 %v2480_v9, %v2481_v10  ;;  %3459 = vmatmul.msk.bf16.gmra.mxu0 %vm1669_vm2, %v3558_v1  ;;  %3483 = vmatmul.msk.bf16.gmra.mxu1 %vm1669_vm2, %v3582_v2  ;;  %v3560_v2 = vld [vmem:[%s3968_s8 + $0x60] sm:$0xff] }
 0x128   : > { %3507 = vmatmul.msk.bf16.gmra.mxu2 %vm1669_vm2, %v3606_v6  ;;  %3531 = vmatmul.msk.bf16.gmra.mxu3 %vm1669_vm2, %v3630_v7  ;;  %v3608_v7 = vld [vmem:[%s3968_s8 + $0x1e0] sm:$0xff] }
 0x129   : > { %v2798_v14 = vadd.f32 %v4051_v24, %v2482_v13  ;;  %v3632_v8 = vld [vmem:[%s3968_s8 + $0x2a0] sm:$0xff] }
 0x12b   : > { %v2846_v16 = vmax.f32 %v2798_v14, 0.0  ;;  %v2224_v17 = vpop.f32.mrf.mxu2  ;;  %v2344_v18 = vpop.f32.mrf.mxu3 }
 0x12c   : > { %v2486_v19 = vsel %vm2454_vm3, %v2224_v17, -inf  ;;  %v2488_v20 = vsel %vm2454_vm3, %v2344_v18, -inf  ;;  %v1986_v21 = vpop.f32.mrf.mxu0  ;;  %v2106_v22 = vpop.f32.mrf.mxu1 }
 0x12d   : > { %v2894_v23 = vpack.c.bf16 %v2846_v16, %v2846_v16  ;;  %v2487_v25 = vmax.f32 %v2485_v15, %v2486_v19  ;;  %v2490_v27 = vsel %vm2454_vm3, %v1986_v21, -inf  ;;  %v2491_v28 = vsel %vm2454_vm3, %v2106_v22, -inf }
 0x12e   : > { %v2492_v31 = vmax.f32 %v2490_v27, %v2491_v28 }
 0x12f   : > { %2943 = vst.msk [vmem:[%s4061_s17 + $0xc] sm:$0xf] %vm2939_vm4, %v2894_v23  ;;  %v2489_v26 = vmax.f32 %v2487_v25, %v2488_v20 }
 0x131   : > { %v2799_v29 = vadd.f32 %v4051_v24, %v2489_v26 }
 0x133   : > { %v2847_v30 = vmax.f32 %v2799_v29, 0.0  ;;  %v2226_v32 = vpop.f32.mrf.mxu2  ;;  %v2346_v33 = vpop.f32.mrf.mxu3 }
 0x134   : > { %v2493_v36 = vsel %vm2454_vm3, %v2226_v32, -inf  ;;  %v1989_v37 = vpop.f32.mrf.mxu0  ;;  %v2109_v38 = vpop.f32.mrf.mxu1  ;;  %v2495_v43 = vsel %vm2454_vm3, %v2346_v33, -inf }
 0x135   : > { %v2895_v41 = vpack.c.bf16 %v2847_v30, %v2847_v30  ;;  %v2494_v42 = vmax.f32 %v2492_v31, %v2493_v36  ;;  %v2497_v44 = vsel %vm2454_vm3, %v1989_v37, -inf  ;;  %v2498_v45 = vsel %vm2454_vm3, %v2109_v38, -inf  ;;  %v3585_v36 = vld [vmem:[%s3968_s8 + $0x128] sm:$0xff] }
 0x136   : > { %v2499_v48 = vmax.f32 %v2497_v44, %v2498_v45 }
 0x137   : > { %2944 = vst.msk [vmem:[%s4061_s17 + $0x10] sm:$0xf] %vm2939_vm4, %v2895_v41  ;;  %v2496_v46 = vmax.f32 %v2494_v42, %v2495_v43  ;;  %3460 = vmatmul.msk.bf16.gmra.mxu0 %vm1669_vm2, %v3559_v34  ;;  %3484 = vmatmul.msk.bf16.gmra.mxu1 %vm1669_vm2, %v3583_v35  ;;  %v3561_v35 = vld [vmem:[%s3968_s8 + $0x68] sm:$0xff] }
 0x138   : > { %3508 = vmatmul.msk.bf16.gmra.mxu2 %vm1669_vm2, %v3607_v39  ;;  %3532 = vmatmul.msk.bf16.gmra.mxu3 %vm1669_vm2, %v3631_v40  ;;  %v3609_v40 = vld [vmem:[%s3968_s8 + $0x1e8] sm:$0xff] }
 0x139   : > { %v2800_v47 = vadd.f32 %v4051_v24, %v2496_v46  ;;  %v3633_v41 = vld [vmem:[%s3968_s8 + $0x2a8] sm:$0xff] }
 0x13b   : > { %v2848_v49 = vmax.f32 %v2800_v47, 0.0  ;;  %v2229_v50 = vpop.f32.mrf.mxu2  ;;  %v2349_v51 = vpop.f32.mrf.mxu3 }
 0x13c   : > { %v2500_v52 = vsel %vm2454_vm3, %v2229_v50, -inf  ;;  %v2502_v53 = vsel %vm2454_vm3, %v2349_v51, -inf  ;;  %v1991_v54 = vpop.f32.mrf.mxu0  ;;  %v2111_v55 = vpop.f32.mrf.mxu1 }
 0x13d   : > { %v2896_v56 = vpack.c.bf16 %v2848_v49, %v2848_v49  ;;  %v2501_v57 = vmax.f32 %v2499_v48, %v2500_v52  ;;  %v2504_v59 = vsel %vm2454_vm3, %v1991_v54, -inf  ;;  %v2505_v60 = vsel %vm2454_vm3, %v2111_v55, -inf }
 0x13e   : > { %v2506_v63 = vmax.f32 %v2504_v59, %v2505_v60 }
 0x13f   : > { %2945 = vst.msk [vmem:[%s4061_s17 + $0x14] sm:$0xf] %vm2939_vm4, %v2896_v56  ;;  %v2503_v58 = vmax.f32 %v2501_v57, %v2502_v53 }
 0x141   : > { %v2801_v61 = vadd.f32 %v4051_v24, %v2503_v58 }
 0x143   : > { %v2849_v62 = vmax.f32 %v2801_v61, 0.0  ;;  %v2231_v0 = vpop.f32.mrf.mxu2  ;;  %v2351_v1 = vpop.f32.mrf.mxu3 }
 0x144   : > { %v2507_v4 = vsel %vm2454_vm3, %v2231_v0, -inf  ;;  %v1994_v5 = vpop.f32.mrf.mxu0  ;;  %v2114_v6 = vpop.f32.mrf.mxu1  ;;  %v2509_v11 = vsel %vm2454_vm3, %v2351_v1, -inf }
 0x145   : > { %v2897_v9 = vpack.c.bf16 %v2849_v62, %v2849_v62  ;;  %v2508_v10 = vmax.f32 %v2506_v63, %v2507_v4  ;;  %v2511_v12 = vsel %vm2454_vm3, %v1994_v5, -inf  ;;  %v2512_v13 = vsel %vm2454_vm3, %v2114_v6, -inf  ;;  %v3586_v4 = vld [vmem:[%s3968_s8 + $0x130] sm:$0xff] }
 0x146   : > { %v2513_v16 = vmax.f32 %v2511_v12, %v2512_v13 }
 0x147   : > { %2946 = vst.msk [vmem:[%s4061_s17 + $0x18] sm:$0xf] %vm2939_vm4, %v2897_v9  ;;  %v2510_v14 = vmax.f32 %v2508_v10, %v2509_v11  ;;  %3461 = vmatmul.msk.bf16.gmra.mxu0 %vm1669_vm2, %v3560_v2  ;;  %3485 = vmatmul.msk.bf16.gmra.mxu1 %vm1669_vm2, %v3584_v3  ;;  %v3562_v3 = vld [vmem:[%s3968_s8 + $0x70] sm:$0xff] }
 0x148   : > { %3509 = vmatmul.msk.bf16.gmra.mxu2 %vm1669_vm2, %v3608_v7  ;;  %3533 = vmatmul.msk.bf16.gmra.mxu3 %vm1669_vm2, %v3632_v8  ;;  %v3610_v8 = vld [vmem:[%s3968_s8 + $0x1f0] sm:$0xff] }
 0x149   : > { %v2802_v15 = vadd.f32 %v4051_v24, %v2510_v14  ;;  %v3634_v9 = vld [vmem:[%s3968_s8 + $0x2b0] sm:$0xff] }
 0x14b   : > { %v2850_v17 = vmax.f32 %v2802_v15, 0.0  ;;  %v2234_v18 = vpop.f32.mrf.mxu2  ;;  %v2354_v19 = vpop.f32.mrf.mxu3 }
 0x14c   : > { %v2514_v20 = vsel %vm2454_vm3, %v2234_v18, -inf  ;;  %v2516_v21 = vsel %vm2454_vm3, %v2354_v19, -inf  ;;  %v1996_v22 = vpop.f32.mrf.mxu0  ;;  %v2116_v23 = vpop.f32.mrf.mxu1 }
 0x14d   : > { %v2898_v25 = vpack.c.bf16 %v2850_v17, %v2850_v17  ;;  %v2515_v26 = vmax.f32 %v2513_v16, %v2514_v20  ;;  %v2518_v28 = vsel %vm2454_vm3, %v1996_v22, -inf  ;;  %v2519_v29 = vsel %vm2454_vm3, %v2116_v23, -inf }
 0x14e   : > { %v2520_v32 = vmax.f32 %v2518_v28, %v2519_v29 }
 0x14f   : > { %2947 = vst.msk [vmem:[%s4061_s17 + $0x1c] sm:$0xf] %vm2939_vm4, %v2898_v25  ;;  %v2517_v27 = vmax.f32 %v2515_v26, %v2516_v21 }
 0x151   : > { %v2803_v30 = vadd.f32 %v4051_v24, %v2517_v27 }
 0x153   : > { %v2851_v31 = vmax.f32 %v2803_v30, 0.0  ;;  %v2236_v33 = vpop.f32.mrf.mxu2  ;;  %v2356_v34 = vpop.f32.mrf.mxu3 }
 0x154   : > { %v2521_v37 = vsel %vm2454_vm3, %v2236_v33, -inf  ;;  %v1999_v38 = vpop.f32.mrf.mxu0  ;;  %v2119_v39 = vpop.f32.mrf.mxu1  ;;  %v2523_v44 = vsel %vm2454_vm3, %v2356_v34, -inf }
 0x155   : > { %v2899_v42 = vpack.c.bf16 %v2851_v31, %v2851_v31  ;;  %v2522_v43 = vmax.f32 %v2520_v32, %v2521_v37  ;;  %v2525_v45 = vsel %vm2454_vm3, %v1999_v38, -inf  ;;  %v2526_v46 = vsel %vm2454_vm3, %v2119_v39, -inf  ;;  %v3587_v37 = vld [vmem:[%s3968_s8 + $0x138] sm:$0xff] }
 0x156   : > { %v2527_v49 = vmax.f32 %v2525_v45, %v2526_v46 }
 0x157   : > { %2948 = vst.msk [vmem:[%s4061_s17 + $0x20] sm:$0xf] %vm2939_vm4, %v2899_v42  ;;  %v2524_v47 = vmax.f32 %v2522_v43, %v2523_v44  ;;  %3462 = vmatmul.msk.bf16.gmra.mxu0 %vm1669_vm2, %v3561_v35  ;;  %3486 = vmatmul.msk.bf16.gmra.mxu1 %vm1669_vm2, %v3585_v36  ;;  %v3563_v36 = vld [vmem:[%s3968_s8 + $0x78] sm:$0xff] }
 0x158   : > { %3510 = vmatmul.msk.bf16.gmra.mxu2 %vm1669_vm2, %v3609_v40  ;;  %3534 = vmatmul.msk.bf16.gmra.mxu3 %vm1669_vm2, %v3633_v41  ;;  %v3611_v41 = vld [vmem:[%s3968_s8 + $0x1f8] sm:$0xff] }
 0x159   : > { %v2804_v48 = vadd.f32 %v4051_v24, %v2524_v47  ;;  %v3635_v42 = vld [vmem:[%s3968_s8 + $0x2b8] sm:$0xff] }
 0x15b   : > { %v2852_v50 = vmax.f32 %v2804_v48, 0.0  ;;  %v2239_v51 = vpop.f32.mrf.mxu2  ;;  %v2359_v52 = vpop.f32.mrf.mxu3 }
 0x15c   : > { %v2528_v53 = vsel %vm2454_vm3, %v2239_v51, -inf  ;;  %v2530_v54 = vsel %vm2454_vm3, %v2359_v52, -inf  ;;  %v2001_v55 = vpop.f32.mrf.mxu0  ;;  %v2121_v56 = vpop.f32.mrf.mxu1 }
 0x15d   : > { %v2900_v57 = vpack.c.bf16 %v2852_v50, %v2852_v50  ;;  %v2529_v58 = vmax.f32 %v2527_v49, %v2528_v53  ;;  %v2532_v60 = vsel %vm2454_vm3, %v2001_v55, -inf  ;;  %v2533_v61 = vsel %vm2454_vm3, %v2121_v56, -inf }
 0x15e   : > { %v2534_v0 = vmax.f32 %v2532_v60, %v2533_v61 }
 0x15f   : > { %2949 = vst.msk [vmem:[%s4061_s17 + $0x24] sm:$0xf] %vm2939_vm4, %v2900_v57  ;;  %v2531_v59 = vmax.f32 %v2529_v58, %v2530_v54 }
 0x161   : > { %v2805_v62 = vadd.f32 %v4051_v24, %v2531_v59 }
 0x163   : > { %v2853_v63 = vmax.f32 %v2805_v62, 0.0  ;;  %v2241_v1 = vpop.f32.mrf.mxu2  ;;  %v2361_v2 = vpop.f32.mrf.mxu3 }
 0x164   : > { %v2535_v5 = vsel %vm2454_vm3, %v2241_v1, -inf  ;;  %v2004_v6 = vpop.f32.mrf.mxu0  ;;  %v2124_v7 = vpop.f32.mrf.mxu1  ;;  %v2537_v12 = vsel %vm2454_vm3, %v2361_v2, -inf }
 0x165   : > { %v2901_v10 = vpack.c.bf16 %v2853_v63, %v2853_v63  ;;  %v2536_v11 = vmax.f32 %v2534_v0, %v2535_v5  ;;  %v2539_v13 = vsel %vm2454_vm3, %v2004_v6, -inf  ;;  %v2540_v14 = vsel %vm2454_vm3, %v2124_v7, -inf  ;;  %v3588_v5 = vld [vmem:[%s3968_s8 + $0x140] sm:$0xff] }
 0x166   : > { %v2541_v17 = vmax.f32 %v2539_v13, %v2540_v14 }
 0x167   : > { %2950 = vst.msk [vmem:[%s4061_s17 + $0x28] sm:$0xf] %vm2939_vm4, %v2901_v10  ;;  %v2538_v15 = vmax.f32 %v2536_v11, %v2537_v12  ;;  %3463 = vmatmul.msk.bf16.gmra.mxu0 %vm1669_vm2, %v3562_v3  ;;  %3487 = vmatmul.msk.bf16.gmra.mxu1 %vm1669_vm2, %v3586_v4  ;;  %v3564_v4 = vld [vmem:[%s3968_s8 + $0x80] sm:$0xff] }
 0x168   : > { %3511 = vmatmul.msk.bf16.gmra.mxu2 %vm1669_vm2, %v3610_v8  ;;  %3535 = vmatmul.msk.bf16.gmra.mxu3 %vm1669_vm2, %v3634_v9  ;;  %v3612_v9 = vld [vmem:[%s3968_s8 + $0x200] sm:$0xff] }
 0x169   : > { %v2806_v16 = vadd.f32 %v4051_v24, %v2538_v15  ;;  %v3636_v10 = vld [vmem:[%s3968_s8 + $0x2c0] sm:$0xff] }
 0x16b   : > { %v2854_v18 = vmax.f32 %v2806_v16, 0.0  ;;  %v2244_v19 = vpop.f32.mrf.mxu2  ;;  %v2364_v20 = vpop.f32.mrf.mxu3 }
 0x16c   : > { %v2542_v21 = vsel %vm2454_vm3, %v2244_v19, -inf  ;;  %v2544_v22 = vsel %vm2454_vm3, %v2364_v20, -inf  ;;  %v2006_v23 = vpop.f32.mrf.mxu0  ;;  %v2126_v25 = vpop.f32.mrf.mxu1 }
 0x16d   : > { %v2902_v26 = vpack.c.bf16 %v2854_v18, %v2854_v18  ;;  %v2543_v27 = vmax.f32 %v2541_v17, %v2542_v21  ;;  %v2546_v29 = vsel %vm2454_vm3, %v2006_v23, -inf  ;;  %v2547_v30 = vsel %vm2454_vm3, %v2126_v25, -inf }
 0x16e   : > { %v2548_v33 = vmax.f32 %v2546_v29, %v2547_v30 }
 0x16f   : > { %2951 = vst.msk [vmem:[%s4061_s17 + $0x2c] sm:$0xf] %vm2939_vm4, %v2902_v26  ;;  %v2545_v28 = vmax.f32 %v2543_v27, %v2544_v22 }
 0x171   : > { %v2807_v31 = vadd.f32 %v4051_v24, %v2545_v28 }
 0x173   : > { %v2855_v32 = vmax.f32 %v2807_v31, 0.0  ;;  %v2246_v34 = vpop.f32.mrf.mxu2  ;;  %v2366_v35 = vpop.f32.mrf.mxu3 }
 0x174   : > { %v2549_v38 = vsel %vm2454_vm3, %v2246_v34, -inf  ;;  %v2009_v39 = vpop.f32.mrf.mxu0  ;;  %v2129_v40 = vpop.f32.mrf.mxu1  ;;  %v2551_v45 = vsel %vm2454_vm3, %v2366_v35, -inf }
 0x175   : > { %v2903_v43 = vpack.c.bf16 %v2855_v32, %v2855_v32  ;;  %v2550_v44 = vmax.f32 %v2548_v33, %v2549_v38  ;;  %v2553_v46 = vsel %vm2454_vm3, %v2009_v39, -inf  ;;  %v2554_v47 = vsel %vm2454_vm3, %v2129_v40, -inf  ;;  %v3589_v38 = vld [vmem:[%s3968_s8 + $0x148] sm:$0xff] }
 0x176   : > { %v2555_v50 = vmax.f32 %v2553_v46, %v2554_v47 }
 0x177   : > { %2952 = vst.msk [vmem:[%s4061_s17 + $0x30] sm:$0xf] %vm2939_vm4, %v2903_v43  ;;  %v2552_v48 = vmax.f32 %v2550_v44, %v2551_v45  ;;  %3464 = vmatmul.msk.bf16.gmra.mxu0 %vm1669_vm2, %v3563_v36  ;;  %3488 = vmatmul.msk.bf16.gmra.mxu1 %vm1669_vm2, %v3587_v37  ;;  %v3565_v37 = vld [vmem:[%s3968_s8 + $0x88] sm:$0xff] }
 0x178   : > { %3512 = vmatmul.msk.bf16.gmra.mxu2 %vm1669_vm2, %v3611_v41  ;;  %3536 = vmatmul.msk.bf16.gmra.mxu3 %vm1669_vm2, %v3635_v42  ;;  %v3613_v42 = vld [vmem:[%s3968_s8 + $0x208] sm:$0xff] }
 0x179   : > { %v2808_v49 = vadd.f32 %v4051_v24, %v2552_v48  ;;  %v3637_v43 = vld [vmem:[%s3968_s8 + $0x2c8] sm:$0xff] }
 0x17b   : > { %v2856_v51 = vmax.f32 %v2808_v49, 0.0  ;;  %v2249_v52 = vpop.f32.mrf.mxu2  ;;  %v2369_v53 = vpop.f32.mrf.mxu3 }
 0x17c   : > { %v2556_v54 = vsel %vm2454_vm3, %v2249_v52, -inf  ;;  %v2558_v55 = vsel %vm2454_vm3, %v2369_v53, -inf  ;;  %v2011_v56 = vpop.f32.mrf.mxu0  ;;  %v2131_v57 = vpop.f32.mrf.mxu1 }
 0x17d   : > { %v2904_v58 = vpack.c.bf16 %v2856_v51, %v2856_v51  ;;  %v2557_v59 = vmax.f32 %v2555_v50, %v2556_v54  ;;  %v2560_v61 = vsel %vm2454_vm3, %v2011_v56, -inf  ;;  %v2561_v62 = vsel %vm2454_vm3, %v2131_v57, -inf }
 0x17e   : > { %v2562_v1 = vmax.f32 %v2560_v61, %v2561_v62 }
 0x17f   : > { %2953 = vst.msk [vmem:[%s4061_s17 + $0x34] sm:$0xf] %vm2939_vm4, %v2904_v58  ;;  %v2559_v60 = vmax.f32 %v2557_v59, %v2558_v55 }
 0x181   : > { %v2809_v63 = vadd.f32 %v4051_v24, %v2559_v60 }
 0x183   : > { %v2857_v0 = vmax.f32 %v2809_v63, 0.0  ;;  %v2251_v2 = vpop.f32.mrf.mxu2  ;;  %v2371_v3 = vpop.f32.mrf.mxu3 }
 0x184   : > { %v2563_v6 = vsel %vm2454_vm3, %v2251_v2, -inf  ;;  %v2014_v7 = vpop.f32.mrf.mxu0  ;;  %v2134_v8 = vpop.f32.mrf.mxu1  ;;  %v2565_v13 = vsel %vm2454_vm3, %v2371_v3, -inf }
 0x185   : > { %v2905_v11 = vpack.c.bf16 %v2857_v0, %v2857_v0  ;;  %v2564_v12 = vmax.f32 %v2562_v1, %v2563_v6  ;;  %v2567_v14 = vsel %vm2454_vm3, %v2014_v7, -inf  ;;  %v2568_v15 = vsel %vm2454_vm3, %v2134_v8, -inf  ;;  %v3590_v6 = vld [vmem:[%s3968_s8 + $0x150] sm:$0xff] }
 0x186   : > { %v2569_v18 = vmax.f32 %v2567_v14, %v2568_v15 }
 0x187   : > { %2954 = vst.msk [vmem:[%s4061_s17 + $0x38] sm:$0xf] %vm2939_vm4, %v2905_v11  ;;  %v2566_v16 = vmax.f32 %v2564_v12, %v2565_v13  ;;  %3465 = vmatmul.msk.bf16.gmra.mxu0 %vm1669_vm2, %v3564_v4  ;;  %3489 = vmatmul.msk.bf16.gmra.mxu1 %vm1669_vm2, %v3588_v5  ;;  %v3566_v5 = vld [vmem:[%s3968_s8 + $0x90] sm:$0xff] }
 0x188   : > { %3513 = vmatmul.msk.bf16.gmra.mxu2 %vm1669_vm2, %v3612_v9  ;;  %3537 = vmatmul.msk.bf16.gmra.mxu3 %vm1669_vm2, %v3636_v10  ;;  %v3614_v10 = vld [vmem:[%s3968_s8 + $0x210] sm:$0xff] }
 0x189   : > { %v2810_v17 = vadd.f32 %v4051_v24, %v2566_v16  ;;  %v3638_v11 = vld [vmem:[%s3968_s8 + $0x2d0] sm:$0xff] }
 0x18b   : > { %v2858_v19 = vmax.f32 %v2810_v17, 0.0  ;;  %v2254_v20 = vpop.f32.mrf.mxu2  ;;  %v2374_v21 = vpop.f32.mrf.mxu3 }
 0x18c   : > { %v2570_v22 = vsel %vm2454_vm3, %v2254_v20, -inf  ;;  %v2572_v23 = vsel %vm2454_vm3, %v2374_v21, -inf  ;;  %v2016_v25 = vpop.f32.mrf.mxu0  ;;  %v2136_v26 = vpop.f32.mrf.mxu1 }
 0x18d   : > { %v2906_v27 = vpack.c.bf16 %v2858_v19, %v2858_v19  ;;  %v2571_v28 = vmax.f32 %v2569_v18, %v2570_v22  ;;  %v2574_v30 = vsel %vm2454_vm3, %v2016_v25, -inf  ;;  %v2575_v31 = vsel %vm2454_vm3, %v2136_v26, -inf }
 0x18e   : > { %v2576_v34 = vmax.f32 %v2574_v30, %v2575_v31 }
 0x18f   : > { %2955 = vst.msk [vmem:[%s4061_s17 + $0x3c] sm:$0xf] %vm2939_vm4, %v2906_v27  ;;  %v2573_v29 = vmax.f32 %v2571_v28, %v2572_v23 }
 0x191   : > { %v2811_v32 = vadd.f32 %v4051_v24, %v2573_v29 }
 0x193   : > { %v2859_v33 = vmax.f32 %v2811_v32, 0.0  ;;  %v2256_v35 = vpop.f32.mrf.mxu2  ;;  %v2376_v36 = vpop.f32.mrf.mxu3 }
 0x194   : > { %v2577_v39 = vsel %vm2454_vm3, %v2256_v35, -inf  ;;  %v2019_v40 = vpop.f32.mrf.mxu0  ;;  %v2139_v41 = vpop.f32.mrf.mxu1  ;;  %v2579_v46 = vsel %vm2454_vm3, %v2376_v36, -inf }
 0x195   : > { %v2907_v44 = vpack.c.bf16 %v2859_v33, %v2859_v33  ;;  %v2578_v45 = vmax.f32 %v2576_v34, %v2577_v39  ;;  %v2581_v47 = vsel %vm2454_vm3, %v2019_v40, -inf  ;;  %v2582_v48 = vsel %vm2454_vm3, %v2139_v41, -inf  ;;  %v3591_v39 = vld [vmem:[%s3968_s8 + $0x158] sm:$0xff] }
 0x196   : > { %v2583_v51 = vmax.f32 %v2581_v47, %v2582_v48 }
 0x197   : > { %2956 = vst.msk [vmem:[%s4061_s17 + $0x40] sm:$0xf] %vm2939_vm4, %v2907_v44  ;;  %v2580_v49 = vmax.f32 %v2578_v45, %v2579_v46  ;;  %3466 = vmatmul.msk.bf16.gmra.mxu0 %vm1669_vm2, %v3565_v37  ;;  %3490 = vmatmul.msk.bf16.gmra.mxu1 %vm1669_vm2, %v3589_v38  ;;  %v3567_v38 = vld [vmem:[%s3968_s8 + $0x98] sm:$0xff] }
 0x198   : > { %3514 = vmatmul.msk.bf16.gmra.mxu2 %vm1669_vm2, %v3613_v42  ;;  %3538 = vmatmul.msk.bf16.gmra.mxu3 %vm1669_vm2, %v3637_v43  ;;  %v3615_v43 = vld [vmem:[%s3968_s8 + $0x218] sm:$0xff] }
 0x199   : > { %v2812_v50 = vadd.f32 %v4051_v24, %v2580_v49  ;;  %v3639_v44 = vld [vmem:[%s3968_s8 + $0x2d8] sm:$0xff] }
 0x19b   : > { %v2860_v52 = vmax.f32 %v2812_v50, 0.0  ;;  %v2259_v53 = vpop.f32.mrf.mxu2  ;;  %v2379_v54 = vpop.f32.mrf.mxu3 }
 0x19c   : > { %v2584_v55 = vsel %vm2454_vm3, %v2259_v53, -inf  ;;  %v2586_v56 = vsel %vm2454_vm3, %v2379_v54, -inf  ;;  %v2021_v57 = vpop.f32.mrf.mxu0  ;;  %v2141_v58 = vpop.f32.mrf.mxu1 }
 0x19d   : > { %v2908_v59 = vpack.c.bf16 %v2860_v52, %v2860_v52  ;;  %v2585_v60 = vmax.f32 %v2583_v51, %v2584_v55  ;;  %v2588_v62 = vsel %vm2454_vm3, %v2021_v57, -inf  ;;  %v2589_v63 = vsel %vm2454_vm3, %v2141_v58, -inf }
 0x19e   : > { %v2590_v2 = vmax.f32 %v2588_v62, %v2589_v63 }
 0x19f   : > { %2957 = vst.msk [vmem:[%s4061_s17 + $0x44] sm:$0xf] %vm2939_vm4, %v2908_v59  ;;  %v2587_v61 = vmax.f32 %v2585_v60, %v2586_v56 }
 0x1a1   : > { %v2813_v0 = vadd.f32 %v4051_v24, %v2587_v61 }
 0x1a3   : > { %v2861_v1 = vmax.f32 %v2813_v0, 0.0  ;;  %v2261_v3 = vpop.f32.mrf.mxu2  ;;  %v2381_v4 = vpop.f32.mrf.mxu3 }
 0x1a4   : > { %v2591_v7 = vsel %vm2454_vm3, %v2261_v3, -inf  ;;  %v2024_v8 = vpop.f32.mrf.mxu0  ;;  %v2144_v9 = vpop.f32.mrf.mxu1  ;;  %v2593_v14 = vsel %vm2454_vm3, %v2381_v4, -inf }
 0x1a5   : > { %v2909_v12 = vpack.c.bf16 %v2861_v1, %v2861_v1  ;;  %v2592_v13 = vmax.f32 %v2590_v2, %v2591_v7  ;;  %v2595_v15 = vsel %vm2454_vm3, %v2024_v8, -inf  ;;  %v2596_v16 = vsel %vm2454_vm3, %v2144_v9, -inf  ;;  %v3592_v7 = vld [vmem:[%s3968_s8 + $0x160] sm:$0xff] }
 0x1a6   : > { %v2597_v19 = vmax.f32 %v2595_v15, %v2596_v16 }
 0x1a7   : > { %2958 = vst.msk [vmem:[%s4061_s17 + $0x48] sm:$0xf] %vm2939_vm4, %v2909_v12  ;;  %v2594_v17 = vmax.f32 %v2592_v13, %v2593_v14  ;;  %3467 = vmatmul.msk.bf16.gmra.mxu0 %vm1669_vm2, %v3566_v5  ;;  %3491 = vmatmul.msk.bf16.gmra.mxu1 %vm1669_vm2, %v3590_v6  ;;  %v3568_v6 = vld [vmem:[%s3968_s8 + $0xa0] sm:$0xff] }
 0x1a8   : > { %3515 = vmatmul.msk.bf16.gmra.mxu2 %vm1669_vm2, %v3614_v10  ;;  %3539 = vmatmul.msk.bf16.gmra.mxu3 %vm1669_vm2, %v3638_v11  ;;  %v3616_v11 = vld [vmem:[%s3968_s8 + $0x220] sm:$0xff] }
 0x1a9   : > { %v2814_v18 = vadd.f32 %v4051_v24, %v2594_v17  ;;  %v3640_v12 = vld [vmem:[%s3968_s8 + $0x2e0] sm:$0xff] }
 0x1ab   : > { %v2862_v20 = vmax.f32 %v2814_v18, 0.0  ;;  %v2264_v21 = vpop.f32.mrf.mxu2  ;;  %v2384_v22 = vpop.f32.mrf.mxu3 }
 0x1ac   : > { %v2598_v23 = vsel %vm2454_vm3, %v2264_v21, -inf  ;;  %v2600_v25 = vsel %vm2454_vm3, %v2384_v22, -inf  ;;  %v2026_v26 = vpop.f32.mrf.mxu0  ;;  %v2146_v27 = vpop.f32.mrf.mxu1 }
 0x1ad   : > { %v2910_v28 = vpack.c.bf16 %v2862_v20, %v2862_v20  ;;  %v2599_v29 = vmax.f32 %v2597_v19, %v2598_v23  ;;  %v2602_v31 = vsel %vm2454_vm3, %v2026_v26, -inf  ;;  %v2603_v32 = vsel %vm2454_vm3, %v2146_v27, -inf }
 0x1ae   : > { %v2604_v35 = vmax.f32 %v2602_v31, %v2603_v32 }
 0x1af   : > { %2959 = vst.msk [vmem:[%s4061_s17 + $0x4c] sm:$0xf] %vm2939_vm4, %v2910_v28  ;;  %v2601_v30 = vmax.f32 %v2599_v29, %v2600_v25 }
 0x1b1   : > { %v2815_v33 = vadd.f32 %v4051_v24, %v2601_v30 }
 0x1b3   : > { %v2863_v34 = vmax.f32 %v2815_v33, 0.0  ;;  %v2266_v36 = vpop.f32.mrf.mxu2  ;;  %v2386_v37 = vpop.f32.mrf.mxu3 }
 0x1b4   : > { %v2605_v40 = vsel %vm2454_vm3, %v2266_v36, -inf  ;;  %v2029_v41 = vpop.f32.mrf.mxu0  ;;  %v2149_v42 = vpop.f32.mrf.mxu1  ;;  %v2607_v47 = vsel %vm2454_vm3, %v2386_v37, -inf }
 0x1b5   : > { %v2911_v45 = vpack.c.bf16 %v2863_v34, %v2863_v34  ;;  %v2606_v46 = vmax.f32 %v2604_v35, %v2605_v40  ;;  %v2609_v48 = vsel %vm2454_vm3, %v2029_v41, -inf  ;;  %v2610_v49 = vsel %vm2454_vm3, %v2149_v42, -inf  ;;  %v3593_v40 = vld [vmem:[%s3968_s8 + $0x168] sm:$0xff] }
 0x1b6   : > { %v2611_v52 = vmax.f32 %v2609_v48, %v2610_v49 }
 0x1b7   : > { %2960 = vst.msk [vmem:[%s4061_s17 + $0x50] sm:$0xf] %vm2939_vm4, %v2911_v45  ;;  %v2608_v50 = vmax.f32 %v2606_v46, %v2607_v47  ;;  %3468 = vmatmul.msk.bf16.gmra.mxu0 %vm1669_vm2, %v3567_v38  ;;  %3492 = vmatmul.msk.bf16.gmra.mxu1 %vm1669_vm2, %v3591_v39  ;;  %v3569_v39 = vld [vmem:[%s3968_s8 + $0xa8] sm:$0xff] }
 0x1b8   : > { %3516 = vmatmul.msk.bf16.gmra.mxu2 %vm1669_vm2, %v3615_v43  ;;  %3540 = vmatmul.msk.bf16.gmra.mxu3 %vm1669_vm2, %v3639_v44  ;;  %v3617_v44 = vld [vmem:[%s3968_s8 + $0x228] sm:$0xff] }
 0x1b9   : > { %v2816_v51 = vadd.f32 %v4051_v24, %v2608_v50  ;;  %v3641_v45 = vld [vmem:[%s3968_s8 + $0x2e8] sm:$0xff] }
 0x1bb   : > { %v2864_v53 = vmax.f32 %v2816_v51, 0.0  ;;  %v2269_v54 = vpop.f32.mrf.mxu2  ;;  %v2389_v55 = vpop.f32.mrf.mxu3 }
 0x1bc   : > { %v2612_v56 = vsel %vm2454_vm3, %v2269_v54, -inf  ;;  %v2614_v57 = vsel %vm2454_vm3, %v2389_v55, -inf  ;;  %v2031_v58 = vpop.f32.mrf.mxu0  ;;  %v2151_v59 = vpop.f32.mrf.mxu1 }
 0x1bd   : > { %v2912_v60 = vpack.c.bf16 %v2864_v53, %v2864_v53  ;;  %v2613_v61 = vmax.f32 %v2611_v52, %v2612_v56  ;;  %v2616_v63 = vsel %vm2454_vm3, %v2031_v58, -inf  ;;  %v2617_v0 = vsel %vm2454_vm3, %v2151_v59, -inf }
 0x1be   : > { %v2618_v3 = vmax.f32 %v2616_v63, %v2617_v0 }
 0x1bf   : > { %2961 = vst.msk [vmem:[%s4061_s17 + $0x54] sm:$0xf] %vm2939_vm4, %v2912_v60  ;;  %v2615_v62 = vmax.f32 %v2613_v61, %v2614_v57 }
 0x1c1   : > { %v2817_v1 = vadd.f32 %v4051_v24, %v2615_v62 }
 0x1c3   : > { %v2865_v2 = vmax.f32 %v2817_v1, 0.0  ;;  %v2271_v4 = vpop.f32.mrf.mxu2  ;;  %v2391_v5 = vpop.f32.mrf.mxu3 }
 0x1c4   : > { %v2619_v8 = vsel %vm2454_vm3, %v2271_v4, -inf  ;;  %v2034_v9 = vpop.f32.mrf.mxu0  ;;  %v2154_v10 = vpop.f32.mrf.mxu1  ;;  %v2621_v15 = vsel %vm2454_vm3, %v2391_v5, -inf }
 0x1c5   : > { %v2913_v13 = vpack.c.bf16 %v2865_v2, %v2865_v2  ;;  %v2620_v14 = vmax.f32 %v2618_v3, %v2619_v8  ;;  %v2623_v16 = vsel %vm2454_vm3, %v2034_v9, -inf  ;;  %v2624_v17 = vsel %vm2454_vm3, %v2154_v10, -inf  ;;  %v3594_v8 = vld [vmem:[%s3968_s8 + $0x170] sm:$0xff] }
 0x1c6   : > { %v2625_v20 = vmax.f32 %v2623_v16, %v2624_v17 }
 0x1c7   : > { %2962 = vst.msk [vmem:[%s4061_s17 + $0x58] sm:$0xf] %vm2939_vm4, %v2913_v13  ;;  %v2622_v18 = vmax.f32 %v2620_v14, %v2621_v15  ;;  %3469 = vmatmul.msk.bf16.gmra.mxu0 %vm1669_vm2, %v3568_v6  ;;  %3493 = vmatmul.msk.bf16.gmra.mxu1 %vm1669_vm2, %v3592_v7  ;;  %v3570_v7 = vld [vmem:[%s3968_s8 + $0xb0] sm:$0xff] }
 0x1c8   : > { %3517 = vmatmul.msk.bf16.gmra.mxu2 %vm1669_vm2, %v3616_v11  ;;  %3541 = vmatmul.msk.bf16.gmra.mxu3 %vm1669_vm2, %v3640_v12  ;;  %v3618_v12 = vld [vmem:[%s3968_s8 + $0x230] sm:$0xff] }
 0x1c9   : > { %v2818_v19 = vadd.f32 %v4051_v24, %v2622_v18  ;;  %v3642_v13 = vld [vmem:[%s3968_s8 + $0x2f0] sm:$0xff] }
 0x1cb   : > { %v2866_v21 = vmax.f32 %v2818_v19, 0.0  ;;  %v2274_v22 = vpop.f32.mrf.mxu2  ;;  %v2394_v23 = vpop.f32.mrf.mxu3  ;;  %v4364_v19 = vld [vmem:[%s4527_s2] ss:$0 sm:$0xff] }
 0x1cc   : > { %v2626_v25 = vsel %vm2454_vm3, %v2274_v22, -inf  ;;  %v2628_v26 = vsel %vm2454_vm3, %v2394_v23, -inf  ;;  %v2036_v27 = vpop.f32.mrf.mxu0  ;;  %v2156_v28 = vpop.f32.mrf.mxu1 }
 0x1cd   : > { %v2914_v29 = vpack.c.bf16 %v2866_v21, %v2866_v21  ;;  %v2627_v30 = vmax.f32 %v2625_v20, %v2626_v25  ;;  %v2630_v32 = vsel %vm2454_vm3, %v2036_v27, -inf  ;;  %v2631_v33 = vsel %vm2454_vm3, %v2156_v28, -inf }
 0x1ce   : > { %v2632_v36 = vmax.f32 %v2630_v32, %v2631_v33 }
 0x1cf   : > { %2963 = vst.msk [vmem:[%s4061_s17 + $0x5c] sm:$0xf] %vm2939_vm4, %v2914_v29  ;;  %v2629_v31 = vmax.f32 %v2627_v30, %v2628_v26 }
 0x1d1   : > { %v2819_v34 = vadd.f32 %v4051_v24, %v2629_v31 }
 0x1d3   : > { %v2867_v35 = vmax.f32 %v2819_v34, 0.0  ;;  %v2276_v37 = vpop.f32.mrf.mxu2  ;;  %v2396_v38 = vpop.f32.mrf.mxu3 }
 0x1d4   : > { %v2633_v41 = vsel %vm2454_vm3, %v2276_v37, -inf  ;;  %v2039_v42 = vpop.f32.mrf.mxu0  ;;  %v2159_v43 = vpop.f32.mrf.mxu1  ;;  %v2635_v48 = vsel %vm2454_vm3, %v2396_v38, -inf }
 0x1d5   : > { %v2915_v46 = vpack.c.bf16 %v2867_v35, %v2867_v35  ;;  %v2634_v47 = vmax.f32 %v2632_v36, %v2633_v41  ;;  %v2637_v49 = vsel %vm2454_vm3, %v2039_v42, -inf  ;;  %v2638_v50 = vsel %vm2454_vm3, %v2159_v43, -inf  ;;  %v3595_v41 = vld [vmem:[%s3968_s8 + $0x178] sm:$0xff] }
 0x1d6   : > { %v2639_v53 = vmax.f32 %v2637_v49, %v2638_v50 }
 0x1d7   : > { %2964 = vst.msk [vmem:[%s4061_s17 + $0x60] sm:$0xf] %vm2939_vm4, %v2915_v46  ;;  %v2636_v51 = vmax.f32 %v2634_v47, %v2635_v48  ;;  %3470 = vmatmul.msk.bf16.gmra.mxu0 %vm1669_vm2, %v3569_v39  ;;  %3494 = vmatmul.msk.bf16.gmra.mxu1 %vm1669_vm2, %v3593_v40  ;;  %v3571_v40 = vld [vmem:[%s3968_s8 + $0xb8] sm:$0xff] }
 0x1d8   : > { %3518 = vmatmul.msk.bf16.gmra.mxu2 %vm1669_vm2, %v3617_v44  ;;  %3542 = vmatmul.msk.bf16.gmra.mxu3 %vm1669_vm2, %v3641_v45  ;;  %v3619_v45 = vld [vmem:[%s3968_s8 + $0x238] sm:$0xff] }
 0x1d9   : > { %v2820_v52 = vadd.f32 %v4051_v24, %v2636_v51  ;;  %v3643_v46 = vld [vmem:[%s3968_s8 + $0x2f8] sm:$0xff] }
 0x1db   : > { %v2868_v54 = vmax.f32 %v2820_v52, 0.0  ;;  %v2279_v55 = vpop.f32.mrf.mxu2  ;;  %v2399_v56 = vpop.f32.mrf.mxu3 }
 0x1dc   : > { %v2640_v57 = vsel %vm2454_vm3, %v2279_v55, -inf  ;;  %v2642_v58 = vsel %vm2454_vm3, %v2399_v56, -inf  ;;  %v2041_v59 = vpop.f32.mrf.mxu0  ;;  %v2161_v60 = vpop.f32.mrf.mxu1 }
 0x1dd   : > { %v2916_v61 = vpack.c.bf16 %v2868_v54, %v2868_v54  ;;  %v2641_v62 = vmax.f32 %v2639_v53, %v2640_v57  ;;  %v2644_v0 = vsel %vm2454_vm3, %v2041_v59, -inf  ;;  %v2645_v1 = vsel %vm2454_vm3, %v2161_v60, -inf }
 0x1de   : > { %v2646_v4 = vmax.f32 %v2644_v0, %v2645_v1 }
 0x1df   : > { %2965 = vst.msk [vmem:[%s4061_s17 + $0x64] sm:$0xf] %vm2939_vm4, %v2916_v61  ;;  %v2643_v63 = vmax.f32 %v2641_v62, %v2642_v58 }
 0x1e1   : > { %v2821_v2 = vadd.f32 %v4051_v24, %v2643_v63 }
 0x1e3   : > { %v2869_v3 = vmax.f32 %v2821_v2, 0.0  ;;  %v2281_v5 = vpop.f32.mrf.mxu2  ;;  %v2401_v6 = vpop.f32.mrf.mxu3 }
 0x1e4   : > { %v2647_v9 = vsel %vm2454_vm3, %v2281_v5, -inf  ;;  %v2044_v10 = vpop.f32.mrf.mxu0  ;;  %v2164_v11 = vpop.f32.mrf.mxu1  ;;  %v2649_v16 = vsel %vm2454_vm3, %v2401_v6, -inf }
 0x1e5   : > { %v2917_v14 = vpack.c.bf16 %v2869_v3, %v2869_v3  ;;  %v2648_v15 = vmax.f32 %v2646_v4, %v2647_v9  ;;  %v2651_v17 = vsel %vm2454_vm3, %v2044_v10, -inf  ;;  %v2652_v24 = vsel %vm2454_vm3, %v2164_v11, -inf }
 0x1e6   : > { %v2653_v21 = vmax.f32 %v2651_v17, %v2652_v24 }
 0x1e7   : > { %2966 = vst.msk [vmem:[%s4061_s17 + $0x68] sm:$0xf] %vm2939_vm4, %v2917_v14  ;;  %v2650_v18 = vmax.f32 %v2648_v15, %v2649_v16  ;;  %3471 = vmatmul.msk.bf16.gmra.mxu0 %vm1669_vm2, %v3570_v7  ;;  %3495 = vmatmul.msk.bf16.gmra.mxu1 %vm1669_vm2, %v3594_v8 }
 0x1e8   : > { %3519 = vmatmul.msk.bf16.gmra.mxu2 %vm1669_vm2, %v3618_v12  ;;  %3543 = vmatmul.msk.bf16.gmra.mxu3 %vm1669_vm2, %v3642_v13 }
 0x1e9   : > { %v2822_v20 = vadd.f32 %v4364_v19, %v2650_v18 }
 0x1eb   : > { %v2870_v22 = vmax.f32 %v2822_v20, 0.0  ;;  %v2284_v23 = vpop.f32.mrf.mxu2  ;;  %v2404_v25 = vpop.f32.mrf.mxu3 }
 0x1ec   : > { %v2654_v26 = vsel %vm2454_vm3, %v2284_v23, -inf  ;;  %v2656_v27 = vsel %vm2454_vm3, %v2404_v25, -inf  ;;  %v2046_v28 = vpop.f32.mrf.mxu0  ;;  %v2166_v29 = vpop.f32.mrf.mxu1 }
 0x1ed   : > { %v2918_v30 = vpack.c.bf16 %v2870_v22, %v2870_v22  ;;  %v2655_v31 = vmax.f32 %v2653_v21, %v2654_v26  ;;  %v2658_v33 = vsel %vm2454_vm3, %v2046_v28, -inf  ;;  %v2659_v34 = vsel %vm2454_vm3, %v2166_v29, -inf }
 0x1ee   : > { %v2660_v37 = vmax.f32 %v2658_v33, %v2659_v34 }
 0x1ef   : > { %2967 = vst.msk [vmem:[%s4061_s17 + $0x6c] sm:$0xf] %vm2939_vm4, %v2918_v30  ;;  %v2657_v32 = vmax.f32 %v2655_v31, %v2656_v27 }
 0x1f1   : > { %v2823_v35 = vadd.f32 %v4364_v19, %v2657_v32 }
 0x1f3   : > { %v2871_v36 = vmax.f32 %v2823_v35, 0.0  ;;  %v2286_v38 = vpop.f32.mrf.mxu2  ;;  %v2406_v39 = vpop.f32.mrf.mxu3 }
 0x1f4   : > { %v2661_v42 = vsel %vm2454_vm3, %v2286_v38, -inf  ;;  %v2049_v43 = vpop.f32.mrf.mxu0  ;;  %v2169_v44 = vpop.f32.mrf.mxu1  ;;  %v2663_v49 = vsel %vm2454_vm3, %v2406_v39, -inf }
 0x1f5   : > { %v2919_v47 = vpack.c.bf16 %v2871_v36, %v2871_v36  ;;  %v2662_v48 = vmax.f32 %v2660_v37, %v2661_v42  ;;  %v2665_v50 = vsel %vm2454_vm3, %v2049_v43, -inf  ;;  %v2666_v51 = vsel %vm2454_vm3, %v2169_v44, -inf }
 0x1f6   : > { %v2667_v54 = vmax.f32 %v2665_v50, %v2666_v51 }
 0x1f7   : > { %2968 = vst.msk [vmem:[%s4061_s17 + $0x70] sm:$0xf] %vm2939_vm4, %v2919_v47  ;;  %v2664_v52 = vmax.f32 %v2662_v48, %v2663_v49  ;;  %3472 = vmatmul.msk.bf16.gmra.mxu0 %vm1669_vm2, %v3571_v40  ;;  %3496 = vmatmul.msk.bf16.gmra.mxu1 %vm1669_vm2, %v3595_v41 }
 0x1f8   : > { %3520 = vmatmul.msk.bf16.gmra.mxu2 %vm1669_vm2, %v3619_v45  ;;  %3544 = vmatmul.msk.bf16.gmra.mxu3 %vm1669_vm2, %v3643_v46 }
 0x1f9   : > { %v2824_v53 = vadd.f32 %v4364_v19, %v2664_v52 }
 0x1fb   : > { %v2872_v55 = vmax.f32 %v2824_v53, 0.0  ;;  %v2289_v56 = vpop.f32.mrf.mxu2  ;;  %v2409_v57 = vpop.f32.mrf.mxu3 }
 0x1fc   : > { %v2668_v58 = vsel %vm2454_vm3, %v2289_v56, -inf  ;;  %v2670_v59 = vsel %vm2454_vm3, %v2409_v57, -inf  ;;  %v2051_v60 = vpop.f32.mrf.mxu0  ;;  %v2171_v61 = vpop.f32.mrf.mxu1 }
 0x1fd   : > { %v2920_v62 = vpack.c.bf16 %v2872_v55, %v2872_v55  ;;  %v2669_v63 = vmax.f32 %v2667_v54, %v2668_v58  ;;  %v2672_v1 = vsel %vm2454_vm3, %v2051_v60, -inf  ;;  %v2673_v2 = vsel %vm2454_vm3, %v2171_v61, -inf }
 0x1fe   : > { %v2674_v5 = vmax.f32 %v2672_v1, %v2673_v2 }
 0x1ff   : > { %2969 = vst.msk [vmem:[%s4061_s17 + $0x74] sm:$0xf] %vm2939_vm4, %v2920_v62  ;;  %v2671_v0 = vmax.f32 %v2669_v63, %v2670_v59 }
 0x201   : > { %v2825_v3 = vadd.f32 %v4364_v19, %v2671_v0 }
 0x203   : > { %v2873_v4 = vmax.f32 %v2825_v3, 0.0  ;;  %v2291_v6 = vpop.f32.mrf.mxu2  ;;  %v2411_v7 = vpop.f32.mrf.mxu3 }
 0x204   : > { %v2675_v8 = vsel %vm2454_vm3, %v2291_v6, -inf  ;;  %v2054_v9 = vpop.f32.mrf.mxu0  ;;  %v2174_v10 = vpop.f32.mrf.mxu1  ;;  %v2677_v13 = vsel %vm2454_vm3, %v2411_v7, -inf }
 0x205   : > { %v2921_v11 = vpack.c.bf16 %v2873_v4, %v2873_v4  ;;  %v2676_v12 = vmax.f32 %v2674_v5, %v2675_v8  ;;  %v2679_v14 = vsel %vm2454_vm3, %v2054_v9, -inf  ;;  %v2680_v15 = vsel %vm2454_vm3, %v2174_v10, -inf }
 0x206   : > { %v2681_v24 = vmax.f32 %v2679_v14, %v2680_v15 }
 0x207   : > { %2970 = vst.msk [vmem:[%s4061_s17 + $0x78] sm:$0xf] %vm2939_vm4, %v2921_v11  ;;  %v2678_v16 = vmax.f32 %v2676_v12, %v2677_v13 }
 0x209   : > { %v2826_v17 = vadd.f32 %v4364_v19, %v2678_v16 }
 0x20b   : > { %v2874_v18 = vmax.f32 %v2826_v17, 0.0  ;;  %v2294_v20 = vpop.f32.mrf.mxu2  ;;  %v2414_v21 = vpop.f32.mrf.mxu3 }
 0x20c   : > { %v2682_v22 = vsel %vm2454_vm3, %v2294_v20, -inf  ;;  %v2684_v23 = vsel %vm2454_vm3, %v2414_v21, -inf  ;;  %v2056_v25 = vpop.f32.mrf.mxu0  ;;  %v2176_v26 = vpop.f32.mrf.mxu1 }
 0x20d   : > { %v2922_v27 = vpack.c.bf16 %v2874_v18, %v2874_v18  ;;  %v2683_v28 = vmax.f32 %v2681_v24, %v2682_v22  ;;  %v2686_v30 = vsel %vm2454_vm3, %v2056_v25, -inf  ;;  %v2687_v31 = vsel %vm2454_vm3, %v2176_v26, -inf }
 0x20e   : > { %v2688_v34 = vmax.f32 %v2686_v30, %v2687_v31 }
 0x20f   : > { %2971 = vst.msk [vmem:[%s4061_s17 + $0x7c] sm:$0xf] %vm2939_vm4, %v2922_v27  ;;  %v2685_v29 = vmax.f32 %v2683_v28, %v2684_v23 }
 0x211   : > { %v2827_v32 = vadd.f32 %v4364_v19, %v2685_v29 }
 0x213   : > { %v2875_v33 = vmax.f32 %v2827_v32, 0.0  ;;  %v2296_v35 = vpop.f32.mrf.mxu2  ;;  %v2416_v36 = vpop.f32.mrf.mxu3 }
 0x214   : > { %v2689_v37 = vsel %vm2454_vm3, %v2296_v35, -inf  ;;  %v2059_v38 = vpop.f32.mrf.mxu0  ;;  %v2179_v39 = vpop.f32.mrf.mxu1  ;;  %v2691_v42 = vsel %vm2454_vm3, %v2416_v36, -inf }
 0x215   : > { %v2923_v40 = vpack.c.bf16 %v2875_v33, %v2875_v33  ;;  %v2690_v41 = vmax.f32 %v2688_v34, %v2689_v37  ;;  %v2693_v43 = vsel %vm2454_vm3, %v2059_v38, -inf  ;;  %v2694_v44 = vsel %vm2454_vm3, %v2179_v39, -inf }
 0x216   : > { %v2695_v47 = vmax.f32 %v2693_v43, %v2694_v44 }
 0x217   : > { %2972 = vst.msk [vmem:[%s4061_s17 + $0x80] sm:$0xf] %vm2939_vm4, %v2923_v40  ;;  %v2692_v45 = vmax.f32 %v2690_v41, %v2691_v42 }
 0x219   : > { %v2828_v46 = vadd.f32 %v4364_v19, %v2692_v45 }
 0x21b   : > { %v2876_v48 = vmax.f32 %v2828_v46, 0.0  ;;  %v2299_v49 = vpop.f32.mrf.mxu2  ;;  %v2419_v50 = vpop.f32.mrf.mxu3 }
 0x21c   : > { %v2696_v51 = vsel %vm2454_vm3, %v2299_v49, -inf  ;;  %v2698_v52 = vsel %vm2454_vm3, %v2419_v50, -inf  ;;  %v2061_v53 = vpop.f32.mrf.mxu0  ;;  %v2181_v54 = vpop.f32.mrf.mxu1 }
 0x21d   : > { %v2924_v55 = vpack.c.bf16 %v2876_v48, %v2876_v48  ;;  %v2697_v56 = vmax.f32 %v2695_v47, %v2696_v51  ;;  %v2700_v58 = vsel %vm2454_vm3, %v2061_v53, -inf  ;;  %v2701_v59 = vsel %vm2454_vm3, %v2181_v54, -inf }
 0x21e   : > { %v2702_v62 = vmax.f32 %v2700_v58, %v2701_v59 }
 0x21f   : > { %2973 = vst.msk [vmem:[%s4061_s17 + $0x84] sm:$0xf] %vm2939_vm4, %v2924_v55  ;;  %v2699_v57 = vmax.f32 %v2697_v56, %v2698_v52 }
 0x221   : > { %v2829_v60 = vadd.f32 %v4364_v19, %v2699_v57 }
 0x223   : > { %v2877_v61 = vmax.f32 %v2829_v60, 0.0  ;;  %v2301_v63 = vpop.f32.mrf.mxu2  ;;  %v2421_v0 = vpop.f32.mrf.mxu3 }
 0x224   : > { %v2703_v1 = vsel %vm2454_vm3, %v2301_v63, -inf  ;;  %v2064_v2 = vpop.f32.mrf.mxu0  ;;  %v2184_v3 = vpop.f32.mrf.mxu1  ;;  %v2705_v6 = vsel %vm2454_vm3, %v2421_v0, -inf }
 0x225   : > { %v2925_v4 = vpack.c.bf16 %v2877_v61, %v2877_v61  ;;  %v2704_v5 = vmax.f32 %v2702_v62, %v2703_v1  ;;  %v2707_v7 = vsel %vm2454_vm3, %v2064_v2, -inf  ;;  %v2708_v8 = vsel %vm2454_vm3, %v2184_v3, -inf }
 0x226   : > { %v2709_v11 = vmax.f32 %v2707_v7, %v2708_v8 }
 0x227   : > { %2974 = vst.msk [vmem:[%s4061_s17 + $0x88] sm:$0xf] %vm2939_vm4, %v2925_v4  ;;  %v2706_v9 = vmax.f32 %v2704_v5, %v2705_v6 }
 0x229   : > { %v2830_v10 = vadd.f32 %v4364_v19, %v2706_v9 }
 0x22b   : > { %v2878_v12 = vmax.f32 %v2830_v10, 0.0  ;;  %v2304_v13 = vpop.f32.mrf.mxu2  ;;  %v2424_v14 = vpop.f32.mrf.mxu3 }
 0x22c   : > { %v2710_v15 = vsel %vm2454_vm3, %v2304_v13, -inf  ;;  %v2712_v16 = vsel %vm2454_vm3, %v2424_v14, -inf  ;;  %v2066_v17 = vpop.f32.mrf.mxu0  ;;  %v2186_v24 = vpop.f32.mrf.mxu1 }
 0x22d   : > { %v2926_v18 = vpack.c.bf16 %v2878_v12, %v2878_v12  ;;  %v2711_v20 = vmax.f32 %v2709_v11, %v2710_v15  ;;  %v2714_v22 = vsel %vm2454_vm3, %v2066_v17, -inf  ;;  %v2715_v23 = vsel %vm2454_vm3, %v2186_v24, -inf }
 0x22e   : > { %v2716_v27 = vmax.f32 %v2714_v22, %v2715_v23 }
 0x22f   : > { %2975 = vst.msk [vmem:[%s4061_s17 + $0x8c] sm:$0xf] %vm2939_vm4, %v2926_v18  ;;  %v2713_v21 = vmax.f32 %v2711_v20, %v2712_v16 }
 0x231   : > { %v2831_v25 = vadd.f32 %v4364_v19, %v2713_v21 }
 0x233   : > { %v2879_v26 = vmax.f32 %v2831_v25, 0.0  ;;  %v2306_v28 = vpop.f32.mrf.mxu2  ;;  %v2426_v29 = vpop.f32.mrf.mxu3 }
 0x234   : > { %v2717_v30 = vsel %vm2454_vm3, %v2306_v28, -inf  ;;  %v2069_v31 = vpop.f32.mrf.mxu0  ;;  %v2189_v32 = vpop.f32.mrf.mxu1  ;;  %v2719_v35 = vsel %vm2454_vm3, %v2426_v29, -inf }
 0x235   : > { %v2927_v33 = vpack.c.bf16 %v2879_v26, %v2879_v26  ;;  %v2718_v34 = vmax.f32 %v2716_v27, %v2717_v30  ;;  %v2721_v36 = vsel %vm2454_vm3, %v2069_v31, -inf  ;;  %v2722_v37 = vsel %vm2454_vm3, %v2189_v32, -inf }
 0x236   : > { %v2723_v40 = vmax.f32 %v2721_v36, %v2722_v37 }
 0x237   : > { %2976 = vst.msk [vmem:[%s4061_s17 + $0x90] sm:$0xf] %vm2939_vm4, %v2927_v33  ;;  %v2720_v38 = vmax.f32 %v2718_v34, %v2719_v35 }
 0x239   : > { %v2832_v39 = vadd.f32 %v4364_v19, %v2720_v38 }
 0x23b   : > { %v2880_v41 = vmax.f32 %v2832_v39, 0.0  ;;  %v2309_v42 = vpop.f32.mrf.mxu2  ;;  %v2429_v43 = vpop.f32.mrf.mxu3 }
 0x23c   : > { %v2724_v44 = vsel %vm2454_vm3, %v2309_v42, -inf  ;;  %v2726_v45 = vsel %vm2454_vm3, %v2429_v43, -inf  ;;  %v2071_v46 = vpop.f32.mrf.mxu0  ;;  %v2191_v47 = vpop.f32.mrf.mxu1 }
 0x23d   : > { %v2928_v48 = vpack.c.bf16 %v2880_v41, %v2880_v41  ;;  %v2725_v49 = vmax.f32 %v2723_v40, %v2724_v44  ;;  %v2728_v51 = vsel %vm2454_vm3, %v2071_v46, -inf  ;;  %v2729_v52 = vsel %vm2454_vm3, %v2191_v47, -inf }
 0x23e   : > { %v2730_v55 = vmax.f32 %v2728_v51, %v2729_v52 }
 0x23f   : > { %2977 = vst.msk [vmem:[%s4061_s17 + $0x94] sm:$0xf] %vm2939_vm4, %v2928_v48  ;;  %v2727_v50 = vmax.f32 %v2725_v49, %v2726_v45 }
 0x241   : > { %v2833_v53 = vadd.f32 %v4364_v19, %v2727_v50 }
 0x243   : > { %v2881_v54 = vmax.f32 %v2833_v53, 0.0  ;;  %v2311_v56 = vpop.f32.mrf.mxu2  ;;  %v2431_v57 = vpop.f32.mrf.mxu3 }
 0x244   : > { %v2731_v58 = vsel %vm2454_vm3, %v2311_v56, -inf  ;;  %v2074_v59 = vpop.f32.mrf.mxu0  ;;  %v2194_v60 = vpop.f32.mrf.mxu1  ;;  %v2733_v63 = vsel %vm2454_vm3, %v2431_v57, -inf }
 0x245   : > { %v2929_v61 = vpack.c.bf16 %v2881_v54, %v2881_v54  ;;  %v2732_v62 = vmax.f32 %v2730_v55, %v2731_v58  ;;  %v2735_v0 = vsel %vm2454_vm3, %v2074_v59, -inf  ;;  %v2736_v1 = vsel %vm2454_vm3, %v2194_v60, -inf }
 0x246   : > { %v2737_v4 = vmax.f32 %v2735_v0, %v2736_v1 }
 0x247   : > { %2978 = vst.msk [vmem:[%s4061_s17 + $0x98] sm:$0xf] %vm2939_vm4, %v2929_v61  ;;  %v2734_v2 = vmax.f32 %v2732_v62, %v2733_v63 }
 0x249   : > { %v2834_v3 = vadd.f32 %v4364_v19, %v2734_v2 }
 0x24b   : > { %v2882_v5 = vmax.f32 %v2834_v3, 0.0  ;;  %v2314_v6 = vpop.f32.mrf.mxu2  ;;  %v2434_v7 = vpop.f32.mrf.mxu3 }
 0x24c   : > { %v2738_v8 = vsel %vm2454_vm3, %v2314_v6, -inf  ;;  %v2740_v9 = vsel %vm2454_vm3, %v2434_v7, -inf  ;;  %v2076_v10 = vpop.f32.mrf.mxu0  ;;  %v2196_v11 = vpop.f32.mrf.mxu1 }
 0x24d   : > { %v2930_v12 = vpack.c.bf16 %v2882_v5, %v2882_v5  ;;  %v2739_v13 = vmax.f32 %v2737_v4, %v2738_v8  ;;  %v2742_v15 = vsel %vm2454_vm3, %v2076_v10, -inf  ;;  %v2743_v16 = vsel %vm2454_vm3, %v2196_v11, -inf }
 0x24e   : > { %v2744_v18 = vmax.f32 %v2742_v15, %v2743_v16 }
 0x24f   : > { %2979 = vst.msk [vmem:[%s4061_s17 + $0x9c] sm:$0xf] %vm2939_vm4, %v2930_v12  ;;  %v2741_v14 = vmax.f32 %v2739_v13, %v2740_v9 }
 0x251   : > { %v2835_v17 = vadd.f32 %v4364_v19, %v2741_v14 }
 0x253   : > { %v2883_v24 = vmax.f32 %v2835_v17, 0.0  ;;  %v2316_v20 = vpop.f32.mrf.mxu2  ;;  %v2436_v21 = vpop.f32.mrf.mxu3 }
 0x254   : > { %v2745_v22 = vsel %vm2454_vm3, %v2316_v20, -inf  ;;  %v2079_v23 = vpop.f32.mrf.mxu0  ;;  %v2199_v25 = vpop.f32.mrf.mxu1  ;;  %v2747_v28 = vsel %vm2454_vm3, %v2436_v21, -inf }
 0x255   : > { %v2931_v26 = vpack.c.bf16 %v2883_v24, %v2883_v24  ;;  %v2746_v27 = vmax.f32 %v2744_v18, %v2745_v22  ;;  %v2749_v29 = vsel %vm2454_vm3, %v2079_v23, -inf  ;;  %v2750_v30 = vsel %vm2454_vm3, %v2199_v25, -inf }
 0x256   : > { %v2751_v33 = vmax.f32 %v2749_v29, %v2750_v30 }
 0x257   : > { %2980 = vst.msk [vmem:[%s4061_s17 + $0xa0] sm:$0xf] %vm2939_vm4, %v2931_v26  ;;  %v2748_v31 = vmax.f32 %v2746_v27, %v2747_v28 }
 0x259   : > { %v2836_v32 = vadd.f32 %v4364_v19, %v2748_v31 }
 0x25b   : > { %v2884_v34 = vmax.f32 %v2836_v32, 0.0  ;;  %v2319_v35 = vpop.f32.mrf.mxu2  ;;  %v2439_v36 = vpop.f32.mrf.mxu3 }
 0x25c   : > { %v2752_v37 = vsel %vm2454_vm3, %v2319_v35, -inf  ;;  %v2754_v38 = vsel %vm2454_vm3, %v2439_v36, -inf  ;;  %v2081_v39 = vpop.f32.mrf.mxu0  ;;  %v2201_v40 = vpop.f32.mrf.mxu1 }
 0x25d   : > { %v2932_v41 = vpack.c.bf16 %v2884_v34, %v2884_v34  ;;  %v2753_v42 = vmax.f32 %v2751_v33, %v2752_v37  ;;  %v2756_v44 = vsel %vm2454_vm3, %v2081_v39, -inf  ;;  %v2757_v45 = vsel %vm2454_vm3, %v2201_v40, -inf }
 0x25e   : > { %v2758_v48 = vmax.f32 %v2756_v44, %v2757_v45 }
 0x25f   : > { %2981 = vst.msk [vmem:[%s4061_s17 + $0xa4] sm:$0xf] %vm2939_vm4, %v2932_v41  ;;  %v2755_v43 = vmax.f32 %v2753_v42, %v2754_v38 }
 0x261   : > { %v2837_v46 = vadd.f32 %v4364_v19, %v2755_v43 }
 0x263   : > { %v2885_v47 = vmax.f32 %v2837_v46, 0.0  ;;  %v2321_v49 = vpop.f32.mrf.mxu2  ;;  %v2441_v50 = vpop.f32.mrf.mxu3 }
 0x264   : > { %v2759_v51 = vsel %vm2454_vm3, %v2321_v49, -inf  ;;  %v2084_v52 = vpop.f32.mrf.mxu0  ;;  %v2204_v53 = vpop.f32.mrf.mxu1  ;;  %v2761_v56 = vsel %vm2454_vm3, %v2441_v50, -inf }
 0x265   : > { %v2933_v54 = vpack.c.bf16 %v2885_v47, %v2885_v47  ;;  %v2760_v55 = vmax.f32 %v2758_v48, %v2759_v51  ;;  %v2763_v57 = vsel %vm2454_vm3, %v2084_v52, -inf  ;;  %v2764_v58 = vsel %vm2454_vm3, %v2204_v53, -inf }
 0x266   : > { %v2765_v61 = vmax.f32 %v2763_v57, %v2764_v58 }
 0x267   : > { %2982 = vst.msk [vmem:[%s4061_s17 + $0xa8] sm:$0xf] %vm2939_vm4, %v2933_v54  ;;  %v2762_v59 = vmax.f32 %v2760_v55, %v2761_v56 }
 0x269   : > { %v2838_v60 = vadd.f32 %v4364_v19, %v2762_v59 }
 0x26b   : > { %v2886_v62 = vmax.f32 %v2838_v60, 0.0  ;;  %v2324_v63 = vpop.f32.mrf.mxu2  ;;  %v2444_v0 = vpop.f32.mrf.mxu3 }
 0x26c   : > { %v2766_v1 = vsel %vm2454_vm3, %v2324_v63, -inf  ;;  %v2768_v2 = vsel %vm2454_vm3, %v2444_v0, -inf  ;;  %v2086_v3 = vpop.f32.mrf.mxu0  ;;  %v2206_v4 = vpop.f32.mrf.mxu1 }
 0x26d   : > { %v2934_v5 = vpack.c.bf16 %v2886_v62, %v2886_v62  ;;  %v2767_v6 = vmax.f32 %v2765_v61, %v2766_v1  ;;  %v2770_v8 = vsel %vm2454_vm3, %v2086_v3, -inf  ;;  %v2771_v9 = vsel %vm2454_vm3, %v2206_v4, -inf }
 0x26e   : > { %v2772_v12 = vmax.f32 %v2770_v8, %v2771_v9 }
 0x26f   : > { %2983 = vst.msk [vmem:[%s4061_s17 + $0xac] sm:$0xf] %vm2939_vm4, %v2934_v5  ;;  %v2769_v7 = vmax.f32 %v2767_v6, %v2768_v2 }
 0x271   : > { %v2839_v10 = vadd.f32 %v4364_v19, %v2769_v7 }
 0x273   : > { %v2887_v11 = vmax.f32 %v2839_v10, 0.0  ;;  %v2326_v13 = vpop.f32.mrf.mxu2  ;;  %v2446_v14 = vpop.f32.mrf.mxu3 }
 0x274   : > { %v2773_v15 = vsel %vm2454_vm3, %v2326_v13, -inf  ;;  %v2089_v16 = vpop.f32.mrf.mxu0  ;;  %v2209_v17 = vpop.f32.mrf.mxu1  ;;  %v2775_v20 = vsel %vm2454_vm3, %v2446_v14, -inf }
 0x275   : > { %v2935_v24 = vpack.c.bf16 %v2887_v11, %v2887_v11  ;;  %v2774_v18 = vmax.f32 %v2772_v12, %v2773_v15  ;;  %v2777_v21 = vsel %vm2454_vm3, %v2089_v16, -inf  ;;  %v2778_v22 = vsel %vm2454_vm3, %v2209_v17, -inf }
 0x276   : > { %v2779_v26 = vmax.f32 %v2777_v21, %v2778_v22 }
 0x277   : > { %2984 = vst.msk [vmem:[%s4061_s17 + $0xb0] sm:$0xf] %vm2939_vm4, %v2935_v24  ;;  %v2776_v23 = vmax.f32 %v2774_v18, %v2775_v20 }
 0x279   : > { %v2840_v25 = vadd.f32 %v4364_v19, %v2776_v23 }
 0x27b   : > { %v2888_v27 = vmax.f32 %v2840_v25, 0.0  ;;  %v2329_v28 = vpop.f32.mrf.mxu2  ;;  %v2449_v29 = vpop.f32.mrf.mxu3 }
 0x27c   : > { %v2780_v30 = vsel %vm2454_vm3, %v2329_v28, -inf  ;;  %v2782_v31 = vsel %vm2454_vm3, %v2449_v29, -inf  ;;  %v2091_v34 = vpop.f32.mrf.mxu0  ;;  %v2211_v35 = vpop.f32.mrf.mxu1 }
 0x27d   : > { %v2936_v32 = vpack.c.bf16 %v2888_v27, %v2888_v27  ;;  %v2781_v33 = vmax.f32 %v2779_v26, %v2780_v30  ;;  %v2784_v37 = vsel %vm2454_vm3, %v2091_v34, -inf  ;;  %v2785_v38 = vsel %vm2454_vm3, %v2211_v35, -inf }
 0x27e   : > { %v2786_v41 = vmax.f32 %v2784_v37, %v2785_v38 }
 0x27f   : > { %2985 = vst.msk [vmem:[%s4061_s17 + $0xb4] sm:$0xf] %vm2939_vm4, %v2936_v32  ;;  %v2783_v36 = vmax.f32 %v2781_v33, %v2782_v31 }
 0x281   : > { %v2841_v39 = vadd.f32 %v4364_v19, %v2783_v36 }
 0x283   : > { %v2889_v40 = vmax.f32 %v2841_v39, 0.0  ;;  %v2331_v42 = vpop.f32.mrf.mxu2  ;;  %v2451_v43 = vpop.f32.mrf.mxu3 }
 0x284   : > { %v2787_v44 = vsel %vm2454_vm3, %v2331_v42, -inf  ;;  %v2789_v47 = vsel %vm2454_vm3, %v2451_v43, -inf }
 0x285   : > { %v2937_v45 = vpack.c.bf16 %v2889_v40, %v2889_v40  ;;  %v2788_v46 = vmax.f32 %v2786_v41, %v2787_v44 }
 0x287   : > { %2986 = vst.msk [vmem:[%s4061_s17 + $0xb8] sm:$0xf] %vm2939_vm4, %v2937_v45  ;;  %v2790_v48 = vmax.f32 %v2788_v46, %v2789_v47 }
 0x289   : > { %v2842_v49 = vadd.f32 %v4364_v19, %v2790_v48 }
 0x28b   : > { %v2890_v50 = vmax.f32 %v2842_v49, 0.0 }
 0x28d   : > { %v2938_v51 = vpack.c.bf16 %v2890_v50, %v2890_v50 }
 0x28f   : > { %2987 = vst.msk [vmem:[%s4061_s17 + $0xbc] sm:$0xf] %vm2939_vm4, %v2938_v51 }
 0x290 PF: > { %p10_p9 = scmp.ge.s32.totalorder %s3743_s16, 5   ;;  %s4529_s12 = smov %s3699_s13 }
 0x291   : > { %s4530_s13 = smov %s3752_s19  ;;  %s4531_s14 = smov %s3743_s16 }
 0x292   :  { %12 = sbr.rel (!%p10_p9) target bundleno = 2 (0x2), region = 108 }

// kernel: net_forward.4
= control target key start
LH: loop header
LB: loop body
LE: loop exit
PB: predicated region body
PF: predicated region fallthrough
CT: control target
= control target key end

     0   :  { %s4515_s12 = smov 0   ;;  %s4517_s13 = smov 0   ;;  %s6014_s0 = inlined_call_operand.vmem [shape: bf16[4,192,800], index: 0, kind: input, shape index: {}]   ;;  %s6015_s1 = inlined_call_operand.vmem [shape: bf16[800,64], index: 1, kind: input, shape index: {}]   ;;  %s6016_s2 = inlined_call_operand.vmem [shape: f32[1,64], index: 2, kind: input, shape index: {}]   ;;  %s6017_s3 = inlined_call_operand.vmem [shape: bf16[192,64], index: 3, kind: output, shape index: {}]  }
   0x1   :  { %s4519_s14 = smov 0  }
   0x2 LB: > { %s3199_s15 = sadd.s32 4294967295, %s4493_s14   ;;  %s4532_s16 = sadd.s32 1, %s4493_s14   ;;  %s4493_s14 = sphi %s4519_s14, %s6056_s14   ;;  %s4489_s13 = sphi %s4517_s13, %s6055_s13   ;;  %s4485_s12 = sphi %s4515_s12, %s6054_s12  }
   0x3   : > { %s17_s17 = ssub.s32 %s4493_s14, %s4532_s16  ;;  %s20_s18 = sadd.s32 1, %s4489_s13 }
   0x4   : > { %p18_p0 = scmp.eq.s32.totalorder %s17_s17, 0  ;;  %p27_p1 = scmp.ne.s32.totalorder %s4489_s13, %s4485_s12 }
   0x5   : > { %p28_p2 = scmp.eq.s32.totalorder %s4493_s14, 0  ;;  %p3202_p4 = scmp.ge.s32.totalorder %s4493_s14, 2 }
   0x6   : > { %s4541_s19 = scalar_select %p18_p0, %s4489_s13, %s20_s18  }
   0x7   : > { %p29_p3 = por %p28_p2, %p27_p1  ;;  %127 = sbr.rel (%p3202_p4) target bundleno = 210 (0xd2), region = 24 }
   0xc   : > { %130 = sbr.rel (!%p29_p3) target bundleno = 210 (0xd2), region = 28  ;;  %s132_s20 = sand.u32 (%p29_p3), 1, %s4489_s13  }
   0xd   : > { %s4442_s21 = smul.u32 (%p29_p3), 1344, %s132_s20 }
   0xe   : > { %s4445_s22 = smul.u32 (%p29_p3), 336, %s4493_s14 }
   0xf   : > { %s4554_s26 = scalar_lea.vmem (%p29_p3), [#allocation2], %s4442_s21 }
  0x10   : > { %s4549_s25 = scalar_lea.vmem (%p29_p3), %s6014_s0, %s4445_s22 }
  0x11   : > { %v153_v0 = vld [vmem:[%s4549_s25] sm:$0xff]  ;;  %v155_v1 = vld [vmem:[%s4549_s25 + $0x8] sm:$0xff]  ;;  %v157_v2 = vld [vmem:[%s4549_s25 + $0x10] sm:$0xff] }
  0x12   : > { %154 = vst [vmem:[%s4554_s26] sm:$0xff] %v153_v0  ;;  %v159_v3 = vld [vmem:[%s4549_s25 + $0x1c] sm:$0xff]  ;;  %v161_v4 = vld [vmem:[%s4549_s25 + $0x24] sm:$0xff]  ;;  %v163_v5 = vld [vmem:[%s4549_s25 + $0x2c] sm:$0xff] }
  0x13   : > { %156 = vst [vmem:[%s4554_s26 + $0x8] sm:$0xff] %v155_v1  ;;  %v165_v6 = vld [vmem:[%s4549_s25 + $0x38] sm:$0xff]  ;;  %v167_v7 = vld [vmem:[%s4549_s25 + $0x40] sm:$0xff]  ;;  %v169_v8 = vld [vmem:[%s4549_s25 + $0x48] sm:$0xff] }
  0x14   : > { %158 = vst [vmem:[%s4554_s26 + $0x10] sm:$0xff] %v157_v2  ;;  %v171_v9 = vld [vmem:[%s4549_s25 + $0x54] sm:$0xff]  ;;  %v173_v10 = vld [vmem:[%s4549_s25 + $0x5c] sm:$0xff]  ;;  %v175_v11 = vld [vmem:[%s4549_s25 + $0x64] sm:$0xff] }
  0x15   : > { %160 = vst [vmem:[%s4554_s26 + $0x1c] sm:$0xff] %v159_v3  ;;  %v177_v12 = vld [vmem:[%s4549_s25 + $0x70] sm:$0xff]  ;;  %v179_v13 = vld [vmem:[%s4549_s25 + $0x78] sm:$0xff]  ;;  %v181_v14 = vld [vmem:[%s4549_s25 + $0x80] sm:$0xff] }
  0x16   : > { %162 = vst [vmem:[%s4554_s26 + $0x24] sm:$0xff] %v161_v4  ;;  %v183_v15 = vld [vmem:[%s4549_s25 + $0x8c] sm:$0xff]  ;;  %v185_v16 = vld [vmem:[%s4549_s25 + $0x94] sm:$0xff]  ;;  %v187_v17 = vld [vmem:[%s4549_s25 + $0x9c] sm:$0xff] }
  0x17   : > { %164 = vst [vmem:[%s4554_s26 + $0x2c] sm:$0xff] %v163_v5  ;;  %v189_v18 = vld [vmem:[%s4549_s25 + $0xa8] sm:$0xff]  ;;  %v191_v19 = vld [vmem:[%s4549_s25 + $0xb0] sm:$0xff]  ;;  %v193_v20 = vld [vmem:[%s4549_s25 + $0xb8] sm:$0xff] }
  0x18   : > { %166 = vst [vmem:[%s4554_s26 + $0x38] sm:$0xff] %v165_v6  ;;  %v195_v21 = vld [vmem:[%s4549_s25 + $0xc4] sm:$0xff]  ;;  %v197_v22 = vld [vmem:[%s4549_s25 + $0xcc] sm:$0xff]  ;;  %v199_v23 = vld [vmem:[%s4549_s25 + $0xd4] sm:$0xff] }
  0x19   : > { %168 = vst [vmem:[%s4554_s26 + $0x40] sm:$0xff] %v167_v7  ;;  %v201_v24 = vld [vmem:[%s4549_s25 + $0xe0] sm:$0xff]  ;;  %v203_v25 = vld [vmem:[%s4549_s25 + $0xe8] sm:$0xff]  ;;  %v205_v26 = vld [vmem:[%s4549_s25 + $0xf0] sm:$0xff] }
  0x1a   : > { %170 = vst [vmem:[%s4554_s26 + $0x48] sm:$0xff] %v169_v8  ;;  %v207_v27 = vld [vmem:[%s4549_s25 + $0xfc] sm:$0xff]  ;;  %v209_v28 = vld [vmem:[%s4549_s25 + $0x104] sm:$0xff]  ;;  %v211_v29 = vld [vmem:[%s4549_s25 + $0x10c] sm:$0xff] }
  0x1b   : > { %172 = vst [vmem:[%s4554_s26 + $0x54] sm:$0xff] %v171_v9  ;;  %v213_v30 = vld [vmem:[%s4549_s25 + $0x118] sm:$0xff]  ;;  %v215_v31 = vld [vmem:[%s4549_s25 + $0x120] sm:$0xff]  ;;  %v217_v32 = vld [vmem:[%s4549_s25 + $0x128] sm:$0xff] }
  0x1c   : > { %174 = vst [vmem:[%s4554_s26 + $0x5c] sm:$0xff] %v173_v10  ;;  %v219_v33 = vld [vmem:[%s4549_s25 + $0x134] sm:$0xff]  ;;  %v221_v34 = vld [vmem:[%s4549_s25 + $0x13c] sm:$0xff]  ;;  %v223_v35 = vld [vmem:[%s4549_s25 + $0x144] sm:$0xff] }
  0x1d   : > { %176 = vst [vmem:[%s4554_s26 + $0x64] sm:$0xff] %v175_v11  ;;  %v225_v36 = vld [vmem:[%s4549_s25 + $0x2a0] sm:$0xff]  ;;  %v227_v37 = vld [vmem:[%s4549_s25 + $0x2a8] sm:$0xff]  ;;  %v229_v38 = vld [vmem:[%s4549_s25 + $0x2b0] sm:$0xff] }
  0x1e   : > { %178 = vst [vmem:[%s4554_s26 + $0x70] sm:$0xff] %v177_v12  ;;  %v231_v39 = vld [vmem:[%s4549_s25 + $0x2bc] sm:$0xff]  ;;  %v233_v40 = vld [vmem:[%s4549_s25 + $0x2c4] sm:$0xff]  ;;  %v235_v41 = vld [vmem:[%s4549_s25 + $0x2cc] sm:$0xff] }
  0x1f   : > { %180 = vst [vmem:[%s4554_s26 + $0x78] sm:$0xff] %v179_v13  ;;  %v237_v42 = vld [vmem:[%s4549_s25 + $0x2d8] sm:$0xff]  ;;  %v239_v43 = vld [vmem:[%s4549_s25 + $0x2e0] sm:$0xff]  ;;  %v241_v44 = vld [vmem:[%s4549_s25 + $0x2e8] sm:$0xff] }
  0x20   : > { %182 = vst [vmem:[%s4554_s26 + $0x80] sm:$0xff] %v181_v14  ;;  %v243_v45 = vld [vmem:[%s4549_s25 + $0x2f4] sm:$0xff]  ;;  %v245_v46 = vld [vmem:[%s4549_s25 + $0x2fc] sm:$0xff]  ;;  %v247_v47 = vld [vmem:[%s4549_s25 + $0x304] sm:$0xff] }
  0x21   : > { %184 = vst [vmem:[%s4554_s26 + $0x8c] sm:$0xff] %v183_v15  ;;  %v249_v48 = vld [vmem:[%s4549_s25 + $0x310] sm:$0xff]  ;;  %v251_v49 = vld [vmem:[%s4549_s25 + $0x318] sm:$0xff]  ;;  %v253_v50 = vld [vmem:[%s4549_s25 + $0x320] sm:$0xff] }
  0x22   : > { %186 = vst [vmem:[%s4554_s26 + $0x94] sm:$0xff] %v185_v16  ;;  %v255_v51 = vld [vmem:[%s4549_s25 + $0x32c] sm:$0xff]  ;;  %v257_v52 = vld [vmem:[%s4549_s25 + $0x334] sm:$0xff]  ;;  %v259_v53 = vld [vmem:[%s4549_s25 + $0x33c] sm:$0xff] }
  0x23   : > { %188 = vst [vmem:[%s4554_s26 + $0x9c] sm:$0xff] %v187_v17  ;;  %v261_v54 = vld [vmem:[%s4549_s25 + $0x348] sm:$0xff]  ;;  %v263_v55 = vld [vmem:[%s4549_s25 + $0x350] sm:$0xff]  ;;  %v265_v56 = vld [vmem:[%s4549_s25 + $0x358] sm:$0xff] }
  0x24   : > { %190 = vst [vmem:[%s4554_s26 + $0xa8] sm:$0xff] %v189_v18  ;;  %v267_v57 = vld [vmem:[%s4549_s25 + $0x364] sm:$0xff]  ;;  %v269_v58 = vld [vmem:[%s4549_s25 + $0x36c] sm:$0xff]  ;;  %v271_v59 = vld [vmem:[%s4549_s25 + $0x374] sm:$0xff] }
  0x25   : > { %192 = vst [vmem:[%s4554_s26 + $0xb0] sm:$0xff] %v191_v19  ;;  %v273_v60 = vld [vmem:[%s4549_s25 + $0x380] sm:$0xff]  ;;  %v275_v61 = vld [vmem:[%s4549_s25 + $0x388] sm:$0xff]  ;;  %v277_v62 = vld [vmem:[%s4549_s25 + $0x390] sm:$0xff] }
  0x26   : > { %194 = vst [vmem:[%s4554_s26 + $0xb8] sm:$0xff] %v193_v20  ;;  %v279_v63 = vld [vmem:[%s4549_s25 + $0x39c] sm:$0xff]  ;;  %v281_v0 = vld [vmem:[%s4549_s25 + $0x3a4] sm:$0xff]  ;;  %v283_v1 = vld [vmem:[%s4549_s25 + $0x3ac] sm:$0xff] }
  0x27   : > { %196 = vst [vmem:[%s4554_s26 + $0xc4] sm:$0xff] %v195_v21  ;;  %v285_v2 = vld [vmem:[%s4549_s25 + $0x3b8] sm:$0xff]  ;;  %v287_v3 = vld [vmem:[%s4549_s25 + $0x3c0] sm:$0xff]  ;;  %v289_v4 = vld [vmem:[%s4549_s25 + $0x3c8] sm:$0xff] }
  0x28   : > { %198 = vst [vmem:[%s4554_s26 + $0xcc] sm:$0xff] %v197_v22  ;;  %v291_v5 = vld [vmem:[%s4549_s25 + $0x3d4] sm:$0xff]  ;;  %v293_v6 = vld [vmem:[%s4549_s25 + $0x3dc] sm:$0xff]  ;;  %v295_v7 = vld [vmem:[%s4549_s25 + $0x3e4] sm:$0xff] }
  0x29   : > { %200 = vst [vmem:[%s4554_s26 + $0xd4] sm:$0xff] %v199_v23  ;;  %v297_v8 = vld [vmem:[%s4549_s25 + $0x540] sm:$0xff]  ;;  %v299_v9 = vld [vmem:[%s4549_s25 + $0x548] sm:$0xff]  ;;  %v301_v10 = vld [vmem:[%s4549_s25 + $0x550] sm:$0xff] }
  0x2a   : > { %202 = vst [vmem:[%s4554_s26 + $0xe0] sm:$0xff] %v201_v24  ;;  %v303_v11 = vld [vmem:[%s4549_s25 + $0x55c] sm:$0xff]  ;;  %v305_v12 = vld [vmem:[%s4549_s25 + $0x564] sm:$0xff]  ;;  %v307_v13 = vld [vmem:[%s4549_s25 + $0x56c] sm:$0xff] }
  0x2b   : > { %204 = vst [vmem:[%s4554_s26 + $0xe8] sm:$0xff] %v203_v25  ;;  %v309_v14 = vld [vmem:[%s4549_s25 + $0x578] sm:$0xff]  ;;  %v311_v15 = vld [vmem:[%s4549_s25 + $0x580] sm:$0xff]  ;;  %v313_v16 = vld [vmem:[%s4549_s25 + $0x588] sm:$0xff] }
  0x2c   : > { %206 = vst [vmem:[%s4554_s26 + $0xf0] sm:$0xff] %v205_v26  ;;  %v315_v17 = vld [vmem:[%s4549_s25 + $0x594] sm:$0xff]  ;;  %v317_v18 = vld [vmem:[%s4549_s25 + $0x59c] sm:$0xff]  ;;  %v319_v19 = vld [vmem:[%s4549_s25 + $0x5a4] sm:$0xff] }
  0x2d   : > { %208 = vst [vmem:[%s4554_s26 + $0xfc] sm:$0xff] %v207_v27  ;;  %v321_v20 = vld [vmem:[%s4549_s25 + $0x5b0] sm:$0xff]  ;;  %v323_v21 = vld [vmem:[%s4549_s25 + $0x5b8] sm:$0xff]  ;;  %v325_v22 = vld [vmem:[%s4549_s25 + $0x5c0] sm:$0xff] }
  0x2e   : > { %210 = vst [vmem:[%s4554_s26 + $0x104] sm:$0xff] %v209_v28  ;;  %v327_v23 = vld [vmem:[%s4549_s25 + $0x5cc] sm:$0xff]  ;;  %v329_v24 = vld [vmem:[%s4549_s25 + $0x5d4] sm:$0xff]  ;;  %v331_v25 = vld [vmem:[%s4549_s25 + $0x5dc] sm:$0xff] }
  0x2f   : > { %212 = vst [vmem:[%s4554_s26 + $0x10c] sm:$0xff] %v211_v29  ;;  %v333_v26 = vld [vmem:[%s4549_s25 + $0x5e8] sm:$0xff]  ;;  %v335_v27 = vld [vmem:[%s4549_s25 + $0x5f0] sm:$0xff]  ;;  %v337_v28 = vld [vmem:[%s4549_s25 + $0x5f8] sm:$0xff] }
  0x30   : > { %214 = vst [vmem:[%s4554_s26 + $0x118] sm:$0xff] %v213_v30  ;;  %v339_v29 = vld [vmem:[%s4549_s25 + $0x604] sm:$0xff]  ;;  %v341_v30 = vld [vmem:[%s4549_s25 + $0x60c] sm:$0xff] }
  0x31   : > { %216 = vst [vmem:[%s4554_s26 + $0x120] sm:$0xff] %v215_v31  ;;  %v343_v31 = vld [vmem:[%s4549_s25 + $0x614] sm:$0xff] }
  0x32   : > { %218 = vst [vmem:[%s4554_s26 + $0x128] sm:$0xff] %v217_v32  ;;  %v345_v32 = vld [vmem:[%s4549_s25 + $0x620] sm:$0xff] }
  0x33   : > { %220 = vst [vmem:[%s4554_s26 + $0x134] sm:$0xff] %v219_v33  ;;  %v347_v33 = vld [vmem:[%s4549_s25 + $0x628] sm:$0xff] }
  0x34   : > { %222 = vst [vmem:[%s4554_s26 + $0x13c] sm:$0xff] %v221_v34  ;;  %v349_v34 = vld [vmem:[%s4549_s25 + $0x630] sm:$0xff] }
  0x35   : > { %224 = vst [vmem:[%s4554_s26 + $0x144] sm:$0xff] %v223_v35  ;;  %v351_v35 = vld [vmem:[%s4549_s25 + $0x63c] sm:$0xff] }
  0x36   : > { %226 = vst [vmem:[%s4554_s26 + $0x150] sm:$0xff] %v225_v36  ;;  %v353_v36 = vld [vmem:[%s4549_s25 + $0x644] sm:$0xff] }
  0x37   : > { %228 = vst [vmem:[%s4554_s26 + $0x158] sm:$0xff] %v227_v37  ;;  %v355_v37 = vld [vmem:[%s4549_s25 + $0x64c] sm:$0xff] }
  0x38   : > { %230 = vst [vmem:[%s4554_s26 + $0x160] sm:$0xff] %v229_v38  ;;  %v357_v38 = vld [vmem:[%s4549_s25 + $0x658] sm:$0xff] }
  0x39   : > { %232 = vst [vmem:[%s4554_s26 + $0x16c] sm:$0xff] %v231_v39  ;;  %v359_v39 = vld [vmem:[%s4549_s25 + $0x660] sm:$0xff] }
  0x3a   : > { %234 = vst [vmem:[%s4554_s26 + $0x174] sm:$0xff] %v233_v40  ;;  %v361_v40 = vld [vmem:[%s4549_s25 + $0x668] sm:$0xff] }
  0x3b   : > { %236 = vst [vmem:[%s4554_s26 + $0x17c] sm:$0xff] %v235_v41  ;;  %v363_v41 = vld [vmem:[%s4549_s25 + $0x674] sm:$0xff] }
  0x3c   : > { %238 = vst [vmem:[%s4554_s26 + $0x188] sm:$0xff] %v237_v42  ;;  %v365_v42 = vld [vmem:[%s4549_s25 + $0x67c] sm:$0xff] }
  0x3d   : > { %240 = vst [vmem:[%s4554_s26 + $0x190] sm:$0xff] %v239_v43  ;;  %v367_v43 = vld [vmem:[%s4549_s25 + $0x684] sm:$0xff] }
  0x3e   : > { %242 = vst [vmem:[%s4554_s26 + $0x198] sm:$0xff] %v241_v44  ;;  %v369_v44 = vld [vmem:[%s4549_s25 + $0x7e0] sm:$0xff] }
  0x3f   : > { %244 = vst [vmem:[%s4554_s26 + $0x1a4] sm:$0xff] %v243_v45  ;;  %v371_v45 = vld [vmem:[%s4549_s25 + $0x7e8] sm:$0xff] }
  0x40   : > { %246 = vst [vmem:[%s4554_s26 + $0x1ac] sm:$0xff] %v245_v46  ;;  %v373_v46 = vld [vmem:[%s4549_s25 + $0x7f0] sm:$0xff] }
  0x41   : > { %248 = vst [vmem:[%s4554_s26 + $0x1b4] sm:$0xff] %v247_v47  ;;  %v375_v47 = vld [vmem:[%s4549_s25 + $0x7fc] sm:$0xff] }
  0x42   : > { %250 = vst [vmem:[%s4554_s26 + $0x1c0] sm:$0xff] %v249_v48  ;;  %v377_v48 = vld [vmem:[%s4549_s25 + $0x804] sm:$0xff] }
  0x43   : > { %252 = vst [vmem:[%s4554_s26 + $0x1c8] sm:$0xff] %v251_v49  ;;  %v379_v49 = vld [vmem:[%s4549_s25 + $0x80c] sm:$0xff] }
  0x44   : > { %254 = vst [vmem:[%s4554_s26 + $0x1d0] sm:$0xff] %v253_v50  ;;  %v381_v50 = vld [vmem:[%s4549_s25 + $0x818] sm:$0xff] }
  0x45   : > { %256 = vst [vmem:[%s4554_s26 + $0x1dc] sm:$0xff] %v255_v51  ;;  %v383_v51 = vld [vmem:[%s4549_s25 + $0x820] sm:$0xff] }
  0x46   : > { %258 = vst [vmem:[%s4554_s26 + $0x1e4] sm:$0xff] %v257_v52  ;;  %v385_v52 = vld [vmem:[%s4549_s25 + $0x828] sm:$0xff] }
  0x47   : > { %260 = vst [vmem:[%s4554_s26 + $0x1ec] sm:$0xff] %v259_v53  ;;  %v387_v53 = vld [vmem:[%s4549_s25 + $0x834] sm:$0xff] }
  0x48   : > { %262 = vst [vmem:[%s4554_s26 + $0x1f8] sm:$0xff] %v261_v54  ;;  %v389_v54 = vld [vmem:[%s4549_s25 + $0x83c] sm:$0xff] }
  0x49   : > { %264 = vst [vmem:[%s4554_s26 + $0x200] sm:$0xff] %v263_v55  ;;  %v391_v55 = vld [vmem:[%s4549_s25 + $0x844] sm:$0xff] }
  0x4a   : > { %266 = vst [vmem:[%s4554_s26 + $0x208] sm:$0xff] %v265_v56  ;;  %v393_v56 = vld [vmem:[%s4549_s25 + $0x850] sm:$0xff] }
  0x4b   : > { %268 = vst [vmem:[%s4554_s26 + $0x214] sm:$0xff] %v267_v57  ;;  %v395_v57 = vld [vmem:[%s4549_s25 + $0x858] sm:$0xff] }
  0x4c   : > { %270 = vst [vmem:[%s4554_s26 + $0x21c] sm:$0xff] %v269_v58  ;;  %v397_v58 = vld [vmem:[%s4549_s25 + $0x860] sm:$0xff] }
  0x4d   : > { %272 = vst [vmem:[%s4554_s26 + $0x224] sm:$0xff] %v271_v59  ;;  %v399_v59 = vld [vmem:[%s4549_s25 + $0x86c] sm:$0xff] }
  0x4e   : > { %274 = vst [vmem:[%s4554_s26 + $0x230] sm:$0xff] %v273_v60  ;;  %v401_v60 = vld [vmem:[%s4549_s25 + $0x874] sm:$0xff] }
  0x4f   : > { %276 = vst [vmem:[%s4554_s26 + $0x238] sm:$0xff] %v275_v61  ;;  %v403_v61 = vld [vmem:[%s4549_s25 + $0x87c] sm:$0xff] }
  0x50   : > { %278 = vst [vmem:[%s4554_s26 + $0x240] sm:$0xff] %v277_v62  ;;  %v405_v62 = vld [vmem:[%s4549_s25 + $0x888] sm:$0xff] }
  0x51   : > { %280 = vst [vmem:[%s4554_s26 + $0x24c] sm:$0xff] %v279_v63  ;;  %v407_v63 = vld [vmem:[%s4549_s25 + $0x890] sm:$0xff] }
  0x52   : > { %282 = vst [vmem:[%s4554_s26 + $0x254] sm:$0xff] %v281_v0  ;;  %v409_v0 = vld [vmem:[%s4549_s25 + $0x898] sm:$0xff] }
  0x53   : > { %284 = vst [vmem:[%s4554_s26 + $0x25c] sm:$0xff] %v283_v1  ;;  %v411_v1 = vld [vmem:[%s4549_s25 + $0x8a4] sm:$0xff] }
  0x54   : > { %286 = vst [vmem:[%s4554_s26 + $0x268] sm:$0xff] %v285_v2  ;;  %v413_v2 = vld [vmem:[%s4549_s25 + $0x8ac] sm:$0xff] }
  0x55   : > { %288 = vst [vmem:[%s4554_s26 + $0x270] sm:$0xff] %v287_v3  ;;  %v415_v3 = vld [vmem:[%s4549_s25 + $0x8b4] sm:$0xff] }
  0x56   : > { %290 = vst [vmem:[%s4554_s26 + $0x278] sm:$0xff] %v289_v4  ;;  %v417_v4 = vld [vmem:[%s4549_s25 + $0x8c0] sm:$0xff] }
  0x57   : > { %292 = vst [vmem:[%s4554_s26 + $0x284] sm:$0xff] %v291_v5  ;;  %v419_v5 = vld [vmem:[%s4549_s25 + $0x8c8] sm:$0xff] }
  0x58   : > { %294 = vst [vmem:[%s4554_s26 + $0x28c] sm:$0xff] %v293_v6  ;;  %v421_v6 = vld [vmem:[%s4549_s25 + $0x8d0] sm:$0xff] }
  0x59   : > { %296 = vst [vmem:[%s4554_s26 + $0x294] sm:$0xff] %v295_v7  ;;  %v423_v7 = vld [vmem:[%s4549_s25 + $0x8dc] sm:$0xff] }
  0x5a   : > { %298 = vst [vmem:[%s4554_s26 + $0x2a0] sm:$0xff] %v297_v8  ;;  %v425_v8 = vld [vmem:[%s4549_s25 + $0x8e4] sm:$0xff] }
  0x5b   : > { %300 = vst [vmem:[%s4554_s26 + $0x2a8] sm:$0xff] %v299_v9  ;;  %v427_v9 = vld [vmem:[%s4549_s25 + $0x8ec] sm:$0xff] }
  0x5c   : > { %302 = vst [vmem:[%s4554_s26 + $0x2b0] sm:$0xff] %v301_v10  ;;  %v429_v10 = vld [vmem:[%s4549_s25 + $0x8f8] sm:$0xff] }
  0x5d   : > { %304 = vst [vmem:[%s4554_s26 + $0x2bc] sm:$0xff] %v303_v11  ;;  %v431_v11 = vld [vmem:[%s4549_s25 + $0x900] sm:$0xff] }
  0x5e   : > { %306 = vst [vmem:[%s4554_s26 + $0x2c4] sm:$0xff] %v305_v12  ;;  %v433_v12 = vld [vmem:[%s4549_s25 + $0x908] sm:$0xff] }
  0x5f   : > { %308 = vst [vmem:[%s4554_s26 + $0x2cc] sm:$0xff] %v307_v13  ;;  %v435_v13 = vld [vmem:[%s4549_s25 + $0x914] sm:$0xff] }
  0x60   : > { %310 = vst [vmem:[%s4554_s26 + $0x2d8] sm:$0xff] %v309_v14  ;;  %v437_v14 = vld [vmem:[%s4549_s25 + $0x91c] sm:$0xff] }
  0x61   : > { %312 = vst [vmem:[%s4554_s26 + $0x2e0] sm:$0xff] %v311_v15  ;;  %v439_v15 = vld [vmem:[%s4549_s25 + $0x924] sm:$0xff] }
  0x62   : > { %314 = vst [vmem:[%s4554_s26 + $0x2e8] sm:$0xff] %v313_v16  ;;  %v3204_v16 = vld [vmem:[%s4549_s25 + $0x18] sm:$0xf] }
  0x63   : > { %316 = vst [vmem:[%s4554_s26 + $0x2f4] sm:$0xff] %v315_v17  ;;  %v3206_v17 = vld [vmem:[%s4549_s25 + $0x34] sm:$0xf] }
  0x64   : > { %318 = vst [vmem:[%s4554_s26 + $0x2fc] sm:$0xff] %v317_v18  ;;  %v3208_v18 = vld [vmem:[%s4549_s25 + $0x50] sm:$0xf] }
  0x65   : > { %320 = vst [vmem:[%s4554_s26 + $0x304] sm:$0xff] %v319_v19  ;;  %v3210_v19 = vld [vmem:[%s4549_s25 + $0x6c] sm:$0xf] }
  0x66   : > { %322 = vst [vmem:[%s4554_s26 + $0x310] sm:$0xff] %v321_v20  ;;  %v3212_v20 = vld [vmem:[%s4549_s25 + $0x88] sm:$0xf] }
  0x67   : > { %324 = vst [vmem:[%s4554_s26 + $0x318] sm:$0xff] %v323_v21  ;;  %v3214_v21 = vld [vmem:[%s4549_s25 + $0xa4] sm:$0xf] }
  0x68   : > { %326 = vst [vmem:[%s4554_s26 + $0x320] sm:$0xff] %v325_v22  ;;  %v3216_v22 = vld [vmem:[%s4549_s25 + $0xc0] sm:$0xf] }
  0x69   : > { %328 = vst [vmem:[%s4554_s26 + $0x32c] sm:$0xff] %v327_v23  ;;  %v3218_v23 = vld [vmem:[%s4549_s25 + $0xdc] sm:$0xf] }
  0x6a   : > { %330 = vst [vmem:[%s4554_s26 + $0x334] sm:$0xff] %v329_v24  ;;  %v3220_v24 = vld [vmem:[%s4549_s25 + $0xf8] sm:$0xf] }
  0x6b   : > { %332 = vst [vmem:[%s4554_s26 + $0x33c] sm:$0xff] %v331_v25  ;;  %v3222_v25 = vld [vmem:[%s4549_s25 + $0x114] sm:$0xf] }
  0x6c   : > { %334 = vst [vmem:[%s4554_s26 + $0x348] sm:$0xff] %v333_v26  ;;  %v3224_v26 = vld [vmem:[%s4549_s25 + $0x130] sm:$0xf] }
  0x6d   : > { %336 = vst [vmem:[%s4554_s26 + $0x350] sm:$0xff] %v335_v27  ;;  %v3226_v27 = vld [vmem:[%s4549_s25 + $0x14c] sm:$0xf] }
  0x6e   : > { %338 = vst [vmem:[%s4554_s26 + $0x358] sm:$0xff] %v337_v28  ;;  %v3228_v28 = vld [vmem:[%s4549_s25 + $0x2b8] sm:$0xf] }
  0x6f   : > { %340 = vst [vmem:[%s4554_s26 + $0x364] sm:$0xff] %v339_v29  ;;  %v3230_v29 = vld [vmem:[%s4549_s25 + $0x2d4] sm:$0xf] }
  0x70   : > { %342 = vst [vmem:[%s4554_s26 + $0x36c] sm:$0xff] %v341_v30  ;;  %v3232_v30 = vld [vmem:[%s4549_s25 + $0x2f0] sm:$0xf] }
  0x71   : > { %344 = vst [vmem:[%s4554_s26 + $0x374] sm:$0xff] %v343_v31  ;;  %v3234_v31 = vld [vmem:[%s4549_s25 + $0x30c] sm:$0xf] }
  0x72   : > { %346 = vst [vmem:[%s4554_s26 + $0x380] sm:$0xff] %v345_v32  ;;  %v3236_v32 = vld [vmem:[%s4549_s25 + $0x328] sm:$0xf] }
  0x73   : > { %348 = vst [vmem:[%s4554_s26 + $0x388] sm:$0xff] %v347_v33  ;;  %v3238_v33 = vld [vmem:[%s4549_s25 + $0x344] sm:$0xf] }
  0x74   : > { %350 = vst [vmem:[%s4554_s26 + $0x390] sm:$0xff] %v349_v34  ;;  %v3240_v34 = vld [vmem:[%s4549_s25 + $0x360] sm:$0xf] }
  0x75   : > { %352 = vst [vmem:[%s4554_s26 + $0x39c] sm:$0xff] %v351_v35  ;;  %v3242_v35 = vld [vmem:[%s4549_s25 + $0x37c] sm:$0xf] }
  0x76   : > { %354 = vst [vmem:[%s4554_s26 + $0x3a4] sm:$0xff] %v353_v36  ;;  %v3244_v36 = vld [vmem:[%s4549_s25 + $0x398] sm:$0xf] }
  0x77   : > { %356 = vst [vmem:[%s4554_s26 + $0x3ac] sm:$0xff] %v355_v37  ;;  %v3246_v37 = vld [vmem:[%s4549_s25 + $0x3b4] sm:$0xf] }
  0x78   : > { %358 = vst [vmem:[%s4554_s26 + $0x3b8] sm:$0xff] %v357_v38  ;;  %v3248_v38 = vld [vmem:[%s4549_s25 + $0x3d0] sm:$0xf] }
  0x79   : > { %360 = vst [vmem:[%s4554_s26 + $0x3c0] sm:$0xff] %v359_v39  ;;  %v3250_v39 = vld [vmem:[%s4549_s25 + $0x3ec] sm:$0xf] }
  0x7a   : > { %362 = vst [vmem:[%s4554_s26 + $0x3c8] sm:$0xff] %v361_v40  ;;  %v3252_v40 = vld [vmem:[%s4549_s25 + $0x558] sm:$0xf] }
  0x7b   : > { %364 = vst [vmem:[%s4554_s26 + $0x3d4] sm:$0xff] %v363_v41  ;;  %v3254_v41 = vld [vmem:[%s4549_s25 + $0x574] sm:$0xf] }
  0x7c   : > { %366 = vst [vmem:[%s4554_s26 + $0x3dc] sm:$0xff] %v365_v42  ;;  %v3256_v42 = vld [vmem:[%s4549_s25 + $0x590] sm:$0xf] }
  0x7d   : > { %368 = vst [vmem:[%s4554_s26 + $0x3e4] sm:$0xff] %v367_v43  ;;  %v3258_v43 = vld [vmem:[%s4549_s25 + $0x5ac] sm:$0xf] }
  0x7e   : > { %370 = vst [vmem:[%s4554_s26 + $0x3f0] sm:$0xff] %v369_v44  ;;  %v3260_v44 = vld [vmem:[%s4549_s25 + $0x5c8] sm:$0xf] }
  0x7f   : > { %372 = vst [vmem:[%s4554_s26 + $0x3f8] sm:$0xff] %v371_v45  ;;  %v3262_v45 = vld [vmem:[%s4549_s25 + $0x5e4] sm:$0xf] }
  0x80   : > { %374 = vst [vmem:[%s4554_s26 + $0x400] sm:$0xff] %v373_v46  ;;  %v3264_v46 = vld [vmem:[%s4549_s25 + $0x600] sm:$0xf] }
  0x81   : > { %376 = vst [vmem:[%s4554_s26 + $0x40c] sm:$0xff] %v375_v47  ;;  %v3266_v47 = vld [vmem:[%s4549_s25 + $0x61c] sm:$0xf] }
  0x82   : > { %378 = vst [vmem:[%s4554_s26 + $0x414] sm:$0xff] %v377_v48  ;;  %v3268_v48 = vld [vmem:[%s4549_s25 + $0x638] sm:$0xf] }
  0x83   : > { %380 = vst [vmem:[%s4554_s26 + $0x41c] sm:$0xff] %v379_v49  ;;  %v3270_v49 = vld [vmem:[%s4549_s25 + $0x654] sm:$0xf] }
  0x84   : > { %382 = vst [vmem:[%s4554_s26 + $0x428] sm:$0xff] %v381_v50  ;;  %v3272_v50 = vld [vmem:[%s4549_s25 + $0x670] sm:$0xf] }
  0x85   : > { %384 = vst [vmem:[%s4554_s26 + $0x430] sm:$0xff] %v383_v51  ;;  %v3274_v51 = vld [vmem:[%s4549_s25 + $0x68c] sm:$0xf] }
  0x86   : > { %386 = vst [vmem:[%s4554_s26 + $0x438] sm:$0xff] %v385_v52  ;;  %v3276_v52 = vld [vmem:[%s4549_s25 + $0x7f8] sm:$0xf] }
  0x87   : > { %388 = vst [vmem:[%s4554_s26 + $0x444] sm:$0xff] %v387_v53  ;;  %v3278_v53 = vld [vmem:[%s4549_s25 + $0x814] sm:$0xf] }
  0x88   : > { %390 = vst [vmem:[%s4554_s26 + $0x44c] sm:$0xff] %v389_v54  ;;  %v3280_v54 = vld [vmem:[%s4549_s25 + $0x830] sm:$0xf] }
  0x89   : > { %392 = vst [vmem:[%s4554_s26 + $0x454] sm:$0xff] %v391_v55  ;;  %v3282_v55 = vld [vmem:[%s4549_s25 + $0x84c] sm:$0xf] }
  0x8a   : > { %394 = vst [vmem:[%s4554_s26 + $0x460] sm:$0xff] %v393_v56  ;;  %v3284_v56 = vld [vmem:[%s4549_s25 + $0x868] sm:$0xf] }
  0x8b   : > { %396 = vst [vmem:[%s4554_s26 + $0x468] sm:$0xff] %v395_v57  ;;  %v3286_v57 = vld [vmem:[%s4549_s25 + $0x884] sm:$0xf] }
  0x8c   : > { %398 = vst [vmem:[%s4554_s26 + $0x470] sm:$0xff] %v397_v58  ;;  %v3288_v58 = vld [vmem:[%s4549_s25 + $0x8a0] sm:$0xf] }
  0x8d   : > { %400 = vst [vmem:[%s4554_s26 + $0x47c] sm:$0xff] %v399_v59  ;;  %v3290_v59 = vld [vmem:[%s4549_s25 + $0x8bc] sm:$0xf] }
  0x8e   : > { %402 = vst [vmem:[%s4554_s26 + $0x484] sm:$0xff] %v401_v60  ;;  %v3292_v60 = vld [vmem:[%s4549_s25 + $0x8d8] sm:$0xf] }
  0x8f   : > { %404 = vst [vmem:[%s4554_s26 + $0x48c] sm:$0xff] %v403_v61  ;;  %v3294_v61 = vld [vmem:[%s4549_s25 + $0x8f4] sm:$0xf] }
  0x90   : > { %406 = vst [vmem:[%s4554_s26 + $0x498] sm:$0xff] %v405_v62  ;;  %v3296_v62 = vld [vmem:[%s4549_s25 + $0x910] sm:$0xf] }
  0x91   : > { %408 = vst [vmem:[%s4554_s26 + $0x4a0] sm:$0xff] %v407_v63  ;;  %v3298_v63 = vld [vmem:[%s4549_s25 + $0x92c] sm:$0xf] }
  0x92   : > { %410 = vst [vmem:[%s4554_s26 + $0x4a8] sm:$0xff] %v409_v0 }
  0x93   : > { %412 = vst [vmem:[%s4554_s26 + $0x4b4] sm:$0xff] %v411_v1 }
  0x94   : > { %414 = vst [vmem:[%s4554_s26 + $0x4bc] sm:$0xff] %v413_v2 }
  0x95   : > { %416 = vst [vmem:[%s4554_s26 + $0x4c4] sm:$0xff] %v415_v3 }
  0x96   : > { %418 = vst [vmem:[%s4554_s26 + $0x4d0] sm:$0xff] %v417_v4 }
  0x97   : > { %420 = vst [vmem:[%s4554_s26 + $0x4d8] sm:$0xff] %v419_v5 }
  0x98   : > { %422 = vst [vmem:[%s4554_s26 + $0x4e0] sm:$0xff] %v421_v6 }
  0x99   : > { %424 = vst [vmem:[%s4554_s26 + $0x4ec] sm:$0xff] %v423_v7 }
  0x9a   : > { %426 = vst [vmem:[%s4554_s26 + $0x4f4] sm:$0xff] %v425_v8 }
  0x9b   : > { %428 = vst [vmem:[%s4554_s26 + $0x4fc] sm:$0xff] %v427_v9 }
  0x9c   : > { %430 = vst [vmem:[%s4554_s26 + $0x508] sm:$0xff] %v429_v10 }
  0x9d   : > { %432 = vst [vmem:[%s4554_s26 + $0x510] sm:$0xff] %v431_v11 }
  0x9e   : > { %434 = vst [vmem:[%s4554_s26 + $0x518] sm:$0xff] %v433_v12 }
  0x9f   : > { %436 = vst [vmem:[%s4554_s26 + $0x524] sm:$0xff] %v435_v13 }
  0xa0   : > { %438 = vst [vmem:[%s4554_s26 + $0x52c] sm:$0xff] %v437_v14 }
  0xa1   : > { %440 = vst [vmem:[%s4554_s26 + $0x534] sm:$0xff] %v439_v15 }
  0xa2   : > { %3205 = vst [vmem:[%s4554_s26 + $0x18] sm:$0xf] %v3204_v16 }
  0xa3   : > { %3207 = vst [vmem:[%s4554_s26 + $0x34] sm:$0xf] %v3206_v17 }
  0xa4   : > { %3209 = vst [vmem:[%s4554_s26 + $0x50] sm:$0xf] %v3208_v18 }
  0xa5   : > { %3211 = vst [vmem:[%s4554_s26 + $0x6c] sm:$0xf] %v3210_v19 }
  0xa6   : > { %3213 = vst [vmem:[%s4554_s26 + $0x88] sm:$0xf] %v3212_v20 }
  0xa7   : > { %3215 = vst [vmem:[%s4554_s26 + $0xa4] sm:$0xf] %v3214_v21 }
  0xa8   : > { %3217 = vst [vmem:[%s4554_s26 + $0xc0] sm:$0xf] %v3216_v22 }
  0xa9   : > { %3219 = vst [vmem:[%s4554_s26 + $0xdc] sm:$0xf] %v3218_v23 }
  0xaa   : > { %3221 = vst [vmem:[%s4554_s26 + $0xf8] sm:$0xf] %v3220_v24 }
  0xab   : > { %3223 = vst [vmem:[%s4554_s26 + $0x114] sm:$0xf] %v3222_v25 }
  0xac   : > { %3225 = vst [vmem:[%s4554_s26 + $0x130] sm:$0xf] %v3224_v26 }
  0xad   : > { %3227 = vst [vmem:[%s4554_s26 + $0x14c] sm:$0xf] %v3226_v27 }
  0xae   : > { %3229 = vst [vmem:[%s4554_s26 + $0x168] sm:$0xf] %v3228_v28 }
  0xaf   : > { %3231 = vst [vmem:[%s4554_s26 + $0x184] sm:$0xf] %v3230_v29 }
  0xb0   : > { %3233 = vst [vmem:[%s4554_s26 + $0x1a0] sm:$0xf] %v3232_v30 }
  0xb1   : > { %3235 = vst [vmem:[%s4554_s26 + $0x1bc] sm:$0xf] %v3234_v31 }
  0xb2   : > { %3237 = vst [vmem:[%s4554_s26 + $0x1d8] sm:$0xf] %v3236_v32 }
  0xb3   : > { %3239 = vst [vmem:[%s4554_s26 + $0x1f4] sm:$0xf] %v3238_v33 }
  0xb4   : > { %3241 = vst [vmem:[%s4554_s26 + $0x210] sm:$0xf] %v3240_v34 }
  0xb5   : > { %3243 = vst [vmem:[%s4554_s26 + $0x22c] sm:$0xf] %v3242_v35 }
  0xb6   : > { %3245 = vst [vmem:[%s4554_s26 + $0x248] sm:$0xf] %v3244_v36 }
  0xb7   : > { %3247 = vst [vmem:[%s4554_s26 + $0x264] sm:$0xf] %v3246_v37 }
  0xb8   : > { %3249 = vst [vmem:[%s4554_s26 + $0x280] sm:$0xf] %v3248_v38 }
  0xb9   : > { %3251 = vst [vmem:[%s4554_s26 + $0x29c] sm:$0xf] %v3250_v39 }
  0xba   : > { %3253 = vst [vmem:[%s4554_s26 + $0x2b8] sm:$0xf] %v3252_v40 }
  0xbb   : > { %3255 = vst [vmem:[%s4554_s26 + $0x2d4] sm:$0xf] %v3254_v41 }
  0xbc   : > { %3257 = vst [vmem:[%s4554_s26 + $0x2f0] sm:$0xf] %v3256_v42 }
  0xbd   : > { %3259 = vst [vmem:[%s4554_s26 + $0x30c] sm:$0xf] %v3258_v43 }
  0xbe   : > { %3261 = vst [vmem:[%s4554_s26 + $0x328] sm:$0xf] %v3260_v44 }
  0xbf   : > { %3263 = vst [vmem:[%s4554_s26 + $0x344] sm:$0xf] %v3262_v45 }
  0xc0   : > { %3265 = vst [vmem:[%s4554_s26 + $0x360] sm:$0xf] %v3264_v46 }
  0xc1   : > { %3267 = vst [vmem:[%s4554_s26 + $0x37c] sm:$0xf] %v3266_v47 }
  0xc2   : > { %3269 = vst [vmem:[%s4554_s26 + $0x398] sm:$0xf] %v3268_v48 }
  0xc3   : > { %3271 = vst [vmem:[%s4554_s26 + $0x3b4] sm:$0xf] %v3270_v49 }
  0xc4   : > { %3273 = vst [vmem:[%s4554_s26 + $0x3d0] sm:$0xf] %v3272_v50 }
  0xc5   : > { %3275 = vst [vmem:[%s4554_s26 + $0x3ec] sm:$0xf] %v3274_v51 }
  0xc6   : > { %3277 = vst [vmem:[%s4554_s26 + $0x408] sm:$0xf] %v3276_v52 }
  0xc7   : > { %3279 = vst [vmem:[%s4554_s26 + $0x424] sm:$0xf] %v3278_v53 }
  0xc8   : > { %3281 = vst [vmem:[%s4554_s26 + $0x440] sm:$0xf] %v3280_v54 }
  0xc9   : > { %3283 = vst [vmem:[%s4554_s26 + $0x45c] sm:$0xf] %v3282_v55 }
  0xca   : > { %3285 = vst [vmem:[%s4554_s26 + $0x478] sm:$0xf] %v3284_v56 }
  0xcb   : > { %3287 = vst [vmem:[%s4554_s26 + $0x494] sm:$0xf] %v3286_v57 }
  0xcc   : > { %3289 = vst [vmem:[%s4554_s26 + $0x4b0] sm:$0xf] %v3288_v58 }
  0xcd   : > { %3291 = vst [vmem:[%s4554_s26 + $0x4cc] sm:$0xf] %v3290_v59 }
  0xce   : > { %3293 = vst [vmem:[%s4554_s26 + $0x4e8] sm:$0xf] %v3292_v60 }
  0xcf   : > { %3295 = vst [vmem:[%s4554_s26 + $0x504] sm:$0xf] %v3294_v61 }
  0xd0   : > { %3297 = vst [vmem:[%s4554_s26 + $0x520] sm:$0xf] %v3296_v62 }
  0xd1   : > { %3299 = vst [vmem:[%s4554_s26 + $0x53c] sm:$0xf] %v3298_v63 }
  0xd2 PF: > { %p3300_p5 = scmp.ge.s32.totalorder %s4493_s14, 1  ;;  %p549_p6 = scmp.lt.s32.totalorder %s4493_s14, 3 }
  0xd4   : > { %p550_p7 = pnand %p3300_p5, %p549_p6 }
  0xd6   : > { %553 = sbr.rel (%p550_p7) target bundleno = 1065 (0x429), region = 54 }
  0xdb   : > { %v4375_v0 = vld [vmem:[%s6015_s1 + $0x38] sm:$0xff]  ;;  %v4374_v3 = vld [vmem:[%s6015_s1 + $0x30] sm:$0xff]  ;;  %v4373_v6 = vld [vmem:[%s6015_s1 + $0x28] sm:$0xff]  ;;  %s556_s9 = sand.u32 1, %s4485_s12   ;;  %vm2019_vm0 = vcmask 261120   ;;  %vm2995_vm1 = vcmask 523264  }
  0xdc   : > { %v4945_v1 = vld [vmem:[%s6015_s1 + $0x78] sm:$0xff]  ;;  %2092 = vmatpush.bf16.msra.mxu0 %v4375_v0  ;;  %4418 = vmatpush.bf16.msra.mxu3 %v4375_v0  ;;  %v4960_v4 = vld [vmem:[%s6015_s1 + $0x70] sm:$0xff]  ;;  %v4975_v7 = vld [vmem:[%s6015_s1 + $0x68] sm:$0xff]  ;;  %s4444_s17 = smul.u32 1344, %s556_s9  ;;  %vm3120_vm2 = vcmask 519168  }
  0xdd   : > { %v4950_v2 = vld [vmem:[%s6015_s1 + $0xb8] sm:$0xff]  ;;  %2221 = vmatpush.bf16.msra.mxu1 %v4945_v1  ;;  %v4965_v5 = vld [vmem:[%s6015_s1 + $0xb0] sm:$0xff]  ;;  %v4980_v8 = vld [vmem:[%s6015_s1 + $0xa8] sm:$0xff] }
  0xde   : > { %2350 = vmatpush.bf16.msra.mxu2 %v4950_v2  ;;  %v4372_v9 = vld [vmem:[%s6015_s1 + $0x20] sm:$0xff]  ;;  %v4371_v12 = vld [vmem:[%s6015_s1 + $0x18] sm:$0xff]  ;;  %v4370_v15 = vld [vmem:[%s6015_s1 + $0x10] sm:$0xff]  ;;  %s5054_s7 = scalar_lea.vmem [#allocation2], %s4444_s17 }
  0xdf   : > { %v4990_v10 = vld [vmem:[%s6015_s1 + $0x60] sm:$0xff]  ;;  %v5005_v13 = vld [vmem:[%s6015_s1 + $0x58] sm:$0xff]  ;;  %v5021_v16 = vld [vmem:[%s6015_s1 + $0x50] sm:$0xff] }
  0xe0   : > { %2093 = vmatpush.bf16.msra.mxu0 %v4374_v3  ;;  %4419 = vmatpush.bf16.msra.mxu3 %v4374_v3  ;;  %v4995_v11 = vld [vmem:[%s6015_s1 + $0xa0] sm:$0xff]  ;;  %v5010_v14 = vld [vmem:[%s6015_s1 + $0x98] sm:$0xff]  ;;  %v5026_v17 = vld [vmem:[%s6015_s1 + $0x90] sm:$0xff] }
  0xe1   : > { %2222 = vmatpush.bf16.msra.mxu1 %v4960_v4  ;;  %v4369_v18 = vld [vmem:[%s6015_s1 + $0x8] sm:$0xff]  ;;  %v4368_v21 = vld [vmem:[%s6015_s1] sm:$0xff]  ;;  %v4203_v25 = vld [vmem:[%s5054_s7 + $0x18] sm:$0xf0] }
  0xe2   : > { %2351 = vmatpush.bf16.msra.mxu2 %v4965_v5  ;;  %v4377_v19 = vld [vmem:[%s6015_s1 + $0x48] sm:$0xff]  ;;  %v5047_v22 = vld [vmem:[%s6015_s1 + $0x40] sm:$0xff]  ;;  %v3808_v26 = vld [vmem:[%s5054_s7 + $0x3f0] sm:$0xf] }
  0xe3   : > { %v5039_v20 = vld [vmem:[%s6015_s1 + $0x88] sm:$0xff]  ;;  %v5052_v23 = vld [vmem:[%s6015_s1 + $0x80] sm:$0xff]  ;;  %v4407_v37 = vld [vmem:[%s6015_s1 + $0x138] sm:$0xff] }
  0xe4   : > { %2094 = vmatpush.bf16.msra.mxu0 %v4373_v6  ;;  %4420 = vmatpush.bf16.msra.mxu3 %v4373_v6  ;;  %v3304_v24 = vld [vmem:[%s5054_s7] sm:$0xf]  ;;  %v4329_v27 = vld [vmem:[%s5054_s7 + $0x408] sm:$0xf0]  ;;  %v4200_v28 = vld [vmem:[%s5054_s7 + $0x4] sm:$0xf] }
  0xe5   : > { %2223 = vmatpush.bf16.msra.mxu1 %v4975_v7  ;;  %v3306_v29 = vld [vmem:[%s5054_s7 + $0x1c] sm:$0xf0]  ;;  %v3312_v30 = vld [vmem:[%s5054_s7 + $0x8] sm:$0xf]  ;;  %v4204_v31 = vld [vmem:[%s5054_s7 + $0x20] sm:$0xf0]  ;;  %v3305_v33 = vor.u32 %v4203_v25, %v3304_v24  ;;  %v3809_v34 = vor.u32 %v4329_v27, %v3808_v26 }
  0xe6   : > { %2352 = vmatpush.bf16.msra.mxu2 %v4980_v8  ;;  %v4417_v32 = vld [vmem:[%s6015_s1 + $0x188] sm:$0xff]  ;;  %v3309_v35 = vor.u32 %v4200_v28, %v3306_v29  ;;  %v3313_v36 = vor.u32 %v4204_v31, %v3312_v30  ;;  %v4415_v38 = vld [vmem:[%s6015_s1 + $0x178] sm:$0xff]  ;;  %v4406_v39 = vld [vmem:[%s6015_s1 + $0x130] sm:$0xff] }
  0xe7   : > { %v4414_v40 = vld [vmem:[%s6015_s1 + $0x170] sm:$0xff]  ;;  %v3332_v41 = vld [vmem:[%s5054_s7 + $0x38] sm:$0xf]  ;;  %v3836_v43 = vld [vmem:[%s5054_s7 + $0x428] sm:$0xf] }
  0xe8   : > { %2095 = vmatpush.bf16.msra.mxu0 %v4372_v9  ;;  %4421 = vmatpush.bf16.msra.mxu3 %v4372_v9  ;;  %v4210_v42 = vld [vmem:[%s5054_s7 + $0x50] sm:$0xf0]  ;;  %v4336_v44 = vld [vmem:[%s5054_s7 + $0x440] sm:$0xf0]  ;;  %v4207_v45 = vld [vmem:[%s5054_s7 + $0x3c] sm:$0xf] }
  0xe9   : > { %2224 = vmatpush.bf16.msra.mxu1 %v4990_v10  ;;  %v3334_v46 = vld [vmem:[%s5054_s7 + $0x54] sm:$0xf0]  ;;  %v3340_v47 = vld [vmem:[%s5054_s7 + $0x40] sm:$0xf]  ;;  %v4211_v48 = vld [vmem:[%s5054_s7 + $0x58] sm:$0xf0]  ;;  %v3333_v49 = vor.u32 %v4210_v42, %v3332_v41  ;;  %v3837_v50 = vor.u32 %v4336_v44, %v3836_v43 }
  0xea   : > { %2353 = vmatpush.bf16.msra.mxu2 %v4995_v11  ;;  %v3337_v51 = vor.u32 %v4207_v45, %v3334_v46  ;;  %v3341_v52 = vor.u32 %v4211_v48, %v3340_v47  ;;  %v3360_v53 = vld [vmem:[%s5054_s7 + $0x70] sm:$0xf]  ;;  %v4217_v54 = vld [vmem:[%s5054_s7 + $0x88] sm:$0xf0]  ;;  %v3864_v55 = vld [vmem:[%s5054_s7 + $0x460] sm:$0xf] }
  0xeb   : > { %v4343_v56 = vld [vmem:[%s5054_s7 + $0x478] sm:$0xf0]  ;;  %v4214_v57 = vld [vmem:[%s5054_s7 + $0x74] sm:$0xf]  ;;  %v3362_v58 = vld [vmem:[%s5054_s7 + $0x8c] sm:$0xf0]  ;;  %v3361_v61 = vor.u32 %v4217_v54, %v3360_v53 }
  0xec   : > { %2096 = vmatpush.bf16.msra.mxu0 %v4371_v12  ;;  %4422 = vmatpush.bf16.msra.mxu3 %v4371_v12  ;;  %v3368_v59 = vld [vmem:[%s5054_s7 + $0x78] sm:$0xf]  ;;  %v4218_v60 = vld [vmem:[%s5054_s7 + $0x90] sm:$0xf0]  ;;  %v3865_v62 = vor.u32 %v4343_v56, %v3864_v55  ;;  %v3365_v63 = vor.u32 %v4214_v57, %v3362_v58  ;;  %v4224_v3 = vld [vmem:[%s5054_s7 + $0xc0] sm:$0xf0] }
  0xed   : > { %2225 = vmatpush.bf16.msra.mxu1 %v5005_v13  ;;  %v3369_v0 = vor.u32 %v4218_v60, %v3368_v59  ;;  %v4350_v6 = vld [vmem:[%s5054_s7 + $0x4b0] sm:$0xf0]  ;;  %v3390_v9 = vld [vmem:[%s5054_s7 + $0xc4] sm:$0xf0]  ;;  %v4225_v12 = vld [vmem:[%s5054_s7 + $0xc8] sm:$0xf0] }
  0xee   : > { %2354 = vmatpush.bf16.msra.mxu2 %v5010_v14  ;;  %v3424_v24 = vld [vmem:[%s5054_s7 + $0xe8] sm:$0xf]  ;;  %v4232_v25 = vld [vmem:[%s5054_s7 + $0x100] sm:$0xf0]  ;;  %v3444_v28 = vld [vmem:[%s5054_s7 + $0x118] sm:$0xf] }
  0xef   : > { %v3425_v27 = vor.u32 %v4232_v25, %v3424_v24  ;;  %v4238_v29 = vld [vmem:[%s5054_s7 + $0x130] sm:$0xf0]  ;;  %v3948_v30 = vld [vmem:[%s5054_s7 + $0x508] sm:$0xf]  ;;  %v4364_v31 = vld [vmem:[%s5054_s7 + $0x520] sm:$0xf0] }
  0xf0   : > { %2097 = vmatpush.bf16.msra.mxu0 %v4370_v15  ;;  %4423 = vmatpush.bf16.msra.mxu3 %v4370_v15  ;;  %v3472_v41 = vld [vmem:[%s5054_s7 + $0x150] sm:$0xf]  ;;  %v4245_v42 = vld [vmem:[%s5054_s7 + $0x168] sm:$0xf0]  ;;  %v4242_v43 = vld [vmem:[%s5054_s7 + $0x154] sm:$0xf] }
  0xf1   : > { %2226 = vmatpush.bf16.msra.mxu1 %v5021_v16  ;;  %v4326_v44 = vld [vmem:[%s5054_s7 + $0x3f4] sm:$0xf]  ;;  %v3810_v45 = vld [vmem:[%s5054_s7 + $0x40c] sm:$0xf0]  ;;  %v3480_v47 = vld [vmem:[%s5054_s7 + $0x158] sm:$0xf] }
  0xf2   : > { %2355 = vmatpush.bf16.msra.mxu2 %v5026_v17  ;;  %v3474_v46 = vld [vmem:[%s5054_s7 + $0x16c] sm:$0xf0]  ;;  %v4246_v48 = vld [vmem:[%s5054_s7 + $0x170] sm:$0xf0]  ;;  %v3500_v53 = vld [vmem:[%s5054_s7 + $0x188] sm:$0xf] }
  0xf3   : > { %v4252_v54 = vld [vmem:[%s5054_s7 + $0x1a0] sm:$0xf0]  ;;  %v4249_v55 = vld [vmem:[%s5054_s7 + $0x18c] sm:$0xf]  ;;  %v3838_v57 = vld [vmem:[%s5054_s7 + $0x444] sm:$0xf0] }
  0xf4   : > { %2098 = vmatpush.bf16.msra.mxu0 %v4369_v18  ;;  %4424 = vmatpush.bf16.msra.mxu3 %v4369_v18  ;;  %v3920_v18 = vld [vmem:[%s5054_s7 + $0x4d0] sm:$0xf]  ;;  %v4333_v56 = vld [vmem:[%s5054_s7 + $0x42c] sm:$0xf]  ;;  %v3502_v58 = vld [vmem:[%s5054_s7 + $0x1a4] sm:$0xf0] }
  0xf5   : > { %2227 = vmatpush.bf16.msra.mxu1 %v4377_v19  ;;  %v3508_v59 = vld [vmem:[%s5054_s7 + $0x190] sm:$0xf]  ;;  %v4253_v60 = vld [vmem:[%s5054_s7 + $0x1a8] sm:$0xf0] }
  0xf6   : > { %2356 = vmatpush.bf16.msra.mxu2 %v5039_v20 }
  0xf8   : > { %2099 = vmatpush.bf16.msra.mxu0 %v4368_v21  ;;  %4425 = vmatpush.bf16.msra.mxu3 %v4368_v21  ;;  %v4228_v21 = vld [vmem:[%s5054_s7 + $0xe4] sm:$0xf] }
  0xf9   : > { %2228 = vmatpush.bf16.msra.mxu1 %v5047_v22 }
  0xfa   : > { %2357 = vmatpush.bf16.msra.mxu2 %v5052_v23 }
  0xfb   : > { %2100 = vmatmul.bf16.vlgmr.msra.gmra.mxu0 %v3305_v33  ;;  %2190 = vmatmul.bf16.vlgmr.msra.gmra.mxu3 %v3809_v34  ;;  %v3446_v33 = vld [vmem:[%s5054_s7 + $0x134] sm:$0xf0]  ;;  %v3452_v34 = vld [vmem:[%s5054_s7 + $0x120] sm:$0xf] }
  0xfc   : > { %4426 = vmatpush.bf16.msrb.mxu3 %v4945_v1  ;;  %2229 = vmatmul.bf16.vlgmr.msra.gmra.mxu1 %v3309_v35  ;;  %v3388_v1 = vld [vmem:[%s5054_s7 + $0xa8] sm:$0xf]  ;;  %v3445_v35 = vor.u32 %v4238_v29, %v3444_v28  ;;  %v4263_v28 = vld [vmem:[%s5054_s7 + $0x1fc] sm:$0xf] }
  0xfd   : > { %2358 = vmatmul.bf16.vlgmr.msra.gmra.mxu2 %v3313_v36  ;;  %2608 = vmatpush.bf16.msrb.mxu0 %v4407_v37  ;;  %v3949_v36 = vor.u32 %v4364_v31, %v3948_v30  ;;  %v4347_v29 = vld [vmem:[%s5054_s7 + $0x49c] sm:$0xf]  ;;  %v3894_v30 = vld [vmem:[%s5054_s7 + $0x4b4] sm:$0xf0] }
  0xfe   : > { %2872 = vmatpush.bf16.msrb.mxu2 %v4417_v32  ;;  %2737 = vmatpush.bf16.msrb.mxu1 %v4415_v38  ;;  %v4235_v32 = vld [vmem:[%s5054_s7 + $0x11c] sm:$0xf]  ;;  %v3558_v31 = vld [vmem:[%s5054_s7 + $0x214] sm:$0xf0] }
  0xff   : > { %v3449_v37 = vor.u32 %v4235_v32, %v3446_v33  ;;  %v3564_v32 = vld [vmem:[%s5054_s7 + $0x200] sm:$0xf]  ;;  %v4267_v33 = vld [vmem:[%s5054_s7 + $0x218] sm:$0xf0] }
 0x100   : > { %4427 = vmatpush.bf16.msrb.mxu3 %v4960_v4  ;;  %v3892_v4 = vld [vmem:[%s5054_s7 + $0x498] sm:$0xf] }
 0x101   : > { %2609 = vmatpush.bf16.msrb.mxu0 %v4406_v39  ;;  %v4404_v39 = vld [vmem:[%s6015_s1 + $0x120] sm:$0xff] }
 0x102   : > { %2738 = vmatpush.bf16.msrb.mxu1 %v4414_v40  ;;  %v4412_v40 = vld [vmem:[%s6015_s1 + $0x160] sm:$0xff] }
 0x104   : > { %4428 = vmatpush.bf16.msrb.mxu3 %v4975_v7  ;;  %v4221_v7 = vld [vmem:[%s5054_s7 + $0xac] sm:$0xf] }
 0x105   : > { %v3393_v15 = vor.u32 %v4221_v7, %v3390_v9  ;;  %v4259_v7 = vld [vmem:[%s5054_s7 + $0x1d8] sm:$0xf0]  ;;  %v4256_v9 = vld [vmem:[%s5054_s7 + $0x1c4] sm:$0xf] }
 0x108   : > { %4429 = vmatpush.bf16.msrb.mxu3 %v4990_v10  ;;  %v3396_v10 = vld [vmem:[%s5054_s7 + $0xb0] sm:$0xf] }
 0x10b   : > { %2105 = vmatmul.bf16.gmra.mxu0 %v3333_v49  ;;  %2195 = vmatmul.bf16.gmra.mxu3 %v3837_v50  ;;  %v3473_v49 = vor.u32 %v4245_v42, %v3472_v41  ;;  %v3813_v50 = vor.u32 %v4326_v44, %v3810_v45 }
 0x10c   : > { %4430 = vmatpush.bf16.msrb.mxu3 %v5005_v13  ;;  %2234 = vmatmul.bf16.gmra.mxu1 %v3337_v51  ;;  %v3893_v13 = vor.u32 %v4350_v6, %v3892_v4  ;;  %v3477_v51 = vor.u32 %v4242_v43, %v3474_v46  ;;  %v4411_v4 = vld [vmem:[%s6015_s1 + $0x158] sm:$0xff]  ;;  %v3528_v6 = vld [vmem:[%s5054_s7 + $0x1c0] sm:$0xf] }
 0x10d   : > { %2363 = vmatmul.bf16.gmra.mxu2 %v3341_v52  ;;  %v3481_v52 = vor.u32 %v4246_v48, %v3480_v47 }
 0x110   : > { %4431 = vmatpush.bf16.msrb.mxu3 %v5021_v16  ;;  %v4231_v16 = vld [vmem:[%s5054_s7 + $0xf8] sm:$0xf0] }
 0x114   : > { %4432 = vmatpush.bf16.msrb.mxu3 %v4377_v19  ;;  %v4357_v19 = vld [vmem:[%s5054_s7 + $0x4e8] sm:$0xf0] }
 0x118   : > { %4433 = vmatpush.bf16.msrb.mxu3 %v5047_v22  ;;  %v3418_v22 = vld [vmem:[%s5054_s7 + $0xfc] sm:$0xf0] }
 0x119   : > { %v3421_v26 = vor.u32 %v4228_v21, %v3418_v22 }
 0x11b   : > { %2110 = vmatmul.bf16.gmra.mxu0 %v3361_v61  ;;  %2200 = vmatmul.bf16.gmra.mxu3 %v3865_v62  ;;  %v3501_v61 = vor.u32 %v4252_v54, %v3500_v53  ;;  %v3841_v62 = vor.u32 %v4333_v56, %v3838_v57  ;;  %v3922_v53 = vld [vmem:[%s5054_s7 + $0x4ec] sm:$0xf0]  ;;  %v4274_v56 = vld [vmem:[%s5054_s7 + $0x250] sm:$0xf0] }
 0x11c   : > { %4434 = vmatpush.bf16.msra.mxu3 %v4950_v2  ;;  %2239 = vmatmul.bf16.gmra.mxu1 %v3365_v63  ;;  %v3389_v2 = vor.u32 %v4224_v3, %v3388_v1  ;;  %v3505_v63 = vor.u32 %v4249_v55, %v3502_v58  ;;  %v4416_v1 = vld [vmem:[%s6015_s1 + $0x180] sm:$0xff]  ;;  %v4403_v3 = vld [vmem:[%s6015_s1 + $0x118] sm:$0xff]  ;;  %v3586_v54 = vld [vmem:[%s5054_s7 + $0x24c] sm:$0xf0] }
 0x11d   : > { %2368 = vmatmul.bf16.gmra.mxu2 %v3369_v0  ;;  %v3509_v0 = vor.u32 %v4253_v60, %v3508_v59  ;;  %v3592_v55 = vld [vmem:[%s5054_s7 + $0x238] sm:$0xf] }
 0x11e   : > { %2873 = vmatpush.bf16.msrb.mxu2 %v4416_v1  ;;  %v4402_v1 = vld [vmem:[%s6015_s1 + $0x110] sm:$0xff] }
 0x120   : > { %4435 = vmatpush.bf16.msra.mxu3 %v4965_v5  ;;  %v3397_v5 = vor.u32 %v4225_v12, %v3396_v10  ;;  %v4340_v10 = vld [vmem:[%s5054_s7 + $0x464] sm:$0xf]  ;;  %v3866_v12 = vld [vmem:[%s5054_s7 + $0x47c] sm:$0xf0] }
 0x124   : > { %4436 = vmatpush.bf16.msra.mxu3 %v4980_v8  ;;  %v4405_v8 = vld [vmem:[%s6015_s1 + $0x128] sm:$0xff] }
 0x125   : > { %2610 = vmatpush.bf16.msrb.mxu0 %v4405_v8  ;;  %v3869_v8 = vor.u32 %v4340_v10, %v3866_v12 }
 0x128   : > { %4437 = vmatpush.bf16.msra.mxu3 %v4995_v11  ;;  %v4413_v11 = vld [vmem:[%s6015_s1 + $0x168] sm:$0xff] }
 0x129   : > { %2739 = vmatpush.bf16.msrb.mxu1 %v4413_v11  ;;  %2611 = vmatpush.bf16.msrb.mxu0 %v4404_v39  ;;  %v3561_v39 = vor.u32 %v4263_v28, %v3558_v31  ;;  %v4398_v31 = vld [vmem:[%s6015_s1 + $0xf0] sm:$0xff] }
 0x12b   : > { %2115 = vmatmul.bf16.gmra.mxu0 %v3389_v2  ;;  %2205 = vmatmul.bf16.gmra.mxu3 %v3893_v13  ;;  %v3530_v2 = vld [vmem:[%s5054_s7 + $0x1dc] sm:$0xf0]  ;;  %v3536_v13 = vld [vmem:[%s5054_s7 + $0x1c8] sm:$0xf] }
 0x12c   : > { %4438 = vmatpush.bf16.msra.mxu3 %v5010_v14  ;;  %2244 = vmatmul.bf16.gmra.mxu1 %v3393_v15  ;;  %v3416_v14 = vld [vmem:[%s5054_s7 + $0xe0] sm:$0xf]  ;;  %v4260_v15 = vld [vmem:[%s5054_s7 + $0x1e0] sm:$0xf0] }
 0x12d   : > { %2373 = vmatmul.bf16.gmra.mxu2 %v3397_v5  ;;  %2740 = vmatpush.bf16.msrb.mxu1 %v4412_v40  ;;  %v3529_v5 = vor.u32 %v4259_v7, %v3528_v6  ;;  %v3565_v40 = vor.u32 %v4267_v33, %v3564_v32  ;;  %v4410_v6 = vld [vmem:[%s6015_s1 + $0x150] sm:$0xff]  ;;  %v4399_v7 = vld [vmem:[%s6015_s1 + $0xf8] sm:$0xff] }
 0x12e   : > { %2612 = vmatpush.bf16.msrb.mxu0 %v4403_v3 }
 0x130   : > { %4439 = vmatpush.bf16.msra.mxu3 %v5026_v17  ;;  %v3417_v17 = vor.u32 %v4231_v16, %v3416_v14  ;;  %v3533_v14 = vor.u32 %v4256_v9, %v3530_v2  ;;  %v3537_v16 = vor.u32 %v4260_v15, %v3536_v13 }
 0x131   : > { %2741 = vmatpush.bf16.msrb.mxu1 %v4411_v4 }
 0x132   : > { %2613 = vmatpush.bf16.msrb.mxu0 %v4402_v1  ;;  %v4409_v1 = vld [vmem:[%s6015_s1 + $0x148] sm:$0xff] }
 0x134   : > { %4440 = vmatpush.bf16.msra.mxu3 %v5039_v20  ;;  %v3921_v20 = vor.u32 %v4357_v19, %v3920_v18 }
 0x135   : > { %2742 = vmatpush.bf16.msrb.mxu1 %v4410_v6 }
 0x138   : > { %4441 = vmatpush.bf16.msra.mxu3 %v5052_v23  ;;  %v4239_v23 = vld [vmem:[%s5054_s7 + $0x138] sm:$0xf0] }
 0x139   : > { %v3453_v38 = vor.u32 %v4239_v23, %v3452_v34  ;;  %2743 = vmatpush.bf16.msrb.mxu1 %v4409_v1 }
 0x13b   : > { %2120 = vmatmul.bf16.gmra.mxu0 %v3417_v17  ;;  %2210 = vmatmul.bf16.gmra.mxu3 %v3921_v20 }
 0x13c   : > { %2249 = vmatmul.bf16.gmra.mxu1 %v3421_v26  ;;  %v3556_v26 = vld [vmem:[%s5054_s7 + $0x1f8] sm:$0xf] }
 0x13d   : > { %2378 = vmatmul.bf16.gmra.mxu2 %v3425_v27  ;;  %v4266_v27 = vld [vmem:[%s5054_s7 + $0x210] sm:$0xf0] }
 0x14b   : > { %2125 = vmatmul.bf16.gmra.mxu0 %v3445_v35  ;;  %2215 = vmatmul.bf16.gmra.mxu3 %v3949_v36  ;;  %v3557_v35 = vor.u32 %v4266_v27, %v3556_v26  ;;  %v3897_v36 = vor.u32 %v4347_v29, %v3894_v30 }
 0x14c   : > { %2254 = vmatmul.bf16.gmra.mxu1 %v3449_v37 }
 0x14d   : > { %2383 = vmatmul.bf16.gmra.mxu2 %v3453_v38 }
 0x15b   : > { %2130 = vmatmul.bf16.gmra.mxu0 %v3473_v49  ;;  %2319 = vmatmul.bf16.vlgmr.msrb.gmra.mxu3 %v3813_v50  ;;  %v3584_v49 = vld [vmem:[%s5054_s7 + $0x230] sm:$0xf]  ;;  %v4273_v50 = vld [vmem:[%s5054_s7 + $0x248] sm:$0xf0] }
 0x15c   : > { %2259 = vmatmul.bf16.gmra.mxu1 %v3477_v51  ;;  %v4270_v51 = vld [vmem:[%s5054_s7 + $0x234] sm:$0xf]  ;;  %v3585_v59 = vor.u32 %v4273_v50, %v3584_v49  ;;  %2479 = vmatpush.bf16.msrb.mxu3 %v4399_v7  ;;  %v3642_v49 = vld [vmem:[%s5054_s7 + $0x2bc] sm:$0xf0]  ;;  %v3648_v50 = vld [vmem:[%s5054_s7 + $0x2a8] sm:$0xf] }
 0x15d   : > { %2388 = vmatmul.bf16.gmra.mxu2 %v3481_v52  ;;  %v4354_v52 = vld [vmem:[%s5054_s7 + $0x4d4] sm:$0xf] }
 0x15e   : > { %v3925_v60 = vor.u32 %v4354_v52, %v3922_v53 }
 0x160   : > { %2480 = vmatpush.bf16.msrb.mxu3 %v4398_v31 }
 0x16b   : > { %2135 = vmatmul.bf16.gmra.mxu0 %v3501_v61  ;;  %2324 = vmatmul.bf16.gmra.mxu3 %v3841_v62 }
 0x16c   : > { %2264 = vmatmul.bf16.gmra.mxu1 %v3505_v63  ;;  %v3589_v63 = vor.u32 %v4270_v51, %v3586_v54  ;;  %v4288_v51 = vld [vmem:[%s5054_s7 + $0x2c0] sm:$0xf0] }
 0x16d   : > { %2393 = vmatmul.bf16.gmra.mxu2 %v3509_v0  ;;  %v3593_v0 = vor.u32 %v4274_v56, %v3592_v55 }
 0x178   : > { %v2101_v11 = vpop.f32.mrf.mxu0 }
 0x179   : > { %v2230_v18 = vpop.f32.mrf.mxu1 }
 0x17a   : > { %v2231_v19 = vadd.f32 %v2230_v18, %v2101_v11  ;;  %v4277_v11 = vld [vmem:[%s5054_s7 + $0x26c] sm:$0xf]  ;;  %v3614_v18 = vld [vmem:[%s5054_s7 + $0x284] sm:$0xf0] }
 0x17b   : > { %2140 = vmatmul.bf16.gmra.mxu0 %v3529_v5  ;;  %2329 = vmatmul.bf16.gmra.mxu3 %v3869_v8  ;;  %v3612_v5 = vld [vmem:[%s5054_s7 + $0x268] sm:$0xf]  ;;  %v4280_v8 = vld [vmem:[%s5054_s7 + $0x280] sm:$0xf0]  ;;  %v3617_v29 = vor.u32 %v4277_v11, %v3614_v18  ;;  %v3844_v11 = vld [vmem:[%s5054_s7 + $0x430] sm:$0xf] }
 0x17c   : > { %2269 = vmatmul.bf16.gmra.mxu1 %v3533_v14  ;;  %v4361_v14 = vld [vmem:[%s5054_s7 + $0x50c] sm:$0xf]  ;;  %v3676_v18 = vld [vmem:[%s5054_s7 + $0x2e0] sm:$0xf] }
 0x17d   : > { %2398 = vmatmul.bf16.gmra.mxu2 %v3537_v16  ;;  %v3950_v16 = vld [vmem:[%s5054_s7 + $0x524] sm:$0xf0] }
 0x17e   : > { %v5182_v21 = vpop.f32.mrf.mxu3  ;;  %v3953_v26 = vor.u32 %v4361_v14, %v3950_v16  ;;  %v4337_v14 = vld [vmem:[%s5054_s7 + $0x448] sm:$0xf0]  ;;  %v3670_v16 = vld [vmem:[%s5054_s7 + $0x2f4] sm:$0xf0] }
 0x180   : > { %v2359_v22 = vpop.f32.mrf.mxu2  ;;  %v2103_v25 = vpop.f32.mrf.mxu0 }
 0x181   : > { %v5184_v24 = vadd.f32 %v2359_v22, %v2231_v19  ;;  %v2232_v17 = vpop.f32.mrf.mxu1  ;;  %v3620_v19 = vld [vmem:[%s5054_s7 + $0x270] sm:$0xf]  ;;  %v4281_v22 = vld [vmem:[%s5054_s7 + $0x288] sm:$0xf0] }
 0x182   : > { %v2233_v20 = vadd.f32 %v2232_v17, %v2103_v25  ;;  %v3621_v30 = vor.u32 %v4281_v22, %v3620_v19  ;;  %v4295_v19 = vld [vmem:[%s5054_s7 + $0x2f8] sm:$0xf0] }
 0x183   : > { %v3677_v31 = vor.u32 %v4295_v19, %v3676_v18  ;;  %v4393_v18 = vld [vmem:[%s6015_s1 + $0xc8] sm:$0xff] }
 0x184   : > { %v3724_v19 = vld [vmem:[%s5054_s7 + $0x348] sm:$0xf] }
 0x186   : > { %v5194_v34 = vpop.f32.mrf.mxu3 }
 0x188   : > { %v2361_v23 = vpop.f32.mrf.mxu2  ;;  %v2106_v38 = vpop.f32.mrf.mxu0 }
 0x189   : > { %v5196_v37 = vadd.f32 %v2361_v23, %v2233_v20  ;;  %v2235_v41 = vpop.f32.mrf.mxu1  ;;  %v3613_v20 = vor.u32 %v4280_v8, %v3612_v5  ;;  %v4294_v5 = vld [vmem:[%s5054_s7 + $0x2f0] sm:$0xf0]  ;;  %v4291_v8 = vld [vmem:[%s5054_s7 + $0x2dc] sm:$0xf] }
 0x18a   : > { %v2236_v42 = vadd.f32 %v2235_v41, %v2106_v38  ;;  %v4397_v41 = vld [vmem:[%s6015_s1 + $0xe8] sm:$0xff] }
 0x18b   : > { %2145 = vmatmul.bf16.gmra.mxu0 %v3557_v35  ;;  %2334 = vmatmul.bf16.gmra.mxu3 %v3897_v36 }
 0x18c   : > { %2274 = vmatmul.bf16.gmra.mxu1 %v3561_v39  ;;  %2481 = vmatpush.bf16.msrb.mxu3 %v4397_v41 }
 0x18d   : > { %2403 = vmatmul.bf16.gmra.mxu2 %v3565_v40 }
 0x18e   : > { %v5198_v43 = vpop.f32.mrf.mxu3 }
 0x190   : > { %v2364_v44 = vpop.f32.mrf.mxu2  ;;  %v2108_v46 = vpop.f32.mrf.mxu0 }
 0x191   : > { %v5200_v45 = vadd.f32 %v2364_v44, %v2236_v42  ;;  %v2237_v47 = vpop.f32.mrf.mxu1  ;;  %v3640_v42 = vld [vmem:[%s5054_s7 + $0x2a0] sm:$0xf]  ;;  %v4287_v44 = vld [vmem:[%s5054_s7 + $0x2b8] sm:$0xf0] }
 0x192   : > { %v2238_v48 = vadd.f32 %v2237_v47, %v2108_v46  ;;  %v4284_v46 = vld [vmem:[%s5054_s7 + $0x2a4] sm:$0xf]  ;;  %v3816_v47 = vld [vmem:[%s5054_s7 + $0x3f8] sm:$0xf]  ;;  %v3641_v54 = vor.u32 %v4287_v44, %v3640_v42 }
 0x196   : > { %v5210_v57 = vpop.f32.mrf.mxu3 }
 0x198   : > { %v2366_v58 = vpop.f32.mrf.mxu2  ;;  %v2111_v62 = vpop.f32.mrf.mxu0 }
 0x199   : > { %v5212_v61 = vadd.f32 %v2366_v58, %v2238_v48  ;;  %v2240_v3 = vpop.f32.mrf.mxu1  ;;  %v4330_v48 = vld [vmem:[%s5054_s7 + $0x410] sm:$0xf0] }
 0x19a   : > { %v2241_v4 = vadd.f32 %v2240_v3, %v2111_v62  ;;  %v3817_v55 = vor.u32 %v4330_v48, %v3816_v47  ;;  %v4301_v47 = vld [vmem:[%s5054_s7 + $0x328] sm:$0xf0]  ;;  %v4298_v48 = vld [vmem:[%s5054_s7 + $0x314] sm:$0xf] }
 0x19b   : > { %2150 = vmatmul.bf16.gmra.mxu0 %v3585_v59  ;;  %2339 = vmatmul.bf16.gmra.mxu3 %v3925_v60  ;;  %v3645_v59 = vor.u32 %v4284_v46, %v3642_v49  ;;  %v3649_v60 = vor.u32 %v4288_v51, %v3648_v50  ;;  %v3696_v46 = vld [vmem:[%s5054_s7 + $0x310] sm:$0xf]  ;;  %v3872_v49 = vld [vmem:[%s5054_s7 + $0x468] sm:$0xf]  ;;  %v4344_v50 = vld [vmem:[%s5054_s7 + $0x480] sm:$0xf0] }
 0x19c   : > { %2279 = vmatmul.bf16.gmra.mxu1 %v3589_v63  ;;  %v3698_v51 = vld [vmem:[%s5054_s7 + $0x32c] sm:$0xf0] }
 0x19d   : > { %2408 = vmatmul.bf16.gmra.mxu2 %v3593_v0  ;;  %v4401_v0 = vld [vmem:[%s6015_s1 + $0x108] sm:$0xff] }
 0x19e   : > { %v5223_v9 = vpop.f32.mrf.mxu3  ;;  %2614 = vmatpush.bf16.msrb.mxu0 %v4401_v0  ;;  %v3701_v0 = vor.u32 %v4298_v48, %v3698_v51 }
 0x1a0   : > { %v2369_v10 = vpop.f32.mrf.mxu2  ;;  %v2113_v2 = vpop.f32.mrf.mxu0 }
 0x1a1   : > { %v5225_v12 = vadd.f32 %v2369_v10, %v2241_v4  ;;  %v2242_v13 = vpop.f32.mrf.mxu1  ;;  %v4396_v10 = vld [vmem:[%s6015_s1 + $0xe0] sm:$0xff] }
 0x1a2   : > { %v2243_v15 = vadd.f32 %v2242_v13, %v2113_v2  ;;  %2482 = vmatpush.bf16.msrb.mxu3 %v4396_v10 }
 0x1a6   : > { %v5235_v25 = vpop.f32.mrf.mxu3 }
 0x1a8   : > { %v2371_v17 = vpop.f32.mrf.mxu2  ;;  %v2116_v28 = vpop.f32.mrf.mxu0 }
 0x1a9   : > { %v5237_v27 = vadd.f32 %v2371_v17, %v2243_v15  ;;  %v2245_v32 = vpop.f32.mrf.mxu1  ;;  %v3668_v15 = vld [vmem:[%s5054_s7 + $0x2d8] sm:$0xf] }
 0x1aa   : > { %v2246_v33 = vadd.f32 %v2245_v32, %v2116_v28 }
 0x1ab   : > { %2155 = vmatmul.bf16.gmra.mxu0 %v3613_v20  ;;  %2344 = vmatmul.bf16.gmra.mxu3 %v3953_v26  ;;  %v3669_v20 = vor.u32 %v4294_v5, %v3668_v15  ;;  %v3845_v26 = vor.u32 %v4337_v14, %v3844_v11 }
 0x1ac   : > { %2284 = vmatmul.bf16.gmra.mxu1 %v3617_v29 }
 0x1ad   : > { %2413 = vmatmul.bf16.gmra.mxu2 %v3621_v30  ;;  %v3673_v30 = vor.u32 %v4291_v8, %v3670_v16  ;;  %v4400_v8 = vld [vmem:[%s6015_s1 + $0x100] sm:$0xff] }
 0x1ae   : > { %v5242_v23 = vpop.f32.mrf.mxu3  ;;  %2615 = vmatpush.bf16.msrb.mxu0 %v4400_v8  ;;  %v4408_v16 = vld [vmem:[%s6015_s1 + $0x140] sm:$0xff] }
 0x1af   : > { %2744 = vmatpush.bf16.msrb.mxu1 %v4408_v16 }
 0x1b0   : > { %v2374_v35 = vpop.f32.mrf.mxu2  ;;  %v2118_v38 = vpop.f32.mrf.mxu0 }
 0x1b1   : > { %v5244_v36 = vadd.f32 %v2374_v35, %v2246_v33  ;;  %v2247_v39 = vpop.f32.mrf.mxu1  ;;  %v4395_v35 = vld [vmem:[%s6015_s1 + $0xd8] sm:$0xff] }
 0x1b2   : > { %v2248_v40 = vadd.f32 %v2247_v39, %v2118_v38  ;;  %2483 = vmatpush.bf16.msrb.mxu3 %v4395_v35 }
 0x1b6   : > { %v5257_v52 = vpop.f32.mrf.mxu3 }
 0x1b8   : > { %v2376_v53 = vpop.f32.mrf.mxu2  ;;  %v2121_v58 = vpop.f32.mrf.mxu0 }
 0x1b9   : > { %v5259_v56 = vadd.f32 %v2376_v53, %v2248_v40  ;;  %v2250_v62 = vpop.f32.mrf.mxu1  ;;  %v3704_v53 = vld [vmem:[%s5054_s7 + $0x318] sm:$0xf] }
 0x1ba   : > { %v2251_v63 = vadd.f32 %v2250_v62, %v2121_v58 }
 0x1bb   : > { %2160 = vmatmul.bf16.gmra.mxu0 %v3641_v54  ;;  %2448 = vmatmul.bf16.vlgmr.msra.gmra.mxu3 %v3817_v55  ;;  %v4302_v54 = vld [vmem:[%s5054_s7 + $0x330] sm:$0xf0] }
 0x1bc   : > { %2289 = vmatmul.bf16.gmra.mxu1 %v3645_v59  ;;  %v3697_v59 = vor.u32 %v4301_v47, %v3696_v46  ;;  %v3705_v1 = vor.u32 %v4302_v54, %v3704_v53 }
 0x1bd   : > { %2418 = vmatmul.bf16.gmra.mxu2 %v3649_v60  ;;  %v3873_v60 = vor.u32 %v4344_v50, %v3872_v49 }
 0x1be   : > { %v5267_v3 = vpop.f32.mrf.mxu3 }
 0x1c0   : > { %v2379_v4 = vpop.f32.mrf.mxu2  ;;  %v2123_v7 = vpop.f32.mrf.mxu0 }
 0x1c1   : > { %v5269_v6 = vadd.f32 %v2379_v4, %v2251_v63  ;;  %v2252_v2 = vpop.f32.mrf.mxu1  ;;  %v4394_v4 = vld [vmem:[%s6015_s1 + $0xd0] sm:$0xff] }
 0x1c2   : > { %v2253_v13 = vadd.f32 %v2252_v2, %v2123_v7  ;;  %2484 = vmatpush.bf16.msrb.mxu3 %v4394_v4  ;;  %v3928_v4 = vld [vmem:[%s5054_s7 + $0x4d8] sm:$0xf] }
 0x1c6   : > { %v5282_v22 = vpop.f32.mrf.mxu3  ;;  %2485 = vmatpush.bf16.msrb.mxu3 %v4393_v18 }
 0x1c8   : > { %v2381_v17 = vpop.f32.mrf.mxu2  ;;  %v2126_v29 = vpop.f32.mrf.mxu0 }
 0x1c9   : > { %v5284_v28 = vadd.f32 %v2381_v17, %v2253_v13  ;;  %v2255_v32 = vpop.f32.mrf.mxu1  ;;  %v4308_v17 = vld [vmem:[%s5054_s7 + $0x360] sm:$0xf0] }
 0x1ca   : > { %v2256_v33 = vadd.f32 %v2255_v32, %v2126_v29  ;;  %v4351_v29 = vld [vmem:[%s5054_s7 + $0x4b8] sm:$0xf0]  ;;  %v4309_v32 = vld [vmem:[%s5054_s7 + $0x368] sm:$0xf0] }
 0x1cb   : > { %2165 = vmatmul.bf16.gmra.mxu0 %v3669_v20  ;;  %2453 = vmatmul.bf16.gmra.mxu3 %v3845_v26  ;;  %v4305_v20 = vld [vmem:[%s5054_s7 + $0x34c] sm:$0xf]  ;;  %v3900_v26 = vld [vmem:[%s5054_s7 + $0x4a0] sm:$0xf] }
 0x1cc   : > { %2294 = vmatmul.bf16.gmra.mxu1 %v3673_v30  ;;  %v3726_v30 = vld [vmem:[%s5054_s7 + $0x364] sm:$0xf0] }
 0x1cd   : > { %2423 = vmatmul.bf16.gmra.mxu2 %v3677_v31  ;;  %v3732_v31 = vld [vmem:[%s5054_s7 + $0x350] sm:$0xf]  ;;  %v3729_v46 = vor.u32 %v4305_v20, %v3726_v30 }
 0x1ce   : > { %v5289_v38 = vpop.f32.mrf.mxu3  ;;  %v3733_v47 = vor.u32 %v4309_v32, %v3732_v31 }
 0x1d0   : > { %v2384_v39 = vpop.f32.mrf.mxu2  ;;  %v2128_v41 = vpop.f32.mrf.mxu0 }
 0x1d1   : > { %v5291_v40 = vadd.f32 %v2384_v39, %v2256_v33  ;;  %v2257_v42 = vpop.f32.mrf.mxu1  ;;  %v3725_v39 = vor.u32 %v4308_v17, %v3724_v19 }
 0x1d2   : > { %v2258_v44 = vadd.f32 %v2257_v42, %v2128_v41  ;;  %v3901_v41 = vor.u32 %v4351_v29, %v3900_v26 }
 0x1d6   : > { %v5301_v55 = vpop.f32.mrf.mxu3 }
 0x1d8   : > { %v2386_v58 = vpop.f32.mrf.mxu2  ;;  %v2131_v63 = vpop.f32.mrf.mxu0 }
 0x1d9   : > { %v5303_v62 = vadd.f32 %v2386_v58, %v2258_v44  ;;  %v2260_v7 = vpop.f32.mrf.mxu1  ;;  %v4392_v58 = vld [vmem:[%s6015_s1 + $0xc0] sm:$0xff] }
 0x1da   : > { %v2261_v10 = vadd.f32 %v2260_v7, %v2131_v63  ;;  %2486 = vmatpush.bf16.msrb.mxu3 %v4392_v58  ;;  %v3752_v63 = vld [vmem:[%s5054_s7 + $0x380] sm:$0xf]  ;;  %v4358_v7 = vld [vmem:[%s5054_s7 + $0x4f0] sm:$0xf0]  ;;  %v4323_v58 = vld [vmem:[%s5054_s7 + $0x3d8] sm:$0xf0] }
 0x1db   : > { %2170 = vmatmul.bf16.gmra.mxu0 %v3697_v59  ;;  %2458 = vmatmul.bf16.gmra.mxu3 %v3873_v60  ;;  %v3929_v16 = vor.u32 %v4358_v7, %v3928_v4 }
 0x1dc   : > { %2299 = vmatmul.bf16.gmra.mxu1 %v3701_v0  ;;  %v4315_v0 = vld [vmem:[%s5054_s7 + $0x398] sm:$0xf0] }
 0x1dd   : > { %2428 = vmatmul.bf16.gmra.mxu2 %v3705_v1  ;;  %v4312_v1 = vld [vmem:[%s5054_s7 + $0x384] sm:$0xf] }
 0x1de   : > { %v5308_v2 = vpop.f32.mrf.mxu3 }
 0x1e0   : > { %v2389_v13 = vpop.f32.mrf.mxu2  ;;  %v2133_v5 = vpop.f32.mrf.mxu0 }
 0x1e1   : > { %v5310_v15 = vadd.f32 %v2389_v13, %v2261_v10  ;;  %v2262_v11 = vpop.f32.mrf.mxu1  ;;  %v3754_v10 = vld [vmem:[%s5054_s7 + $0x39c] sm:$0xf0]  ;;  %v3760_v13 = vld [vmem:[%s5054_s7 + $0x388] sm:$0xf] }
 0x1e2   : > { %v2263_v14 = vadd.f32 %v2262_v11, %v2133_v5  ;;  %v4316_v5 = vld [vmem:[%s5054_s7 + $0x3a0] sm:$0xf0]  ;;  %v3757_v17 = vor.u32 %v4312_v1, %v3754_v10 }
 0x1e3   : > { %v3761_v20 = vor.u32 %v4316_v5, %v3760_v13 }
 0x1e6   : > { %v5329_v33 = vpop.f32.mrf.mxu3 }
 0x1e8   : > { %v2391_v35 = vpop.f32.mrf.mxu2  ;;  %v2136_v44 = vpop.f32.mrf.mxu0 }
 0x1e9   : > { %v5331_v42 = vadd.f32 %v2391_v35, %v2263_v14  ;;  %v2265_v48 = vpop.f32.mrf.mxu1  ;;  %v3753_v14 = vor.u32 %v4315_v0, %v3752_v63 }
 0x1ea   : > { %v2266_v49 = vadd.f32 %v2265_v48, %v2136_v44  ;;  %v3780_v44 = vld [vmem:[%s5054_s7 + $0x3b8] sm:$0xf]  ;;  %v3956_v48 = vld [vmem:[%s5054_s7 + $0x510] sm:$0xf] }
 0x1eb   : > { %2175 = vmatmul.bf16.gmra.mxu0 %v3725_v39  ;;  %2463 = vmatmul.bf16.gmra.mxu3 %v3901_v41 }
 0x1ec   : > { %2304 = vmatmul.bf16.gmra.mxu1 %v3729_v46  ;;  %v4322_v46 = vld [vmem:[%s5054_s7 + $0x3d0] sm:$0xf0] }
 0x1ed   : > { %2433 = vmatmul.bf16.gmra.mxu2 %v3733_v47  ;;  %v4319_v47 = vld [vmem:[%s5054_s7 + $0x3bc] sm:$0xf]  ;;  %v3781_v63 = vor.u32 %v4322_v46, %v3780_v44  ;;  %v4202_v44 = vld [vmem:[%s5054_s7 + $0x14] sm:$0xf]  ;;  %v3322_v46 = vld [vmem:[%s5054_s7 + $0x2c] sm:$0xf0] }
 0x1ee   : > { %v5333_v50 = vpop.f32.mrf.mxu3 }
 0x1f0   : > { %v2394_v51 = vpop.f32.mrf.mxu2  ;;  %v2138_v54 = vpop.f32.mrf.mxu0 }
 0x1f1   : > { %v5335_v53 = vadd.f32 %v2394_v51, %v2266_v49  ;;  %v2267_v59 = vpop.f32.mrf.mxu1  ;;  %v4365_v49 = vld [vmem:[%s5054_s7 + $0x528] sm:$0xf0]  ;;  %v3782_v51 = vld [vmem:[%s5054_s7 + $0x3d4] sm:$0xf0] }
 0x1f2   : > { %v2268_v60 = vadd.f32 %v2267_v59, %v2138_v54  ;;  %v3788_v54 = vld [vmem:[%s5054_s7 + $0x3c0] sm:$0xf]  ;;  %v3957_v0 = vor.u32 %v4365_v49, %v3956_v48  ;;  %v3785_v7 = vor.u32 %v4319_v47, %v3782_v51 }
 0x1f3   : > { %v3789_v10 = vor.u32 %v4323_v58, %v3788_v54 }
 0x1f6   : > { %v5348_v8 = vpop.f32.mrf.mxu3 }
 0x1f8   : > { %v2396_v11 = vpop.f32.mrf.mxu2  ;;  %v2141_v19 = vpop.f32.mrf.mxu0 }
 0x1f9   : > { %v5350_v18 = vadd.f32 %v2396_v11, %v2268_v60  ;;  %v2270_v26 = vpop.f32.mrf.mxu1 }
 0x1fa   : > { %v2271_v29 = vadd.f32 %v2270_v26, %v2141_v19  ;;  %v4201_v26 = vld [vmem:[%s5054_s7 + $0xc] sm:$0xf] }
 0x1fb   : > { %2180 = vmatmul.bf16.gmra.mxu0 %v3753_v14  ;;  %2468 = vmatmul.bf16.gmra.mxu3 %v3929_v16 }
 0x1fc   : > { %2309 = vmatmul.bf16.gmra.mxu1 %v3757_v17 }
 0x1fd   : > { %2438 = vmatmul.bf16.gmra.mxu2 %v3761_v20 }
 0x1fe   : > { %v5352_v30 = vpop.f32.mrf.mxu3 }
 0x200   : > { %v2399_v31 = vpop.f32.mrf.mxu2  ;;  %v2143_v35 = vpop.f32.mrf.mxu0 }
 0x201   : > { %v5354_v32 = vadd.f32 %v2399_v31, %v2271_v29  ;;  %v2272_v39 = vpop.f32.mrf.mxu1  ;;  %v3314_v29 = vld [vmem:[%s5054_s7 + $0x24] sm:$0xf0]  ;;  %v3320_v31 = vld [vmem:[%s5054_s7 + $0x10] sm:$0xf] }
 0x202   : > { %v2273_v41 = vadd.f32 %v2272_v39, %v2143_v35  ;;  %v4205_v35 = vld [vmem:[%s5054_s7 + $0x28] sm:$0xf0]  ;;  %v3328_v39 = vld [vmem:[%s5054_s7 + $0x18] sm:$0xf]  ;;  %v3317_v49 = vor.u32 %v4201_v26, %v3314_v29  ;;  %v3348_v26 = vld [vmem:[%s5054_s7 + $0x48] sm:$0xf] }
 0x203   : > { %v3321_v51 = vor.u32 %v4205_v35, %v3320_v31  ;;  %v4212_v29 = vld [vmem:[%s5054_s7 + $0x60] sm:$0xf0]  ;;  %v3356_v31 = vld [vmem:[%s5054_s7 + $0x50] sm:$0xf]  ;;  %v4213_v35 = vld [vmem:[%s5054_s7 + $0x68] sm:$0xf0] }
 0x206   : > { %v5364_v59 = vpop.f32.mrf.mxu3 }
 0x208   : > { %v2401_v60 = vpop.f32.mrf.mxu2  ;;  %v2146_v4 = vpop.f32.mrf.mxu0 }
 0x209   : > { %v5366_v1 = vadd.f32 %v2401_v60, %v2273_v41  ;;  %v2275_v13 = vpop.f32.mrf.mxu1  ;;  %v4206_v41 = vld [vmem:[%s5054_s7 + $0x30] sm:$0xf0] }
 0x20a   : > { %v2276_v5 = vadd.f32 %v2275_v13, %v2146_v4  ;;  %v3329_v60 = vor.u32 %v4206_v41, %v3328_v39  ;;  %v4209_v39 = vld [vmem:[%s5054_s7 + $0x4c] sm:$0xf]  ;;  %v3350_v41 = vld [vmem:[%s5054_s7 + $0x64] sm:$0xf0] }
 0x20b   : > { %2185 = vmatmul.bf16.gmra.mxu0 %v3781_v63  ;;  %2473 = vmatmul.bf16.gmra.mxu3 %v3957_v0  ;;  %v3325_v63 = vor.u32 %v4202_v44, %v3322_v46 }
 0x20c   : > { %2314 = vmatmul.bf16.gmra.mxu1 %v3785_v7 }
 0x20d   : > { %2443 = vmatmul.bf16.gmra.mxu2 %v3789_v10 }
 0x20e   : > { %v5368_v11 = vpop.f32.mrf.mxu3 }
 0x210   : > { %v2404_v14 = vpop.f32.mrf.mxu2  ;;  %v2148_v19 = vpop.f32.mrf.mxu0 }
 0x211   : > { %v5370_v16 = vadd.f32 %v2404_v14, %v2276_v5  ;;  %v2277_v17 = vpop.f32.mrf.mxu1 }
 0x212   : > { %v2278_v20 = vadd.f32 %v2277_v17, %v2148_v19  ;;  %v4208_v17 = vld [vmem:[%s5054_s7 + $0x44] sm:$0xf] }
 0x216   : > { %v5380_v47 = vpop.f32.mrf.mxu3 }
 0x218   : > { %v2406_v48 = vpop.f32.mrf.mxu2  ;;  %v2151_v58 = vpop.f32.mrf.mxu0 }
 0x219   : > { %v5382_v54 = vadd.f32 %v2406_v48, %v2278_v20  ;;  %v2280_v0 = vpop.f32.mrf.mxu1  ;;  %v3342_v20 = vld [vmem:[%s5054_s7 + $0x5c] sm:$0xf0] }
 0x21a   : > { %v2281_v4 = vadd.f32 %v2280_v0, %v2151_v58  ;;  %v3345_v48 = vor.u32 %v4208_v17, %v3342_v20 }
 0x21b   : > { %2487 = vmatmul.bf16.vlgmr.msrb.gmra.mxu3 %v3317_v49  ;;  %2616 = vmatmul.bf16.vlgmr.msrb.gmra.mxu0 %v3321_v51  ;;  %v3349_v49 = vor.u32 %v4212_v29, %v3348_v26  ;;  %v4215_v26 = vld [vmem:[%s5054_s7 + $0x7c] sm:$0xf]  ;;  %v3370_v29 = vld [vmem:[%s5054_s7 + $0x94] sm:$0xf0] }
 0x21c   : > { %2745 = vmatmul.bf16.vlgmr.msrb.gmra.mxu1 %v3325_v63  ;;  %v3353_v63 = vor.u32 %v4209_v39, %v3350_v41  ;;  %v3384_v39 = vld [vmem:[%s5054_s7 + $0x88] sm:$0xf]  ;;  %v4220_v41 = vld [vmem:[%s5054_s7 + $0xa0] sm:$0xf0] }
 0x21d   : > { %4174 = vmatmul.msk.bf16.vlgmr.msrb.gmra.mxu2 %vm2019_vm0, %v3329_v60  ;;  %v3357_v60 = vor.u32 %v4213_v35, %v3356_v31  ;;  %v3376_v31 = vld [vmem:[%s5054_s7 + $0x80] sm:$0xf]  ;;  %v4219_v35 = vld [vmem:[%s5054_s7 + $0x98] sm:$0xf0] }
 0x21e   : > { %v5385_v7 = vpop.f32.mrf.mxu3 }
 0x220   : > { %v2409_v10 = vpop.f32.mrf.mxu2  ;;  %v2153_v5 = vpop.f32.mrf.mxu0 }
 0x221   : > { %v5387_v13 = vadd.f32 %v2409_v10, %v2281_v4  ;;  %v2282_v14 = vpop.f32.mrf.mxu1 }
 0x222   : > { %v2283_v19 = vadd.f32 %v2282_v14, %v2153_v5 }
 0x226   : > { %v5397_v44 = vpop.f32.mrf.mxu3 }
 0x228   : > { %v2411_v46 = vpop.f32.mrf.mxu2  ;;  %v2156_v58 = vpop.f32.mrf.mxu0 }
 0x229   : > { %v5399_v51 = vadd.f32 %v2411_v46, %v2283_v19  ;;  %v2285_v0 = vpop.f32.mrf.mxu1  ;;  %v4216_v46 = vld [vmem:[%s5054_s7 + $0x84] sm:$0xf] }
 0x22a   : > { %v2286_v4 = vadd.f32 %v2285_v0, %v2156_v58 }
 0x22b   : > { %6018 = vst [vmem:[#allocation3_spill] sm:$0xff] %v5399_v51  ;;  %2492 = vmatmul.bf16.gmra.mxu3 %v3345_v48  ;;  %2621 = vmatmul.bf16.gmra.mxu0 %v3349_v49  ;;  %v3378_v48 = vld [vmem:[%s5054_s7 + $0x9c] sm:$0xf0] }
 0x22c   : > { %2750 = vmatmul.bf16.gmra.mxu1 %v3353_v63  ;;  %v3377_v63 = vor.u32 %v4219_v35, %v3376_v31 }
 0x22d   : > { %4175 = vmatmul.msk.bf16.gmra.mxu2 %vm2019_vm0, %v3357_v60  ;;  %v3373_v60 = vor.u32 %v4215_v26, %v3370_v29 }
 0x22e   : > { %v5402_v10 = vpop.f32.mrf.mxu3 }
 0x230   : > { %v2414_v5 = vpop.f32.mrf.mxu2  ;;  %v2158_v19 = vpop.f32.mrf.mxu0 }
 0x231   : > { %v5404_v14 = vadd.f32 %v2414_v5, %v2286_v4  ;;  %v2287_v17 = vpop.f32.mrf.mxu1  ;;  %v3385_v5 = vor.u32 %v4220_v41, %v3384_v39 }
 0x232   : > { %v2288_v20 = vadd.f32 %v2287_v17, %v2158_v19 }
 0x233   : > { %6019 = vst [vmem:[#allocation4_spill] sm:$0xff] %v5404_v14  ;;  %v3381_v14 = vor.u32 %v4216_v46, %v3378_v48  ;;  %v4222_v48 = vld [vmem:[%s5054_s7 + $0xb4] sm:$0xf] }
 0x236   : > { %v5414_v49 = vpop.f32.mrf.mxu3 }
 0x238   : > { %v2416_v58 = vpop.f32.mrf.mxu2  ;;  %v2161_v4 = vpop.f32.mrf.mxu0 }
 0x239   : > { %v5416_v0 = vadd.f32 %v2416_v58, %v2288_v20  ;;  %v2290_v19 = vpop.f32.mrf.mxu1  ;;  %v2321_v20 = vadd.f32 %v5308_v2, %v5182_v21  ;;  %v3398_v58 = vld [vmem:[%s5054_s7 + $0xcc] sm:$0xf0]  ;;  %v4223_v21 = vld [vmem:[%s5054_s7 + $0xbc] sm:$0xf]  ;;  %v3406_v2 = vld [vmem:[%s5054_s7 + $0xd4] sm:$0xf0] }
 0x23a   : > { %v2291_v17 = vadd.f32 %v2290_v19, %v2161_v4  ;;  %v3412_v4 = vld [vmem:[%s5054_s7 + $0xc0] sm:$0xf] }
 0x23b   : > { %6020 = vst [vmem:[#allocation5_spill] sm:$0xff] %v5416_v0  ;;  %2497 = vmatmul.bf16.gmra.mxu3 %v3373_v60  ;;  %2626 = vmatmul.bf16.gmra.mxu0 %v3377_v63  ;;  %v3404_v60 = vld [vmem:[%s5054_s7 + $0xb8] sm:$0xf]  ;;  %v4226_v63 = vld [vmem:[%s5054_s7 + $0xd0] sm:$0xf0] }
 0x23c   : > { %2755 = vmatmul.bf16.gmra.mxu1 %v3381_v14  ;;  %v2323_v14 = vadd.f32 %v5329_v33, %v5194_v34  ;;  %v2326_v34 = vadd.f32 %v5333_v50, %v5198_v43  ;;  %v4230_v43 = vld [vmem:[%s5054_s7 + $0xf4] sm:$0xf]  ;;  %v3434_v50 = vld [vmem:[%s5054_s7 + $0x10c] sm:$0xf0] }
 0x23d   : > { %4176 = vmatmul.msk.bf16.gmra.mxu2 %vm2019_vm0, %v3385_v5  ;;  %v4227_v5 = vld [vmem:[%s5054_s7 + $0xd8] sm:$0xf0] }
 0x23e   : > { %v2449_v26 = vpop.f32.mrf.mxu3 }
 0x23f   : > { %v5421_v31 = vadd.f32 %v2449_v26, %v2321_v20  ;;  %v3405_v26 = vor.u32 %v4226_v63, %v3404_v60  ;;  %v4229_v63 = vld [vmem:[%s5054_s7 + $0xec] sm:$0xf] }
 0x240   : > { %v2419_v29 = vpop.f32.mrf.mxu2  ;;  %v2163_v39 = vpop.f32.mrf.mxu0 }
 0x241   : > { %6021 = vst [vmem:[#allocation6_spill] sm:$0xff] %v5421_v31  ;;  %v5423_v35 = vadd.f32 %v2419_v29, %v2291_v17  ;;  %v2292_v41 = vpop.f32.mrf.mxu1  ;;  %v3401_v17 = vor.u32 %v4222_v48, %v3398_v58  ;;  %v3409_v31 = vor.u32 %v4223_v21, %v3406_v2  ;;  %v3440_v21 = vld [vmem:[%s5054_s7 + $0xf8] sm:$0xf]  ;;  %v4234_v2 = vld [vmem:[%s5054_s7 + $0x110] sm:$0xf0] }
 0x242   : > { %v2293_v46 = vadd.f32 %v2292_v41, %v2163_v39  ;;  %v3413_v41 = vor.u32 %v4227_v5, %v3412_v4  ;;  %v3426_v4 = vld [vmem:[%s5054_s7 + $0x104] sm:$0xf0]  ;;  %v4233_v5 = vld [vmem:[%s5054_s7 + $0x108] sm:$0xf0] }
 0x243   : > { %6022 = vst [vmem:[#allocation7_spill] sm:$0xff] %v5423_v35 }
 0x246   : > { %v2451_v19 = vpop.f32.mrf.mxu3 }
 0x247   : > { %v5435_v20 = vadd.f32 %v2451_v19, %v2323_v14  ;;  %v3432_v14 = vld [vmem:[%s5054_s7 + $0xf0] sm:$0xf] }
 0x248   : > { %v2421_v0 = vpop.f32.mrf.mxu2  ;;  %v2166_v39 = vpop.f32.mrf.mxu0 }
 0x249   : > { %v5437_v29 = vadd.f32 %v2421_v0, %v2293_v46  ;;  %v2295_v35 = vpop.f32.mrf.mxu1 }
 0x24a   : > { %v2296_v51 = vadd.f32 %v2295_v35, %v2166_v39  ;;  %v3433_v39 = vor.u32 %v4233_v5, %v3432_v14 }
 0x24b   : > { %2502 = vmatmul.bf16.gmra.mxu3 %v3401_v17  ;;  %2631 = vmatmul.bf16.gmra.mxu0 %v3405_v26 }
 0x24c   : > { %2760 = vmatmul.bf16.gmra.mxu1 %v3409_v31  ;;  %v2328_v31 = vadd.f32 %v5348_v8, %v5210_v57  ;;  %v2331_v57 = vadd.f32 %v5352_v30, %v5223_v9  ;;  %v4237_v9 = vld [vmem:[%s5054_s7 + $0x12c] sm:$0xf]  ;;  %v3462_v30 = vld [vmem:[%s5054_s7 + $0x144] sm:$0xf0] }
 0x24d   : > { %4177 = vmatmul.msk.bf16.gmra.mxu2 %vm2019_vm0, %v3413_v41 }
 0x24e   : > { %v2454_v33 = vpop.f32.mrf.mxu3 }
 0x24f   : > { %v5442_v46 = vadd.f32 %v2454_v33, %v2326_v34  ;;  %v3441_v33 = vor.u32 %v4234_v2, %v3440_v21  ;;  %v3454_v2 = vld [vmem:[%s5054_s7 + $0x13c] sm:$0xf0] }
 0x250   : > { %v2424_v0 = vpop.f32.mrf.mxu2  ;;  %v2168_v35 = vpop.f32.mrf.mxu0 }
 0x251   : > { %v5444_v48 = vadd.f32 %v2424_v0, %v2296_v51  ;;  %v2297_v58 = vpop.f32.mrf.mxu1  ;;  %v3429_v51 = vor.u32 %v4229_v63, %v3426_v4  ;;  %v3437_v0 = vor.u32 %v4230_v43, %v3434_v50  ;;  %v3460_v43 = vld [vmem:[%s5054_s7 + $0x128] sm:$0xf]  ;;  %v4240_v50 = vld [vmem:[%s5054_s7 + $0x140] sm:$0xf0] }
 0x252   : > { %v2298_v60 = vadd.f32 %v2297_v58, %v2168_v35 }
 0x256   : > { %v2456_v19 = vpop.f32.mrf.mxu3 }
 0x257   : > { %v5456_v26 = vadd.f32 %v2456_v19, %v2328_v31  ;;  %v4236_v31 = vld [vmem:[%s5054_s7 + $0x124] sm:$0xf]  ;;  %v3468_v19 = vld [vmem:[%s5054_s7 + $0x130] sm:$0xf] }
 0x258   : > { %v2426_v17 = vpop.f32.mrf.mxu2  ;;  %v2171_v34 = vpop.f32.mrf.mxu0 }
 0x259   : > { %v5458_v41 = vadd.f32 %v2426_v17, %v2298_v60  ;;  %v2300_v35 = vpop.f32.mrf.mxu1  ;;  %v2333_v17 = vadd.f32 %v5364_v59, %v5235_v25  ;;  %v2336_v25 = vadd.f32 %v5368_v11, %v5242_v23  ;;  %v4244_v23 = vld [vmem:[%s5054_s7 + $0x164] sm:$0xf]  ;;  %v3490_v11 = vld [vmem:[%s5054_s7 + $0x17c] sm:$0xf0] }
 0x25a   : > { %v2301_v58 = vadd.f32 %v2300_v35, %v2171_v34  ;;  %v3461_v35 = vor.u32 %v4240_v50, %v3460_v43 }
 0x25b   : > { %2507 = vmatmul.bf16.gmra.mxu3 %v3429_v51  ;;  %2636 = vmatmul.bf16.gmra.mxu0 %v3433_v39  ;;  %v4241_v51 = vld [vmem:[%s5054_s7 + $0x148] sm:$0xf0] }
 0x25c   : > { %2765 = vmatmul.bf16.gmra.mxu1 %v3437_v0  ;;  %v3457_v0 = vor.u32 %v4236_v31, %v3454_v2 }
 0x25d   : > { %4178 = vmatmul.msk.bf16.gmra.mxu2 %vm2019_vm0, %v3441_v33 }
 0x25e   : > { %v2459_v8 = vpop.f32.mrf.mxu3 }
 0x25f   : > { %v5463_v63 = vadd.f32 %v2459_v8, %v2331_v57  ;;  %v3469_v8 = vor.u32 %v4241_v51, %v3468_v19  ;;  %v3482_v51 = vld [vmem:[%s5054_s7 + $0x174] sm:$0xf0] }
 0x260   : > { %v2429_v60 = vpop.f32.mrf.mxu2  ;;  %v2173_v14 = vpop.f32.mrf.mxu0 }
 0x261   : > { %v5465_v4 = vadd.f32 %v2429_v60, %v2301_v58  ;;  %v2302_v5 = vpop.f32.mrf.mxu1  ;;  %v3465_v60 = vor.u32 %v4237_v9, %v3462_v30  ;;  %v3488_v9 = vld [vmem:[%s5054_s7 + $0x160] sm:$0xf]  ;;  %v4247_v30 = vld [vmem:[%s5054_s7 + $0x178] sm:$0xf0] }
 0x262   : > { %v2303_v21 = vadd.f32 %v2302_v5, %v2173_v14 }
 0x266   : > { %v2461_v39 = vpop.f32.mrf.mxu3 }
 0x267   : > { %v5477_v33 = vadd.f32 %v2461_v39, %v2333_v17  ;;  %v4243_v17 = vld [vmem:[%s5054_s7 + $0x15c] sm:$0xf]  ;;  %v3496_v39 = vld [vmem:[%s5054_s7 + $0x168] sm:$0xf] }
 0x268   : > { %v2431_v34 = vpop.f32.mrf.mxu2  ;;  %v2176_v57 = vpop.f32.mrf.mxu0 }
 0x269   : > { %6023 = vst [vmem:[#allocation8_spill] sm:$0xff] %v5477_v33  ;;  %v5479_v58 = vadd.f32 %v2431_v34, %v2303_v21  ;;  %v2305_v14 = vpop.f32.mrf.mxu1  ;;  %v2338_v34 = vadd.f32 %v5380_v47, %v5257_v52  ;;  %v2341_v52 = vadd.f32 %v5385_v7, %v5267_v3  ;;  %v4251_v3 = vld [vmem:[%s5054_s7 + $0x19c] sm:$0xf]  ;;  %v3518_v7 = vld [vmem:[%s5054_s7 + $0x1b4] sm:$0xf0] }
 0x26a   : > { %v2306_v5 = vadd.f32 %v2305_v14, %v2176_v57  ;;  %v3489_v14 = vor.u32 %v4247_v30, %v3488_v9 }
 0x26b   : > { %2512 = vmatmul.bf16.gmra.mxu3 %v3457_v0  ;;  %2641 = vmatmul.bf16.gmra.mxu0 %v3461_v35  ;;  %v4248_v0 = vld [vmem:[%s5054_s7 + $0x180] sm:$0xf0] }
 0x26c   : > { %2770 = vmatmul.bf16.gmra.mxu1 %v3465_v60  ;;  %v3485_v60 = vor.u32 %v4243_v17, %v3482_v51 }
 0x26d   : > { %4179 = vmatmul.msk.bf16.gmra.mxu2 %vm2019_vm0, %v3469_v8 }
 0x26e   : > { %v2464_v59 = vpop.f32.mrf.mxu3 }
 0x26f   : > { %v5484_v31 = vadd.f32 %v2464_v59, %v2336_v25  ;;  %v3497_v59 = vor.u32 %v4248_v0, %v3496_v39  ;;  %v3510_v0 = vld [vmem:[%s5054_s7 + $0x1ac] sm:$0xf0] }
 0x270   : > { %v2434_v21 = vpop.f32.mrf.mxu2  ;;  %v2178_v43 = vpop.f32.mrf.mxu0 }
 0x271   : > { %6024 = vst [vmem:[#allocation9_spill] sm:$0xff] %v5484_v31  ;;  %v5486_v2 = vadd.f32 %v2434_v21, %v2306_v5  ;;  %v2307_v50 = vpop.f32.mrf.mxu1  ;;  %v3493_v21 = vor.u32 %v4244_v23, %v3490_v11  ;;  %v3516_v23 = vld [vmem:[%s5054_s7 + $0x198] sm:$0xf]  ;;  %v4254_v11 = vld [vmem:[%s5054_s7 + $0x1b0] sm:$0xf0] }
 0x272   : > { %v2308_v19 = vadd.f32 %v2307_v50, %v2178_v43 }
 0x276   : > { %v2466_v35 = vpop.f32.mrf.mxu3 }
 0x277   : > { %v5498_v8 = vadd.f32 %v2466_v35, %v2338_v34  ;;  %v4250_v34 = vld [vmem:[%s5054_s7 + $0x194] sm:$0xf]  ;;  %v3524_v35 = vld [vmem:[%s5054_s7 + $0x1a0] sm:$0xf] }
 0x278   : > { %v2436_v57 = vpop.f32.mrf.mxu2  ;;  %v2181_v25 = vpop.f32.mrf.mxu0 }
 0x279   : > { %6025 = vst [vmem:[#allocation10_spill] sm:$0xff] %v5498_v8  ;;  %v5500_v5 = vadd.f32 %v2436_v57, %v2308_v19  ;;  %v2310_v43 = vpop.f32.mrf.mxu1  ;;  %v2343_v57 = vadd.f32 %v5397_v44, %v5282_v22  ;;  %v2346_v22 = vadd.f32 %v5402_v10, %v5289_v38  ;;  %v4258_v38 = vld [vmem:[%s5054_s7 + $0x1d4] sm:$0xf]  ;;  %v3546_v10 = vld [vmem:[%s5054_s7 + $0x1ec] sm:$0xf0] }
 0x27a   : > { %v2311_v50 = vadd.f32 %v2310_v43, %v2181_v25  ;;  %v3517_v43 = vor.u32 %v4254_v11, %v3516_v23 }
 0x27b   : > { %2517 = vmatmul.bf16.gmra.mxu3 %v3485_v60  ;;  %2646 = vmatmul.bf16.gmra.mxu0 %v3489_v14  ;;  %v4255_v60 = vld [vmem:[%s5054_s7 + $0x1b8] sm:$0xf0] }
 0x27c   : > { %2775 = vmatmul.bf16.gmra.mxu1 %v3493_v21  ;;  %v3513_v21 = vor.u32 %v4250_v34, %v3510_v0 }
 0x27d   : > { %4180 = vmatmul.msk.bf16.gmra.mxu2 %vm2019_vm0, %v3497_v59 }
 0x27e   : > { %v2469_v47 = vpop.f32.mrf.mxu3 }
 0x27f   : > { %v5505_v17 = vadd.f32 %v2469_v47, %v2341_v52  ;;  %v3525_v47 = vor.u32 %v4255_v60, %v3524_v35  ;;  %v3538_v60 = vld [vmem:[%s5054_s7 + $0x1e4] sm:$0xf0] }
 0x280   : > { %v2439_v19 = vpop.f32.mrf.mxu2  ;;  %v2183_v9 = vpop.f32.mrf.mxu0 }
 0x281   : > { %6026 = vst [vmem:[#allocation11_spill] sm:$0xff] %v5505_v17  ;;  %v5507_v51 = vadd.f32 %v2439_v19, %v2311_v50  ;;  %v2312_v30 = vpop.f32.mrf.mxu1  ;;  %v3521_v19 = vor.u32 %v4251_v3, %v3518_v7  ;;  %v3544_v3 = vld [vmem:[%s5054_s7 + $0x1d0] sm:$0xf]  ;;  %v4261_v7 = vld [vmem:[%s5054_s7 + $0x1e8] sm:$0xf0] }
 0x282   : > { %v2313_v39 = vadd.f32 %v2312_v30, %v2183_v9 }
 0x286   : > { %v2471_v14 = vpop.f32.mrf.mxu3 }
 0x287   : > { %v5519_v59 = vadd.f32 %v2471_v14, %v2343_v57  ;;  %v4257_v57 = vld [vmem:[%s5054_s7 + $0x1cc] sm:$0xf]  ;;  %v3552_v14 = vld [vmem:[%s5054_s7 + $0x1d8] sm:$0xf] }
 0x288   : > { %v2441_v25 = vpop.f32.mrf.mxu2  ;;  %v2186_v52 = vpop.f32.mrf.mxu0 }
 0x289   : > { %6027 = vst [vmem:[#allocation12_spill] sm:$0xff] %v5519_v59  ;;  %v5521_v50 = vadd.f32 %v2441_v25, %v2313_v39  ;;  %v2315_v9 = vpop.f32.mrf.mxu1  ;;  %v2348_v25 = vadd.f32 %v5414_v49, %v5301_v55 }
 0x28a   : > { %v2316_v30 = vadd.f32 %v2315_v9, %v2186_v52  ;;  %v3545_v9 = vor.u32 %v4261_v7, %v3544_v3  ;;  %v4264_v7 = vld [vmem:[%s5054_s7 + $0x204] sm:$0xf] }
 0x28b   : > { %2522 = vmatmul.bf16.gmra.mxu3 %v3513_v21  ;;  %2651 = vmatmul.bf16.gmra.mxu0 %v3517_v43  ;;  %v4262_v21 = vld [vmem:[%s5054_s7 + $0x1f0] sm:$0xf0] }
 0x28c   : > { %2780 = vmatmul.bf16.gmra.mxu1 %v3521_v19  ;;  %v3541_v19 = vor.u32 %v4257_v57, %v3538_v60 }
 0x28d   : > { %4181 = vmatmul.msk.bf16.gmra.mxu2 %vm2019_vm0, %v3525_v47 }
 0x28e   : > { %v2474_v44 = vpop.f32.mrf.mxu3 }
 0x28f   : > { %v5526_v34 = vadd.f32 %v2474_v44, %v2346_v22  ;;  %v3553_v44 = vor.u32 %v4262_v21, %v3552_v14  ;;  %v3566_v14 = vld [vmem:[%s5054_s7 + $0x21c] sm:$0xf0]  ;;  %v4268_v21 = vld [vmem:[%s5054_s7 + $0x220] sm:$0xf0] }
 0x290   : > { %v2444_v39 = vpop.f32.mrf.mxu2  ;;  %v2188_v23 = vpop.f32.mrf.mxu0 }
 0x291   : > { %6028 = vst [vmem:[#allocation13_spill] sm:$0xff] %v5526_v34  ;;  %v5528_v0 = vadd.f32 %v2444_v39, %v2316_v30  ;;  %v2317_v11 = vpop.f32.mrf.mxu1  ;;  %v3549_v39 = vor.u32 %v4258_v38, %v3546_v10  ;;  %v3580_v38 = vld [vmem:[%s5054_s7 + $0x210] sm:$0xf] }
 0x292   : > { %v2318_v35 = vadd.f32 %v2317_v11, %v2188_v23 }
 0x296   : > { %v2476_v43 = vpop.f32.mrf.mxu3 }
 0x297   : > { %v5540_v47 = vadd.f32 %v2476_v43, %v2348_v25  ;;  %v3572_v25 = vld [vmem:[%s5054_s7 + $0x208] sm:$0xf]  ;;  %v4269_v43 = vld [vmem:[%s5054_s7 + $0x228] sm:$0xf0] }
 0x298   : > { %v2446_v52 = vpop.f32.mrf.mxu2  ;;  %v2617_v22 = vpop.f32.mrf.mxu0 }
 0x299   : > { %6029 = vst [vmem:[#allocation14_spill] sm:$0xff] %v5540_v47  ;;  %v5542_v30 = vadd.f32 %v2446_v52, %v2318_v35  ;;  %v2746_v23 = vpop.f32.mrf.mxu1  ;;  %v4265_v52 = vld [vmem:[%s5054_s7 + $0x20c] sm:$0xf] }
 0x29b   : > { %2527 = vmatmul.bf16.gmra.mxu3 %v3541_v19  ;;  %2656 = vmatmul.bf16.gmra.mxu0 %v3545_v9  ;;  %v3574_v19 = vld [vmem:[%s5054_s7 + $0x224] sm:$0xf0] }
 0x29c   : > { %2785 = vmatmul.bf16.gmra.mxu1 %v3549_v39 }
 0x29d   : > { %4182 = vmatmul.msk.bf16.gmra.mxu2 %vm2019_vm0, %v3553_v44 }
 0x29e   : > { %v2488_v55 = vpop.f32.mrf.mxu3 }
 0x29f   : > { %v2489_v49 = vadd.f32 %v2488_v55, %v5184_v24  ;;  %v3569_v24 = vor.u32 %v4264_v7, %v3566_v14  ;;  %v3573_v55 = vor.u32 %v4268_v21, %v3572_v25  ;;  %v4271_v21 = vld [vmem:[%s5054_s7 + $0x23c] sm:$0xf] }
 0x2a0   : > { %v2875_v11 = vpop.f32.mrf.mxu2  ;;  %v2619_v35 = vpop.f32.mrf.mxu0 }
 0x2a1   : > { %v2618_v57 = vadd.f32 %v2617_v22, %v2489_v49  ;;  %v2748_v60 = vpop.f32.mrf.mxu1  ;;  %v3581_v22 = vor.u32 %v4269_v43, %v3580_v38  ;;  %v3577_v49 = vor.u32 %v4265_v52, %v3574_v19  ;;  %v3594_v38 = vld [vmem:[%s5054_s7 + $0x254] sm:$0xf0]  ;;  %v3600_v43 = vld [vmem:[%s5054_s7 + $0x240] sm:$0xf]  ;;  %v4275_v52 = vld [vmem:[%s5054_s7 + $0x258] sm:$0xf0] }
 0x2a2   : > { %v3608_v19 = vld [vmem:[%s5054_s7 + $0x248] sm:$0xf] }
 0x2a3   : > { %v2747_v3 = vadd.f32 %v2746_v23, %v2618_v57 }
 0x2a5   : > { %v5551_v10 = vadd.f32 %v2875_v11, %v2747_v3 }
 0x2a6   : > { %v2490_v9 = vpop.f32.mrf.mxu3 }
 0x2a7   : > { %v2491_v44 = vadd.f32 %v2490_v9, %v5196_v37 }
 0x2a8   : > { %v2877_v39 = vpop.f32.mrf.mxu2  ;;  %v2622_v47 = vpop.f32.mrf.mxu0 }
 0x2a9   : > { %v2620_v23 = vadd.f32 %v2619_v35, %v2491_v44  ;;  %v2751_v57 = vpop.f32.mrf.mxu1  ;;  %v4276_v44 = vld [vmem:[%s5054_s7 + $0x260] sm:$0xf0] }
 0x2ab   : > { %v2749_v34 = vadd.f32 %v2748_v60, %v2620_v23  ;;  %2532 = vmatmul.bf16.gmra.mxu3 %v3569_v24  ;;  %2661 = vmatmul.bf16.gmra.mxu0 %v3573_v55  ;;  %v4272_v24 = vld [vmem:[%s5054_s7 + $0x244] sm:$0xf] }
 0x2ac   : > { %2790 = vmatmul.bf16.gmra.mxu1 %v3577_v49  ;;  %v3601_v49 = vor.u32 %v4275_v52, %v3600_v43  ;;  %v4278_v52 = vld [vmem:[%s5054_s7 + $0x274] sm:$0xf] }
 0x2ad   : > { %4183 = vmatmul.msk.bf16.gmra.mxu2 %vm2019_vm0, %v3581_v22  ;;  %v5558_v37 = vadd.f32 %v2877_v39, %v2749_v34  ;;  %v3602_v34 = vld [vmem:[%s5054_s7 + $0x25c] sm:$0xf0] }
 0x2ae   : > { %v2493_v11 = vpop.f32.mrf.mxu3 }
 0x2af   : > { %v2494_v3 = vadd.f32 %v2493_v11, %v5200_v45  ;;  %v3597_v45 = vor.u32 %v4271_v21, %v3594_v38  ;;  %v3605_v11 = vor.u32 %v4272_v24, %v3602_v34  ;;  %v4282_v24 = vld [vmem:[%s5054_s7 + $0x290] sm:$0xf0]  ;;  %v3636_v34 = vld [vmem:[%s5054_s7 + $0x280] sm:$0xf] }
 0x2b0   : > { %v2880_v35 = vpop.f32.mrf.mxu2  ;;  %v2624_v7 = vpop.f32.mrf.mxu0 }
 0x2b1   : > { %v2623_v14 = vadd.f32 %v2622_v47, %v2494_v3  ;;  %v2753_v25 = vpop.f32.mrf.mxu1  ;;  %v3609_v47 = vor.u32 %v4276_v44, %v3608_v19  ;;  %v3622_v19 = vld [vmem:[%s5054_s7 + $0x28c] sm:$0xf0]  ;;  %v3628_v44 = vld [vmem:[%s5054_s7 + $0x278] sm:$0xf] }
 0x2b3   : > { %v2752_v60 = vadd.f32 %v2751_v57, %v2623_v14 }
 0x2b5   : > { %v5566_v9 = vadd.f32 %v2880_v35, %v2752_v60 }
 0x2b6   : > { %v2495_v39 = vpop.f32.mrf.mxu3 }
 0x2b7   : > { %v2496_v55 = vadd.f32 %v2495_v39, %v5212_v61 }
 0x2b8   : > { %v2882_v22 = vpop.f32.mrf.mxu2  ;;  %v2627_v23 = vpop.f32.mrf.mxu0 }
 0x2b9   : > { %v2625_v57 = vadd.f32 %v2624_v7, %v2496_v55  ;;  %v2756_v3 = vpop.f32.mrf.mxu1  ;;  %v4283_v55 = vld [vmem:[%s5054_s7 + $0x298] sm:$0xf0] }
 0x2bb   : > { %v2754_v14 = vadd.f32 %v2753_v25, %v2625_v57  ;;  %2537 = vmatmul.bf16.gmra.mxu3 %v3597_v45  ;;  %2666 = vmatmul.bf16.gmra.mxu0 %v3601_v49  ;;  %v4279_v45 = vld [vmem:[%s5054_s7 + $0x27c] sm:$0xf]  ;;  %v3629_v57 = vor.u32 %v4282_v24, %v3628_v44  ;;  %v4285_v24 = vld [vmem:[%s5054_s7 + $0x2ac] sm:$0xf] }
 0x2bc   : > { %2795 = vmatmul.bf16.gmra.mxu1 %v3605_v11 }
 0x2bd   : > { %4184 = vmatmul.msk.bf16.gmra.mxu2 %vm2019_vm0, %v3609_v47  ;;  %v5573_v61 = vadd.f32 %v2882_v22, %v2754_v14  ;;  %v3630_v22 = vld [vmem:[%s5054_s7 + $0x294] sm:$0xf0] }
 0x2be   : > { %v2498_v35 = vpop.f32.mrf.mxu3 }
 0x2bf   : > { %v2499_v60 = vadd.f32 %v2498_v35, %v5225_v12  ;;  %v3625_v12 = vor.u32 %v4278_v52, %v3622_v19  ;;  %v3633_v35 = vor.u32 %v4279_v45, %v3630_v22  ;;  %v4289_v45 = vld [vmem:[%s5054_s7 + $0x2c8] sm:$0xf0]  ;;  %v3664_v22 = vld [vmem:[%s5054_s7 + $0x2b8] sm:$0xf] }
 0x2c0   : > { %v2885_v7 = vpop.f32.mrf.mxu2  ;;  %v2629_v21 = vpop.f32.mrf.mxu0 }
 0x2c1   : > { %v2628_v38 = vadd.f32 %v2627_v23, %v2499_v60  ;;  %v2758_v43 = vpop.f32.mrf.mxu1  ;;  %v3637_v23 = vor.u32 %v4283_v55, %v3636_v34  ;;  %v3650_v34 = vld [vmem:[%s5054_s7 + $0x2c4] sm:$0xf0]  ;;  %v3656_v55 = vld [vmem:[%s5054_s7 + $0x2b0] sm:$0xf] }
 0x2c3   : > { %v2757_v25 = vadd.f32 %v2756_v3, %v2628_v38 }
 0x2c5   : > { %v5581_v39 = vadd.f32 %v2885_v7, %v2757_v25 }
 0x2c6   : > { %v2500_v49 = vpop.f32.mrf.mxu3 }
 0x2c7   : > { %v2501_v47 = vadd.f32 %v2500_v49, %v5237_v27 }
 0x2c8   : > { %v2887_v11 = vpop.f32.mrf.mxu2  ;;  %v2632_v14 = vpop.f32.mrf.mxu0 }
 0x2c9   : > { %v2630_v3 = vadd.f32 %v2629_v21, %v2501_v47  ;;  %v2761_v60 = vpop.f32.mrf.mxu1  ;;  %v4290_v47 = vld [vmem:[%s5054_s7 + $0x2d0] sm:$0xf0] }
 0x2cb   : > { %v2759_v38 = vadd.f32 %v2758_v43, %v2630_v3  ;;  %2542 = vmatmul.bf16.gmra.mxu3 %v3625_v12  ;;  %2671 = vmatmul.bf16.gmra.mxu0 %v3629_v57  ;;  %v4286_v12 = vld [vmem:[%s5054_s7 + $0x2b4] sm:$0xf]  ;;  %v3657_v3 = vor.u32 %v4289_v45, %v3656_v55  ;;  %v4292_v45 = vld [vmem:[%s5054_s7 + $0x2e4] sm:$0xf] }
 0x2cc   : > { %2800 = vmatmul.bf16.gmra.mxu1 %v3633_v35 }
 0x2cd   : > { %4185 = vmatmul.msk.bf16.gmra.mxu2 %vm2019_vm0, %v3637_v23  ;;  %v5588_v27 = vadd.f32 %v2887_v11, %v2759_v38  ;;  %v3658_v11 = vld [vmem:[%s5054_s7 + $0x2cc] sm:$0xf0] }
 0x2ce   : > { %v2503_v7 = vpop.f32.mrf.mxu3 }
 0x2cf   : > { %v2504_v25 = vadd.f32 %v2503_v7, %v5244_v36  ;;  %v3653_v36 = vor.u32 %v4285_v24, %v3650_v34  ;;  %v3661_v7 = vor.u32 %v4286_v12, %v3658_v11  ;;  %v4296_v12 = vld [vmem:[%s5054_s7 + $0x300] sm:$0xf0]  ;;  %v3692_v11 = vld [vmem:[%s5054_s7 + $0x2f0] sm:$0xf] }
 0x2d0   : > { %v2890_v21 = vpop.f32.mrf.mxu2  ;;  %v2634_v52 = vpop.f32.mrf.mxu0 }
 0x2d1   : > { %v2633_v19 = vadd.f32 %v2632_v14, %v2504_v25  ;;  %v2763_v44 = vpop.f32.mrf.mxu1  ;;  %v3665_v14 = vor.u32 %v4290_v47, %v3664_v22  ;;  %v3678_v22 = vld [vmem:[%s5054_s7 + $0x2fc] sm:$0xf0]  ;;  %v3684_v47 = vld [vmem:[%s5054_s7 + $0x2e8] sm:$0xf] }
 0x2d3   : > { %v2762_v43 = vadd.f32 %v2761_v60, %v2633_v19 }
 0x2d5   : > { %v5596_v49 = vadd.f32 %v2890_v21, %v2762_v43 }
 0x2d6   : > { %v2505_v57 = vpop.f32.mrf.mxu3 }
 0x2d7   : > { %v2506_v23 = vadd.f32 %v2505_v57, %v5259_v56 }
 0x2d8   : > { %v2892_v35 = vpop.f32.mrf.mxu2  ;;  %v2637_v38 = vpop.f32.mrf.mxu0 }
 0x2d9   : > { %v2635_v60 = vadd.f32 %v2634_v52, %v2506_v23  ;;  %v2766_v25 = vpop.f32.mrf.mxu1  ;;  %v4297_v23 = vld [vmem:[%s5054_s7 + $0x308] sm:$0xf0] }
 0x2db   : > { %v2764_v19 = vadd.f32 %v2763_v44, %v2635_v60  ;;  %2547 = vmatmul.bf16.gmra.mxu3 %v3653_v36  ;;  %2676 = vmatmul.bf16.gmra.mxu0 %v3657_v3  ;;  %v4293_v36 = vld [vmem:[%s5054_s7 + $0x2ec] sm:$0xf]  ;;  %v3685_v60 = vor.u32 %v4296_v12, %v3684_v47  ;;  %v4299_v12 = vld [vmem:[%s5054_s7 + $0x31c] sm:$0xf] }
 0x2dc   : > { %2805 = vmatmul.bf16.gmra.mxu1 %v3661_v7 }
 0x2dd   : > { %4186 = vmatmul.msk.bf16.gmra.mxu2 %vm2019_vm0, %v3665_v14  ;;  %v5603_v56 = vadd.f32 %v2892_v35, %v2764_v19  ;;  %v3686_v35 = vld [vmem:[%s5054_s7 + $0x304] sm:$0xf0] }
 0x2de   : > { %v2508_v21 = vpop.f32.mrf.mxu3 }
 0x2df   : > { %v2509_v43 = vadd.f32 %v2508_v21, %v5269_v6  ;;  %v3681_v6 = vor.u32 %v4292_v45, %v3678_v22  ;;  %v3689_v21 = vor.u32 %v4293_v36, %v3686_v35  ;;  %v4303_v36 = vld [vmem:[%s5054_s7 + $0x338] sm:$0xf0]  ;;  %v3720_v35 = vld [vmem:[%s5054_s7 + $0x328] sm:$0xf] }
 0x2e0   : > { %v2895_v52 = vpop.f32.mrf.mxu2  ;;  %v2639_v24 = vpop.f32.mrf.mxu0 }
 0x2e1   : > { %v2638_v34 = vadd.f32 %v2637_v38, %v2509_v43  ;;  %v2768_v55 = vpop.f32.mrf.mxu1  ;;  %v3693_v38 = vor.u32 %v4297_v23, %v3692_v11  ;;  %v3706_v11 = vld [vmem:[%s5054_s7 + $0x334] sm:$0xf0]  ;;  %v3712_v23 = vld [vmem:[%s5054_s7 + $0x320] sm:$0xf] }
 0x2e3   : > { %v2767_v44 = vadd.f32 %v2766_v25, %v2638_v34 }
 0x2e5   : > { %v5611_v57 = vadd.f32 %v2895_v52, %v2767_v44 }
 0x2e6   : > { %v2510_v3 = vpop.f32.mrf.mxu3 }
 0x2e7   : > { %v2511_v14 = vadd.f32 %v2510_v3, %v5284_v28 }
 0x2e8   : > { %v2897_v7 = vpop.f32.mrf.mxu2  ;;  %v2642_v19 = vpop.f32.mrf.mxu0 }
 0x2e9   : > { %v2640_v25 = vadd.f32 %v2639_v24, %v2511_v14  ;;  %v2771_v43 = vpop.f32.mrf.mxu1  ;;  %v4304_v14 = vld [vmem:[%s5054_s7 + $0x340] sm:$0xf0] }
 0x2eb   : > { %v2769_v34 = vadd.f32 %v2768_v55, %v2640_v25  ;;  %2552 = vmatmul.bf16.gmra.mxu3 %v3681_v6  ;;  %2681 = vmatmul.bf16.gmra.mxu0 %v3685_v60  ;;  %v4300_v6 = vld [vmem:[%s5054_s7 + $0x324] sm:$0xf]  ;;  %v3713_v25 = vor.u32 %v4303_v36, %v3712_v23  ;;  %v4306_v36 = vld [vmem:[%s5054_s7 + $0x354] sm:$0xf] }
 0x2ec   : > { %2810 = vmatmul.bf16.gmra.mxu1 %v3689_v21 }
 0x2ed   : > { %4187 = vmatmul.msk.bf16.gmra.mxu2 %vm2019_vm0, %v3693_v38  ;;  %v5618_v28 = vadd.f32 %v2897_v7, %v2769_v34  ;;  %v3714_v7 = vld [vmem:[%s5054_s7 + $0x33c] sm:$0xf0] }
 0x2ee   : > { %v2513_v52 = vpop.f32.mrf.mxu3 }
 0x2ef   : > { %v2514_v44 = vadd.f32 %v2513_v52, %v5291_v40  ;;  %v3709_v40 = vor.u32 %v4299_v12, %v3706_v11  ;;  %v3717_v52 = vor.u32 %v4300_v6, %v3714_v7  ;;  %v4310_v6 = vld [vmem:[%s5054_s7 + $0x370] sm:$0xf0]  ;;  %v3748_v7 = vld [vmem:[%s5054_s7 + $0x360] sm:$0xf] }
 0x2f0   : > { %v2900_v24 = vpop.f32.mrf.mxu2  ;;  %v2644_v45 = vpop.f32.mrf.mxu0 }
 0x2f1   : > { %v2643_v22 = vadd.f32 %v2642_v19, %v2514_v44  ;;  %v2773_v47 = vpop.f32.mrf.mxu1  ;;  %v3721_v19 = vor.u32 %v4304_v14, %v3720_v35  ;;  %v3734_v35 = vld [vmem:[%s5054_s7 + $0x36c] sm:$0xf0]  ;;  %v3740_v14 = vld [vmem:[%s5054_s7 + $0x358] sm:$0xf] }
 0x2f3   : > { %v2772_v55 = vadd.f32 %v2771_v43, %v2643_v22 }
 0x2f5   : > { %v5626_v3 = vadd.f32 %v2900_v24, %v2772_v55 }
 0x2f6   : > { %v2515_v60 = vpop.f32.mrf.mxu3 }
 0x2f7   : > { %v2516_v38 = vadd.f32 %v2515_v60, %v5303_v62 }
 0x2f8   : > { %v2902_v21 = vpop.f32.mrf.mxu2  ;;  %v2647_v34 = vpop.f32.mrf.mxu0 }
 0x2f9   : > { %v2645_v43 = vadd.f32 %v2644_v45, %v2516_v38  ;;  %v2776_v44 = vpop.f32.mrf.mxu1  ;;  %v4311_v38 = vld [vmem:[%s5054_s7 + $0x378] sm:$0xf0] }
 0x2fb   : > { %v2774_v22 = vadd.f32 %v2773_v47, %v2645_v43  ;;  %2557 = vmatmul.bf16.gmra.mxu3 %v3709_v40  ;;  %2686 = vmatmul.bf16.gmra.mxu0 %v3713_v25  ;;  %v3742_v40 = vld [vmem:[%s5054_s7 + $0x374] sm:$0xf0]  ;;  %v5646_v25 = vsel %vm2995_vm1, %v5551_v10, -inf  ;;  %v3737_v43 = vor.u32 %v4306_v36, %v3734_v35  ;;  %v5657_v36 = vsel %vm2995_vm1, %v5558_v37, -inf  ;;  %v4317_v37 = vld [vmem:[%s5054_s7 + $0x3a8] sm:$0xf0] }
 0x2fc   : > { %2815 = vmatmul.bf16.gmra.mxu1 %v3717_v52 }
 0x2fd   : > { %4188 = vmatmul.msk.bf16.gmra.mxu2 %vm2019_vm0, %v3721_v19  ;;  %v5633_v62 = vadd.f32 %v2902_v21, %v2774_v22  ;;  %v4307_v21 = vld [vmem:[%s5054_s7 + $0x35c] sm:$0xf] }
 0x2fe   : > { %v2518_v24 = vpop.f32.mrf.mxu3 }
 0x2ff   : > { %v2519_v45 = vadd.f32 %v2518_v24, %v5310_v15 }
 0x300   : > { %v2905_v55 = vpop.f32.mrf.mxu2  ;;  %v2649_v12 = vpop.f32.mrf.mxu0 }
 0x301   : > { %v2648_v11 = vadd.f32 %v2647_v34, %v2519_v45  ;;  %v2778_v47 = vpop.f32.mrf.mxu1  ;;  %v3749_v45 = vor.u32 %v4311_v38, %v3748_v7  ;;  %v4313_v38 = vld [vmem:[%s5054_s7 + $0x38c] sm:$0xf] }
 0x303   : > { %v2777_v23 = vadd.f32 %v2776_v44, %v2648_v11  ;;  %v3741_v44 = vor.u32 %v4310_v6, %v3740_v14 }
 0x305   : > { %v2906_v60 = vadd.f32 %v2905_v55, %v2777_v23  ;;  %v3745_v55 = vor.u32 %v4307_v21, %v3742_v40  ;;  %v3762_v21 = vld [vmem:[%s5054_s7 + $0x3a4] sm:$0xf0]  ;;  %v3768_v40 = vld [vmem:[%s5054_s7 + $0x390] sm:$0xf] }
 0x306   : > { %v2520_v15 = vpop.f32.mrf.mxu3 }
 0x307   : > { %v5649_v19 = vsel %vm2995_vm1, %v2906_v60, -inf  ;;  %v2521_v34 = vadd.f32 %v2520_v15, %v5331_v42  ;;  %v3776_v15 = vld [vmem:[%s5054_s7 + $0x398] sm:$0xf] }
 0x308   : > { %v2907_v52 = vpop.f32.mrf.mxu2  ;;  %v2652_v24 = vpop.f32.mrf.mxu0 }
 0x309   : > { %v2650_v11 = vadd.f32 %v2649_v12, %v2521_v34  ;;  %v2781_v23 = vpop.f32.mrf.mxu1 }
 0x30b   : > { %v2779_v59 = vadd.f32 %v2778_v47, %v2650_v11  ;;  %2562 = vmatmul.bf16.gmra.mxu3 %v3737_v43  ;;  %2691 = vmatmul.bf16.gmra.mxu0 %v3741_v44  ;;  %v4314_v43 = vld [vmem:[%s5054_s7 + $0x394] sm:$0xf]  ;;  %v3770_v44 = vld [vmem:[%s5054_s7 + $0x3ac] sm:$0xf0] }
 0x30c   : > { %2820 = vmatmul.bf16.gmra.mxu1 %v3745_v55 }
 0x30d   : > { %4189 = vmatmul.msk.bf16.gmra.mxu2 %vm2019_vm0, %v3749_v45  ;;  %v2908_v42 = vadd.f32 %v2907_v52, %v2779_v59  ;;  %v4318_v52 = vld [vmem:[%s5054_s7 + $0x3b0] sm:$0xf0] }
 0x30e   : > { %v2523_v10 = vpop.f32.mrf.mxu3 }
 0x30f   : > { %v5660_v12 = vsel %vm2995_vm1, %v2908_v42, -inf  ;;  %v2524_v47 = vadd.f32 %v2523_v10, %v5335_v53  ;;  %v5675_v53 = vsel %vm2995_vm1, %v5566_v9, -inf  ;;  %v3769_v42 = vor.u32 %v4317_v37, %v3768_v40 }
 0x310   : > { %v2910_v35 = vpop.f32.mrf.mxu2  ;;  %v2654_v6 = vpop.f32.mrf.mxu0 }
 0x311   : > { %v2653_v7 = vadd.f32 %v2652_v24, %v2524_v47  ;;  %v2783_v59 = vpop.f32.mrf.mxu1 }
 0x313   : > { %v2782_v60 = vadd.f32 %v2781_v23, %v2653_v7  ;;  %v3765_v23 = vor.u32 %v4313_v38, %v3762_v21  ;;  %v3773_v7 = vor.u32 %v4314_v43, %v3770_v44  ;;  %v5686_v38 = vsel %vm2995_vm1, %v5573_v61, -inf  ;;  %v3790_v43 = vld [vmem:[%s5054_s7 + $0x3dc] sm:$0xf0]  ;;  %v3796_v44 = vld [vmem:[%s5054_s7 + $0x3c8] sm:$0xf] }
 0x314   : > { %v4324_v61 = vld [vmem:[%s5054_s7 + $0x3e0] sm:$0xf0] }
 0x315   : > { %v2911_v34 = vadd.f32 %v2910_v35, %v2782_v60  ;;  %v3777_v35 = vor.u32 %v4318_v52, %v3776_v15  ;;  %v4320_v52 = vld [vmem:[%s5054_s7 + $0x3c4] sm:$0xf] }
 0x316   : > { %v2525_v45 = vpop.f32.mrf.mxu3 }
 0x317   : > { %v5678_v55 = vsel %vm2995_vm1, %v2911_v34, -inf  ;;  %v2526_v24 = vadd.f32 %v2525_v45, %v5350_v18  ;;  %v3804_v45 = vld [vmem:[%s5054_s7 + $0x3d0] sm:$0xf] }
 0x318   : > { %v2912_v11 = vpop.f32.mrf.mxu2  ;;  %v2657_v47 = vpop.f32.mrf.mxu0 }
 0x319   : > { %v2655_v60 = vadd.f32 %v2654_v6, %v2526_v24  ;;  %v2786_v14 = vpop.f32.mrf.mxu1 }
 0x31b   : > { %v2784_v22 = vadd.f32 %v2783_v59, %v2655_v60  ;;  %2567 = vmatmul.bf16.gmra.mxu3 %v3765_v23  ;;  %2696 = vmatmul.bf16.gmra.mxu0 %v3769_v42  ;;  %v4321_v23 = vld [vmem:[%s5054_s7 + $0x3cc] sm:$0xf]  ;;  %v3798_v42 = vld [vmem:[%s5054_s7 + $0x3e4] sm:$0xf0]  ;;  %v3793_v60 = vor.u32 %v4320_v52, %v3790_v43  ;;  %v5715_v52 = vsel %vm2995_vm1, %v5588_v27, -inf }
 0x31c   : > { %2825 = vmatmul.bf16.gmra.mxu1 %v3773_v7  ;;  %v4331_v27 = vld [vmem:[%s5054_s7 + $0x418] sm:$0xf0] }
 0x31d   : > { %4190 = vmatmul.msk.bf16.gmra.mxu2 %vm2019_vm0, %v3777_v35  ;;  %v2913_v18 = vadd.f32 %v2912_v11, %v2784_v22  ;;  %v4325_v11 = vld [vmem:[%s5054_s7 + $0x3e8] sm:$0xf0] }
 0x31e   : > { %v2528_v9 = vpop.f32.mrf.mxu3 }
 0x31f   : > { %v5689_v6 = vsel %vm2995_vm1, %v2913_v18, -inf  ;;  %v2529_v59 = vadd.f32 %v2528_v9, %v5354_v32  ;;  %v5704_v32 = vsel %vm2995_vm1, %v5581_v39, -inf  ;;  %v3797_v18 = vor.u32 %v4324_v61, %v3796_v44 }
 0x320   : > { %v2915_v21 = vpop.f32.mrf.mxu2  ;;  %v2659_v37 = vpop.f32.mrf.mxu0 }
 0x321   : > { %v2658_v15 = vadd.f32 %v2657_v47, %v2529_v59  ;;  %v2788_v22 = vpop.f32.mrf.mxu1 }
 0x323   : > { %v2787_v34 = vadd.f32 %v2786_v14, %v2658_v15  ;;  %v3801_v15 = vor.u32 %v4321_v23, %v3798_v42  ;;  %v3818_v23 = vld [vmem:[%s5054_s7 + $0x414] sm:$0xf0]  ;;  %v3824_v42 = vld [vmem:[%s5054_s7 + $0x400] sm:$0xf] }
 0x325   : > { %v2916_v24 = vadd.f32 %v2915_v21, %v2787_v34  ;;  %v3805_v21 = vor.u32 %v4325_v11, %v3804_v45  ;;  %v4327_v11 = vld [vmem:[%s5054_s7 + $0x3fc] sm:$0xf] }
 0x326   : > { %v2530_v35 = vpop.f32.mrf.mxu3 }
 0x327   : > { %v5707_v7 = vsel %vm2995_vm1, %v2916_v24, -inf  ;;  %v2531_v47 = vadd.f32 %v2530_v35, %v5366_v1  ;;  %v3832_v35 = vld [vmem:[%s5054_s7 + $0x408] sm:$0xf] }
 0x328   : > { %v2917_v14 = vpop.f32.mrf.mxu2  ;;  %v2662_v59 = vpop.f32.mrf.mxu0 }
 0x329   : > { %v2660_v34 = vadd.f32 %v2659_v37, %v2531_v47  ;;  %v2791_v40 = vpop.f32.mrf.mxu1 }
 0x32b   : > { %v2789_v10 = vadd.f32 %v2788_v22, %v2660_v34  ;;  %2572 = vmatmul.bf16.gmra.mxu3 %v3793_v60  ;;  %2701 = vmatmul.bf16.gmra.mxu0 %v3797_v18  ;;  %v4328_v60 = vld [vmem:[%s5054_s7 + $0x404] sm:$0xf]  ;;  %v3826_v18 = vld [vmem:[%s5054_s7 + $0x41c] sm:$0xf0]  ;;  %v3821_v34 = vor.u32 %v4327_v11, %v3818_v23  ;;  %v5744_v11 = vsel %vm2995_vm1, %v5603_v56, -inf }
 0x32c   : > { %2830 = vmatmul.bf16.gmra.mxu1 %v3801_v15  ;;  %v4338_v56 = vld [vmem:[%s5054_s7 + $0x450] sm:$0xf0] }
 0x32d   : > { %4191 = vmatmul.msk.bf16.gmra.mxu2 %vm2019_vm0, %v3805_v21  ;;  %v2918_v1 = vadd.f32 %v2917_v14, %v2789_v10  ;;  %v4332_v14 = vld [vmem:[%s5054_s7 + $0x420] sm:$0xf0] }
 0x32e   : > { %v2533_v39 = vpop.f32.mrf.mxu3 }
 0x32f   : > { %v5718_v37 = vsel %vm2995_vm1, %v2918_v1, -inf  ;;  %v2534_v22 = vadd.f32 %v2533_v39, %v5370_v16  ;;  %v5733_v16 = vsel %vm2995_vm1, %v5596_v49, -inf  ;;  %v3825_v1 = vor.u32 %v4331_v27, %v3824_v42 }
 0x330   : > { %v2920_v43 = vpop.f32.mrf.mxu2  ;;  %v2664_v61 = vpop.f32.mrf.mxu0 }
 0x331   : > { %v2663_v45 = vadd.f32 %v2662_v59, %v2534_v22  ;;  %v2793_v10 = vpop.f32.mrf.mxu1 }
 0x333   : > { %v2792_v24 = vadd.f32 %v2791_v40, %v2663_v45  ;;  %v3829_v45 = vor.u32 %v4328_v60, %v3826_v18  ;;  %v3846_v60 = vld [vmem:[%s5054_s7 + $0x44c] sm:$0xf0]  ;;  %v3852_v18 = vld [vmem:[%s5054_s7 + $0x438] sm:$0xf] }
 0x335   : > { %v2921_v47 = vadd.f32 %v2920_v43, %v2792_v24  ;;  %v3833_v43 = vor.u32 %v4332_v14, %v3832_v35  ;;  %v4334_v14 = vld [vmem:[%s5054_s7 + $0x434] sm:$0xf] }
 0x336   : > { %v2535_v21 = vpop.f32.mrf.mxu3 }
 0x337   : > { %v5736_v15 = vsel %vm2995_vm1, %v2921_v47, -inf  ;;  %v2536_v59 = vadd.f32 %v2535_v21, %v5382_v54  ;;  %v3860_v21 = vld [vmem:[%s5054_s7 + $0x440] sm:$0xf] }
 0x338   : > { %v2922_v40 = vpop.f32.mrf.mxu2  ;;  %v2667_v22 = vpop.f32.mrf.mxu0 }
 0x339   : > { %v2665_v24 = vadd.f32 %v2664_v61, %v2536_v59  ;;  %v2796_v44 = vpop.f32.mrf.mxu1 }
 0x33b   : > { %v2794_v9 = vadd.f32 %v2793_v10, %v2665_v24  ;;  %2577 = vmatmul.bf16.gmra.mxu3 %v3821_v34  ;;  %2706 = vmatmul.bf16.gmra.mxu0 %v3825_v1  ;;  %v4335_v34 = vld [vmem:[%s5054_s7 + $0x43c] sm:$0xf]  ;;  %v3854_v1 = vld [vmem:[%s5054_s7 + $0x454] sm:$0xf0] }
 0x33c   : > { %2835 = vmatmul.bf16.gmra.mxu1 %v3829_v45 }
 0x33d   : > { %4192 = vmatmul.msk.bf16.gmra.mxu2 %vm2019_vm0, %v3833_v43  ;;  %v2923_v54 = vadd.f32 %v2922_v40, %v2794_v9  ;;  %v4339_v40 = vld [vmem:[%s5054_s7 + $0x458] sm:$0xf0] }
 0x33e   : > { %v2538_v49 = vpop.f32.mrf.mxu3 }
 0x33f   : > { %v5747_v61 = vsel %vm2995_vm1, %v2923_v54, -inf  ;;  %v2539_v10 = vadd.f32 %v2538_v49, %v5387_v13  ;;  %v5762_v13 = vsel %vm2995_vm1, %v5611_v57, -inf  ;;  %v3849_v54 = vor.u32 %v4334_v14, %v3846_v60 }
 0x340   : > { %v2925_v23 = vpop.f32.mrf.mxu2  ;;  %v2669_v27 = vpop.f32.mrf.mxu0  ;;  %v3853_v49 = vor.u32 %v4338_v56, %v3852_v18  ;;  %v5773_v60 = vsel %vm2995_vm1, %v5618_v28, -inf  ;;  %v4345_v28 = vld [vmem:[%s5054_s7 + $0x488] sm:$0xf0] }
 0x341   : > { %v2668_v35 = vadd.f32 %v2667_v22, %v2539_v10  ;;  %v2798_v9 = vpop.f32.mrf.mxu1  ;;  %v6030_v22 = vld [vmem:[#allocation3_spill] sm:$0xff] }
 0x343   : > { %v2797_v47 = vadd.f32 %v2796_v44, %v2668_v35  ;;  %v3861_v35 = vor.u32 %v4339_v40, %v3860_v21 }
 0x345   : > { %v2926_v59 = vadd.f32 %v2925_v23, %v2797_v47  ;;  %v3857_v47 = vor.u32 %v4335_v34, %v3854_v1  ;;  %v4341_v34 = vld [vmem:[%s5054_s7 + $0x46c] sm:$0xf]  ;;  %v3874_v1 = vld [vmem:[%s5054_s7 + $0x484] sm:$0xf0] }
 0x346   : > { %v2540_v43 = vpop.f32.mrf.mxu3 }
 0x347   : > { %v5765_v45 = vsel %vm2995_vm1, %v2926_v59, -inf  ;;  %v2541_v24 = vadd.f32 %v2540_v43, %v6030_v22  ;;  %v3880_v43 = vld [vmem:[%s5054_s7 + $0x470] sm:$0xf]  ;;  %v3888_v22 = vld [vmem:[%s5054_s7 + $0x478] sm:$0xf] }
 0x348   : > { %v2927_v44 = vpop.f32.mrf.mxu2  ;;  %v2672_v23 = vpop.f32.mrf.mxu0 }
 0x349   : > { %v2670_v42 = vadd.f32 %v2669_v27, %v2541_v24  ;;  %v2801_v39 = vpop.f32.mrf.mxu1  ;;  %v6031_v27 = vld [vmem:[#allocation4_spill] sm:$0xff] }
 0x34b   : > { %v2799_v17 = vadd.f32 %v2798_v9, %v2670_v42  ;;  %2582 = vmatmul.bf16.gmra.mxu3 %v3849_v54  ;;  %2711 = vmatmul.bf16.gmra.mxu0 %v3853_v49  ;;  %v4342_v54 = vld [vmem:[%s5054_s7 + $0x474] sm:$0xf]  ;;  %v3882_v49 = vld [vmem:[%s5054_s7 + $0x48c] sm:$0xf0] }
 0x34c   : > { %2840 = vmatmul.bf16.gmra.mxu1 %v3857_v47  ;;  %v3885_v56 = vor.u32 %v4342_v54, %v3882_v49  ;;  %v3902_v54 = vld [vmem:[%s5054_s7 + $0x4bc] sm:$0xf0]  ;;  %v3908_v49 = vld [vmem:[%s5054_s7 + $0x4a8] sm:$0xf] }
 0x34d   : > { %4193 = vmatmul.msk.bf16.gmra.mxu2 %vm2019_vm0, %v3861_v35  ;;  %v2928_v57 = vadd.f32 %v2927_v44, %v2799_v17  ;;  %v4346_v44 = vld [vmem:[%s5054_s7 + $0x490] sm:$0xf0]  ;;  %v5791_v35 = vsel %vm2995_vm1, %v5626_v3, -inf }
 0x34e   : > { %v2543_v14 = vpop.f32.mrf.mxu3 }
 0x34f   : > { %v5776_v42 = vsel %vm2995_vm1, %v2928_v57, -inf  ;;  %v2544_v9 = vadd.f32 %v2543_v14, %v6031_v27  ;;  %v3877_v27 = vor.u32 %v4341_v34, %v3874_v1  ;;  %v5802_v1 = vsel %vm2995_vm1, %v5633_v62, -inf  ;;  %v4352_v62 = vld [vmem:[%s5054_s7 + $0x4c0] sm:$0xf0] }
 0x350   : > { %v2930_v18 = vpop.f32.mrf.mxu2  ;;  %v2674_v21 = vpop.f32.mrf.mxu0 }
 0x351   : > { %v2673_v59 = vadd.f32 %v2672_v23, %v2544_v9  ;;  %v2803_v17 = vpop.f32.mrf.mxu1  ;;  %v6032_v23 = vld [vmem:[#allocation5_spill] sm:$0xff]  ;;  %v3881_v9 = vor.u32 %v4345_v28, %v3880_v43  ;;  %v3909_v28 = vor.u32 %v4352_v62, %v3908_v49 }
 0x353   : > { %v2802_v40 = vadd.f32 %v2801_v39, %v2673_v59 }
 0x355   : > { %v2931_v24 = vadd.f32 %v2930_v18, %v2802_v40  ;;  %v3889_v40 = vor.u32 %v4346_v44, %v3888_v22  ;;  %v4348_v44 = vld [vmem:[%s5054_s7 + $0x4a4] sm:$0xf] }
 0x356   : > { %v2545_v47 = vpop.f32.mrf.mxu3 }
 0x357   : > { %v5794_v57 = vsel %vm2995_vm1, %v2931_v24, -inf  ;;  %v2546_v14 = vadd.f32 %v2545_v47, %v6032_v23  ;;  %v3916_v47 = vld [vmem:[%s5054_s7 + $0x4b0] sm:$0xf] }
 0x358   : > { %v2932_v39 = vpop.f32.mrf.mxu2  ;;  %v2677_v18 = vpop.f32.mrf.mxu0 }
 0x359   : > { %v2675_v10 = vadd.f32 %v2674_v21, %v2546_v14  ;;  %v2806_v8 = vpop.f32.mrf.mxu1  ;;  %v6033_v21 = vld [vmem:[#allocation7_spill] sm:$0xff]  ;;  %v4353_v14 = vld [vmem:[%s5054_s7 + $0x4c8] sm:$0xf0] }
 0x35b   : > { %v2804_v31 = vadd.f32 %v2803_v17, %v2675_v10  ;;  %2587 = vmatmul.bf16.gmra.mxu3 %v3877_v27  ;;  %2716 = vmatmul.bf16.gmra.mxu0 %v3881_v9  ;;  %v3910_v27 = vld [vmem:[%s5054_s7 + $0x4c4] sm:$0xf0] }
 0x35c   : > { %2845 = vmatmul.bf16.gmra.mxu1 %v3885_v56 }
 0x35d   : > { %4194 = vmatmul.msk.bf16.gmra.mxu2 %vm2019_vm0, %v3889_v40  ;;  %v2933_v3 = vadd.f32 %v2932_v39, %v2804_v31  ;;  %v4349_v39 = vld [vmem:[%s5054_s7 + $0x4ac] sm:$0xf] }
 0x35e   : > { %v2548_v34 = vpop.f32.mrf.mxu3  ;;  %v3913_v59 = vor.u32 %v4349_v39, %v3910_v27  ;;  %v3944_v39 = vld [vmem:[%s5054_s7 + $0x4e8] sm:$0xf] }
 0x35f   : > { %v5805_v10 = vsel %vm2995_vm1, %v2933_v3, -inf  ;;  %v2549_v17 = vadd.f32 %v2548_v34, %v6033_v21  ;;  %v3905_v21 = vor.u32 %v4348_v44, %v3902_v54 }
 0x360   : > { %v2935_v43 = vpop.f32.mrf.mxu2  ;;  %v2679_v56 = vpop.f32.mrf.mxu0 }
 0x361   : > { %v2678_v22 = vadd.f32 %v2677_v18, %v2549_v17  ;;  %v2808_v31 = vpop.f32.mrf.mxu1 }
 0x363   : > { %v2807_v24 = vadd.f32 %v2806_v8, %v2678_v22  ;;  %v6034_v8 = vmax.f32 %v5646_v25, %v5649_v19  ;;  %v3917_v22 = vor.u32 %v4353_v14, %v3916_v47  ;;  %v4359_v14 = vld [vmem:[%s5054_s7 + $0x4f8] sm:$0xf0] }
 0x365   : > { %v2936_v23 = vadd.f32 %v2935_v43, %v2807_v24 }
 0x366   : > { %v2550_v9 = vpop.f32.mrf.mxu3 }
 0x367   : > { %v2999_v40 = vsel %vm2995_vm1, %v2936_v23, -inf  ;;  %v2551_v3 = vadd.f32 %v2550_v9, %v5437_v29  ;;  %v3936_v23 = vld [vmem:[%s5054_s7 + $0x4e0] sm:$0xf]  ;;  %v4360_v9 = vld [vmem:[%s5054_s7 + $0x500] sm:$0xf0] }
 0x368   : > { %v2937_v34 = vpop.f32.mrf.mxu2  ;;  %v5823_v18 = vmax.f32 %v6034_v8, %v2999_v40  ;;  %v2682_v17 = vpop.f32.mrf.mxu0  ;;  %v4356_v40 = vld [vmem:[%s5054_s7 + $0x4e4] sm:$0xf]  ;;  %v3937_v8 = vor.u32 %v4359_v14, %v3936_v23  ;;  %v4362_v23 = vld [vmem:[%s5054_s7 + $0x514] sm:$0xf]  ;;  %v3958_v14 = vld [vmem:[%s5054_s7 + $0x52c] sm:$0xf0] }
 0x369   : > { %v2680_v43 = vadd.f32 %v2679_v56, %v2551_v3  ;;  %v2811_v24 = vpop.f32.mrf.mxu1  ;;  %v3938_v3 = vld [vmem:[%s5054_s7 + $0x4fc] sm:$0xf0] }
 0x36b   : > { %v2809_v33 = vadd.f32 %v2808_v31, %v2680_v43  ;;  %2592 = vmatmul.bf16.gmra.mxu3 %v3905_v21  ;;  %2721 = vmatmul.bf16.gmra.mxu0 %v3909_v28  ;;  %v6035_v31 = vmax.f32 %v5657_v36, %v5660_v12 }
 0x36c   : > { %2850 = vmatmul.bf16.gmra.mxu1 %v3913_v59  ;;  %v4355_v59 = vld [vmem:[%s5054_s7 + $0x4dc] sm:$0xf] }
 0x36d   : > { %4195 = vmatmul.msk.bf16.gmra.mxu2 %vm2019_vm0, %v3917_v22  ;;  %v2938_v29 = vadd.f32 %v2937_v34, %v2809_v33  ;;  %v3930_v33 = vld [vmem:[%s5054_s7 + $0x4f4] sm:$0xf0] }
 0x36e   : > { %v2553_v25 = vpop.f32.mrf.mxu3  ;;  %v3933_v21 = vor.u32 %v4355_v59, %v3930_v33 }
 0x36f   : > { %v3006_v19 = vsel %vm2995_vm1, %v2938_v29, -inf  ;;  %v2554_v56 = vadd.f32 %v2553_v25, %v5444_v48  ;;  %v3941_v29 = vor.u32 %v4356_v40, %v3938_v3  ;;  %v4367_v3 = vld [vmem:[%s5054_s7 + $0x538] sm:$0xf0] }
 0x370   : > { %v2940_v44 = vpop.f32.mrf.mxu2  ;;  %v5831_v54 = vmax.f32 %v6035_v31, %v3006_v19  ;;  %v2684_v28 = vpop.f32.mrf.mxu0 }
 0x371   : > { %v2683_v49 = vadd.f32 %v2682_v17, %v2554_v56  ;;  %v2813_v62 = vpop.f32.mrf.mxu1  ;;  %v6036_v17 = vmax.f32 %v5675_v53, %v5678_v55 }
 0x373   : > { %v2812_v47 = vadd.f32 %v2811_v24, %v2683_v49  ;;  %v3945_v24 = vor.u32 %v4360_v9, %v3944_v39  ;;  %v3964_v39 = vld [vmem:[%s5054_s7 + $0x518] sm:$0xf]  ;;  %v3972_v9 = vld [vmem:[%s5054_s7 + $0x520] sm:$0xf] }
 0x375   : > { %v2941_v27 = vadd.f32 %v2940_v44, %v2812_v47 }
 0x376   : > { %v2555_v48 = vpop.f32.mrf.mxu3 }
 0x377   : > { %v3013_v34 = vsel %vm2995_vm1, %v2941_v27, -inf  ;;  %v2556_v36 = vadd.f32 %v2555_v48, %v5458_v41  ;;  %v4366_v27 = vld [vmem:[%s5054_s7 + $0x530] sm:$0xf0]  ;;  %v4363_v48 = vld [vmem:[%s5054_s7 + $0x51c] sm:$0xf] }
 0x378   : > { %v2942_v12 = vpop.f32.mrf.mxu2  ;;  %v5846_v22 = vmax.f32 %v6036_v17, %v3013_v34  ;;  %v2687_v43 = vpop.f32.mrf.mxu0  ;;  %v3966_v34 = vld [vmem:[%s5054_s7 + $0x534] sm:$0xf0]  ;;  %s580_s7 = smul.u32 12, %s3199_s15 }
 0x379   : > { %v2685_v25 = vadd.f32 %v2684_v28, %v2556_v36  ;;  %v2816_v19 = vpop.f32.mrf.mxu1  ;;  %v6037_v28 = vmax.f32 %v5686_v38, %v5689_v6 }
 0x37a   : > { %p581_p8 = scmp.lt.s32.totalorder %s580_s7, 23 }
 0x37b   : > { %v2814_v56 = vadd.f32 %v2813_v62, %v2685_v25  ;;  %2597 = vmatmul.bf16.gmra.mxu3 %v3933_v21  ;;  %2726 = vmatmul.bf16.gmra.mxu0 %v3937_v8  ;;  %v3965_v21 = vor.u32 %v4366_v27, %v3964_v39  ;;  %v6038_v8 = vmax.f32 %v5704_v32, %v5707_v7 }
 0x37c   : > { %2855 = vmatmul.bf16.gmra.mxu1 %v3941_v29  ;;  %v3969_v29 = vor.u32 %v4363_v48, %v3966_v34  ;;  %v6039_v7 = vmax.f32 %v5715_v52, %v5718_v37  ;;  %s6058_s7 = smov (!%p581_p8, %s580_s7), 23 }
 0x37d   : > { %4196 = vmatmul.msk.bf16.gmra.mxu2 %vm2019_vm0, %v3945_v24  ;;  %v2943_v41 = vadd.f32 %v2942_v12, %v2814_v56  ;;  %v3961_v12 = vor.u32 %v4362_v23, %v3958_v14  ;;  %v3973_v24 = vor.u32 %v4367_v3, %v3972_v9  ;;  %s3301_s15 = sshll.u32 %s6058_s7, 2 }
 0x37e   : > { %v2558_v53 = vpop.f32.mrf.mxu3  ;;  %s5935_s26 = scalar_lea.vmem %s6017_s3, %s3301_s15 }
 0x37f   : > { %v3020_v55 = vsel %vm2995_vm1, %v2943_v41, -inf  ;;  %v2559_v44 = vadd.f32 %v2558_v53, %v5465_v4 }
 0x380   : > { %v2945_v31 = vpop.f32.mrf.mxu2  ;;  %v5854_v49 = vmax.f32 %v6037_v28, %v3020_v55  ;;  %v2689_v62 = vpop.f32.mrf.mxu0 }
 0x381   : > { %v2688_v47 = vadd.f32 %v2687_v43, %v2559_v44  ;;  %v2818_v59 = vpop.f32.mrf.mxu1 }
 0x383   : > { %v2817_v33 = vadd.f32 %v2816_v19, %v2688_v47 }
 0x385   : > { %v2946_v40 = vadd.f32 %v2945_v31, %v2817_v33 }
 0x386   : > { %v2560_v4 = vpop.f32.mrf.mxu3 }
 0x387   : > { %v3027_v36 = vsel %vm2995_vm1, %v2946_v40, -inf  ;;  %v2561_v38 = vadd.f32 %v2560_v4, %v5479_v58 }
 0x388   : > { %v2947_v6 = vpop.f32.mrf.mxu2  ;;  %v5869_v17 = vmax.f32 %v6038_v8, %v3027_v36  ;;  %v2692_v43 = vpop.f32.mrf.mxu0 }
 0x389   : > { %v2690_v25 = vadd.f32 %v2689_v62, %v2561_v38  ;;  %v2821_v19 = vpop.f32.mrf.mxu1 }
 0x38b   : > { %v2819_v56 = vadd.f32 %v2818_v59, %v2690_v25  ;;  %2602 = vmatmul.bf16.gmra.mxu3 %v3961_v12  ;;  %2731 = vmatmul.bf16.gmra.mxu0 %v3965_v21 }
 0x38c   : > { %2860 = vmatmul.bf16.gmra.mxu1 %v3969_v29 }
 0x38d   : > { %4197 = vmatmul.msk.bf16.gmra.mxu2 %vm2019_vm0, %v3973_v24  ;;  %v2948_v58 = vadd.f32 %v2947_v6, %v2819_v56 }
 0x38e   : > { %v2563_v41 = vpop.f32.mrf.mxu3 }
 0x38f   : > { %v3034_v53 = vsel %vm2995_vm1, %v2948_v58, -inf  ;;  %v2564_v55 = vadd.f32 %v2563_v41, %v5486_v2  ;;  %v6040_v2 = vmax.f32 %v5733_v16, %v5736_v15 }
 0x390   : > { %v2950_v32 = vpop.f32.mrf.mxu2  ;;  %v5877_v44 = vmax.f32 %v6039_v7, %v3034_v53  ;;  %v2694_v31 = vpop.f32.mrf.mxu0 }
 0x391   : > { %v2693_v28 = vadd.f32 %v2692_v43, %v2564_v55  ;;  %v2823_v62 = vpop.f32.mrf.mxu1 }
 0x393   : > { %v2822_v47 = vadd.f32 %v2821_v19, %v2693_v28 }
 0x395   : > { %v2951_v59 = vadd.f32 %v2950_v32, %v2822_v47 }
 0x396   : > { %v2565_v33 = vpop.f32.mrf.mxu3 }
 0x397   : > { %v3041_v23 = vsel %vm2995_vm1, %v2951_v59, -inf  ;;  %v2566_v14 = vadd.f32 %v2565_v33, %v5500_v5  ;;  %v6041_v5 = vmax.f32 %v5744_v11, %v5747_v61 }
 0x398   : > { %v2952_v39 = vpop.f32.mrf.mxu2  ;;  %v5884_v27 = vmax.f32 %v6040_v2, %v3041_v23  ;;  %v2697_v9 = vpop.f32.mrf.mxu0 }
 0x399   : > { %v2695_v52 = vadd.f32 %v2694_v31, %v2566_v14  ;;  %v2826_v37 = vpop.f32.mrf.mxu1 }
 0x39b   : > { %v2824_v40 = vadd.f32 %v2823_v62, %v2695_v52 }
 0x39d   : > { %v2953_v3 = vadd.f32 %v2952_v39, %v2824_v40  ;;  %v6045_v40 = vld [vmem:[#allocation6_spill] sm:$0xff] }
 0x39e   : > { %v2568_v48 = vpop.f32.mrf.mxu3 }
 0x39f   : > { %v3048_v34 = vsel %vm2995_vm1, %v2953_v3, -inf  ;;  %v2569_v4 = vadd.f32 %v2568_v48, %v5507_v51  ;;  %v6042_v51 = vmax.f32 %v5762_v13, %v5765_v45 }
 0x3a0   : > { %v2955_v36 = vpop.f32.mrf.mxu2  ;;  %v5891_v38 = vmax.f32 %v6041_v5, %v3048_v34  ;;  %v2699_v6 = vpop.f32.mrf.mxu0 }
 0x3a1   : > { %v2698_v16 = vadd.f32 %v2697_v9, %v2569_v4  ;;  %v2828_v15 = vpop.f32.mrf.mxu1 }
 0x3a3   : > { %v2827_v12 = vadd.f32 %v2826_v37, %v2698_v16 }
 0x3a5   : > { %v2956_v21 = vadd.f32 %v2955_v36, %v2827_v12 }
 0x3a6   : > { %v2570_v8 = vpop.f32.mrf.mxu3 }
 0x3a7   : > { %v3055_v43 = vsel %vm2995_vm1, %v2956_v21, -inf  ;;  %v2571_v24 = vadd.f32 %v2570_v8, %v5521_v50  ;;  %v6043_v50 = vmax.f32 %v5773_v60, %v5776_v42 }
 0x3a8   : > { %v2957_v29 = vpop.f32.mrf.mxu2  ;;  %v5898_v25 = vmax.f32 %v6042_v51, %v3055_v43  ;;  %v2702_v19 = vpop.f32.mrf.mxu0 }
 0x3a9   : > { %v2700_v11 = vadd.f32 %v2699_v6, %v2571_v24  ;;  %v2831_v61 = vpop.f32.mrf.mxu1  ;;  %v5926_v6 = vld [vmem:[%s6016_s2] ss:$0 sm:$0xff] }
 0x3ab   : > { %v2829_v56 = vadd.f32 %v2828_v15, %v2700_v11 }
 0x3ad   : > { %v2958_v58 = vadd.f32 %v2957_v29, %v2829_v56 }
 0x3ae   : > { %v2573_v41 = vpop.f32.mrf.mxu3 }
 0x3af   : > { %v3062_v53 = vsel %vm2995_vm1, %v2958_v58, -inf  ;;  %v2574_v55 = vadd.f32 %v2573_v41, %v5528_v0  ;;  %v6044_v0 = vmax.f32 %v5791_v35, %v5794_v57 }
 0x3b0   : > { %v2960_v32 = vpop.f32.mrf.mxu2  ;;  %v5905_v7 = vmax.f32 %v6043_v50, %v3062_v53  ;;  %v2704_v31 = vpop.f32.mrf.mxu0 }
 0x3b1   : > { %v2703_v13 = vadd.f32 %v2702_v19, %v2574_v55  ;;  %v2833_v45 = vpop.f32.mrf.mxu1 }
 0x3b3   : > { %v2832_v28 = vadd.f32 %v2831_v61, %v2703_v13 }
 0x3b5   : > { %v2961_v62 = vadd.f32 %v2960_v32, %v2832_v28 }
 0x3b6   : > { %v2575_v47 = vpop.f32.mrf.mxu3 }
 0x3b7   : > { %v3069_v59 = vsel %vm2995_vm1, %v2961_v62, -inf  ;;  %v2576_v33 = vadd.f32 %v2575_v47, %v5542_v30  ;;  %v6046_v30 = vmax.f32 %v5802_v1, %v5805_v10 }
 0x3b8   : > { %v2962_v23 = vpop.f32.mrf.mxu2  ;;  %v5912_v14 = vmax.f32 %v6044_v0, %v3069_v59  ;;  %v2707_v60 = vpop.f32.mrf.mxu0 }
 0x3b9   : > { %v2705_v42 = vadd.f32 %v2704_v31, %v2576_v33  ;;  %v2836_v39 = vpop.f32.mrf.mxu1 }
 0x3bb   : > { %v2834_v2 = vadd.f32 %v2833_v45, %v2705_v42 }
 0x3bd   : > { %v2963_v9 = vadd.f32 %v2962_v23, %v2834_v2 }
 0x3be   : > { %v2578_v52 = vpop.f32.mrf.mxu3 }
 0x3bf   : > { %v3076_v37 = vsel %vm2995_vm1, %v2963_v9, -inf  ;;  %v2579_v3 = vadd.f32 %v2578_v52, %v6045_v40 }
 0x3c0   : > { %v2965_v48 = vpop.f32.mrf.mxu2  ;;  %v5921_v34 = vmax.f32 %v6046_v30, %v3076_v37  ;;  %v2709_v35 = vpop.f32.mrf.mxu0 }
 0x3c1   : > { %v2708_v57 = vadd.f32 %v2707_v60, %v2579_v3  ;;  %v2838_v4 = vpop.f32.mrf.mxu1 }
 0x3c3   : > { %v2837_v36 = vadd.f32 %v2836_v39, %v2708_v57 }
 0x3c5   : > { %v2966_v5 = vadd.f32 %v2965_v48, %v2837_v36 }
 0x3c6   : > { %v2580_v16 = vpop.f32.mrf.mxu3 }
 0x3c7   : > { %v3001_v15 = vsel %vm2995_vm1, %v2966_v5, -inf  ;;  %v2581_v12 = vadd.f32 %v2580_v16, %v5435_v20 }
 0x3c8   : > { %v2967_v1 = vpop.f32.mrf.mxu2  ;;  %v3002_v10 = vmax.f32 %v5823_v18, %v3001_v15  ;;  %v2712_v21 = vpop.f32.mrf.mxu0  ;;  %v6047_v15 = vld [vmem:[#allocation8_spill] sm:$0xff] }
 0x3c9   : > { %v2710_v8 = vadd.f32 %v2709_v35, %v2581_v12  ;;  %v2841_v43 = vpop.f32.mrf.mxu1 }
 0x3ca   : > { %v3084_v24 = vadd.f32 %v5926_v6, %v3002_v10 }
 0x3cb   : > { %v2839_v29 = vadd.f32 %v2838_v4, %v2710_v8 }
 0x3cc   : > { %v3096_v51 = vmax.f32 %v3084_v24, 0.0 }
 0x3cd   : > { %v2968_v19 = vadd.f32 %v2967_v1, %v2839_v29 }
 0x3ce   : > { %v3108_v20 = vpack.c.bf16 %v3096_v51, %v3096_v51  ;;  %v2583_v11 = vpop.f32.mrf.mxu3 }
 0x3cf   : > { %v3008_v18 = vsel %vm2995_vm1, %v2968_v19, -inf  ;;  %v2584_v61 = vadd.f32 %v2583_v11, %v5442_v46  ;;  %v6048_v11 = vld [vmem:[#allocation9_spill] sm:$0xff] }
 0x3d0   : > { %v2970_v56 = vpop.f32.mrf.mxu2  ;;  %3121 = vst.msk [vmem:[%s5935_s26] sm:$0xf] %vm3120_vm2, %v3108_v20  ;;  %v3009_v58 = vmax.f32 %v5831_v54, %v3008_v18  ;;  %v2714_v41 = vpop.f32.mrf.mxu0 }
 0x3d1   : > { %v2713_v53 = vadd.f32 %v2712_v21, %v2584_v61  ;;  %v2843_v55 = vpop.f32.mrf.mxu1 }
 0x3d2   : > { %v3085_v32 = vadd.f32 %v5926_v6, %v3009_v58 }
 0x3d3   : > { %v2842_v50 = vadd.f32 %v2841_v43, %v2713_v53 }
 0x3d4   : > { %v3097_v31 = vmax.f32 %v3085_v32, 0.0 }
 0x3d5   : > { %v2971_v13 = vadd.f32 %v2970_v56, %v2842_v50 }
 0x3d6   : > { %v3109_v45 = vpack.c.bf16 %v3097_v31, %v3097_v31  ;;  %v2585_v28 = vpop.f32.mrf.mxu3 }
 0x3d7   : > { %v3015_v62 = vsel %vm2995_vm1, %v2971_v13, -inf  ;;  %v2586_v46 = vadd.f32 %v2585_v28, %v5456_v26  ;;  %v6049_v28 = vld [vmem:[#allocation10_spill] sm:$0xff] }
 0x3d8   : > { %v2972_v47 = vpop.f32.mrf.mxu2  ;;  %3122 = vst.msk [vmem:[%s5935_s26 + $0x4] sm:$0xf] %vm3120_vm2, %v3109_v45  ;;  %v3016_v54 = vmax.f32 %v5846_v22, %v3015_v62  ;;  %v2717_v59 = vpop.f32.mrf.mxu0 }
 0x3d9   : > { %v2715_v33 = vadd.f32 %v2714_v41, %v2586_v46  ;;  %v2846_v23 = vpop.f32.mrf.mxu1 }
 0x3da   : > { %v3086_v0 = vadd.f32 %v5926_v6, %v3016_v54 }
 0x3db   : > { %v2844_v60 = vadd.f32 %v2843_v55, %v2715_v33 }
 0x3dc   : > { %v3098_v42 = vmax.f32 %v3086_v0, 0.0 }
 0x3dd   : > { %v2973_v39 = vadd.f32 %v2972_v47, %v2844_v60 }
 0x3de   : > { %v3110_v2 = vpack.c.bf16 %v3098_v42, %v3098_v42  ;;  %v2588_v9 = vpop.f32.mrf.mxu3 }
 0x3df   : > { %v3022_v52 = vsel %vm2995_vm1, %v2973_v39, -inf  ;;  %v2589_v26 = vadd.f32 %v2588_v9, %v5463_v63  ;;  %v6050_v9 = vld [vmem:[#allocation11_spill] sm:$0xff] }
 0x3e0   : > { %v2975_v37 = vpop.f32.mrf.mxu2  ;;  %3123 = vst.msk [vmem:[%s5935_s26 + $0x8] sm:$0xf] %vm3120_vm2, %v3110_v2  ;;  %v3023_v22 = vmax.f32 %v5854_v49, %v3022_v52  ;;  %v2719_v40 = vpop.f32.mrf.mxu0 }
 0x3e1   : > { %v2718_v3 = vadd.f32 %v2717_v59, %v2589_v26  ;;  %v2848_v48 = vpop.f32.mrf.mxu1 }
 0x3e2   : > { %v3087_v30 = vadd.f32 %v5926_v6, %v3023_v22 }
 0x3e3   : > { %v2847_v35 = vadd.f32 %v2846_v23, %v2718_v3 }
 0x3e4   : > { %v3099_v57 = vmax.f32 %v3087_v30, 0.0 }
 0x3e5   : > { %v2976_v4 = vadd.f32 %v2975_v37, %v2847_v35 }
 0x3e6   : > { %v3111_v36 = vpack.c.bf16 %v3099_v57, %v3099_v57  ;;  %v2590_v5 = vpop.f32.mrf.mxu3 }
 0x3e7   : > { %v3029_v16 = vsel %vm2995_vm1, %v2976_v4, -inf  ;;  %v2591_v63 = vadd.f32 %v2590_v5, %v6047_v15  ;;  %v6051_v5 = vld [vmem:[#allocation12_spill] sm:$0xff] }
 0x3e8   : > { %v2977_v12 = vpop.f32.mrf.mxu2  ;;  %3124 = vst.msk [vmem:[%s5935_s26 + $0xc] sm:$0xf] %vm3120_vm2, %v3111_v36  ;;  %v3030_v49 = vmax.f32 %v5869_v17, %v3029_v16  ;;  %v2722_v1 = vpop.f32.mrf.mxu0 }
 0x3e9   : > { %v2720_v10 = vadd.f32 %v2719_v40, %v2591_v63  ;;  %v2851_v21 = vpop.f32.mrf.mxu1 }
 0x3ea   : > { %v3088_v8 = vadd.f32 %v5926_v6, %v3030_v49 }
 0x3eb   : > { %v2849_v43 = vadd.f32 %v2848_v48, %v2720_v10 }
 0x3ec   : > { %v3100_v24 = vmax.f32 %v3088_v8, 0.0 }
 0x3ed   : > { %v2978_v29 = vadd.f32 %v2977_v12, %v2849_v43 }
 0x3ee   : > { %v3112_v51 = vpack.c.bf16 %v3100_v24, %v3100_v24  ;;  %v2593_v19 = vpop.f32.mrf.mxu3 }
 0x3ef   : > { %v3036_v20 = vsel %vm2995_vm1, %v2978_v29, -inf  ;;  %v2594_v18 = vadd.f32 %v2593_v19, %v6048_v11  ;;  %v6052_v29 = vld [vmem:[#allocation13_spill] sm:$0xff] }
 0x3f0   : > { %v2980_v61 = vpop.f32.mrf.mxu2  ;;  %3125 = vst.msk [vmem:[%s5935_s26 + $0x10] sm:$0xf] %vm3120_vm2, %v3112_v51  ;;  %v3037_v17 = vmax.f32 %v5877_v44, %v3036_v20  ;;  %v2724_v56 = vpop.f32.mrf.mxu0 }
 0x3f1   : > { %v2723_v58 = vadd.f32 %v2722_v1, %v2594_v18  ;;  %v2853_v53 = vpop.f32.mrf.mxu1 }
 0x3f2   : > { %v3089_v41 = vadd.f32 %v5926_v6, %v3037_v17 }
 0x3f3   : > { %v2852_v55 = vadd.f32 %v2851_v21, %v2723_v58 }
 0x3f4   : > { %v3101_v32 = vmax.f32 %v3089_v41, 0.0 }
 0x3f5   : > { %v2981_v50 = vadd.f32 %v2980_v61, %v2852_v55  ;;  %v6053_v55 = vld [vmem:[#allocation14_spill] sm:$0xff] }
 0x3f6   : > { %v3113_v31 = vpack.c.bf16 %v3101_v32, %v3101_v32  ;;  %v2595_v13 = vpop.f32.mrf.mxu3 }
 0x3f7   : > { %v3043_v45 = vsel %vm2995_vm1, %v2981_v50, -inf  ;;  %v2596_v62 = vadd.f32 %v2595_v13, %v6049_v28 }
 0x3f8   : > { %v2982_v46 = vpop.f32.mrf.mxu2  ;;  %3126 = vst.msk [vmem:[%s5935_s26 + $0x14] sm:$0xf] %vm3120_vm2, %v3113_v31  ;;  %v3044_v44 = vmax.f32 %v5884_v27, %v3043_v45  ;;  %v2727_v59 = vpop.f32.mrf.mxu0 }
 0x3f9   : > { %v2725_v47 = vadd.f32 %v2724_v56, %v2596_v62  ;;  %v2856_v0 = vpop.f32.mrf.mxu1 }
 0x3fa   : > { %v3090_v54 = vadd.f32 %v5926_v6, %v3044_v44 }
 0x3fb   : > { %v2854_v33 = vadd.f32 %v2853_v53, %v2725_v47 }
 0x3fc   : > { %v3102_v23 = vmax.f32 %v3090_v54, 0.0 }
 0x3fd   : > { %v2983_v60 = vadd.f32 %v2982_v46, %v2854_v33 }
 0x3fe   : > { %v3114_v42 = vpack.c.bf16 %v3102_v23, %v3102_v23  ;;  %v2598_v39 = vpop.f32.mrf.mxu3 }
 0x3ff   : > { %v3050_v2 = vsel %vm2995_vm1, %v2983_v60, -inf  ;;  %v2599_v52 = vadd.f32 %v2598_v39, %v6050_v9 }
 0x400   : > { %v2985_v26 = vpop.f32.mrf.mxu2  ;;  %3127 = vst.msk [vmem:[%s5935_s26 + $0x18] sm:$0xf] %vm3120_vm2, %v3114_v42  ;;  %v3051_v27 = vmax.f32 %v5891_v38, %v3050_v2  ;;  %v2729_v48 = vpop.f32.mrf.mxu0 }
 0x401   : > { %v2728_v37 = vadd.f32 %v2727_v59, %v2599_v52  ;;  %v2858_v57 = vpop.f32.mrf.mxu1 }
 0x402   : > { %v3091_v22 = vadd.f32 %v5926_v6, %v3051_v27 }
 0x403   : > { %v2857_v40 = vadd.f32 %v2856_v0, %v2728_v37 }
 0x404   : > { %v3103_v3 = vmax.f32 %v3091_v22, 0.0 }
 0x405   : > { %v2986_v30 = vadd.f32 %v2985_v26, %v2857_v40 }
 0x406   : > { %v3115_v35 = vpack.c.bf16 %v3103_v3, %v3103_v3  ;;  %v2600_v4 = vpop.f32.mrf.mxu3 }
 0x407   : > { %v3057_v36 = vsel %vm2995_vm1, %v2986_v30, -inf  ;;  %v2601_v16 = vadd.f32 %v2600_v4, %v6051_v5 }
 0x408   : > { %3128 = vst.msk [vmem:[%s5935_s26 + $0x1c] sm:$0xf] %vm3120_vm2, %v3115_v35  ;;  %v3058_v15 = vmax.f32 %v5898_v25, %v3057_v36  ;;  %v2987_v38 = vpop.f32.mrf.mxu2  ;;  %v2732_v8 = vpop.f32.mrf.mxu0 }
 0x409   : > { %v2730_v63 = vadd.f32 %v2729_v48, %v2601_v16  ;;  %v2861_v25 = vpop.f32.mrf.mxu1 }
 0x40a   : > { %v3092_v12 = vadd.f32 %v5926_v6, %v3058_v15 }
 0x40b   : > { %v2859_v49 = vadd.f32 %v2858_v57, %v2730_v63 }
 0x40c   : > { %v3104_v1 = vmax.f32 %v3092_v12, 0.0 }
 0x40d   : > { %v2988_v10 = vadd.f32 %v2987_v38, %v2859_v49 }
 0x40e   : > { %v3116_v21 = vpack.c.bf16 %v3104_v1, %v3104_v1  ;;  %v2603_v43 = vpop.f32.mrf.mxu3 }
 0x40f   : > { %v3064_v24 = vsel %vm2995_vm1, %v2988_v10, -inf  ;;  %v2604_v51 = vadd.f32 %v2603_v43, %v6052_v29 }
 0x410   : > { %3129 = vst.msk [vmem:[%s5935_s26 + $0x20] sm:$0xf] %vm3120_vm2, %v3116_v21  ;;  %v3065_v19 = vmax.f32 %v5905_v7, %v3064_v24  ;;  %v2990_v18 = vpop.f32.mrf.mxu2  ;;  %v2734_v7 = vpop.f32.mrf.mxu0 }
 0x411   : > { %v2733_v20 = vadd.f32 %v2732_v8, %v2604_v51  ;;  %v2863_v45 = vpop.f32.mrf.mxu1 }
 0x412   : > { %v3093_v11 = vadd.f32 %v5926_v6, %v3065_v19 }
 0x413   : > { %v2862_v61 = vadd.f32 %v2861_v25, %v2733_v20 }
 0x414   : > { %v3105_v17 = vmax.f32 %v3093_v11, 0.0 }
 0x415   : > { %v2991_v56 = vadd.f32 %v2990_v18, %v2862_v61 }
 0x416   : > { %v3117_v58 = vpack.c.bf16 %v3105_v17, %v3105_v17  ;;  %v2605_v41 = vpop.f32.mrf.mxu3 }
 0x417   : > { %v3071_v53 = vsel %vm2995_vm1, %v2991_v56, -inf  ;;  %v2606_v32 = vadd.f32 %v2605_v41, %v6053_v55 }
 0x418   : > { %3130 = vst.msk [vmem:[%s5935_s26 + $0x24] sm:$0xf] %vm3120_vm2, %v3117_v58  ;;  %v3072_v50 = vmax.f32 %v5912_v14, %v3071_v53  ;;  %v2992_v46 = vpop.f32.mrf.mxu2 }
 0x419   : > { %v2735_v31 = vadd.f32 %v2734_v7, %v2606_v32 }
 0x41a   : > { %v3094_v13 = vadd.f32 %v5926_v6, %v3072_v50 }
 0x41b   : > { %v2864_v28 = vadd.f32 %v2863_v45, %v2735_v31 }
 0x41c   : > { %v3106_v62 = vmax.f32 %v3094_v13, 0.0 }
 0x41d   : > { %v2993_v44 = vadd.f32 %v2992_v46, %v2864_v28 }
 0x41e   : > { %v3118_v47 = vpack.c.bf16 %v3106_v62, %v3106_v62 }
 0x41f   : > { %v3078_v54 = vsel %vm2995_vm1, %v2993_v44, -inf }
 0x420   : > { %3131 = vst.msk [vmem:[%s5935_s26 + $0x28] sm:$0xf] %vm3120_vm2, %v3118_v47  ;;  %v3079_v59 = vmax.f32 %v5921_v34, %v3078_v54 }
 0x422   : > { %v3095_v33 = vadd.f32 %v5926_v6, %v3079_v59 }
 0x424   : > { %v3107_v14 = vmax.f32 %v3095_v33, 0.0 }
 0x426   : > { %v3119_v23 = vpack.c.bf16 %v3107_v14, %v3107_v14 }
 0x428   : > { %3132 = vst.msk [vmem:[%s5935_s26 + $0x2c] sm:$0xf] %vm3120_vm2, %v3119_v23 }
 0x429 PF: > { %p10_p9 = scmp.ge.s32.totalorder %s4532_s16, 4   ;;  %s6054_s12 = smov %s4489_s13 }
 0x42a   : > { %s6055_s13 = smov %s4541_s19  ;;  %s6056_s14 = smov %s4532_s16 }
 0x42b   :  { %12 = sbr.rel (!%p10_p9) target bundleno = 2 (0x2), region = 99 }

// kernel: net_forward.5
= control target key start
LH: loop header
LB: loop body
LE: loop exit
PB: predicated region body
PF: predicated region fallthrough
CT: control target
= control target key end

     0   :  { %vm1459_vm0 = vcmask 523264   ;;  %s7515_s1 = inlined_call_operand.vmem [shape: bf16[1600,128], index: 1, kind: input, shape index: {}]   ;;  %s7516_s0 = inlined_call_operand.vmem [shape: bf16[4,32,1600], index: 0, kind: input, shape index: {}]   ;;  %s7517_s2 = inlined_call_operand.vmem [shape: f32[1,128], index: 2, kind: input, shape index: {}]   ;;  %s7518_s3 = inlined_call_operand.vmem [shape: bf16[512,512], index: 3, kind: input, shape index: {}]   ;;  %s7519_s6 = inlined_call_operand.vmem [shape: f32[1,128], index: 6, kind: input, shape index: {}]   ;;  %s7520_s5 = inlined_call_operand.vmem [shape: bf16[512,128], index: 5, kind: input, shape index: {}]   ;;  %s7521_s4 = inlined_call_operand.vmem [shape: f32[1,512], index: 4, kind: input, shape index: {}]   ;;  %s7522_s7 = inlined_call_operand.vmem [shape: f32[8,128], index: 7, kind: output, shape index: {}]  }
   0x1   :  { %v5069_v0 = vld [vmem:[%s7515_s1 + $0x38] sm:$0xff]  ;;  %v5068_v4 = vld [vmem:[%s7515_s1 + $0x30] sm:$0xff]  ;;  %v5067_v8 = vld [vmem:[%s7515_s1 + $0x28] sm:$0xff] }
   0x2   :  { %v5077_v1 = vld [vmem:[%s7515_s1 + $0x78] sm:$0xff]  ;;  %1484 = vmatpush.bf16.msra.mxu0 %v5069_v0  ;;  %v5076_v5 = vld [vmem:[%s7515_s1 + $0x70] sm:$0xff]  ;;  %v5075_v9 = vld [vmem:[%s7515_s1 + $0x68] sm:$0xff] }
   0x3   :  { %v5085_v2 = vld [vmem:[%s7515_s1 + $0xb8] sm:$0xff]  ;;  %1533 = vmatpush.bf16.msra.mxu1 %v5077_v1  ;;  %v5084_v6 = vld [vmem:[%s7515_s1 + $0xb0] sm:$0xff]  ;;  %v5083_v10 = vld [vmem:[%s7515_s1 + $0xa8] sm:$0xff] }
   0x4   :  { %v5093_v3 = vld [vmem:[%s7515_s1 + $0xf8] sm:$0xff]  ;;  %1582 = vmatpush.bf16.msra.mxu2 %v5085_v2  ;;  %v5092_v7 = vld [vmem:[%s7515_s1 + $0xf0] sm:$0xff]  ;;  %v5091_v11 = vld [vmem:[%s7515_s1 + $0xe8] sm:$0xff] }
   0x5   :  { %1631 = vmatpush.bf16.msra.mxu3 %v5093_v3  ;;  %v5066_v12 = vld [vmem:[%s7515_s1 + $0x20] sm:$0xff]  ;;  %v5065_v16 = vld [vmem:[%s7515_s1 + $0x18] sm:$0xff]  ;;  %v5064_v20 = vld [vmem:[%s7515_s1 + $0x10] sm:$0xff] }
   0x6   :  { %1485 = vmatpush.bf16.msra.mxu0 %v5068_v4  ;;  %v5074_v13 = vld [vmem:[%s7515_s1 + $0x60] sm:$0xff]  ;;  %v5073_v17 = vld [vmem:[%s7515_s1 + $0x58] sm:$0xff]  ;;  %v5072_v21 = vld [vmem:[%s7515_s1 + $0x50] sm:$0xff] }
   0x7   :  { %1534 = vmatpush.bf16.msra.mxu1 %v5076_v5  ;;  %v5082_v14 = vld [vmem:[%s7515_s1 + $0xa0] sm:$0xff]  ;;  %v5081_v18 = vld [vmem:[%s7515_s1 + $0x98] sm:$0xff]  ;;  %v5080_v22 = vld [vmem:[%s7515_s1 + $0x90] sm:$0xff] }
   0x8   :  { %1583 = vmatpush.bf16.msra.mxu2 %v5084_v6  ;;  %v5090_v15 = vld [vmem:[%s7515_s1 + $0xe0] sm:$0xff]  ;;  %v5089_v19 = vld [vmem:[%s7515_s1 + $0xd8] sm:$0xff]  ;;  %v5088_v23 = vld [vmem:[%s7515_s1 + $0xd0] sm:$0xff] }
   0x9   :  { %1632 = vmatpush.bf16.msra.mxu3 %v5092_v7  ;;  %v5063_v24 = vld [vmem:[%s7515_s1 + $0x8] sm:$0xff]  ;;  %v5062_v28 = vld [vmem:[%s7515_s1] sm:$0xff]  ;;  %v4964_v33 = vld [vmem:[%s7516_s0 + $0x30] sm:$0xf0] }
   0xa   :  { %1486 = vmatpush.bf16.msra.mxu0 %v5067_v8  ;;  %v5071_v25 = vld [vmem:[%s7515_s1 + $0x48] sm:$0xff]  ;;  %v5070_v29 = vld [vmem:[%s7515_s1 + $0x40] sm:$0xff]  ;;  %v3498_v35 = vld [vmem:[%s7516_s0 + $0x34] sm:$0xf0] }
   0xb   :  { %1535 = vmatpush.bf16.msra.mxu1 %v5075_v9  ;;  %v5079_v26 = vld [vmem:[%s7515_s1 + $0x88] sm:$0xff]  ;;  %v5078_v30 = vld [vmem:[%s7515_s1 + $0x80] sm:$0xff]  ;;  %v4965_v37 = vld [vmem:[%s7516_s0 + $0x38] sm:$0xf0] }
   0xc   :  { %1584 = vmatpush.bf16.msra.mxu2 %v5083_v10  ;;  %v5087_v27 = vld [vmem:[%s7515_s1 + $0xc8] sm:$0xff]  ;;  %v5086_v31 = vld [vmem:[%s7515_s1 + $0xc0] sm:$0xff]  ;;  %v5101_v40 = vld [vmem:[%s7515_s1 + $0x138] sm:$0xff] }
   0xd   :  { %1633 = vmatpush.bf16.msra.mxu3 %v5091_v11  ;;  %v3496_v32 = vld [vmem:[%s7516_s0] sm:$0xf]  ;;  %v4958_v34 = vld [vmem:[%s7516_s0 + $0x4] sm:$0xf]  ;;  %v3504_v36 = vld [vmem:[%s7516_s0 + $0x8] sm:$0xf] }
   0xe   :  { %1487 = vmatpush.bf16.msra.mxu0 %v5066_v12  ;;  %v4959_v38 = vld [vmem:[%s7516_s0 + $0xc] sm:$0xf]  ;;  %v3506_v39 = vld [vmem:[%s7516_s0 + $0x3c] sm:$0xf0]  ;;  %v3497_v41 = vor.u32 %v4964_v33, %v3496_v32  ;;  %v3501_v42 = vor.u32 %v4958_v34, %v3498_v35  ;;  %v3505_v43 = vor.u32 %v4965_v37, %v3504_v36  ;;  %v5100_v45 = vld [vmem:[%s7515_s1 + $0x130] sm:$0xff] }
   0xf   :  { %1536 = vmatpush.bf16.msra.mxu1 %v5074_v13  ;;  %v3509_v44 = vor.u32 %v4959_v38, %v3506_v39  ;;  %v3548_v46 = vld [vmem:[%s7516_s0 + $0x68] sm:$0xf]  ;;  %v4977_v47 = vld [vmem:[%s7516_s0 + $0x98] sm:$0xf0]  ;;  %v4971_v48 = vld [vmem:[%s7516_s0 + $0x6c] sm:$0xf] }
  0x10   :  { %1585 = vmatpush.bf16.msra.mxu2 %v5082_v14  ;;  %v3550_v49 = vld [vmem:[%s7516_s0 + $0x9c] sm:$0xf0]  ;;  %v3556_v50 = vld [vmem:[%s7516_s0 + $0x70] sm:$0xf]  ;;  %v4978_v51 = vld [vmem:[%s7516_s0 + $0xa0] sm:$0xf0]  ;;  %v3549_v54 = vor.u32 %v4977_v47, %v3548_v46 }
  0x11   :  { %1634 = vmatpush.bf16.msra.mxu3 %v5090_v15  ;;  %v4972_v52 = vld [vmem:[%s7516_s0 + $0x74] sm:$0xf]  ;;  %v3558_v53 = vld [vmem:[%s7516_s0 + $0xa4] sm:$0xf0]  ;;  %v3553_v55 = vor.u32 %v4971_v48, %v3550_v49  ;;  %v3557_v56 = vor.u32 %v4978_v51, %v3556_v50  ;;  %v3600_v59 = vld [vmem:[%s7516_s0 + $0xd0] sm:$0xf] }
  0x12   :  { %1488 = vmatpush.bf16.msra.mxu0 %v5065_v16  ;;  %v3561_v57 = vor.u32 %v4972_v52, %v3558_v53  ;;  %v5099_v58 = vld [vmem:[%s7515_s1 + $0x128] sm:$0xff]  ;;  %v4990_v60 = vld [vmem:[%s7516_s0 + $0x100] sm:$0xf0]  ;;  %v4984_v61 = vld [vmem:[%s7516_s0 + $0xd4] sm:$0xf] }
  0x13   :  { %1537 = vmatpush.bf16.msra.mxu1 %v5073_v17  ;;  %v3602_v62 = vld [vmem:[%s7516_s0 + $0x104] sm:$0xf0]  ;;  %v3608_v63 = vld [vmem:[%s7516_s0 + $0xd8] sm:$0xf]  ;;  %v4991_v0 = vld [vmem:[%s7516_s0 + $0x108] sm:$0xf0]  ;;  %v3601_v3 = vor.u32 %v4990_v60, %v3600_v59 }
  0x14   :  { %1586 = vmatpush.bf16.msra.mxu2 %v5081_v18  ;;  %v4985_v1 = vld [vmem:[%s7516_s0 + $0xdc] sm:$0xf]  ;;  %v3610_v2 = vld [vmem:[%s7516_s0 + $0x10c] sm:$0xf0]  ;;  %v3605_v4 = vor.u32 %v4984_v61, %v3602_v62  ;;  %v3609_v5 = vor.u32 %v4991_v0, %v3608_v63  ;;  %v5098_v7 = vld [vmem:[%s7515_s1 + $0x120] sm:$0xff] }
  0x15   :  { %1635 = vmatpush.bf16.msra.mxu3 %v5089_v19  ;;  %v3613_v6 = vor.u32 %v4985_v1, %v3610_v2  ;;  %v3652_v8 = vld [vmem:[%s7516_s0 + $0x138] sm:$0xf]  ;;  %v5003_v9 = vld [vmem:[%s7516_s0 + $0x168] sm:$0xf0]  ;;  %v4997_v10 = vld [vmem:[%s7516_s0 + $0x13c] sm:$0xf] }
  0x16   :  { %1489 = vmatpush.bf16.msra.mxu0 %v5064_v20  ;;  %v3654_v11 = vld [vmem:[%s7516_s0 + $0x16c] sm:$0xf0]  ;;  %v3660_v12 = vld [vmem:[%s7516_s0 + $0x140] sm:$0xf]  ;;  %v5004_v13 = vld [vmem:[%s7516_s0 + $0x170] sm:$0xf0]  ;;  %v3653_v16 = vor.u32 %v5003_v9, %v3652_v8 }
  0x17   :  { %1538 = vmatpush.bf16.msra.mxu1 %v5072_v21  ;;  %v4998_v14 = vld [vmem:[%s7516_s0 + $0x144] sm:$0xf]  ;;  %v3662_v15 = vld [vmem:[%s7516_s0 + $0x174] sm:$0xf0]  ;;  %v3657_v17 = vor.u32 %v4997_v10, %v3654_v11  ;;  %v3661_v18 = vor.u32 %v5004_v13, %v3660_v12  ;;  %v3704_v21 = vld [vmem:[%s7516_s0 + $0x1a0] sm:$0xf] }
  0x18   :  { %1587 = vmatpush.bf16.msra.mxu2 %v5080_v22  ;;  %v3665_v19 = vor.u32 %v4998_v14, %v3662_v15  ;;  %v5097_v20 = vld [vmem:[%s7515_s1 + $0x118] sm:$0xff]  ;;  %v5016_v22 = vld [vmem:[%s7516_s0 + $0x1d0] sm:$0xf0]  ;;  %v3758_v46 = vld [vmem:[%s7516_s0 + $0x23c] sm:$0xf0] }
  0x19   :  { %1636 = vmatpush.bf16.msra.mxu3 %v5088_v23  ;;  %v5010_v23 = vld [vmem:[%s7516_s0 + $0x1a4] sm:$0xf]  ;;  %v5117_v33 = vld [vmem:[%s7515_s1 + $0x1b8] sm:$0xff]  ;;  %v5116_v36 = vld [vmem:[%s7515_s1 + $0x1b0] sm:$0xff] }
  0x1a   :  { %1490 = vmatpush.bf16.msra.mxu0 %v5063_v24  ;;  %v3706_v24 = vld [vmem:[%s7516_s0 + $0x1d4] sm:$0xf0]  ;;  %v5096_v37 = vld [vmem:[%s7515_s1 + $0x110] sm:$0xff]  ;;  %v5030_v48 = vld [vmem:[%s7516_s0 + $0x240] sm:$0xf0] }
  0x1b   :  { %1539 = vmatpush.bf16.msra.mxu1 %v5071_v25  ;;  %v3712_v25 = vld [vmem:[%s7516_s0 + $0x1a8] sm:$0xf]  ;;  %v5109_v34 = vld [vmem:[%s7515_s1 + $0x178] sm:$0xff]  ;;  %v5108_v38 = vld [vmem:[%s7515_s1 + $0x170] sm:$0xff] }
  0x1c   :  { %1588 = vmatpush.bf16.msra.mxu2 %v5079_v26  ;;  %v5017_v26 = vld [vmem:[%s7516_s0 + $0x1d8] sm:$0xf0]  ;;  %v5124_v39 = vld [vmem:[%s7515_s1 + $0x1f0] sm:$0xff]  ;;  %v3766_v50 = vld [vmem:[%s7516_s0 + $0x244] sm:$0xf0] }
  0x1d   :  { %1637 = vmatpush.bf16.msra.mxu3 %v5087_v27  ;;  %v5011_v27 = vld [vmem:[%s7516_s0 + $0x1ac] sm:$0xf]  ;;  %v5125_v35 = vld [vmem:[%s7515_s1 + $0x1f8] sm:$0xff]  ;;  %v3764_v47 = vld [vmem:[%s7516_s0 + $0x210] sm:$0xf] }
  0x1e   :  { %1491 = vmatpush.bf16.msra.mxu0 %v5062_v28  ;;  %v3714_v28 = vld [vmem:[%s7516_s0 + $0x1dc] sm:$0xf0]  ;;  %v5024_v49 = vld [vmem:[%s7516_s0 + $0x214] sm:$0xf]  ;;  %v5105_v59 = vld [vmem:[%s7515_s1 + $0x158] sm:$0xff] }
  0x1f   :  { %1540 = vmatpush.bf16.msra.mxu1 %v5070_v29  ;;  %v3705_v29 = vor.u32 %v5016_v22, %v3704_v21  ;;  %v3717_v32 = vor.u32 %v5011_v27, %v3714_v28  ;;  %v5114_v51 = vld [vmem:[%s7515_s1 + $0x1a0] sm:$0xff]  ;;  %v5121_v60 = vld [vmem:[%s7515_s1 + $0x1d8] sm:$0xff]  ;;  %v5112_v61 = vld [vmem:[%s7515_s1 + $0x190] sm:$0xff] }
  0x20   :  { %1589 = vmatpush.bf16.msra.mxu2 %v5078_v30  ;;  %v3709_v30 = vor.u32 %v5010_v23, %v3706_v24  ;;  %v5106_v52 = vld [vmem:[%s7515_s1 + $0x160] sm:$0xff]  ;;  %v5095_v62 = vld [vmem:[%s7515_s1 + $0x108] sm:$0xff]  ;;  %v5104_v63 = vld [vmem:[%s7515_s1 + $0x150] sm:$0xff] }
  0x21   :  { %1638 = vmatpush.bf16.msra.mxu3 %v5086_v31  ;;  %1492 = vmatmul.bf16.vlgmr.msra.gmra.mxu0 %v3497_v41  ;;  %v3713_v31 = vor.u32 %v5017_v26, %v3712_v25  ;;  %v5107_v41 = vld [vmem:[%s7515_s1 + $0x168] sm:$0xff]  ;;  %v5122_v53 = vld [vmem:[%s7515_s1 + $0x1e0] sm:$0xff]  ;;  %v5120_v0 = vld [vmem:[%s7515_s1 + $0x1d0] sm:$0xff] }
  0x22   :  { %1680 = vmatpush.bf16.msrb.mxu0 %v5101_v40  ;;  %1541 = vmatmul.bf16.vlgmr.msra.gmra.mxu1 %v3501_v42  ;;  %v5115_v40 = vld [vmem:[%s7515_s1 + $0x1a8] sm:$0xff]  ;;  %v3816_v8 = vld [vmem:[%s7516_s0 + $0x278] sm:$0xf]  ;;  %v5037_v10 = vld [vmem:[%s7516_s0 + $0x27c] sm:$0xf] }
  0x23   :  { %1590 = vmatmul.bf16.vlgmr.msra.gmra.mxu2 %v3505_v43  ;;  %1729 = vmatpush.bf16.msrb.mxu1 %v5109_v34  ;;  %v5123_v42 = vld [vmem:[%s7515_s1 + $0x1e8] sm:$0xff]  ;;  %v3818_v11 = vld [vmem:[%s7516_s0 + $0x2ac] sm:$0xf0]  ;;  %v5094_v14 = vld [vmem:[%s7515_s1 + $0x100] sm:$0xff] }
  0x24   :  { %1639 = vmatmul.bf16.vlgmr.msra.gmra.mxu3 %v3509_v44  ;;  %1778 = vmatpush.bf16.msrb.mxu2 %v5117_v33  ;;  %v3756_v43 = vld [vmem:[%s7516_s0 + $0x208] sm:$0xf]  ;;  %v5029_v44 = vld [vmem:[%s7516_s0 + $0x238] sm:$0xf0]  ;;  %v5043_v9 = vld [vmem:[%s7516_s0 + $0x2a8] sm:$0xf0] }
  0x25   :  { %1827 = vmatpush.bf16.msrb.mxu3 %v5125_v35  ;;  %v5111_v1 = vld [vmem:[%s7515_s1 + $0x188] sm:$0xff]  ;;  %v5110_v15 = vld [vmem:[%s7515_s1 + $0x180] sm:$0xff]  ;;  %v5049_v22 = vld [vmem:[%s7516_s0 + $0x2dc] sm:$0xf] }
  0x26   :  { %1681 = vmatpush.bf16.msrb.mxu0 %v5100_v45  ;;  %v5023_v45 = vld [vmem:[%s7516_s0 + $0x20c] sm:$0xf]  ;;  %v3862_v23 = vld [vmem:[%s7516_s0 + $0x30c] sm:$0xf0]  ;;  %v3868_v24 = vld [vmem:[%s7516_s0 + $0x2e0] sm:$0xf] }
  0x27   :  { %1730 = vmatpush.bf16.msrb.mxu1 %v5108_v38  ;;  %v5103_v2 = vld [vmem:[%s7515_s1 + $0x148] sm:$0xff]  ;;  %v5056_v25 = vld [vmem:[%s7516_s0 + $0x310] sm:$0xf0]  ;;  %v5050_v26 = vld [vmem:[%s7516_s0 + $0x2e4] sm:$0xf] }
  0x28   :  { %1779 = vmatpush.bf16.msrb.mxu2 %v5116_v36  ;;  %v5055_v21 = vld [vmem:[%s7516_s0 + $0x308] sm:$0xf0]  ;;  %v3870_v27 = vld [vmem:[%s7516_s0 + $0x314] sm:$0xf0]  ;;  %v3512_v33 = vld [vmem:[%s7516_s0 + $0x10] sm:$0xf] }
  0x29   :  { %1828 = vmatpush.bf16.msrb.mxu3 %v5124_v39  ;;  %v4966_v34 = vld [vmem:[%s7516_s0 + $0x40] sm:$0xf0]  ;;  %v3520_v35 = vld [vmem:[%s7516_s0 + $0x18] sm:$0xf]  ;;  %v4960_v36 = vld [vmem:[%s7516_s0 + $0x14] sm:$0xf] }
  0x2a   :  { %1682 = vmatpush.bf16.msrb.mxu0 %v5099_v58  ;;  %v5113_v58 = vld [vmem:[%s7515_s1 + $0x198] sm:$0xff]  ;;  %v4967_v38 = vld [vmem:[%s7516_s0 + $0x48] sm:$0xf0] }
  0x2b   :  { %1731 = vmatpush.bf16.msrb.mxu1 %v5107_v41  ;;  %v4961_v39 = vld [vmem:[%s7516_s0 + $0x1c] sm:$0xf]  ;;  %v3513_v41 = vor.u32 %v4966_v34, %v3512_v33 }
  0x2c   :  { %1780 = vmatpush.bf16.msrb.mxu2 %v5115_v40  ;;  %v3522_v40 = vld [vmem:[%s7516_s0 + $0x4c] sm:$0xf0] }
  0x2d   :  { %1829 = vmatpush.bf16.msrb.mxu3 %v5123_v42 }
  0x2e   :  { %1683 = vmatpush.bf16.msrb.mxu0 %v5098_v7  ;;  %v3810_v7 = vld [vmem:[%s7516_s0 + $0x2a4] sm:$0xf0] }
  0x2f   :  { %1732 = vmatpush.bf16.msrb.mxu1 %v5106_v52 }
  0x30   :  { %1781 = vmatpush.bf16.msrb.mxu2 %v5114_v51 }
  0x31   :  { %1497 = vmatmul.bf16.gmra.mxu0 %v3549_v54  ;;  %v3757_v54 = vor.u32 %v5029_v44, %v3756_v43  ;;  %1830 = vmatpush.bf16.msrb.mxu3 %v5122_v53 }
  0x32   :  { %1546 = vmatmul.bf16.gmra.mxu1 %v3553_v55  ;;  %1684 = vmatpush.bf16.msrb.mxu0 %v5097_v20  ;;  %v3761_v55 = vor.u32 %v5023_v45, %v3758_v46  ;;  %v3860_v20 = vld [vmem:[%s7516_s0 + $0x2d8] sm:$0xf]  ;;  %v3521_v45 = vor.u32 %v4967_v38, %v3520_v35  ;;  %v3525_v46 = vor.u32 %v4961_v39, %v3522_v40 }
  0x33   :  { %1595 = vmatmul.bf16.gmra.mxu2 %v3557_v56  ;;  %v3765_v56 = vor.u32 %v5030_v48, %v3764_v47  ;;  %1733 = vmatpush.bf16.msrb.mxu1 %v5105_v59  ;;  %v3861_v28 = vor.u32 %v5055_v21, %v3860_v20  ;;  %v4973_v59 = vld [vmem:[%s7516_s0 + $0x7c] sm:$0xf]  ;;  %v4992_v20 = vld [vmem:[%s7516_s0 + $0x110] sm:$0xf0]  ;;  %v3624_v21 = vld [vmem:[%s7516_s0 + $0xe8] sm:$0xf] }
  0x34   :  { %1644 = vmatmul.bf16.gmra.mxu3 %v3561_v57  ;;  %v3769_v57 = vor.u32 %v5024_v49, %v3766_v50  ;;  %1782 = vmatpush.bf16.msrb.mxu2 %v5113_v58  ;;  %v3572_v58 = vld [vmem:[%s7516_s0 + $0x80] sm:$0xf] }
  0x35   :  { %1831 = vmatpush.bf16.msrb.mxu3 %v5121_v60  ;;  %v3566_v60 = vld [vmem:[%s7516_s0 + $0xac] sm:$0xf0] }
  0x36   :  { %1685 = vmatpush.bf16.msrb.mxu0 %v5096_v37  ;;  %v3514_v37 = vld [vmem:[%s7516_s0 + $0x44] sm:$0xf0] }
  0x37   :  { %1734 = vmatpush.bf16.msrb.mxu1 %v5104_v63  ;;  %v3517_v42 = vor.u32 %v4960_v36, %v3514_v37  ;;  %v3574_v63 = vld [vmem:[%s7516_s0 + $0xb4] sm:$0xf0] }
  0x38   :  { %1783 = vmatpush.bf16.msrb.mxu2 %v5112_v61  ;;  %v4980_v61 = vld [vmem:[%s7516_s0 + $0xb0] sm:$0xf0] }
  0x39   :  { %1832 = vmatpush.bf16.msrb.mxu3 %v5120_v0 }
  0x3a   :  { %1686 = vmatpush.bf16.msrb.mxu0 %v5095_v62  ;;  %v4974_v62 = vld [vmem:[%s7516_s0 + $0x84] sm:$0xf] }
  0x3b   :  { %1735 = vmatpush.bf16.msrb.mxu1 %v5103_v2 }
  0x3c   :  { %1784 = vmatpush.bf16.msrb.mxu2 %v5111_v1 }
  0x3e   :  { %1687 = vmatpush.bf16.msrb.mxu0 %v5094_v14 }
  0x40   :  { %1785 = vmatpush.bf16.msrb.mxu2 %v5110_v15 }
  0x41   :  { %1502 = vmatmul.bf16.gmra.mxu0 %v3601_v3  ;;  %v5119_v3 = vld [vmem:[%s7515_s1 + $0x1c8] sm:$0xff] }
  0x42   :  { %1551 = vmatmul.bf16.gmra.mxu1 %v3605_v4  ;;  %v3808_v4 = vld [vmem:[%s7516_s0 + $0x270] sm:$0xf]  ;;  %1833 = vmatpush.bf16.msrb.mxu3 %v5119_v3  ;;  %v3569_v3 = vor.u32 %v4973_v59, %v3566_v60 }
  0x43   :  { %1600 = vmatmul.bf16.gmra.mxu2 %v3609_v5  ;;  %v5042_v5 = vld [vmem:[%s7516_s0 + $0x2a0] sm:$0xf0] }
  0x44   :  { %1649 = vmatmul.bf16.gmra.mxu3 %v3613_v6  ;;  %v5036_v6 = vld [vmem:[%s7516_s0 + $0x274] sm:$0xf]  ;;  %v3809_v12 = vor.u32 %v5042_v5, %v3808_v4 }
  0x45   :  { %v3813_v13 = vor.u32 %v5036_v6, %v3810_v7  ;;  %v3573_v7 = vor.u32 %v4980_v61, %v3572_v58 }
  0x51   :  { %1507 = vmatmul.bf16.gmra.mxu0 %v3653_v16  ;;  %v3817_v16 = vor.u32 %v5043_v9, %v3816_v8  ;;  %v3577_v8 = vor.u32 %v4974_v62, %v3574_v63 }
  0x52   :  { %1556 = vmatmul.bf16.gmra.mxu1 %v3657_v17  ;;  %v3821_v17 = vor.u32 %v5037_v10, %v3818_v11 }
  0x53   :  { %1605 = vmatmul.bf16.gmra.mxu2 %v3661_v18  ;;  %v5102_v18 = vld [vmem:[%s7515_s1 + $0x140] sm:$0xff] }
  0x54   :  { %1654 = vmatmul.bf16.gmra.mxu3 %v3665_v19  ;;  %v5118_v19 = vld [vmem:[%s7515_s1 + $0x1c0] sm:$0xff]  ;;  %1736 = vmatpush.bf16.msrb.mxu1 %v5102_v18  ;;  %v5131_v18 = vld [vmem:[%s7515_s1 + $0x228] sm:$0xff] }
  0x55   :  { %1834 = vmatpush.bf16.msrb.mxu3 %v5118_v19  ;;  %v3616_v19 = vld [vmem:[%s7516_s0 + $0xe0] sm:$0xf] }
  0x61   :  { %1512 = vmatmul.bf16.gmra.mxu0 %v3705_v29  ;;  %v3865_v29 = vor.u32 %v5049_v22, %v3862_v23  ;;  %v4986_v22 = vld [vmem:[%s7516_s0 + $0xe4] sm:$0xf]  ;;  %v3618_v23 = vld [vmem:[%s7516_s0 + $0x114] sm:$0xf0] }
  0x62   :  { %1561 = vmatmul.bf16.gmra.mxu1 %v3709_v30  ;;  %v3869_v30 = vor.u32 %v5056_v25, %v3868_v24  ;;  %v4993_v24 = vld [vmem:[%s7516_s0 + $0x118] sm:$0xf0]  ;;  %v4987_v25 = vld [vmem:[%s7516_s0 + $0xec] sm:$0xf] }
  0x63   :  { %1610 = vmatmul.bf16.gmra.mxu2 %v3713_v31  ;;  %v3873_v31 = vor.u32 %v5050_v26, %v3870_v27  ;;  %v3626_v26 = vld [vmem:[%s7516_s0 + $0x11c] sm:$0xf0]  ;;  %v3625_v34 = vor.u32 %v4993_v24, %v3624_v21 }
  0x64   :  { %1659 = vmatmul.bf16.gmra.mxu3 %v3717_v32  ;;  %v5133_v32 = vld [vmem:[%s7515_s1 + $0x238] sm:$0xff]  ;;  %v3629_v35 = vor.u32 %v4987_v25, %v3626_v26 }
  0x65   :  { %1876 = vmatpush.bf16.msra.mxu0 %v5133_v32 }
  0x71   :  { %1517 = vmatmul.bf16.gmra.mxu0 %v3757_v54 }
  0x72   :  { %1566 = vmatmul.bf16.gmra.mxu1 %v3761_v55  ;;  %v5132_v55 = vld [vmem:[%s7515_s1 + $0x230] sm:$0xff] }
  0x73   :  { %1615 = vmatmul.bf16.gmra.mxu2 %v3765_v56  ;;  %v3564_v56 = vld [vmem:[%s7516_s0 + $0x78] sm:$0xf]  ;;  %1877 = vmatpush.bf16.msra.mxu0 %v5132_v55 }
  0x74   :  { %1664 = vmatmul.bf16.gmra.mxu3 %v3769_v57  ;;  %v4979_v57 = vld [vmem:[%s7516_s0 + $0xa8] sm:$0xf0] }
  0x75   :  { %v3565_v2 = vor.u32 %v4979_v57, %v3564_v56 }
  0x77   :  { %1878 = vmatpush.bf16.msra.mxu0 %v5131_v18  ;;  %v5013_v18 = vld [vmem:[%s7516_s0 + $0x1bc] sm:$0xf] }
  0x81   :  { %1522 = vmatmul.bf16.gmra.mxu0 %v3809_v12 }
  0x82   :  { %1571 = vmatmul.bf16.gmra.mxu1 %v3813_v13 }
  0x83   :  { %1620 = vmatmul.bf16.gmra.mxu2 %v3817_v16 }
  0x84   :  { %1669 = vmatmul.bf16.gmra.mxu3 %v3821_v17 }
  0x91   :  { %1527 = vmatmul.bf16.gmra.mxu0 %v3861_v28 }
  0x92   :  { %1576 = vmatmul.bf16.gmra.mxu1 %v3865_v29  ;;  %v3617_v29 = vor.u32 %v4992_v20, %v3616_v19  ;;  %v3730_v19 = vld [vmem:[%s7516_s0 + $0x1ec] sm:$0xf0] }
  0x93   :  { %1625 = vmatmul.bf16.gmra.mxu2 %v3869_v30  ;;  %v3621_v30 = vor.u32 %v4986_v22, %v3618_v23 }
  0x94   :  { %1674 = vmatmul.bf16.gmra.mxu3 %v3873_v31 }
  0x9e   :  { %v1493_v43 = vpop.f32.mrf.mxu0 }
  0x9f   :  { %v1542_v44 = vpop.f32.mrf.mxu1 }
  0xa0   :  { %v1543_v47 = vadd.f32 %v1542_v44, %v1493_v43 }
  0xa1   :  { %1688 = vmatmul.bf16.vlgmr.msrb.gmra.mxu0 %v3513_v41 }
  0xa2   :  { %1737 = vmatmul.bf16.vlgmr.msrb.gmra.mxu1 %v3517_v42 }
  0xa3   :  { %1786 = vmatmul.bf16.vlgmr.msrb.gmra.mxu2 %v3521_v45  ;;  %v5130_v45 = vld [vmem:[%s7515_s1 + $0x220] sm:$0xff] }
  0xa4   :  { %1835 = vmatmul.bf16.vlgmr.msrb.gmra.mxu3 %v3525_v46  ;;  %v3668_v46 = vld [vmem:[%s7516_s0 + $0x148] sm:$0xf]  ;;  %1879 = vmatpush.bf16.msra.mxu0 %v5130_v45 }
  0xa6   :  { %v1591_v48 = vpop.f32.mrf.mxu2  ;;  %v1495_v51 = vpop.f32.mrf.mxu0 }
  0xa7   :  { %v1640_v49 = vpop.f32.mrf.mxu3  ;;  %v1592_v50 = vadd.f32 %v1591_v48, %v1543_v47  ;;  %v1544_v52 = vpop.f32.mrf.mxu1  ;;  %v5005_v47 = vld [vmem:[%s7516_s0 + $0x178] sm:$0xf0]  ;;  %v3676_v48 = vld [vmem:[%s7516_s0 + $0x150] sm:$0xf] }
  0xa8   :  { %v1545_v53 = vadd.f32 %v1544_v52, %v1495_v51  ;;  %v5006_v51 = vld [vmem:[%s7516_s0 + $0x180] sm:$0xf0]  ;;  %v5000_v52 = vld [vmem:[%s7516_s0 + $0x154] sm:$0xf]  ;;  %v3669_v57 = vor.u32 %v5005_v47, %v3668_v46  ;;  %v3772_v46 = vld [vmem:[%s7516_s0 + $0x218] sm:$0xf] }
  0xa9   :  { %v5779_v54 = vadd.f32 %v1640_v49, %v1592_v50  ;;  %v4999_v49 = vld [vmem:[%s7516_s0 + $0x14c] sm:$0xf]  ;;  %v3670_v50 = vld [vmem:[%s7516_s0 + $0x17c] sm:$0xf0]  ;;  %v3677_v62 = vor.u32 %v5006_v51, %v3676_v48  ;;  %v5128_v47 = vld [vmem:[%s7515_s1 + $0x210] sm:$0xff] }
  0xaa   :  { %v3673_v58 = vor.u32 %v4999_v49, %v3670_v50  ;;  %v5147_v48 = vld [vmem:[%s7515_s1 + $0x2a8] sm:$0xff]  ;;  %v3780_v50 = vld [vmem:[%s7516_s0 + $0x220] sm:$0xf]  ;;  %v5032_v51 = vld [vmem:[%s7516_s0 + $0x250] sm:$0xf0] }
  0xab   :  { %v5031_v49 = vld [vmem:[%s7516_s0 + $0x248] sm:$0xf0] }
  0xae   :  { %v1593_v0 = vpop.f32.mrf.mxu2  ;;  %v1498_v5 = vpop.f32.mrf.mxu0 }
  0xaf   :  { %v1642_v1 = vpop.f32.mrf.mxu3  ;;  %v1594_v4 = vadd.f32 %v1593_v0, %v1545_v53  ;;  %v1547_v6 = vpop.f32.mrf.mxu1  ;;  %v3678_v53 = vld [vmem:[%s7516_s0 + $0x184] sm:$0xf0] }
  0xb0   :  { %v1548_v9 = vadd.f32 %v1547_v6, %v1498_v5  ;;  %v3681_v63 = vor.u32 %v5000_v52, %v3678_v53  ;;  %v5025_v52 = vld [vmem:[%s7516_s0 + $0x21c] sm:$0xf]  ;;  %v3774_v53 = vld [vmem:[%s7516_s0 + $0x24c] sm:$0xf0] }
  0xb1   :  { %v5808_v10 = vadd.f32 %v1642_v1, %v1594_v4  ;;  %1693 = vmatmul.bf16.gmra.mxu0 %v3565_v2 }
  0xb2   :  { %1742 = vmatmul.bf16.gmra.mxu1 %v3569_v3 }
  0xb3   :  { %1791 = vmatmul.bf16.gmra.mxu2 %v3573_v7 }
  0xb4   :  { %1840 = vmatmul.bf16.gmra.mxu3 %v3577_v8 }
  0xb6   :  { %v1596_v11 = vpop.f32.mrf.mxu2  ;;  %v1500_v14 = vpop.f32.mrf.mxu0 }
  0xb7   :  { %v1645_v12 = vpop.f32.mrf.mxu3  ;;  %v1597_v13 = vadd.f32 %v1596_v11, %v1548_v9  ;;  %v1549_v15 = vpop.f32.mrf.mxu1  ;;  %v5129_v9 = vld [vmem:[%s7515_s1 + $0x218] sm:$0xff]  ;;  %v3720_v11 = vld [vmem:[%s7516_s0 + $0x1b0] sm:$0xf] }
  0xb8   :  { %v1550_v16 = vadd.f32 %v1549_v15, %v1500_v14  ;;  %v5012_v14 = vld [vmem:[%s7516_s0 + $0x1b4] sm:$0xf]  ;;  %v3722_v15 = vld [vmem:[%s7516_s0 + $0x1e4] sm:$0xf0]  ;;  %1880 = vmatpush.bf16.msra.mxu0 %v5129_v9  ;;  %v5154_v9 = vld [vmem:[%s7515_s1 + $0x2e0] sm:$0xff] }
  0xb9   :  { %v5810_v17 = vadd.f32 %v1645_v12, %v1597_v13  ;;  %v5018_v12 = vld [vmem:[%s7516_s0 + $0x1e0] sm:$0xf0]  ;;  %v3728_v13 = vld [vmem:[%s7516_s0 + $0x1b8] sm:$0xf]  ;;  %v3725_v23 = vor.u32 %v5012_v14, %v3722_v15 }
  0xba   :  { %v3721_v22 = vor.u32 %v5018_v12, %v3720_v11  ;;  %v5145_v12 = vld [vmem:[%s7515_s1 + $0x298] sm:$0xff] }
  0xbb   :  { %v5153_v14 = vld [vmem:[%s7515_s1 + $0x2d8] sm:$0xff] }
  0xbc   :  { %1881 = vmatpush.bf16.msra.mxu0 %v5128_v47  ;;  %v5142_v47 = vld [vmem:[%s7515_s1 + $0x280] sm:$0xff] }
  0xbe   :  { %v1598_v27 = vpop.f32.mrf.mxu2  ;;  %v1503_v32 = vpop.f32.mrf.mxu0 }
  0xbf   :  { %v1647_v28 = vpop.f32.mrf.mxu3  ;;  %v1599_v31 = vadd.f32 %v1598_v27, %v1550_v16  ;;  %v1552_v33 = vpop.f32.mrf.mxu1  ;;  %v5019_v16 = vld [vmem:[%s7516_s0 + $0x1e8] sm:$0xf0] }
  0xc0   :  { %v1553_v36 = vadd.f32 %v1552_v33, %v1503_v32  ;;  %v3729_v27 = vor.u32 %v5019_v16, %v3728_v13  ;;  %v5141_v32 = vld [vmem:[%s7515_s1 + $0x278] sm:$0xff] }
  0xc1   :  { %v5839_v37 = vadd.f32 %v1647_v28, %v1599_v31  ;;  %1698 = vmatmul.bf16.gmra.mxu0 %v3617_v29  ;;  %v3733_v28 = vor.u32 %v5013_v18, %v3730_v19  ;;  %v5149_v31 = vld [vmem:[%s7515_s1 + $0x2b8] sm:$0xff]  ;;  %1925 = vmatpush.bf16.msra.mxu1 %v5141_v32  ;;  %v5144_v18 = vld [vmem:[%s7515_s1 + $0x290] sm:$0xff] }
  0xc2   :  { %1747 = vmatmul.bf16.gmra.mxu1 %v3621_v30  ;;  %1974 = vmatpush.bf16.msra.mxu2 %v5149_v31  ;;  %v5157_v33 = vld [vmem:[%s7515_s1 + $0x2f8] sm:$0xff]  ;;  %v3832_v31 = vld [vmem:[%s7516_s0 + $0x288] sm:$0xf] }
  0xc3   :  { %1796 = vmatmul.bf16.gmra.mxu2 %v3625_v34  ;;  %2023 = vmatpush.bf16.msra.mxu3 %v5157_v33  ;;  %v5137_v13 = vld [vmem:[%s7515_s1 + $0x258] sm:$0xff]  ;;  %v5038_v33 = vld [vmem:[%s7516_s0 + $0x284] sm:$0xf] }
  0xc4   :  { %1845 = vmatmul.bf16.gmra.mxu3 %v3629_v35  ;;  %v5045_v32 = vld [vmem:[%s7516_s0 + $0x2b8] sm:$0xf0] }
  0xc6   :  { %v1601_v38 = vpop.f32.mrf.mxu2  ;;  %v1505_v41 = vpop.f32.mrf.mxu0 }
  0xc7   :  { %v1650_v39 = vpop.f32.mrf.mxu3  ;;  %v1602_v40 = vadd.f32 %v1601_v38, %v1553_v36  ;;  %v1554_v42 = vpop.f32.mrf.mxu1  ;;  %v5148_v36 = vld [vmem:[%s7515_s1 + $0x2b0] sm:$0xff] }
  0xc8   :  { %v1555_v43 = vadd.f32 %v1554_v42, %v1505_v41  ;;  %1975 = vmatpush.bf16.msra.mxu2 %v5148_v36  ;;  %v5140_v42 = vld [vmem:[%s7515_s1 + $0x270] sm:$0xff]  ;;  %v3834_v36 = vld [vmem:[%s7516_s0 + $0x2bc] sm:$0xf0] }
  0xc9   :  { %v5841_v44 = vadd.f32 %v1650_v39, %v1602_v40  ;;  %1926 = vmatpush.bf16.msra.mxu1 %v5140_v42 }
  0xcc   :  { %1976 = vmatpush.bf16.msra.mxu2 %v5147_v48 }
  0xce   :  { %v1603_v55 = vpop.f32.mrf.mxu2  ;;  %v1508_v60 = vpop.f32.mrf.mxu0 }
  0xcf   :  { %v1652_v56 = vpop.f32.mrf.mxu3  ;;  %v1604_v59 = vadd.f32 %v1603_v55, %v1555_v43  ;;  %v1557_v61 = vpop.f32.mrf.mxu1  ;;  %v5156_v43 = vld [vmem:[%s7515_s1 + $0x2f0] sm:$0xff]  ;;  %v5026_v55 = vld [vmem:[%s7516_s0 + $0x224] sm:$0xf] }
  0xd0   :  { %v1558_v0 = vadd.f32 %v1557_v61, %v1508_v60  ;;  %2024 = vmatpush.bf16.msra.mxu3 %v5156_v43  ;;  %v3773_v61 = vor.u32 %v5031_v49, %v3772_v46  ;;  %v5126_v46 = vld [vmem:[%s7515_s1 + $0x200] sm:$0xff] }
  0xd1   :  { %v5870_v1 = vadd.f32 %v1652_v56, %v1604_v59  ;;  %1703 = vmatmul.bf16.gmra.mxu0 %v3669_v57  ;;  %v3782_v56 = vld [vmem:[%s7516_s0 + $0x254] sm:$0xf0]  ;;  %v5139_v57 = vld [vmem:[%s7515_s1 + $0x268] sm:$0xff] }
  0xd2   :  { %1752 = vmatmul.bf16.gmra.mxu1 %v3673_v58  ;;  %v5155_v58 = vld [vmem:[%s7515_s1 + $0x2e8] sm:$0xff] }
  0xd3   :  { %1801 = vmatmul.bf16.gmra.mxu2 %v3677_v62  ;;  %v3777_v62 = vor.u32 %v5025_v52, %v3774_v53  ;;  %1927 = vmatpush.bf16.msra.mxu1 %v5139_v57 }
  0xd4   :  { %1850 = vmatmul.bf16.gmra.mxu3 %v3681_v63  ;;  %v5146_v63 = vld [vmem:[%s7515_s1 + $0x2a0] sm:$0xff] }
  0xd5   :  { %2025 = vmatpush.bf16.msra.mxu3 %v5155_v58  ;;  %1977 = vmatpush.bf16.msra.mxu2 %v5146_v63 }
  0xd6   :  { %v1606_v2 = vpop.f32.mrf.mxu2  ;;  %v1510_v5 = vpop.f32.mrf.mxu0 }
  0xd7   :  { %v1655_v3 = vpop.f32.mrf.mxu3  ;;  %v1607_v4 = vadd.f32 %v1606_v2, %v1558_v0  ;;  %v1559_v6 = vpop.f32.mrf.mxu1 }
  0xd8   :  { %v1560_v7 = vadd.f32 %v1559_v6, %v1510_v5  ;;  %v3785_v5 = vor.u32 %v5026_v55, %v3782_v56  ;;  %v5134_v55 = vld [vmem:[%s7515_s1 + $0x240] sm:$0xff] }
  0xd9   :  { %v5872_v8 = vadd.f32 %v1655_v3, %v1607_v4  ;;  %v3781_v4 = vor.u32 %v5032_v51, %v3780_v50  ;;  %2026 = vmatpush.bf16.msra.mxu3 %v5154_v9  ;;  %1978 = vmatpush.bf16.msra.mxu2 %v5145_v12  ;;  %v3833_v51 = vor.u32 %v5045_v32, %v3832_v31  ;;  %v5150_v56 = vld [vmem:[%s7515_s1 + $0x2c0] sm:$0xff]  ;;  %v5052_v9 = vld [vmem:[%s7516_s0 + $0x2f4] sm:$0xf]  ;;  %v3886_v12 = vld [vmem:[%s7516_s0 + $0x324] sm:$0xf0] }
  0xdd   :  { %2027 = vmatpush.bf16.msra.mxu3 %v5153_v14  ;;  %1979 = vmatpush.bf16.msra.mxu2 %v5144_v18 }
  0xde   :  { %v1608_v20 = vpop.f32.mrf.mxu2  ;;  %v1513_v25 = vpop.f32.mrf.mxu0 }
  0xdf   :  { %v1657_v21 = vpop.f32.mrf.mxu3  ;;  %v1609_v24 = vadd.f32 %v1608_v20, %v1560_v7  ;;  %v1562_v26 = vpop.f32.mrf.mxu1  ;;  %v5138_v7 = vld [vmem:[%s7515_s1 + $0x260] sm:$0xff] }
  0xe0   :  { %v1563_v29 = vadd.f32 %v1562_v26, %v1513_v25  ;;  %1928 = vmatpush.bf16.msra.mxu1 %v5138_v7  ;;  %v3824_v26 = vld [vmem:[%s7516_s0 + $0x280] sm:$0xf]  ;;  %v5058_v7 = vld [vmem:[%s7516_s0 + $0x320] sm:$0xf0] }
  0xe1   :  { %v5901_v30 = vadd.f32 %v1657_v21, %v1609_v24  ;;  %1708 = vmatmul.bf16.gmra.mxu0 %v3721_v22  ;;  %v5152_v24 = vld [vmem:[%s7515_s1 + $0x2d0] sm:$0xff] }
  0xe2   :  { %1757 = vmatmul.bf16.gmra.mxu1 %v3725_v23  ;;  %v5136_v23 = vld [vmem:[%s7515_s1 + $0x250] sm:$0xff]  ;;  %2028 = vmatpush.bf16.msra.mxu3 %v5152_v24 }
  0xe3   :  { %1806 = vmatmul.bf16.gmra.mxu2 %v3729_v27  ;;  %v5127_v27 = vld [vmem:[%s7515_s1 + $0x208] sm:$0xff] }
  0xe4   :  { %1855 = vmatmul.bf16.gmra.mxu3 %v3733_v28  ;;  %1929 = vmatpush.bf16.msra.mxu1 %v5137_v13  ;;  %v5143_v28 = vld [vmem:[%s7515_s1 + $0x288] sm:$0xff] }
  0xe5   :  { %1882 = vmatpush.bf16.msra.mxu0 %v5127_v27  ;;  %1980 = vmatpush.bf16.msra.mxu2 %v5143_v28 }
  0xe6   :  { %v1611_v34 = vpop.f32.mrf.mxu2  ;;  %v1515_v39 = vpop.f32.mrf.mxu0 }
  0xe7   :  { %v1660_v35 = vpop.f32.mrf.mxu3  ;;  %v1612_v38 = vadd.f32 %v1611_v34, %v1563_v29  ;;  %v1564_v40 = vpop.f32.mrf.mxu1  ;;  %v5044_v29 = vld [vmem:[%s7516_s0 + $0x2b0] sm:$0xf0]  ;;  %v3826_v34 = vld [vmem:[%s7516_s0 + $0x2b4] sm:$0xf0] }
  0xe8   :  { %v1565_v41 = vadd.f32 %v1564_v40, %v1515_v39  ;;  %1930 = vmatpush.bf16.msra.mxu1 %v5136_v23  ;;  %v5151_v39 = vld [vmem:[%s7515_s1 + $0x2c8] sm:$0xff]  ;;  %v3825_v42 = vor.u32 %v5044_v29, %v3824_v26  ;;  %v3829_v43 = vor.u32 %v5038_v33, %v3826_v34  ;;  %v3528_v34 = vld [vmem:[%s7516_s0 + $0x20] sm:$0xf] }
  0xe9   :  { %v5921_v45 = vadd.f32 %v1660_v35, %v1612_v38  ;;  %v5039_v35 = vld [vmem:[%s7516_s0 + $0x28c] sm:$0xf]  ;;  %2029 = vmatpush.bf16.msra.mxu3 %v5151_v39  ;;  %1883 = vmatpush.bf16.msra.mxu0 %v5126_v46  ;;  %v4962_v39 = vld [vmem:[%s7516_s0 + $0x24] sm:$0xf] }
  0xea   :  { %v5135_v38 = vld [vmem:[%s7515_s1 + $0x248] sm:$0xff]  ;;  %v3837_v52 = vor.u32 %v5039_v35, %v3834_v36  ;;  %1981 = vmatpush.bf16.msra.mxu2 %v5142_v47  ;;  %v4968_v35 = vld [vmem:[%s7516_s0 + $0x50] sm:$0xf0]  ;;  %v5161_v36 = vld [vmem:[%s7515_s1 + $0x318] sm:$0xff] }
  0xec   :  { %1931 = vmatpush.bf16.msra.mxu1 %v5135_v38  ;;  %v3536_v38 = vld [vmem:[%s7516_s0 + $0x28] sm:$0xf] }
  0xed   :  { %2030 = vmatpush.bf16.msra.mxu3 %v5150_v56  ;;  %2076 = vmatpush.bf16.msrb.mxu0 %v5161_v36 }
  0xee   :  { %v1613_v59 = vpop.f32.mrf.mxu2  ;;  %v1518_v2 = vpop.f32.mrf.mxu0 }
  0xef   :  { %v1662_v60 = vpop.f32.mrf.mxu3  ;;  %v1614_v0 = vadd.f32 %v1613_v59, %v1565_v41  ;;  %v1567_v3 = vpop.f32.mrf.mxu1 }
  0xf0   :  { %v1568_v6 = vadd.f32 %v1567_v3, %v1518_v2  ;;  %1932 = vmatpush.bf16.msra.mxu1 %v5134_v55  ;;  %v3876_v2 = vld [vmem:[%s7516_s0 + $0x2e8] sm:$0xf]  ;;  %v5057_v3 = vld [vmem:[%s7516_s0 + $0x318] sm:$0xf0] }
  0xf1   :  { %v5968_v11 = vadd.f32 %v1662_v60, %v1614_v0  ;;  %1713 = vmatmul.bf16.gmra.mxu0 %v3773_v61 }
  0xf2   :  { %1762 = vmatmul.bf16.gmra.mxu1 %v3777_v62 }
  0xf3   :  { %1811 = vmatmul.bf16.gmra.mxu2 %v3781_v4  ;;  %v3884_v4 = vld [vmem:[%s7516_s0 + $0x2f0] sm:$0xf] }
  0xf4   :  { %1860 = vmatmul.bf16.gmra.mxu3 %v3785_v5  ;;  %v5051_v5 = vld [vmem:[%s7516_s0 + $0x2ec] sm:$0xf] }
  0xf6   :  { %v1616_v15 = vpop.f32.mrf.mxu2  ;;  %v1520_v20 = vpop.f32.mrf.mxu0 }
  0xf7   :  { %v1665_v16 = vpop.f32.mrf.mxu3  ;;  %v1617_v19 = vadd.f32 %v1616_v15, %v1568_v6  ;;  %v1569_v21 = vpop.f32.mrf.mxu1  ;;  %v3878_v6 = vld [vmem:[%s7516_s0 + $0x31c] sm:$0xf0]  ;;  %v3877_v15 = vor.u32 %v5057_v3, %v3876_v2 }
  0xf8   :  { %v1570_v22 = vadd.f32 %v1569_v21, %v1520_v20  ;;  %v3885_v21 = vor.u32 %v5058_v7, %v3884_v4  ;;  %v3588_v7 = vld [vmem:[%s7516_s0 + $0x90] sm:$0xf] }
  0xf9   :  { %v5988_v25 = vadd.f32 %v1665_v16, %v1617_v19  ;;  %v3881_v16 = vor.u32 %v5051_v5, %v3878_v6  ;;  %v4981_v6 = vld [vmem:[%s7516_s0 + $0xb8] sm:$0xf0] }
  0xfe   :  { %v1618_v40 = vpop.f32.mrf.mxu2  ;;  %v1523_v49 = vpop.f32.mrf.mxu0 }
  0xff   :  { %v1667_v41 = vpop.f32.mrf.mxu3  ;;  %v1619_v48 = vadd.f32 %v1618_v40, %v1570_v22  ;;  %v1572_v50 = vpop.f32.mrf.mxu1  ;;  %v3889_v22 = vor.u32 %v5052_v9, %v3886_v12  ;;  %v3530_v40 = vld [vmem:[%s7516_s0 + $0x54] sm:$0xf0]  ;;  %v4975_v9 = vld [vmem:[%s7516_s0 + $0x8c] sm:$0xf]  ;;  %v4982_v12 = vld [vmem:[%s7516_s0 + $0xc0] sm:$0xf0] }
 0x100   :  { %v1573_v53 = vadd.f32 %v1572_v50, %v1523_v49  ;;  %v3533_v49 = vor.u32 %v4962_v39, %v3530_v40 }
 0x101   :  { %v6038_v57 = vadd.f32 %v1667_v41, %v1619_v48  ;;  %1718 = vmatmul.bf16.gmra.mxu0 %v3825_v42  ;;  %v4969_v41 = vld [vmem:[%s7516_s0 + $0x58] sm:$0xf0]  ;;  %v4963_v42 = vld [vmem:[%s7516_s0 + $0x2c] sm:$0xf]  ;;  %v3529_v48 = vor.u32 %v4968_v35, %v3528_v34 }
 0x102   :  { %1767 = vmatmul.bf16.gmra.mxu1 %v3829_v43  ;;  %v3538_v43 = vld [vmem:[%s7516_s0 + $0x5c] sm:$0xf0] }
 0x103   :  { %1816 = vmatmul.bf16.gmra.mxu2 %v3833_v51  ;;  %v3541_v55 = vor.u32 %v4963_v42, %v3538_v43  ;;  %v5160_v42 = vld [vmem:[%s7515_s1 + $0x310] sm:$0xff]  ;;  %v3640_v43 = vld [vmem:[%s7516_s0 + $0xf8] sm:$0xf] }
 0x104   :  { %1865 = vmatmul.bf16.gmra.mxu3 %v3837_v52  ;;  %2077 = vmatpush.bf16.msrb.mxu0 %v5160_v42 }
 0x106   :  { %v1621_v58 = vpop.f32.mrf.mxu2  ;;  %v1525_v61 = vpop.f32.mrf.mxu0 }
 0x107   :  { %v1670_v59 = vpop.f32.mrf.mxu3  ;;  %v1622_v60 = vadd.f32 %v1621_v58, %v1573_v53  ;;  %v1574_v62 = vpop.f32.mrf.mxu1  ;;  %v3537_v53 = vor.u32 %v4969_v41, %v3536_v38  ;;  %v4994_v41 = vld [vmem:[%s7516_s0 + $0x120] sm:$0xf0] }
 0x108   :  { %v1575_v63 = vadd.f32 %v1574_v62, %v1525_v61 }
 0x109   :  { %v6040_v0 = vadd.f32 %v1670_v59, %v1622_v60 }
 0x10e   :  { %v1623_v13 = vpop.f32.mrf.mxu2  ;;  %v1528_v19 = vpop.f32.mrf.mxu0 }
 0x10f   :  { %v1672_v14 = vpop.f32.mrf.mxu3  ;;  %v1624_v18 = vadd.f32 %v1623_v13, %v1575_v63  ;;  %v1577_v20 = vpop.f32.mrf.mxu1  ;;  %v4976_v13 = vld [vmem:[%s7516_s0 + $0x94] sm:$0xf] }
 0x110   :  { %v1578_v23 = vadd.f32 %v1577_v20, %v1528_v19 }
 0x111   :  { %v6066_v24 = vadd.f32 %v1672_v14, %v1624_v18  ;;  %1723 = vmatmul.bf16.gmra.mxu0 %v3877_v15  ;;  %v3590_v14 = vld [vmem:[%s7516_s0 + $0xc4] sm:$0xf0] }
 0x112   :  { %1772 = vmatmul.bf16.gmra.mxu1 %v3881_v16 }
 0x113   :  { %1821 = vmatmul.bf16.gmra.mxu2 %v3885_v21 }
 0x114   :  { %1870 = vmatmul.bf16.gmra.mxu3 %v3889_v22 }
 0x116   :  { %v1626_v26 = vpop.f32.mrf.mxu2  ;;  %v1530_v29 = vpop.f32.mrf.mxu0 }
 0x117   :  { %v1675_v27 = vpop.f32.mrf.mxu3  ;;  %v1627_v28 = vadd.f32 %v1626_v26, %v1578_v23  ;;  %v1579_v31 = vpop.f32.mrf.mxu1  ;;  %v3589_v23 = vor.u32 %v4982_v12, %v3588_v7  ;;  %v3593_v26 = vor.u32 %v4976_v13, %v3590_v14  ;;  %v5007_v13 = vld [vmem:[%s7516_s0 + $0x188] sm:$0xf0]  ;;  %v3692_v14 = vld [vmem:[%s7516_s0 + $0x160] sm:$0xf] }
 0x118   :  { %v1580_v32 = vadd.f32 %v1579_v31, %v1530_v29 }
 0x119   :  { %v6068_v33 = vadd.f32 %v1675_v27, %v1627_v28 }
 0x11e   :  { %v1628_v46 = vpop.f32.mrf.mxu2  ;;  %v1689_v51 = vpop.f32.mrf.mxu0 }
 0x11f   :  { %v1677_v47 = vpop.f32.mrf.mxu3  ;;  %v1629_v50 = vadd.f32 %v1628_v46, %v1580_v32  ;;  %v1738_v52 = vpop.f32.mrf.mxu1  ;;  %v1690_v56 = vadd.f32 %v1689_v51, %v5779_v54  ;;  %v3580_v54 = vld [vmem:[%s7516_s0 + $0x88] sm:$0xf] }
 0x120   :  { %v3581_v18 = vor.u32 %v4981_v6, %v3580_v54  ;;  %v3634_v46 = vld [vmem:[%s7516_s0 + $0x124] sm:$0xf0] }
 0x121   :  { %v6098_v58 = vadd.f32 %v1677_v47, %v1629_v50  ;;  %v1739_v59 = vadd.f32 %v1738_v52, %v1690_v56  ;;  %1884 = vmatmul.bf16.vlgmr.msra.gmra.mxu0 %v3529_v48  ;;  %v4995_v47 = vld [vmem:[%s7516_s0 + $0x128] sm:$0xf0]  ;;  %v4989_v48 = vld [vmem:[%s7516_s0 + $0xfc] sm:$0xf] }
 0x122   :  { %1933 = vmatmul.bf16.vlgmr.msra.gmra.mxu1 %v3533_v49  ;;  %v3642_v49 = vld [vmem:[%s7516_s0 + $0x12c] sm:$0xf0] }
 0x123   :  { %1982 = vmatmul.bf16.vlgmr.msra.gmra.mxu2 %v3537_v53 }
 0x124   :  { %2031 = vmatmul.bf16.vlgmr.msra.gmra.mxu3 %v3541_v55 }
 0x126   :  { %v1787_v60 = vpop.f32.mrf.mxu2  ;;  %v1691_v63 = vpop.f32.mrf.mxu0 }
 0x127   :  { %v1836_v61 = vpop.f32.mrf.mxu3  ;;  %v1788_v62 = vadd.f32 %v1787_v60, %v1739_v59  ;;  %v1740_v2 = vpop.f32.mrf.mxu1  ;;  %v1692_v3 = vadd.f32 %v1691_v63, %v5808_v10  ;;  %v3582_v10 = vld [vmem:[%s7516_s0 + $0xbc] sm:$0xf0]  ;;  %v3641_v60 = vor.u32 %v4995_v47, %v3640_v43  ;;  %v5020_v47 = vld [vmem:[%s7516_s0 + $0x1f0] sm:$0xf0] }
 0x128   :  { %v3585_v19 = vor.u32 %v4975_v9, %v3582_v10 }
 0x129   :  { %v6101_v4 = vadd.f32 %v1836_v61, %v1788_v62  ;;  %v1741_v5 = vadd.f32 %v1740_v2, %v1692_v3  ;;  %v3645_v61 = vor.u32 %v4989_v48, %v3642_v49  ;;  %v5159_v48 = vld [vmem:[%s7515_s1 + $0x308] sm:$0xff] }
 0x12a   :  { %v3744_v49 = vld [vmem:[%s7516_s0 + $0x1c8] sm:$0xf]  ;;  %2078 = vmatpush.bf16.msrb.mxu0 %v5159_v48  ;;  %v5046_v48 = vld [vmem:[%s7516_s0 + $0x2c0] sm:$0xf0] }
 0x12e   :  { %v1789_v15 = vpop.f32.mrf.mxu2  ;;  %v1694_v21 = vpop.f32.mrf.mxu0 }
 0x12f   :  { %v1838_v16 = vpop.f32.mrf.mxu3  ;;  %v1790_v20 = vadd.f32 %v1789_v15, %v1741_v5  ;;  %v1743_v22 = vpop.f32.mrf.mxu1  ;;  %v1695_v27 = vadd.f32 %v1694_v21, %v5810_v17  ;;  %v3632_v17 = vld [vmem:[%s7516_s0 + $0xf0] sm:$0xf]  ;;  %v5001_v15 = vld [vmem:[%s7516_s0 + $0x15c] sm:$0xf] }
 0x130   :  { %v3633_v52 = vor.u32 %v4994_v41, %v3632_v17 }
 0x131   :  { %v6128_v28 = vadd.f32 %v1838_v16, %v1790_v20  ;;  %v1744_v29 = vadd.f32 %v1743_v22, %v1695_v27  ;;  %1889 = vmatmul.bf16.gmra.mxu0 %v3581_v18  ;;  %v5008_v16 = vld [vmem:[%s7516_s0 + $0x190] sm:$0xf0]  ;;  %v5002_v18 = vld [vmem:[%s7516_s0 + $0x164] sm:$0xf] }
 0x132   :  { %1938 = vmatmul.bf16.gmra.mxu1 %v3585_v19  ;;  %v3694_v19 = vld [vmem:[%s7516_s0 + $0x194] sm:$0xf0] }
 0x133   :  { %1987 = vmatmul.bf16.gmra.mxu2 %v3589_v23 }
 0x134   :  { %2036 = vmatmul.bf16.gmra.mxu3 %v3593_v26 }
 0x136   :  { %v1792_v31 = vpop.f32.mrf.mxu2  ;;  %v1696_v35 = vpop.f32.mrf.mxu0 }
 0x137   :  { %v1841_v32 = vpop.f32.mrf.mxu3  ;;  %v1793_v34 = vadd.f32 %v1792_v31, %v1744_v29  ;;  %v1745_v36 = vpop.f32.mrf.mxu1  ;;  %v1697_v38 = vadd.f32 %v1696_v35, %v5839_v37  ;;  %v4988_v37 = vld [vmem:[%s7516_s0 + $0xf4] sm:$0xf]  ;;  %v3693_v31 = vor.u32 %v5008_v16, %v3692_v14  ;;  %v5033_v16 = vld [vmem:[%s7516_s0 + $0x258] sm:$0xf0] }
 0x138   :  { %v3637_v53 = vor.u32 %v4988_v37, %v3634_v46 }
 0x139   :  { %v6131_v39 = vadd.f32 %v1841_v32, %v1793_v34  ;;  %v1746_v40 = vadd.f32 %v1745_v36, %v1697_v38  ;;  %v3697_v32 = vor.u32 %v5002_v18, %v3694_v19  ;;  %v3796_v18 = vld [vmem:[%s7516_s0 + $0x230] sm:$0xf]  ;;  %v5027_v19 = vld [vmem:[%s7516_s0 + $0x22c] sm:$0xf] }
 0x13e   :  { %v1794_v50 = vpop.f32.mrf.mxu2  ;;  %v1699_v56 = vpop.f32.mrf.mxu0 }
 0x13f   :  { %v1843_v51 = vpop.f32.mrf.mxu3  ;;  %v1795_v55 = vadd.f32 %v1794_v50, %v1746_v40  ;;  %v1748_v59 = vpop.f32.mrf.mxu1  ;;  %v1700_v62 = vadd.f32 %v1699_v56, %v5841_v44  ;;  %v3684_v44 = vld [vmem:[%s7516_s0 + $0x158] sm:$0xf] }
 0x140   :  { %v3685_v22 = vor.u32 %v5007_v13, %v3684_v44  ;;  %v3738_v50 = vld [vmem:[%s7516_s0 + $0x1f4] sm:$0xf0] }
 0x141   :  { %v6161_v63 = vadd.f32 %v1843_v51, %v1795_v55  ;;  %v1749_v2 = vadd.f32 %v1748_v59, %v1700_v62  ;;  %1894 = vmatmul.bf16.gmra.mxu0 %v3633_v52  ;;  %v5021_v51 = vld [vmem:[%s7516_s0 + $0x1f8] sm:$0xf0]  ;;  %v5015_v52 = vld [vmem:[%s7516_s0 + $0x1cc] sm:$0xf] }
 0x142   :  { %1943 = vmatmul.bf16.gmra.mxu1 %v3637_v53  ;;  %v3746_v53 = vld [vmem:[%s7516_s0 + $0x1fc] sm:$0xf0] }
 0x143   :  { %1992 = vmatmul.bf16.gmra.mxu2 %v3641_v60 }
 0x144   :  { %2041 = vmatmul.bf16.gmra.mxu3 %v3645_v61 }
 0x146   :  { %v1797_v3 = vpop.f32.mrf.mxu2  ;;  %v1701_v6 = vpop.f32.mrf.mxu0 }
 0x147   :  { %v1846_v5 = vpop.f32.mrf.mxu3  ;;  %v1798_v54 = vadd.f32 %v1797_v3, %v1749_v2  ;;  %v1750_v7 = vpop.f32.mrf.mxu1  ;;  %v1702_v9 = vadd.f32 %v1701_v6, %v5870_v1  ;;  %v3686_v1 = vld [vmem:[%s7516_s0 + $0x18c] sm:$0xf0]  ;;  %v3745_v3 = vor.u32 %v5021_v51, %v3744_v49  ;;  %v5158_v49 = vld [vmem:[%s7515_s1 + $0x300] sm:$0xff]  ;;  %v5047_v51 = vld [vmem:[%s7516_s0 + $0x2c8] sm:$0xf0] }
 0x148   :  { %v3689_v23 = vor.u32 %v5001_v15, %v3686_v1  ;;  %2079 = vmatpush.bf16.msrb.mxu0 %v5158_v49 }
 0x149   :  { %v6164_v10 = vadd.f32 %v1846_v5, %v1798_v54  ;;  %v1751_v12 = vadd.f32 %v1750_v7, %v1702_v9  ;;  %v3749_v5 = vor.u32 %v5015_v52, %v3746_v53  ;;  %v5041_v52 = vld [vmem:[%s7516_s0 + $0x29c] sm:$0xf]  ;;  %v3850_v53 = vld [vmem:[%s7516_s0 + $0x2cc] sm:$0xf0] }
 0x14e   :  { %v1799_v20 = vpop.f32.mrf.mxu2  ;;  %v1704_v27 = vpop.f32.mrf.mxu0 }
 0x14f   :  { %v1848_v21 = vpop.f32.mrf.mxu3  ;;  %v1800_v26 = vadd.f32 %v1799_v20, %v1751_v12  ;;  %v1753_v29 = vpop.f32.mrf.mxu1  ;;  %v1705_v34 = vadd.f32 %v1704_v27, %v5872_v8  ;;  %v3736_v8 = vld [vmem:[%s7516_s0 + $0x1c0] sm:$0xf]  ;;  %v5034_v20 = vld [vmem:[%s7516_s0 + $0x260] sm:$0xf0] }
 0x150   :  { %v3737_v59 = vor.u32 %v5020_v47, %v3736_v8 }
 0x151   :  { %v6191_v35 = vadd.f32 %v1848_v21, %v1800_v26  ;;  %v1754_v36 = vadd.f32 %v1753_v29, %v1705_v34  ;;  %1899 = vmatmul.bf16.gmra.mxu0 %v3685_v22  ;;  %v5028_v21 = vld [vmem:[%s7516_s0 + $0x234] sm:$0xf]  ;;  %v3798_v22 = vld [vmem:[%s7516_s0 + $0x264] sm:$0xf0]  ;;  %v3797_v34 = vor.u32 %v5034_v20, %v3796_v18  ;;  %v5059_v18 = vld [vmem:[%s7516_s0 + $0x328] sm:$0xf0] }
 0x152   :  { %1948 = vmatmul.bf16.gmra.mxu1 %v3689_v23  ;;  %v5060_v20 = vld [vmem:[%s7516_s0 + $0x330] sm:$0xf0] }
 0x153   :  { %1997 = vmatmul.bf16.gmra.mxu2 %v3693_v31 }
 0x154   :  { %2046 = vmatmul.bf16.gmra.mxu3 %v3697_v32 }
 0x156   :  { %v1802_v38 = vpop.f32.mrf.mxu2  ;;  %v1706_v41 = vpop.f32.mrf.mxu0 }
 0x157   :  { %v1851_v40 = vpop.f32.mrf.mxu3  ;;  %v1803_v17 = vadd.f32 %v1802_v38, %v1754_v36  ;;  %v1755_v42 = vpop.f32.mrf.mxu1  ;;  %v1707_v43 = vadd.f32 %v1706_v41, %v5901_v30  ;;  %v5014_v30 = vld [vmem:[%s7516_s0 + $0x1c4] sm:$0xf]  ;;  %v3801_v36 = vor.u32 %v5028_v21, %v3798_v22  ;;  %v3902_v22 = vld [vmem:[%s7516_s0 + $0x334] sm:$0xf0] }
 0x158   :  { %v3741_v60 = vor.u32 %v5014_v30, %v3738_v50  ;;  %v3848_v30 = vld [vmem:[%s7516_s0 + $0x298] sm:$0xf]  ;;  %v3842_v50 = vld [vmem:[%s7516_s0 + $0x2c4] sm:$0xf0]  ;;  %v5054_v21 = vld [vmem:[%s7516_s0 + $0x304] sm:$0xf] }
 0x159   :  { %v6194_v37 = vadd.f32 %v1851_v40, %v1803_v17  ;;  %v1756_v46 = vadd.f32 %v1755_v42, %v1707_v43 }
 0x15e   :  { %v1804_v55 = vpop.f32.mrf.mxu2  ;;  %v1709_v62 = vpop.f32.mrf.mxu0 }
 0x15f   :  { %v1853_v56 = vpop.f32.mrf.mxu3  ;;  %v1805_v61 = vadd.f32 %v1804_v55, %v1756_v46  ;;  %v1758_v2 = vpop.f32.mrf.mxu1  ;;  %v1710_v54 = vadd.f32 %v1709_v62, %v5921_v45  ;;  %v3788_v45 = vld [vmem:[%s7516_s0 + $0x228] sm:$0xf] }
 0x160   :  { %v3789_v27 = vor.u32 %v5033_v16, %v3788_v45 }
 0x161   :  { %v6224_v6 = vadd.f32 %v1853_v56, %v1805_v61  ;;  %v1759_v7 = vadd.f32 %v1758_v2, %v1710_v54  ;;  %1904 = vmatmul.bf16.gmra.mxu0 %v3737_v59  ;;  %v3849_v2 = vor.u32 %v5047_v51, %v3848_v30 }
 0x162   :  { %1953 = vmatmul.bf16.gmra.mxu1 %v3741_v60 }
 0x163   :  { %2002 = vmatmul.bf16.gmra.mxu2 %v3745_v3  ;;  %v3853_v3 = vor.u32 %v5041_v52, %v3850_v53 }
 0x164   :  { %2051 = vmatmul.bf16.gmra.mxu3 %v3749_v5 }
 0x166   :  { %v1807_v9 = vpop.f32.mrf.mxu2  ;;  %v1711_v13 = vpop.f32.mrf.mxu0 }
 0x167   :  { %v1856_v12 = vpop.f32.mrf.mxu3  ;;  %v1808_v44 = vadd.f32 %v1807_v9, %v1759_v7  ;;  %v6226_v14 = vpop.f32.mrf.mxu1  ;;  %v6229_v15 = vadd.f32 %v1711_v13, %v5968_v11  ;;  %v3790_v11 = vld [vmem:[%s7516_s0 + $0x25c] sm:$0xf0] }
 0x168   :  { %v3793_v29 = vor.u32 %v5027_v19, %v3790_v11  ;;  %v3900_v19 = vld [vmem:[%s7516_s0 + $0x300] sm:$0xf]  ;;  %v5053_v11 = vld [vmem:[%s7516_s0 + $0x2fc] sm:$0xf] }
 0x169   :  { %v6231_v1 = vadd.f32 %v1856_v12, %v1808_v44 }
 0x16e   :  { %v6257_v23 = vpop.f32.mrf.mxu2  ;;  %v1714_v31 = vpop.f32.mrf.mxu0 }
 0x16f   :  { %v6259_v26 = vpop.f32.mrf.mxu3  ;;  %v1763_v32 = vpop.f32.mrf.mxu1  ;;  %v1715_v38 = vadd.f32 %v1714_v31, %v5988_v25  ;;  %v3840_v25 = vld [vmem:[%s7516_s0 + $0x290] sm:$0xf] }
 0x170   :  { %v3841_v59 = vor.u32 %v5046_v48, %v3840_v25 }
 0x171   :  { %v1764_v40 = vadd.f32 %v1763_v32, %v1715_v38  ;;  %1909 = vmatmul.bf16.gmra.mxu0 %v3789_v27  ;;  %v3901_v38 = vor.u32 %v5060_v20, %v3900_v19 }
 0x172   :  { %1958 = vmatmul.bf16.gmra.mxu1 %v3793_v29 }
 0x173   :  { %2007 = vmatmul.bf16.gmra.mxu2 %v3797_v34 }
 0x174   :  { %2056 = vmatmul.bf16.gmra.mxu3 %v3801_v36 }
 0x176   :  { %v1812_v17 = vpop.f32.mrf.mxu2  ;;  %v1716_v43 = vpop.f32.mrf.mxu0 }
 0x177   :  { %v1861_v41 = vpop.f32.mrf.mxu3  ;;  %v1813_v42 = vadd.f32 %v1812_v17, %v1764_v40  ;;  %v6262_v46 = vpop.f32.mrf.mxu1  ;;  %v6265_v8 = vadd.f32 %v1716_v43, %v6038_v57  ;;  %v5040_v57 = vld [vmem:[%s7516_s0 + $0x294] sm:$0xf]  ;;  %v3905_v40 = vor.u32 %v5054_v21, %v3902_v22 }
 0x178   :  { %v3845_v60 = vor.u32 %v5040_v57, %v3842_v50  ;;  %v4970_v50 = vld [vmem:[%s7516_s0 + $0x60] sm:$0xf0] }
 0x179   :  { %v6267_v47 = vadd.f32 %v1861_v41, %v1813_v42 }
 0x17e   :  { %v6296_v55 = vpop.f32.mrf.mxu2  ;;  %v1719_v61 = vpop.f32.mrf.mxu0 }
 0x17f   :  { %v6298_v56 = vpop.f32.mrf.mxu3  ;;  %v1768_v62 = vpop.f32.mrf.mxu1  ;;  %v1720_v5 = vadd.f32 %v1719_v61, %v6040_v0  ;;  %v3892_v0 = vld [vmem:[%s7516_s0 + $0x2f8] sm:$0xf] }
 0x180   :  { %v3893_v31 = vor.u32 %v5059_v18, %v3892_v0 }
 0x181   :  { %v1769_v54 = vadd.f32 %v1768_v62, %v1720_v5  ;;  %1914 = vmatmul.bf16.gmra.mxu0 %v3841_v59 }
 0x182   :  { %1963 = vmatmul.bf16.gmra.mxu1 %v3845_v60 }
 0x183   :  { %2012 = vmatmul.bf16.gmra.mxu2 %v3849_v2 }
 0x184   :  { %2061 = vmatmul.bf16.gmra.mxu3 %v3853_v3 }
 0x186   :  { %v1817_v7 = vpop.f32.mrf.mxu2  ;;  %v1721_v44 = vpop.f32.mrf.mxu0 }
 0x187   :  { %v1866_v9 = vpop.f32.mrf.mxu3  ;;  %v1818_v12 = vadd.f32 %v1817_v7, %v1769_v54  ;;  %v6301_v13 = vpop.f32.mrf.mxu1  ;;  %v6304_v45 = vadd.f32 %v1721_v44, %v6066_v24  ;;  %v3894_v24 = vld [vmem:[%s7516_s0 + $0x32c] sm:$0xf0] }
 0x188   :  { %v3897_v32 = vor.u32 %v5053_v11, %v3894_v24 }
 0x189   :  { %v6306_v16 = vadd.f32 %v1866_v9, %v1818_v12  ;;  %v3596_v12 = vld [vmem:[%s7516_s0 + $0x98] sm:$0xf] }
 0x18e   :  { %v6332_v27 = vpop.f32.mrf.mxu2  ;;  %v1724_v34 = vpop.f32.mrf.mxu0 }
 0x18f   :  { %v6334_v29 = vpop.f32.mrf.mxu3  ;;  %v1773_v36 = vpop.f32.mrf.mxu1  ;;  %v1725_v17 = vadd.f32 %v1724_v34, %v6068_v33  ;;  %v3544_v33 = vld [vmem:[%s7516_s0 + $0x30] sm:$0xf] }
 0x190   :  { %v3545_v53 = vor.u32 %v4970_v50, %v3544_v33 }
 0x191   :  { %v1774_v41 = vadd.f32 %v1773_v36, %v1725_v17  ;;  %1919 = vmatmul.bf16.gmra.mxu0 %v3893_v31 }
 0x192   :  { %1968 = vmatmul.bf16.gmra.mxu1 %v3897_v32 }
 0x193   :  { %2017 = vmatmul.bf16.gmra.mxu2 %v3901_v38  ;;  %v3648_v38 = vld [vmem:[%s7516_s0 + $0x100] sm:$0xf] }
 0x194   :  { %2066 = vmatmul.bf16.gmra.mxu3 %v3905_v40 }
 0x196   :  { %v1822_v42 = vpop.f32.mrf.mxu2  ;;  %v1726_v48 = vpop.f32.mrf.mxu0 }
 0x197   :  { %v1871_v43 = vpop.f32.mrf.mxu3  ;;  %v1823_v25 = vadd.f32 %v1822_v42, %v1774_v41  ;;  %v6337_v49 = vpop.f32.mrf.mxu1  ;;  %v6340_v30 = vadd.f32 %v1726_v48, %v6098_v58 }
 0x199   :  { %v6342_v57 = vadd.f32 %v1871_v43, %v1823_v25 }
 0x19e   :  { %v6350_v51 = vpop.f32.mrf.mxu2  ;;  %v1885_v59 = vpop.f32.mrf.mxu0 }
 0x19f   :  { %v6352_v52 = vpop.f32.mrf.mxu3  ;;  %v1934_v60 = vpop.f32.mrf.mxu1  ;;  %v1886_v58 = vadd.f32 %v1885_v59, %v6101_v4  ;;  %v4983_v4 = vld [vmem:[%s7516_s0 + $0xc8] sm:$0xf0] }
 0x1a0   :  { %v3597_v18 = vor.u32 %v4983_v4, %v3596_v12 }
 0x1a1   :  { %v1935_v61 = vadd.f32 %v1934_v60, %v1886_v58  ;;  %4310 = vmatmul.msk.bf16.vlgmr.msrb.gmra.mxu0 %vm1459_vm0, %v3545_v53 }
 0x1a6   :  { %v1983_v62 = vpop.f32.mrf.mxu2  ;;  %v1887_v5 = vpop.f32.mrf.mxu0 }
 0x1a7   :  { %v2032_v2 = vpop.f32.mrf.mxu3  ;;  %v1984_v3 = vadd.f32 %v1983_v62, %v1935_v61  ;;  %v6356_v54 = vpop.f32.mrf.mxu1  ;;  %v6359_v7 = vadd.f32 %v1887_v5, %v6128_v28  ;;  %v3700_v61 = vld [vmem:[%s7516_s0 + $0x168] sm:$0xf] }
 0x1a9   :  { %v6361_v9 = vadd.f32 %v2032_v2, %v1984_v3 }
 0x1ae   :  { %v6369_v44 = vpop.f32.mrf.mxu2  ;;  %v1890_v19 = vpop.f32.mrf.mxu0 }
 0x1af   :  { %v6371_v0 = vpop.f32.mrf.mxu3  ;;  %v1939_v11 = vpop.f32.mrf.mxu1  ;;  %v1891_v28 = vadd.f32 %v1890_v19, %v6131_v39  ;;  %v4996_v39 = vld [vmem:[%s7516_s0 + $0x130] sm:$0xf0] }
 0x1b0   :  { %v3649_v41 = vor.u32 %v4996_v39, %v3648_v38 }
 0x1b1   :  { %v1940_v24 = vadd.f32 %v1939_v11, %v1891_v28  ;;  %4311 = vmatmul.msk.bf16.gmra.mxu0 %vm1459_vm0, %v3597_v18 }
 0x1b6   :  { %v1988_v20 = vpop.f32.mrf.mxu2  ;;  %v1892_v31 = vpop.f32.mrf.mxu0 }
 0x1b7   :  { %v2037_v21 = vpop.f32.mrf.mxu3  ;;  %v1989_v22 = vadd.f32 %v1988_v20, %v1940_v24  ;;  %v6375_v32 = vpop.f32.mrf.mxu1  ;;  %v6378_v34 = vadd.f32 %v1892_v31, %v6161_v63 }
 0x1b9   :  { %v6380_v36 = vadd.f32 %v2037_v21, %v1989_v22  ;;  %v3752_v21 = vld [vmem:[%s7516_s0 + $0x1d0] sm:$0xf] }
 0x1be   :  { %v6388_v40 = vpop.f32.mrf.mxu2  ;;  %v1895_v42 = vpop.f32.mrf.mxu0 }
 0x1bf   :  { %v6390_v17 = vpop.f32.mrf.mxu3  ;;  %v1944_v43 = vpop.f32.mrf.mxu1  ;;  %v1896_v63 = vadd.f32 %v1895_v42, %v6164_v10  ;;  %v5009_v10 = vld [vmem:[%s7516_s0 + $0x198] sm:$0xf0] }
 0x1c0   :  { %v3701_v3 = vor.u32 %v5009_v10, %v3700_v61 }
 0x1c1   :  { %v1945_v25 = vadd.f32 %v1944_v43, %v1896_v63  ;;  %4312 = vmatmul.msk.bf16.gmra.mxu0 %vm1459_vm0, %v3649_v41  ;;  %v5035_v41 = vld [vmem:[%s7516_s0 + $0x268] sm:$0xf0] }
 0x1c6   :  { %v1993_v48 = vpop.f32.mrf.mxu2  ;;  %v1897_v53 = vpop.f32.mrf.mxu0 }
 0x1c7   :  { %v2042_v33 = vpop.f32.mrf.mxu3  ;;  %v1994_v50 = vadd.f32 %v1993_v48, %v1945_v25  ;;  %v6394_v59 = vpop.f32.mrf.mxu1  ;;  %v6397_v60 = vadd.f32 %v1897_v53, %v6191_v35  ;;  %v3856_v25 = vld [vmem:[%s7516_s0 + $0x2a0] sm:$0xf]  ;;  %v5048_v48 = vld [vmem:[%s7516_s0 + $0x2d0] sm:$0xf0]  ;;  %v1771_v53 = vadd.f32 %v6301_v13, %v6304_v45  ;;  %v4440_v45 = vld [vmem:[%s7518_s3 + $0x1e8] sm:$0xf] }
 0x1c8   :  { %v4434_v13 = vld [vmem:[%s7518_s3 + $0x1f0] sm:$0xf0] }
 0x1c9   :  { %v6399_v58 = vadd.f32 %v2042_v33, %v1994_v50  ;;  %v3857_v33 = vor.u32 %v5048_v48, %v3856_v25  ;;  %v1820_v61 = vadd.f32 %v6332_v27, %v1771_v53  ;;  %v5225_v27 = vld [vmem:[%s7518_s3 + $0x1f4] sm:$0xf0]  ;;  %v1937_v48 = vadd.f32 %v6356_v54, %v6359_v7  ;;  %v4416_v53 = vld [vmem:[%s7518_s3 + $0x1c0] sm:$0xf]  ;;  %v5214_v54 = vld [vmem:[%s7518_s3 + $0x1a4] sm:$0xf] }
 0x1ca   :  { %v4402_v7 = vld [vmem:[%s7518_s3 + $0x1b0] sm:$0xf0] }
 0x1cb   :  { %v1869_v10 = vadd.f32 %v6334_v29, %v1820_v61  ;;  %v4441_v29 = vor.u32 %v5225_v27, %v4440_v45  ;;  %v5220_v61 = vld [vmem:[%s7518_s3 + $0x1cc] sm:$0xf0]  ;;  %v1942_v27 = vadd.f32 %v6375_v32, %v6378_v34  ;;  %v5210_v32 = vld [vmem:[%s7518_s3 + $0x184] sm:$0xf]  ;;  %v4386_v34 = vld [vmem:[%s7518_s3 + $0x190] sm:$0xf0] }
 0x1cd   :  { %2397 = vmatpush.bf16.msrb.mxu3 %v4441_v29 }
 0x1ce   :  { %v6407_v62 = vpop.f32.mrf.mxu2  ;;  %v1900_v5 = vpop.f32.mrf.mxu0 }
 0x1cf   :  { %v6409_v2 = vpop.f32.mrf.mxu3  ;;  %v1949_v12 = vpop.f32.mrf.mxu1  ;;  %v1901_v35 = vadd.f32 %v1900_v5, %v6194_v37  ;;  %v5022_v37 = vld [vmem:[%s7516_s0 + $0x200] sm:$0xf0] }
 0x1d0   :  { %v3753_v22 = vor.u32 %v5022_v37, %v3752_v21  ;;  %v4432_v21 = vld [vmem:[%s7518_s3 + $0x1e0] sm:$0xf]  ;;  %v5224_v37 = vld [vmem:[%s7518_s3 + $0x1ec] sm:$0xf0] }
 0x1d1   :  { %v1950_v4 = vadd.f32 %v1949_v12, %v1901_v35  ;;  %4313 = vmatmul.msk.bf16.gmra.mxu0 %vm1459_vm0, %v3701_v3  ;;  %v5222_v12 = vld [vmem:[%s7518_s3 + $0x1e4] sm:$0xf]  ;;  %v3908_v35 = vld [vmem:[%s7516_s0 + $0x308] sm:$0xf] }
 0x1d6   :  { %v1998_v18 = vpop.f32.mrf.mxu2  ;;  %v1902_v28 = vpop.f32.mrf.mxu0 }
 0x1d7   :  { %v2047_v19 = vpop.f32.mrf.mxu3  ;;  %v1999_v11 = vadd.f32 %v1998_v18, %v1950_v4  ;;  %v6414_v24 = vadd.f32 %v1902_v28, %v6224_v6  ;;  %v3804_v6 = vld [vmem:[%s7516_s0 + $0x238] sm:$0xf]  ;;  %v5061_v4 = vld [vmem:[%s7516_s0 + $0x338] sm:$0xf0] }
 0x1d8   :  { %v3805_v42 = vor.u32 %v5035_v41, %v3804_v6  ;;  %v3909_v18 = vor.u32 %v5061_v4, %v3908_v35  ;;  %v4418_v41 = vld [vmem:[%s7518_s3 + $0x1d0] sm:$0xf0]  ;;  %v1991_v35 = vadd.f32 %v6388_v40, %v1942_v27  ;;  %v4400_v4 = vld [vmem:[%s7518_s3 + $0x1a0] sm:$0xf]  ;;  %v4389_v40 = vor.u32 %v5210_v32, %v4386_v34  ;;  %v5200_v34 = vld [vmem:[%s7518_s3 + $0x12c] sm:$0xf0] }
 0x1d9   :  { %v6416_v20 = vadd.f32 %v2047_v19, %v1999_v11  ;;  %v1776_v11 = vadd.f32 %v6337_v49, %v6340_v30  ;;  %v4336_v32 = vld [vmem:[%s7518_s3 + $0x120] sm:$0xf] }
 0x1de   :  { %v1905_v31 = vpop.f32.mrf.mxu0 }
 0x1df   :  { %v6425_v38 = vadd.f32 %v1905_v31, %v6231_v1  ;;  %v1825_v31 = vadd.f32 %v6350_v51, %v1776_v11  ;;  %v4424_v51 = vld [vmem:[%s7518_s3 + $0x1c8] sm:$0xf]  ;;  %v2040_v11 = vadd.f32 %v6390_v17, %v1991_v35  ;;  %v5213_v17 = vld [vmem:[%s7518_s3 + $0x194] sm:$0xf0]  ;;  %v4354_v35 = vld [vmem:[%s7518_s3 + $0x150] sm:$0xf0] }
 0x1e1   :  { %4314 = vmatmul.msk.bf16.gmra.mxu0 %vm1459_vm0, %v3753_v22  ;;  %v4433_v22 = vor.u32 %v5224_v37, %v4432_v21  ;;  %v1874_v6 = vadd.f32 %v6352_v52, %v1825_v31  ;;  %v5221_v52 = vld [vmem:[%s7518_s3 + $0x1d4] sm:$0xf0] }
 0x1e3   :  { %2371 = vmatpush.bf16.msrb.mxu1 %v4433_v22  ;;  %v1951_v22 = vpop.f32.mrf.mxu1 }
 0x1e6   :  { %v6428_v39 = vpop.f32.mrf.mxu0 }
 0x1ee   :  { %v1910_v43 = vpop.f32.mrf.mxu0 }
 0x1ef   :  { %v6437_v63 = vadd.f32 %v1910_v43, %v6267_v47  ;;  %v4425_v43 = vor.u32 %v5221_v52, %v4424_v51  ;;  %v4384_v52 = vld [vmem:[%s7518_s3 + $0x180] sm:$0xf] }
 0x1f1   :  { %4315 = vmatmul.msk.bf16.gmra.mxu0 %vm1459_vm0, %v3805_v42  ;;  %2398 = vmatpush.bf16.msrb.mxu3 %v4425_v43  ;;  %v5212_v43 = vld [vmem:[%s7518_s3 + $0x18c] sm:$0xf0] }
 0x1f6   :  { %v6440_v1 = vpop.f32.mrf.mxu0 }
 0x1fe   :  { %v1915_v50 = vpop.f32.mrf.mxu0 }
 0x1ff   :  { %v6451_v47 = vadd.f32 %v1915_v50, %v6306_v16  ;;  %v4437_v16 = vor.u32 %v5222_v12, %v4434_v13  ;;  %v1986_v50 = vadd.f32 %v6369_v44, %v1937_v48  ;;  %v4405_v44 = vor.u32 %v5214_v54, %v4402_v7 }
 0x200   :  { %v4385_v48 = vor.u32 %v5212_v43, %v4384_v52 }
 0x201   :  { %4316 = vmatmul.msk.bf16.gmra.mxu0 %vm1459_vm0, %v3857_v33  ;;  %2384 = vmatpush.bf16.msrb.mxu2 %v4437_v16 }
 0x206   :  { %v1917_v3 = vpop.f32.mrf.mxu0 }
 0x207   :  { %v6456_v5 = vadd.f32 %v1917_v3, %v1869_v10  ;;  %v4417_v10 = vor.u32 %v5220_v61, %v4416_v53  ;;  %v2035_v3 = vadd.f32 %v6371_v0, %v1986_v50  ;;  %v5217_v0 = vld [vmem:[%s7518_s3 + $0x1b4] sm:$0xf0]  ;;  %v5206_v50 = vld [vmem:[%s7518_s3 + $0x164] sm:$0xf] }
 0x209   :  { %2372 = vmatpush.bf16.msrb.mxu1 %v4417_v10  ;;  %v4376_v10 = vld [vmem:[%s7518_s3 + $0x168] sm:$0xf] }
 0x20e   :  { %v1920_v19 = vpop.f32.mrf.mxu0 }
 0x20f   :  { %v6479_v28 = vadd.f32 %v1920_v19, %v6342_v57  ;;  %v5218_v57 = vld [vmem:[%s7518_s3 + $0x1c4] sm:$0xf] }
 0x210   :  { %v4421_v42 = vor.u32 %v5218_v57, %v4418_v41  ;;  %v1947_v57 = vadd.f32 %v6394_v59, %v6397_v60  ;;  %v6575_v60 = vpop.f32.mrf.mxu1 }
 0x211   :  { %4317 = vmatmul.msk.bf16.gmra.mxu0 %vm1459_vm0, %v3909_v18  ;;  %v5216_v18 = vld [vmem:[%s7518_s3 + $0x1ac] sm:$0xf0] }
 0x212   :  { %2385 = vmatpush.bf16.msrb.mxu2 %v4421_v42  ;;  %v4401_v19 = vor.u32 %v5216_v18, %v4400_v4  ;;  %v1996_v51 = vadd.f32 %v6407_v62, %v1947_v57  ;;  %v5208_v62 = vld [vmem:[%s7518_s3 + $0x16c] sm:$0xf0]  ;;  %v4360_v4 = vld [vmem:[%s7518_s3 + $0x148] sm:$0xf]  ;;  %v5205_v18 = vld [vmem:[%s7518_s3 + $0x154] sm:$0xf0] }
 0x213   :  { %v5201_v57 = vld [vmem:[%s7518_s3 + $0x134] sm:$0xf0] }
 0x214   :  { %2373 = vmatpush.bf16.msrb.mxu1 %v4401_v19  ;;  %v2045_v59 = vadd.f32 %v6409_v2, %v1996_v51  ;;  %v4370_v2 = vld [vmem:[%s7518_s3 + $0x170] sm:$0xf0]  ;;  %v1952_v51 = vadd.f32 %v1951_v22, %v6414_v24  ;;  %v5288_v24 = vld [vmem:[%s7518_s3 + $0x3ec] sm:$0xf0]  ;;  %v1761_v22 = vadd.f32 %v6226_v14, %v6229_v15  ;;  %v4328_v14 = vld [vmem:[%s7518_s3 + $0x108] sm:$0xf] }
 0x215   :  { %v4373_v54 = vor.u32 %v5206_v50, %v4370_v2  ;;  %v4816_v50 = vld [vmem:[%s7518_s3 + $0x3e0] sm:$0xf]  ;;  %v5194_v2 = vld [vmem:[%s7518_s3 + $0x104] sm:$0xf]  ;;  %v5197_v15 = vld [vmem:[%s7518_s3 + $0x114] sm:$0xf0] }
 0x216   :  { %v1922_v49 = vpop.f32.mrf.mxu0  ;;  %2386 = vmatpush.bf16.msrb.mxu2 %v4405_v44 }
 0x217   :  { %v6490_v30 = vadd.f32 %v1922_v49, %v1874_v6  ;;  %v2000_v6 = vpop.f32.mrf.mxu2 }
 0x218   :  { %2374 = vmatpush.bf16.msrb.mxu1 %v4385_v48  ;;  %v6640_v52 = vpop.f32.mrf.mxu1 }
 0x21a   :  { %2387 = vmatpush.bf16.msrb.mxu2 %v4389_v40 }
 0x21e   :  { %v2081_v25 = vpop.f32.mrf.mxu0  ;;  %2388 = vmatpush.bf16.msrb.mxu2 %v4373_v54 }
 0x21f   :  { %v6507_v33 = vadd.f32 %v2081_v25, %v6361_v9  ;;  %v4408_v9 = vld [vmem:[%s7518_s3 + $0x1a8] sm:$0xf]  ;;  %v6572_v25 = vpop.f32.mrf.mxu3 }
 0x220   :  { %v4409_v45 = vor.u32 %v5217_v0, %v4408_v9  ;;  %v6597_v9 = vpop.f32.mrf.mxu2  ;;  %v4352_v0 = vld [vmem:[%s7518_s3 + $0x140] sm:$0xf] }
 0x222   :  { %2399 = vmatpush.bf16.msrb.mxu3 %v4409_v45  ;;  %v5204_v45 = vld [vmem:[%s7518_s3 + $0x14c] sm:$0xf0] }
 0x223   :  { %v4353_v27 = vor.u32 %v5204_v45, %v4352_v0  ;;  %v1810_v0 = vadd.f32 %v6257_v23, %v1761_v22  ;;  %v4329_v45 = vor.u32 %v5197_v15, %v4328_v14  ;;  %v5215_v22 = vld [vmem:[%s7518_s3 + $0x1ac] sm:$0xf] }
 0x226   :  { %v2083_v12 = vpop.f32.mrf.mxu0 }
 0x227   :  { %v6517_v13 = vadd.f32 %v2083_v12, %v2035_v3  ;;  %v5209_v3 = vld [vmem:[%s7518_s3 + $0x174] sm:$0xf0] }
 0x228   :  { %v4377_v7 = vor.u32 %v5209_v3, %v4376_v10  ;;  %v4322_v10 = vld [vmem:[%s7518_s3 + $0x110] sm:$0xf0] }
 0x229   :  { %v4325_v54 = vor.u32 %v5194_v2, %v4322_v10  ;;  %v4530_v2 = vld [vmem:[%s7518_s3 + $0xb0] sm:$0xf0] }
 0x22e   :  { %v2086_v16 = vpop.f32.mrf.mxu0 }
 0x22f   :  { %v6534_v29 = vadd.f32 %v2086_v16, %v6380_v36  ;;  %v4392_v36 = vld [vmem:[%s7518_s3 + $0x188] sm:$0xf]  ;;  %v5202_v16 = vld [vmem:[%s7518_s3 + $0x144] sm:$0xf] }
 0x230   :  { %v4393_v31 = vor.u32 %v5213_v17, %v4392_v36  ;;  %v4357_v19 = vor.u32 %v5202_v16, %v4354_v35  ;;  %v5198_v36 = vld [vmem:[%s7518_s3 + $0x124] sm:$0xf]  ;;  %v4337_v17 = vor.u32 %v5200_v34, %v4336_v32  ;;  %v4442_v16 = vld [vmem:[%s7518_s3 + $0x1f8] sm:$0xf0]  ;;  %v5192_v35 = vld [vmem:[%s7518_s3 + $0xec] sm:$0xf0] }
 0x232   :  { %2400 = vmatpush.bf16.msrb.mxu3 %v4393_v31  ;;  %2389 = vmatpush.bf16.msrb.mxu2 %v4357_v19  ;;  %v4338_v31 = vld [vmem:[%s7518_s3 + $0x130] sm:$0xf0]  ;;  %v5190_v19 = vld [vmem:[%s7518_s3 + $0xe4] sm:$0xf] }
 0x233   :  { %v4341_v48 = vor.u32 %v5198_v36, %v4338_v31  ;;  %v1955_v31 = vadd.f32 %v6575_v60, %v6425_v38  ;;  %v1859_v60 = vadd.f32 %v6259_v26, %v1810_v0  ;;  %v5184_v26 = vld [vmem:[%s7518_s3 + $0xac] sm:$0xf0] }
 0x235   :  { %v1908_v10 = vadd.f32 %v6428_v39, %v1859_v60  ;;  %v4512_v39 = vld [vmem:[%s7518_s3 + $0x80] sm:$0xf] }
 0x236   :  { %v2088_v21 = vpop.f32.mrf.mxu0  ;;  %2401 = vmatpush.bf16.msrb.mxu3 %v4377_v7  ;;  %2390 = vmatpush.bf16.msrb.mxu2 %v4341_v48  ;;  %v5223_v7 = vld [vmem:[%s7518_s3 + $0x1ec] sm:$0xf]  ;;  %v5186_v48 = vld [vmem:[%s7518_s3 + $0xc4] sm:$0xf] }
 0x237   :  { %v6544_v37 = vadd.f32 %v2088_v21, %v2040_v11  ;;  %v4361_v11 = vor.u32 %v5205_v18, %v4360_v4  ;;  %v6619_v21 = vpop.f32.mrf.mxu3  ;;  %v4445_v18 = vor.u32 %v5223_v7, %v4442_v16  ;;  %v4394_v16 = vld [vmem:[%s7518_s3 + $0x198] sm:$0xf0] }
 0x23a   :  { %2402 = vmatpush.bf16.msrb.mxu3 %v4361_v11  ;;  %2391 = vmatpush.bf16.msrb.mxu2 %v4325_v54  ;;  %v4562_v11 = vld [vmem:[%s7518_s3 + $0xf0] sm:$0xf0] }
 0x23b   :  { %v4565_v36 = vor.u32 %v5190_v19, %v4562_v11 }
 0x23e   :  { %v2091_v49 = vpop.f32.mrf.mxu0 }
 0x23f   :  { %v6561_v41 = vadd.f32 %v2091_v49, %v6399_v58  ;;  %v4368_v58 = vld [vmem:[%s7518_s3 + $0x160] sm:$0xf]  ;;  %v4344_v49 = vld [vmem:[%s7518_s3 + $0x128] sm:$0xf]  ;;  %v6695_v32 = vpop.f32.mrf.mxu3 }
 0x240   :  { %v4369_v61 = vor.u32 %v5208_v62, %v4368_v58  ;;  %v2001_v58 = vadd.f32 %v2000_v6, %v1952_v51  ;;  %v6658_v6 = vpop.f32.mrf.mxu2  ;;  %v5188_v51 = vld [vmem:[%s7518_s3 + $0xcc] sm:$0xf0] }
 0x241   :  { %v2121_v42 = vmax.f32 %v6507_v33, %v6561_v41  ;;  %v5176_v41 = vld [vmem:[%s7518_s3 + $0x6c] sm:$0xf0] }
 0x242   :  { %2375 = vmatpush.bf16.msrb.mxu1 %v4369_v61  ;;  %v5196_v61 = vld [vmem:[%s7518_s3 + $0x10c] sm:$0xf0]  ;;  %v2050_v4 = vadd.f32 %v6572_v25, %v2001_v58  ;;  %v5219_v25 = vld [vmem:[%s7518_s3 + $0x1cc] sm:$0xf] }
 0x246   :  { %v2093_v53 = vpop.f32.mrf.mxu0  ;;  %2376 = vmatpush.bf16.msrb.mxu1 %v4353_v27  ;;  %v4560_v27 = vld [vmem:[%s7518_s3 + $0xe0] sm:$0xf] }
 0x247   :  { %v6595_v12 = vadd.f32 %v2093_v53, %v2045_v59  ;;  %v4345_v59 = vor.u32 %v5201_v57, %v4344_v49  ;;  %v4817_v53 = vor.u32 %v5288_v24, %v4816_v50  ;;  %v4561_v23 = vor.u32 %v5192_v35, %v4560_v27  ;;  %v1959_v24 = vpop.f32.mrf.mxu1  ;;  %v6762_v19 = vpop.f32.mrf.mxu3 }
 0x248   :  { %v2004_v50 = vadd.f32 %v6597_v9, %v1955_v31  ;;  %v5182_v9 = vld [vmem:[%s7518_s3 + $0xa4] sm:$0xf]  ;;  %v2008_v14 = vpop.f32.mrf.mxu2  ;;  %v1957_v27 = vadd.f32 %v6640_v52, %v1908_v10  ;;  %v4482_v10 = vld [vmem:[%s7518_s3 + $0x50] sm:$0xf0] }
 0x249   :  { %v2124_v44 = vmax.f32 %v6517_v13, %v6595_v12  ;;  %2403 = vmatpush.bf16.msrb.mxu3 %v4345_v59  ;;  %3077 = vmatpush.bf16.msra.mxu0 %v4817_v53  ;;  %v4546_v59 = vld [vmem:[%s7518_s3 + $0xd0] sm:$0xf0]  ;;  %v4410_v53 = vld [vmem:[%s7518_s3 + $0x1b8] sm:$0xf0]  ;;  %v4533_v15 = vor.u32 %v5182_v9, %v4530_v2  ;;  %v5172_v9 = vld [vmem:[%s7518_s3 + $0x4c] sm:$0xf0] }
 0x24a   :  { %2377 = vmatpush.bf16.msrb.mxu1 %v4337_v17  ;;  %v4544_v17 = vld [vmem:[%s7518_s3 + $0xc0] sm:$0xf]  ;;  %2583 = vmatpush.bf16.msra.mxu2 %v4561_v23  ;;  %v4549_v38 = vor.u32 %v5186_v48, %v4546_v59  ;;  %v2053_v7 = vadd.f32 %v6619_v21, %v2004_v50  ;;  %v5180_v21 = vld [vmem:[%s7518_s3 + $0x8c] sm:$0xf0]  ;;  %v4514_v23 = vld [vmem:[%s7518_s3 + $0x90] sm:$0xf0] }
 0x24b   :  { %v4545_v58 = vor.u32 %v5188_v51, %v4544_v17  ;;  %v4513_v52 = vor.u32 %v5180_v21, %v4512_v39  ;;  %v4496_v17 = vld [vmem:[%s7518_s3 + $0x60] sm:$0xf]  ;;  %v5170_v2 = vld [vmem:[%s7518_s3 + $0x44] sm:$0xf]  ;;  %v5199_v39 = vld [vmem:[%s7518_s3 + $0x12c] sm:$0xf] }
 0x24c   :  { %v4497_v51 = vor.u32 %v5176_v41, %v4496_v17  ;;  %v5168_v12 = vld [vmem:[%s7518_s3 + $0x2c] sm:$0xf0]  ;;  %v4448_v17 = vld [vmem:[%s7518_s3] sm:$0xf] }
 0x24d   :  { %2404 = vmatpush.bf16.msrb.mxu3 %v4329_v45  ;;  %v5211_v45 = vld [vmem:[%s7518_s3 + $0x18c] sm:$0xf]  ;;  %v5164_v41 = vld [vmem:[%s7518_s3 + $0xc] sm:$0xf0] }
 0x24e   :  { %v2096_v40 = vpop.f32.mrf.mxu0  ;;  %2584 = vmatpush.bf16.msra.mxu2 %v4545_v58 }
 0x24f   :  { %v6643_v43 = vadd.f32 %v2096_v40, %v6416_v20  ;;  %v4320_v20 = vld [vmem:[%s7518_s3 + $0x100] sm:$0xf]  ;;  %v4426_v40 = vld [vmem:[%s7518_s3 + $0x1d8] sm:$0xf0]  ;;  %v1961_v31 = vpop.f32.mrf.mxu1 }
 0x250   :  { %v4321_v3 = vor.u32 %v5196_v61, %v4320_v20  ;;  %v4429_v57 = vor.u32 %v5219_v25, %v4426_v40  ;;  %v4528_v61 = vld [vmem:[%s7518_s3 + $0xa0] sm:$0xf]  ;;  %v5207_v25 = vld [vmem:[%s7518_s3 + $0x16c] sm:$0xf]  ;;  %v4378_v40 = vld [vmem:[%s7518_s3 + $0x178] sm:$0xf0]  ;;  %v2010_v60 = vpop.f32.mrf.mxu2 }
 0x251   :  { %v2127_v62 = vmax.f32 %v6534_v29, %v6643_v43  ;;  %2596 = vmatpush.bf16.msra.mxu3 %v4565_v36  ;;  %v4529_v54 = vor.u32 %v5184_v26, %v4528_v61  ;;  %v4381_v33 = vor.u32 %v5207_v25, %v4378_v40  ;;  %v4480_v61 = vld [vmem:[%s7518_s3 + $0x40] sm:$0xf]  ;;  %v1960_v26 = vadd.f32 %v1959_v24, %v6437_v63  ;;  %v5195_v25 = vld [vmem:[%s7518_s3 + $0x10c] sm:$0xf]  ;;  %v4330_v40 = vld [vmem:[%s7518_s3 + $0x118] sm:$0xf0] }
 0x252   :  { %2378 = vmatpush.bf16.msrb.mxu1 %v4321_v3  ;;  %v4413_v3 = vor.u32 %v5215_v22, %v4410_v53  ;;  %v5203_v22 = vld [vmem:[%s7518_s3 + $0x14c] sm:$0xf]  ;;  %v4362_v53 = vld [vmem:[%s7518_s3 + $0x158] sm:$0xf0]  ;;  %v4485_v63 = vor.u32 %v5170_v2, %v4482_v10  ;;  %v4784_v24 = vld [vmem:[%s7518_s3 + $0x3a0] sm:$0xf] }
 0x253   :  { %2585 = vmatpush.bf16.msra.mxu2 %v4529_v54  ;;  %v5280_v54 = vld [vmem:[%s7518_s3 + $0x3ac] sm:$0xf0]  ;;  %v4736_v29 = vld [vmem:[%s7518_s3 + $0x340] sm:$0xf] }
 0x254   :  { %v5268_v43 = vld [vmem:[%s7518_s3 + $0x34c] sm:$0xf0]  ;;  %v4720_v2 = vld [vmem:[%s7518_s3 + $0x320] sm:$0xf] }
 0x255   :  { %2597 = vmatpush.bf16.msra.mxu3 %v4549_v38  ;;  %v5264_v10 = vld [vmem:[%s7518_s3 + $0x32c] sm:$0xf0] }
 0x256   :  { %v2098_v34 = vpop.f32.mrf.mxu0  ;;  %2410 = vmatpush.bf16.msra.mxu1 %v4445_v18  ;;  %v5178_v18 = vld [vmem:[%s7518_s3 + $0x84] sm:$0xf] }
 0x257   :  { %v6708_v49 = vadd.f32 %v2098_v34, %v2050_v4  ;;  %v4397_v4 = vor.u32 %v5211_v45, %v4394_v16  ;;  %v4517_v11 = vor.u32 %v5178_v18, %v4514_v23  ;;  %v2006_v34 = vadd.f32 %v6658_v6, %v1957_v27  ;;  %2586 = vmatpush.bf16.msra.mxu2 %v4513_v52  ;;  %v2059_v16 = vpop.f32.mrf.mxu3  ;;  %v4346_v27 = vld [vmem:[%s7518_s3 + $0x138] sm:$0xf0]  ;;  %v5276_v18 = vld [vmem:[%s7518_s3 + $0x38c] sm:$0xf0]  ;;  %v1964_v52 = vpop.f32.mrf.mxu1 }
 0x258   :  { %v1766_v6 = vadd.f32 %v6262_v46, %v6265_v8  ;;  %v4800_v46 = vld [vmem:[%s7518_s3 + $0x3c0] sm:$0xf]  ;;  %v5284_v8 = vld [vmem:[%s7518_s3 + $0x3cc] sm:$0xf0]  ;;  %v4785_v45 = vor.u32 %v5280_v54, %v4784_v24  ;;  %v4349_v13 = vor.u32 %v5199_v39, %v4346_v27 }
 0x259   :  { %v2130_v20 = vmax.f32 %v6544_v37, %v6708_v49  ;;  %2598 = vmatpush.bf16.msra.mxu3 %v4533_v15  ;;  %v2055_v58 = vadd.f32 %v6695_v32, %v2006_v34  ;;  %v4801_v38 = vor.u32 %v5284_v8, %v4800_v46  ;;  %v4365_v32 = vor.u32 %v5203_v22, %v4362_v53  ;;  %v2013_v46 = vpop.f32.mrf.mxu2  ;;  %v4704_v37 = vld [vmem:[%s7518_s3 + $0x300] sm:$0xf]  ;;  %v5260_v49 = vld [vmem:[%s7518_s3 + $0x30c] sm:$0xf0] }
 0x25a   :  { %2411 = vmatpush.bf16.msra.mxu1 %v4429_v57  ;;  %v4498_v57 = vld [vmem:[%s7518_s3 + $0x70] sm:$0xf0]  ;;  %v1815_v59 = vadd.f32 %v6296_v55, %v1766_v6 }
 0x25b   :  { %3078 = vmatpush.bf16.msra.mxu0 %v4801_v38  ;;  %2587 = vmatpush.bf16.msra.mxu2 %v4497_v51 }
 0x25c   :  { %v1864_v15 = vadd.f32 %v6298_v56, %v1815_v59  ;;  %v4464_v56 = vld [vmem:[%s7518_s3 + $0x20] sm:$0xf] }
 0x25d   :  { %2599 = vmatpush.bf16.msra.mxu3 %v4517_v11  ;;  %v4752_v59 = vld [vmem:[%s7518_s3 + $0x360] sm:$0xf] }
 0x25e   :  { %v2101_v0 = vpop.f32.mrf.mxu0  ;;  %2412 = vmatpush.bf16.msra.mxu1 %v4413_v3  ;;  %v4481_v3 = vor.u32 %v5172_v9, %v4480_v61 }
 0x25f   :  { %v2102_v35 = vadd.f32 %v2101_v0, %v2053_v7  ;;  %v2009_v7 = vadd.f32 %v2008_v14, %v1960_v26  ;;  %v1913_v14 = vadd.f32 %v6440_v1, %v1864_v15  ;;  %3079 = vmatpush.bf16.msra.mxu0 %v4785_v45  ;;  %v4768_v1 = vld [vmem:[%s7518_s3 + $0x380] sm:$0xf]  ;;  %v1966_v53 = vpop.f32.mrf.mxu1  ;;  %v4737_v26 = vor.u32 %v5268_v43, %v4736_v29  ;;  %v5185_v29 = vld [vmem:[%s7518_s3 + $0xb4] sm:$0xf0]  ;;  %v5183_v43 = vld [vmem:[%s7518_s3 + $0xac] sm:$0xf] }
 0x260   :  { %2588 = vmatpush.bf16.msra.mxu2 %v4481_v3  ;;  %v4769_v11 = vor.u32 %v5276_v18, %v4768_v1  ;;  %v4705_v15 = vor.u32 %v5260_v49, %v4704_v37  ;;  %v5191_v1 = vld [vmem:[%s7518_s3 + $0xec] sm:$0xf]  ;;  %v4570_v18 = vld [vmem:[%s7518_s3 + $0xf8] sm:$0xf0] }
 0x261   :  { %v6768_v36 = vmax.f32 %v2121_v42, %v2102_v35  ;;  %v5174_v42 = vld [vmem:[%s7518_s3 + $0x64] sm:$0xf]  ;;  %v4466_v35 = vld [vmem:[%s7518_s3 + $0x30] sm:$0xf0]  ;;  %v2058_v23 = vadd.f32 %v6762_v19, %v2009_v7  ;;  %v1962_v6 = vadd.f32 %v1961_v31, %v1913_v14  ;;  %v4333_v19 = vor.u32 %v5195_v25, %v4330_v40  ;;  %v2015_v9 = vpop.f32.mrf.mxu2  ;;  %v5179_v37 = vld [vmem:[%s7518_s3 + $0x8c] sm:$0xf] }
 0x262   :  { %2413 = vmatpush.bf16.msra.mxu1 %v4397_v4  ;;  %v4501_v48 = vor.u32 %v5174_v42, %v4498_v57  ;;  %v4465_v4 = vor.u32 %v5168_v12, %v4464_v56  ;;  %v5162_v42 = vld [vmem:[%s7518_s3 + $0x4] sm:$0xf]  ;;  %v4450_v57 = vld [vmem:[%s7518_s3 + $0x10] sm:$0xf0]  ;;  %v4449_v31 = vor.u32 %v5164_v41, %v4448_v17  ;;  %v4522_v49 = vld [vmem:[%s7518_s3 + $0x98] sm:$0xf0] }
 0x263   :  { %3080 = vmatpush.bf16.msra.mxu0 %v4769_v11  ;;  %v4453_v8 = vor.u32 %v5162_v42, %v4450_v57  ;;  %v2011_v51 = vadd.f32 %v2010_v60, %v1962_v6  ;;  %v4552_v42 = vld [vmem:[%s7518_s3 + $0xc8] sm:$0xf]  ;;  %v5189_v57 = vld [vmem:[%s7518_s3 + $0xd4] sm:$0xf0] }
 0x264   :  { %2600 = vmatpush.bf16.msra.mxu3 %v4501_v48  ;;  %2589 = vmatpush.bf16.msra.mxu2 %v4465_v4 }
 0x265   :  { %v2060_v22 = vadd.f32 %v2059_v16, %v2011_v51 }
 0x266   :  { %v2103_v50 = vpop.f32.mrf.mxu0  ;;  %2414 = vmatpush.bf16.msra.mxu1 %v4381_v33 }
 0x267   :  { %v2104_v55 = vadd.f32 %v2103_v50, %v2055_v58  ;;  %v5272_v58 = vld [vmem:[%s7518_s3 + $0x36c] sm:$0xf0]  ;;  %v2062_v50 = vpop.f32.mrf.mxu3  ;;  %v1969_v45 = vpop.f32.mrf.mxu1 }
 0x268   :  { %2601 = vmatpush.bf16.msra.mxu3 %v4485_v63  ;;  %v4753_v38 = vor.u32 %v5272_v58, %v4752_v59  ;;  %2590 = vmatpush.bf16.msra.mxu2 %v4449_v31  ;;  %v1970_v14 = vadd.f32 %v1969_v45, %v6479_v28  ;;  %v5193_v28 = vld [vmem:[%s7518_s3 + $0xf4] sm:$0xf0]  ;;  %v4672_v31 = vld [vmem:[%s7518_s3 + $0x2c0] sm:$0xf]  ;;  %v4504_v45 = vld [vmem:[%s7518_s3 + $0x68] sm:$0xf] }
 0x269   :  { %v6827_v0 = vmax.f32 %v2124_v44, %v2104_v55  ;;  %v5166_v44 = vld [vmem:[%s7518_s3 + $0x24] sm:$0xf]  ;;  %v2018_v39 = vpop.f32.mrf.mxu2 }
 0x26a   :  { %2415 = vmatpush.bf16.msra.mxu1 %v4365_v32  ;;  %v4469_v21 = vor.u32 %v5166_v44, %v4466_v35  ;;  %3081 = vmatpush.bf16.msra.mxu0 %v4753_v38  ;;  %v2019_v44 = vadd.f32 %v2018_v39, %v1970_v14  ;;  %v4553_v38 = vor.u32 %v5189_v57, %v4552_v42  ;;  %v5177_v14 = vld [vmem:[%s7518_s3 + $0x74] sm:$0xf0]  ;;  %v4474_v42 = vld [vmem:[%s7518_s3 + $0x38] sm:$0xf0]  ;;  %v4592_v57 = vld [vmem:[%s7518_s3 + $0x220] sm:$0xf] }
 0x26c   :  { %2602 = vmatpush.bf16.msra.mxu3 %v4469_v21 }
 0x26e   :  { %v2106_v34 = vpop.f32.mrf.mxu0  ;;  %2416 = vmatpush.bf16.msra.mxu1 %v4349_v13  ;;  %3082 = vmatpush.bf16.msra.mxu0 %v4737_v26 }
 0x26f   :  { %v2107_v33 = vadd.f32 %v2106_v34, %v2058_v23  ;;  %v2064_v63 = vpop.f32.mrf.mxu3  ;;  %v1971_v4 = vpop.f32.mrf.mxu1  ;;  %v5256_v23 = vld [vmem:[%s7518_s3 + $0x2ec] sm:$0xf0] }
 0x270   :  { %2603 = vmatpush.bf16.msra.mxu3 %v4453_v8  ;;  %v1972_v34 = vadd.f32 %v1971_v4, %v6490_v30  ;;  %v5187_v30 = vld [vmem:[%s7518_s3 + $0xcc] sm:$0xf]  ;;  %v5252_v8 = vld [vmem:[%s7518_s3 + $0x2cc] sm:$0xf0]  ;;  %v4505_v4 = vor.u32 %v5177_v14, %v4504_v45  ;;  %v4666_v14 = vld [vmem:[%s7518_s3 + $0x2b8] sm:$0xf0] }
 0x271   :  { %v6876_v48 = vmax.f32 %v2127_v62, %v2107_v33  ;;  %v1965_v62 = vadd.f32 %v1964_v52, %v6451_v47  ;;  %v4721_v47 = vor.u32 %v5264_v10, %v4720_v2  ;;  %v2020_v25 = vpop.f32.mrf.mxu2 }
 0x272   :  { %2417 = vmatpush.bf16.msra.mxu1 %v4333_v19  ;;  %v4573_v19 = vor.u32 %v5191_v1, %v4570_v18  ;;  %v2021_v51 = vadd.f32 %v2020_v25, %v1972_v34  ;;  %v4488_v1 = vld [vmem:[%s7518_s3 + $0x48] sm:$0xf]  ;;  %v5173_v18 = vld [vmem:[%s7518_s3 + $0x54] sm:$0xf0]  ;;  %v5236_v34 = vld [vmem:[%s7518_s3 + $0x24c] sm:$0xf0] }
 0x273   :  { %v2014_v55 = vadd.f32 %v2013_v46, %v1965_v62  ;;  %3083 = vmatpush.bf16.msra.mxu0 %v4721_v47  ;;  %v4554_v46 = vld [vmem:[%s7518_s3 + $0xd8] sm:$0xf0]  ;;  %v4489_v25 = vor.u32 %v5173_v18, %v4488_v1 }
 0x274   :  { %v4538_v62 = vld [vmem:[%s7518_s3 + $0xb8] sm:$0xf0] }
 0x275   :  { %v2063_v3 = vadd.f32 %v2062_v50, %v2014_v55  ;;  %v4536_v50 = vld [vmem:[%s7518_s3 + $0xa8] sm:$0xf]  ;;  %v4541_v2 = vor.u32 %v5183_v43, %v4538_v62  ;;  %v5254_v43 = vld [vmem:[%s7518_s3 + $0x2e4] sm:$0xf]  ;;  %v4690_v62 = vld [vmem:[%s7518_s3 + $0x2f0] sm:$0xf0] }
 0x276   :  { %v2108_v60 = vpop.f32.mrf.mxu0 }
 0x277   :  { %v2109_v61 = vadd.f32 %v2108_v60, %v2060_v22  ;;  %3084 = vmatpush.bf16.msra.mxu0 %v4705_v15  ;;  %v2067_v12 = vpop.f32.mrf.mxu3  ;;  %v4557_v22 = vor.u32 %v5187_v30, %v4554_v46  ;;  %v4673_v60 = vor.u32 %v5252_v8, %v4672_v31  ;;  %v5232_v30 = vld [vmem:[%s7518_s3 + $0x22c] sm:$0xf0]  ;;  %v4456_v31 = vld [vmem:[%s7518_s3 + $0x8] sm:$0xf] }
 0x278   :  { %v2068_v52 = vadd.f32 %v2067_v12, %v2019_v44  ;;  %v4624_v12 = vld [vmem:[%s7518_s3 + $0x260] sm:$0xf]  ;;  %v5240_v44 = vld [vmem:[%s7518_s3 + $0x26c] sm:$0xf0] }
 0x279   :  { %v6894_v32 = vmax.f32 %v2130_v20, %v2109_v61  ;;  %v1967_v20 = vadd.f32 %v1966_v53, %v6456_v5  ;;  %v6917_v5 = vld [vmem:[%s7517_s2] ss:$0 sm:$0xff]  ;;  %v5248_v61 = vld [vmem:[%s7518_s3 + $0x2ac] sm:$0xf0] }
 0x27a   :  { %v4656_v53 = vld [vmem:[%s7518_s3 + $0x2a0] sm:$0xf] }
 0x27b   :  { %v2016_v7 = vadd.f32 %v2015_v9, %v1967_v20  ;;  %v4537_v9 = vor.u32 %v5185_v29, %v4536_v50  ;;  %v4640_v20 = vld [vmem:[%s7518_s3 + $0x280] sm:$0xf]  ;;  %v4458_v50 = vld [vmem:[%s7518_s3 + $0x18] sm:$0xf0]  ;;  %v5228_v29 = vld [vmem:[%s7518_s3 + $0x20c] sm:$0xf0] }
 0x27d   :  { %v2065_v27 = vadd.f32 %v2064_v63, %v2016_v7  ;;  %v4520_v63 = vld [vmem:[%s7518_s3 + $0x88] sm:$0xf] }
 0x27e   :  { %v2111_v24 = vpop.f32.mrf.mxu0 }
 0x27f   :  { %v6909_v54 = vadd.f32 %v2111_v24, %v2063_v3  ;;  %v2069_v58 = vpop.f32.mrf.mxu3  ;;  %v4657_v3 = vor.u32 %v5248_v61, %v4656_v53  ;;  %v5181_v24 = vld [vmem:[%s7518_s3 + $0x94] sm:$0xf0]  ;;  %v4698_v53 = vld [vmem:[%s7518_s3 + $0x2f8] sm:$0xf0] }
 0x280   :  { %v2070_v26 = vadd.f32 %v2069_v58, %v2021_v51  ;;  %v4521_v7 = vor.u32 %v5181_v24, %v4520_v63  ;;  %v4593_v51 = vor.u32 %v5232_v30, %v4592_v57  ;;  %v5165_v58 = vld [vmem:[%s7518_s3 + $0x14] sm:$0xf0]  ;;  %v4680_v63 = vld [vmem:[%s7518_s3 + $0x2c8] sm:$0xf]  ;;  %v4610_v57 = vld [vmem:[%s7518_s3 + $0x250] sm:$0xf0] }
 0x281   :  { %v2123_v16 = vmax.f32 %v6768_v36, %v6909_v54  ;;  %v4568_v36 = vld [vmem:[%s7518_s3 + $0xe8] sm:$0xf]  ;;  %v5244_v54 = vld [vmem:[%s7518_s3 + $0x28c] sm:$0xf0]  ;;  %v5253_v24 = vld [vmem:[%s7518_s3 + $0x2d4] sm:$0xf0] }
 0x282   :  { %v4569_v17 = vor.u32 %v5193_v28, %v4568_v36  ;;  %v4625_v28 = vor.u32 %v5240_v44, %v4624_v12  ;;  %v5242_v12 = vld [vmem:[%s7518_s3 + $0x284] sm:$0xf]  ;;  %v4616_v30 = vld [vmem:[%s7518_s3 + $0x248] sm:$0xf] }
 0x283   :  { %v2137_v10 = vadd.f32 %v6917_v5, %v2123_v16 }
 0x285   :  { %v2141_v16 = vmax.f32 %v2137_v10, 0.0  ;;  %v5250_v10 = vld [vmem:[%s7518_s3 + $0x2c4] sm:$0xf] }
 0x286   :  { %v2113_v56 = vpop.f32.mrf.mxu0 }
 0x287   :  { %v2114_v13 = vadd.f32 %v2113_v56, %v2065_v27  ;;  %v4525_v27 = vor.u32 %v5179_v37, %v4522_v49  ;;  %v4641_v56 = vor.u32 %v5244_v54, %v4640_v20  ;;  %v5251_v37 = vld [vmem:[%s7518_s3 + $0x2cc] sm:$0xf]  ;;  %v4682_v49 = vld [vmem:[%s7518_s3 + $0x2d8] sm:$0xf0] }
 0x288   :  { %v4685_v45 = vor.u32 %v5251_v37, %v4682_v49 }
 0x289   :  { %v2126_v35 = vmax.f32 %v6827_v0, %v2114_v13  ;;  %v4688_v0 = vld [vmem:[%s7518_s3 + $0x2e0] sm:$0xf]  ;;  %v4506_v13 = vld [vmem:[%s7518_s3 + $0x78] sm:$0xf0] }
 0x28a   :  { %v4689_v41 = vor.u32 %v5256_v23, %v4688_v0  ;;  %v5171_v0 = vld [vmem:[%s7518_s3 + $0x4c] sm:$0xf] }
 0x28b   :  { %v2138_v21 = vadd.f32 %v6917_v5, %v2126_v35 }
 0x28d   :  { %v2142_v11 = vmax.f32 %v2138_v21, 0.0  ;;  %v7024_v21 = vpack.c.bf16 %v2141_v16, %v2141_v16  ;;  %v4658_v16 = vld [vmem:[%s7518_s3 + $0x2b0] sm:$0xf0] }
 0x28e   :  { %v2116_v40 = vpop.f32.mrf.mxu0 }
 0x28f   :  { %v6940_v6 = vpack.c.bf16 %v2142_v11, %v2142_v11  ;;  %v6942_v33 = vadd.f32 %v2116_v40, %v2068_v52  ;;  %v4490_v52 = vld [vmem:[%s7518_s3 + $0x58] sm:$0xf0]  ;;  %v4608_v11 = vld [vmem:[%s7518_s3 + $0x240] sm:$0xf] }
 0x290   :  { %v4493_v40 = vor.u32 %v5171_v0, %v4490_v52  ;;  %v5238_v0 = vld [vmem:[%s7518_s3 + $0x264] sm:$0xf] }
 0x291   :  { %v2129_v59 = vmax.f32 %v6876_v48, %v6942_v33  ;;  %2379 = vmatmul.bf16.vlgmr.msrb.gmra.mxu1 %v6940_v6  ;;  %2392 = vmatmul.bf16.vlgmr.msrb.gmra.mxu2 %v6940_v6  ;;  %v4696_v48 = vld [vmem:[%s7518_s3 + $0x2e8] sm:$0xf]  ;;  %v4457_v33 = vor.u32 %v5165_v58, %v4456_v31  ;;  %v5235_v31 = vld [vmem:[%s7518_s3 + $0x24c] sm:$0xf] }
 0x292   :  { %2405 = vmatmul.bf16.vlgmr.msrb.gmra.mxu3 %v6940_v6  ;;  %2609 = vmatpush.bf16.msrb.mxu1 %v4569_v17  ;;  %v4609_v17 = vor.u32 %v5236_v34, %v4608_v11  ;;  %v4626_v11 = vld [vmem:[%s7518_s3 + $0x270] sm:$0xf0]  ;;  %v4632_v34 = vld [vmem:[%s7518_s3 + $0x268] sm:$0xf] }
 0x293   :  { %2622 = vmatpush.bf16.msrb.mxu2 %v4573_v19  ;;  %2828 = vmatpush.bf16.msrb.mxu3 %v4689_v41  ;;  %v4472_v19 = vld [vmem:[%s7518_s3 + $0x28] sm:$0xf]  ;;  %v5169_v41 = vld [vmem:[%s7518_s3 + $0x34] sm:$0xf0] }
 0x294   :  { %v4473_v46 = vor.u32 %v5169_v41, %v4472_v19  ;;  %v4629_v19 = vor.u32 %v5238_v0, %v4626_v11  ;;  %v5274_v11 = vld [vmem:[%s7518_s3 + $0x384] sm:$0xf] }
 0x296   :  { %2610 = vmatpush.bf16.msrb.mxu1 %v4553_v38  ;;  %v2118_v55 = vpop.f32.mrf.mxu0  ;;  %v5163_v38 = vld [vmem:[%s7518_s3 + $0xc] sm:$0xf] }
 0x297   :  { %2623 = vmatpush.bf16.msrb.mxu2 %v4557_v22  ;;  %2829 = vmatpush.bf16.msrb.mxu3 %v4673_v60  ;;  %v2119_v47 = vadd.f32 %v2118_v55, %v2070_v26  ;;  %v2139_v22 = vadd.f32 %v6917_v5, %v2129_v59  ;;  %v4576_v60 = vld [vmem:[%s7518_s3 + $0x200] sm:$0xf]  ;;  %v5255_v59 = vld [vmem:[%s7518_s3 + $0x2ec] sm:$0xf]  ;;  %v4461_v61 = vor.u32 %v5163_v38, %v4458_v50  ;;  %v5230_v38 = vld [vmem:[%s7518_s3 + $0x224] sm:$0xf] }
 0x298   :  { %v4577_v26 = vor.u32 %v5228_v29, %v4576_v60  ;;  %v4600_v60 = vld [vmem:[%s7518_s3 + $0x228] sm:$0xf]  ;;  %v5233_v29 = vld [vmem:[%s7518_s3 + $0x234] sm:$0xf0] }
 0x299   :  { %v2132_v15 = vmax.f32 %v6894_v32, %v2119_v47  ;;  %v5175_v32 = vld [vmem:[%s7518_s3 + $0x6c] sm:$0xf]  ;;  %v2143_v55 = vmax.f32 %v2139_v22, 0.0  ;;  %v4701_v47 = vor.u32 %v5255_v59, %v4698_v53  ;;  %v4594_v22 = vld [vmem:[%s7518_s3 + $0x230] sm:$0xf0] }
 0x29a   :  { %2611 = vmatpush.bf16.msrb.mxu1 %v4537_v9  ;;  %v4509_v36 = vor.u32 %v5175_v32, %v4506_v13  ;;  %v4693_v9 = vor.u32 %v5254_v43, %v4690_v62  ;;  %v5231_v43 = vld [vmem:[%s7518_s3 + $0x22c] sm:$0xf]  ;;  %v4602_v62 = vld [vmem:[%s7518_s3 + $0x238] sm:$0xf0]  ;;  %v4578_v59 = vld [vmem:[%s7518_s3 + $0x210] sm:$0xf0] }
 0x29b   :  { %v2140_v39 = vadd.f32 %v6917_v5, %v2132_v15  ;;  %2624 = vmatpush.bf16.msrb.mxu2 %v4541_v2  ;;  %2830 = vmatpush.bf16.msrb.mxu3 %v4657_v3  ;;  %v5257_v5 = vld [vmem:[%s7518_s3 + $0x2f4] sm:$0xf0]  ;;  %v4674_v3 = vld [vmem:[%s7518_s3 + $0x2d0] sm:$0xf0]  ;;  %v7126_v20 = vpack.c.bf16 %v2143_v55, %v2143_v55  ;;  %v4681_v15 = vor.u32 %v5253_v24, %v4680_v63  ;;  %v4584_v53 = vld [vmem:[%s7518_s3 + $0x208] sm:$0xf] }
 0x29c   :  { %v4697_v2 = vor.u32 %v5257_v5, %v4696_v48  ;;  %v4677_v54 = vor.u32 %v5250_v10, %v4674_v3  ;;  %v4597_v48 = vor.u32 %v5230_v38, %v4594_v22  ;;  %v4601_v5 = vor.u32 %v5233_v29, %v4600_v60  ;;  %v5227_v55 = vld [vmem:[%s7518_s3 + $0x20c] sm:$0xf]  ;;  %v4818_v10 = vld [vmem:[%s7518_s3 + $0x3f0] sm:$0xf0]  ;;  %v5289_v3 = vld [vmem:[%s7518_s3 + $0x3f4] sm:$0xf0] }
 0x29d   :  { %v2144_v35 = vmax.f32 %v2140_v39, 0.0  ;;  %v4664_v39 = vld [vmem:[%s7518_s3 + $0x2a8] sm:$0xf]  ;;  %v5287_v63 = vld [vmem:[%s7518_s3 + $0x3ec] sm:$0xf] }
 0x29e   :  { %2612 = vmatpush.bf16.msrb.mxu1 %v4521_v7  ;;  %v5246_v7 = vld [vmem:[%s7518_s3 + $0x2a4] sm:$0xf]  ;;  %v4826_v24 = vld [vmem:[%s7518_s3 + $0x3f8] sm:$0xf0]  ;;  %v4738_v22 = vld [vmem:[%s7518_s3 + $0x350] sm:$0xf0] }
 0x29f   :  { %2625 = vmatpush.bf16.msrb.mxu2 %v4525_v27  ;;  %2831 = vmatpush.bf16.msrb.mxu3 %v4641_v56  ;;  %v7035_v23 = vpack.c.bf16 %v2144_v35, %v2144_v35  ;;  %v5249_v27 = vld [vmem:[%s7518_s3 + $0x2b4] sm:$0xf0]  ;;  %v5247_v56 = vld [vmem:[%s7518_s3 + $0x2ac] sm:$0xf]  ;;  %v4661_v32 = vor.u32 %v5246_v7, %v4658_v16  ;;  %v4642_v35 = vld [vmem:[%s7518_s3 + $0x290] sm:$0xf0] }
 0x2a0   :  { %v4665_v13 = vor.u32 %v5249_v27, %v4664_v39  ;;  %v4669_v44 = vor.u32 %v5247_v56, %v4666_v14  ;;  %v4645_v1 = vor.u32 %v5242_v12, %v4642_v35  ;;  %v5282_v16 = vld [vmem:[%s7518_s3 + $0x3c4] sm:$0xf]  ;;  %v4802_v39 = vld [vmem:[%s7518_s3 + $0x3d0] sm:$0xf0]  ;;  %v4808_v27 = vld [vmem:[%s7518_s3 + $0x3c8] sm:$0xf] }
 0x2a1   :  { %2418 = vmatmul.bf16.vlgmr.msra.gmra.mxu1 %v6940_v6  ;;  %2591 = vmatmul.bf16.vlgmr.msra.gmra.mxu2 %v7024_v21  ;;  %v5167_v6 = vld [vmem:[%s7518_s3 + $0x2c] sm:$0xf]  ;;  %v5285_v56 = vld [vmem:[%s7518_s3 + $0x3d4] sm:$0xf0]  ;;  %v5278_v35 = vld [vmem:[%s7518_s3 + $0x3a4] sm:$0xf] }
 0x2a2   :  { %2604 = vmatmul.bf16.vlgmr.msra.gmra.mxu3 %v7024_v21  ;;  %2613 = vmatpush.bf16.msrb.mxu1 %v4505_v4  ;;  %v4477_v8 = vor.u32 %v5167_v6, %v4474_v42  ;;  %v4648_v4 = vld [vmem:[%s7518_s3 + $0x288] sm:$0xf]  ;;  %v5234_v6 = vld [vmem:[%s7518_s3 + $0x244] sm:$0xf]  ;;  %v5283_v14 = vld [vmem:[%s7518_s3 + $0x3cc] sm:$0xf]  ;;  %v4809_v12 = vor.u32 %v5285_v56, %v4808_v27 }
 0x2a3   :  { %2626 = vmatpush.bf16.msrb.mxu2 %v4509_v36  ;;  %2832 = vmatpush.bf16.msrb.mxu3 %v4625_v28  ;;  %v5243_v36 = vld [vmem:[%s7518_s3 + $0x28c] sm:$0xf]  ;;  %v4650_v28 = vld [vmem:[%s7518_s3 + $0x298] sm:$0xf0]  ;;  %v4744_v60 = vld [vmem:[%s7518_s3 + $0x348] sm:$0xf] }
 0x2a4   :  { %3085 = vmatmul.bf16.vlgmr.msra.gmra.mxu0 %v7035_v23  ;;  %v4653_v52 = vor.u32 %v5243_v36, %v4650_v28  ;;  %v5281_v36 = vld [vmem:[%s7518_s3 + $0x3b4] sm:$0xf0]  ;;  %v5279_v28 = vld [vmem:[%s7518_s3 + $0x3ac] sm:$0xf]  ;;  %v5294_v56 = vld [vmem:[%s7520_s5 + $0x20] sm:$0xff] }
 0x2a5   :  { %v5269_v29 = vld [vmem:[%s7518_s3 + $0x354] sm:$0xf0]  ;;  %v5295_v27 = vld [vmem:[%s7520_s5 + $0x28] sm:$0xff] }
 0x2a6   :  { %2614 = vmatpush.bf16.msrb.mxu1 %v4489_v25  ;;  %v5241_v25 = vld [vmem:[%s7518_s3 + $0x274] sm:$0xf0] }
 0x2a7   :  { %2627 = vmatpush.bf16.msrb.mxu2 %v4493_v40  ;;  %2833 = vmatpush.bf16.msrb.mxu3 %v4609_v17  ;;  %v5239_v40 = vld [vmem:[%s7518_s3 + $0x26c] sm:$0xf]  ;;  %v4634_v17 = vld [vmem:[%s7518_s3 + $0x278] sm:$0xf0]  ;;  %v4633_v41 = vor.u32 %v5241_v25, %v4632_v34  ;;  %v4770_v34 = vld [vmem:[%s7518_s3 + $0x390] sm:$0xf0] }
 0x2a8   :  { %v4637_v42 = vor.u32 %v5239_v40, %v4634_v17  ;;  %v4776_v25 = vld [vmem:[%s7518_s3 + $0x388] sm:$0xf]  ;;  %v5275_v40 = vld [vmem:[%s7518_s3 + $0x38c] sm:$0xf]  ;;  %v4778_v17 = vld [vmem:[%s7518_s3 + $0x398] sm:$0xf0] }
 0x2aa   :  { %2615 = vmatpush.bf16.msrb.mxu1 %v4473_v46  ;;  %v5237_v46 = vld [vmem:[%s7518_s3 + $0x254] sm:$0xf0] }
 0x2ab   :  { %2628 = vmatpush.bf16.msrb.mxu2 %v4477_v8  ;;  %2834 = vmatpush.bf16.msrb.mxu3 %v4593_v51  ;;  %v4618_v8 = vld [vmem:[%s7518_s3 + $0x258] sm:$0xf0]  ;;  %v4613_v51 = vor.u32 %v5234_v6, %v4610_v57  ;;  %v4617_v58 = vor.u32 %v5237_v46, %v4616_v30  ;;  %v4781_v6 = vor.u32 %v5275_v40, %v4778_v17  ;;  %v4754_v57 = vld [vmem:[%s7518_s3 + $0x370] sm:$0xf0]  ;;  %v4760_v30 = vld [vmem:[%s7518_s3 + $0x368] sm:$0xf] }
 0x2ac   :  { %v4621_v50 = vor.u32 %v5235_v31, %v4618_v8  ;;  %v5273_v46 = vld [vmem:[%s7518_s3 + $0x374] sm:$0xf0]  ;;  %v5271_v31 = vld [vmem:[%s7518_s3 + $0x36c] sm:$0xf]  ;;  %v4762_v8 = vld [vmem:[%s7518_s3 + $0x378] sm:$0xf0] }
 0x2ad   :  { %v4765_v38 = vor.u32 %v5271_v31, %v4762_v8  ;;  %v5305_v17 = vld [vmem:[%s7520_s5 + $0x78] sm:$0xff] }
 0x2ae   :  { %2616 = vmatpush.bf16.msrb.mxu1 %v4457_v33  ;;  %v5226_v33 = vld [vmem:[%s7518_s3 + $0x204] sm:$0xf] }
 0x2af   :  { %2629 = vmatpush.bf16.msrb.mxu2 %v4461_v61  ;;  %2835 = vmatpush.bf16.msrb.mxu3 %v4577_v26  ;;  %v4605_v61 = vor.u32 %v5231_v43, %v4602_v62  ;;  %v5229_v26 = vld [vmem:[%s7518_s3 + $0x214] sm:$0xf0]  ;;  %v4581_v37 = vor.u32 %v5226_v33, %v4578_v59  ;;  %v5267_v43 = vld [vmem:[%s7518_s3 + $0x34c] sm:$0xf]  ;;  %v4746_v62 = vld [vmem:[%s7518_s3 + $0x358] sm:$0xf0] }
 0x2b0   :  { %v4585_v49 = vor.u32 %v5229_v26, %v4584_v53  ;;  %v4749_v33 = vor.u32 %v5267_v43, %v4746_v62  ;;  %v5262_v59 = vld [vmem:[%s7518_s3 + $0x324] sm:$0xf]  ;;  %v4722_v53 = vld [vmem:[%s7518_s3 + $0x330] sm:$0xf0]  ;;  %v5265_v26 = vld [vmem:[%s7518_s3 + $0x334] sm:$0xf0] }
 0x2b1   :  { %2617 = vmatmul.bf16.vlgmr.msrb.gmra.mxu1 %v7024_v21  ;;  %v5302_v43 = vld [vmem:[%s7520_s5 + $0x60] sm:$0xff] }
 0x2b2   :  { %2841 = vmatpush.bf16.msra.mxu1 %v4693_v9  ;;  %2630 = vmatmul.bf16.vlgmr.msrb.gmra.mxu2 %v7024_v21  ;;  %v5245_v21 = vld [vmem:[%s7518_s3 + $0x294] sm:$0xf0]  ;;  %v4586_v9 = vld [vmem:[%s7518_s3 + $0x218] sm:$0xf0] }
 0x2b3   :  { %2854 = vmatpush.bf16.msra.mxu2 %v4697_v2  ;;  %2867 = vmatpush.bf16.msra.mxu3 %v4701_v47  ;;  %v4649_v18 = vor.u32 %v5245_v21, %v4648_v4  ;;  %v5286_v2 = vld [vmem:[%s7518_s3 + $0x3e4] sm:$0xf]  ;;  %v4824_v47 = vld [vmem:[%s7518_s3 + $0x3e8] sm:$0xf]  ;;  %v4786_v4 = vld [vmem:[%s7518_s3 + $0x3b0] sm:$0xf0] }
 0x2b4   :  { %2836 = vmatmul.bf16.vlgmr.msrb.gmra.mxu3 %v7126_v20  ;;  %v4825_v7 = vor.u32 %v5289_v3, %v4824_v47  ;;  %v4792_v21 = vld [vmem:[%s7518_s3 + $0x3a8] sm:$0xf]  ;;  %v5258_v3 = vld [vmem:[%s7518_s3 + $0x304] sm:$0xf] }
 0x2b5   :  { %v4793_v0 = vor.u32 %v5281_v36, %v4792_v21  ;;  %v5290_v36 = vld [vmem:[%s7520_s5] sm:$0xff] }
 0x2b6   :  { %2842 = vmatpush.bf16.msra.mxu1 %v4677_v54  ;;  %v4589_v54 = vor.u32 %v5227_v55, %v4586_v9  ;;  %v5263_v55 = vld [vmem:[%s7518_s3 + $0x32c] sm:$0xf]  ;;  %v4730_v9 = vld [vmem:[%s7518_s3 + $0x338] sm:$0xf0] }
 0x2b7   :  { %2855 = vmatpush.bf16.msra.mxu2 %v4681_v15  ;;  %2868 = vmatpush.bf16.msra.mxu3 %v4685_v45  ;;  %v4821_v15 = vor.u32 %v5286_v2, %v4818_v10  ;;  %v4829_v45 = vor.u32 %v5287_v63, %v4826_v24  ;;  %v4725_v2 = vor.u32 %v5262_v59, %v4722_v53  ;;  %v4706_v63 = vld [vmem:[%s7518_s3 + $0x310] sm:$0xf0]  ;;  %v4712_v24 = vld [vmem:[%s7518_s3 + $0x308] sm:$0xf]  ;;  %v5301_v53 = vld [vmem:[%s7520_s5 + $0x58] sm:$0xff] }
 0x2b8   :  { %v4733_v47 = vor.u32 %v5263_v55, %v4730_v9  ;;  %v5300_v55 = vld [vmem:[%s7520_s5 + $0x50] sm:$0xff]  ;;  %v5309_v9 = vld [vmem:[%s7520_s5 + $0x98] sm:$0xff] }
 0x2ba   :  { %2843 = vmatpush.bf16.msra.mxu1 %v4661_v32  ;;  %v4810_v32 = vld [vmem:[%s7518_s3 + $0x3d8] sm:$0xf0] }
 0x2bb   :  { %2856 = vmatpush.bf16.msra.mxu2 %v4665_v13  ;;  %2869 = vmatpush.bf16.msra.mxu3 %v4669_v44  ;;  %v4805_v13 = vor.u32 %v5282_v16, %v4802_v39  ;;  %v4813_v44 = vor.u32 %v5283_v14, %v4810_v32  ;;  %v5297_v16 = vld [vmem:[%s7520_s5 + $0x38] sm:$0xff]  ;;  %v5296_v39 = vld [vmem:[%s7520_s5 + $0x30] sm:$0xff] }
 0x2bc   :  { %3415 = vmatpush.bf16.msrb.mxu0 %v5297_v16  ;;  %v5293_v14 = vld [vmem:[%s7520_s5 + $0x18] sm:$0xff]  ;;  %v5314_v16 = vld [vmem:[%s7520_s5 + $0xc0] sm:$0xff] }
 0x2be   :  { %2844 = vmatpush.bf16.msra.mxu1 %v4645_v1  ;;  %v4794_v1 = vld [vmem:[%s7518_s3 + $0x3b8] sm:$0xf0] }
 0x2bf   :  { %2857 = vmatpush.bf16.msra.mxu2 %v4649_v18  ;;  %2870 = vmatpush.bf16.msra.mxu3 %v4653_v52  ;;  %v4789_v18 = vor.u32 %v5278_v35, %v4786_v4  ;;  %v4797_v52 = vor.u32 %v5279_v28, %v4794_v1  ;;  %v5291_v35 = vld [vmem:[%s7520_s5 + $0x8] sm:$0xff] }
 0x2c0   :  { %3416 = vmatpush.bf16.msrb.mxu0 %v5296_v39 }
 0x2c2   :  { %2845 = vmatpush.bf16.msra.mxu1 %v4629_v19  ;;  %v4773_v19 = vor.u32 %v5274_v11, %v4770_v34 }
 0x2c3   :  { %2858 = vmatpush.bf16.msra.mxu2 %v4633_v41  ;;  %2871 = vmatpush.bf16.msra.mxu3 %v4637_v42  ;;  %v5270_v42 = vld [vmem:[%s7518_s3 + $0x364] sm:$0xf] }
 0x2c4   :  { %3417 = vmatpush.bf16.msrb.mxu0 %v5295_v27 }
 0x2c6   :  { %2846 = vmatpush.bf16.msra.mxu1 %v4613_v51  ;;  %v4757_v51 = vor.u32 %v5270_v42, %v4754_v57  ;;  %v5313_v42 = vld [vmem:[%s7520_s5 + $0xb8] sm:$0xff] }
 0x2c7   :  { %2859 = vmatpush.bf16.msra.mxu2 %v4617_v58  ;;  %2872 = vmatpush.bf16.msra.mxu3 %v4621_v50  ;;  %v4761_v58 = vor.u32 %v5273_v46, %v4760_v30  ;;  %v5266_v50 = vld [vmem:[%s7518_s3 + $0x344] sm:$0xf]  ;;  %v5321_v57 = vld [vmem:[%s7520_s5 + $0xf8] sm:$0xff] }
 0x2c8   :  { %3418 = vmatpush.bf16.msrb.mxu0 %v5294_v56 }
 0x2ca   :  { %2847 = vmatpush.bf16.msra.mxu1 %v4597_v48  ;;  %v4741_v48 = vor.u32 %v5266_v50, %v4738_v22  ;;  %v5303_v50 = vld [vmem:[%s7520_s5 + $0x68] sm:$0xff]  ;;  %v5312_v22 = vld [vmem:[%s7520_s5 + $0xb0] sm:$0xff] }
 0x2cb   :  { %2860 = vmatpush.bf16.msra.mxu2 %v4601_v5  ;;  %2873 = vmatpush.bf16.msra.mxu3 %v4605_v61  ;;  %v4745_v5 = vor.u32 %v5269_v29, %v4744_v60  ;;  %v4728_v61 = vld [vmem:[%s7518_s3 + $0x328] sm:$0xf]  ;;  %v5320_v60 = vld [vmem:[%s7520_s5 + $0xf0] sm:$0xff] }
 0x2cc   :  { %v4729_v10 = vor.u32 %v5265_v26, %v4728_v61  ;;  %3419 = vmatpush.bf16.msrb.mxu0 %v5293_v14  ;;  %v5310_v61 = vld [vmem:[%s7520_s5 + $0xa0] sm:$0xff] }
 0x2cd   :  { %v5318_v26 = vld [vmem:[%s7520_s5 + $0xe0] sm:$0xff] }
 0x2ce   :  { %2848 = vmatpush.bf16.msra.mxu1 %v4581_v37  ;;  %v5261_v37 = vld [vmem:[%s7518_s3 + $0x314] sm:$0xf0] }
 0x2cf   :  { %2861 = vmatpush.bf16.msra.mxu2 %v4585_v49  ;;  %2874 = vmatpush.bf16.msra.mxu3 %v4589_v54  ;;  %v5259_v49 = vld [vmem:[%s7518_s3 + $0x30c] sm:$0xf]  ;;  %v4714_v54 = vld [vmem:[%s7518_s3 + $0x318] sm:$0xf0] }
 0x2d1   :  { %2849 = vmatmul.bf16.vlgmr.msra.gmra.mxu1 %v7126_v20 }
 0x2d2   :  { %3090 = vmatpush.bf16.msrb.mxu1 %v4821_v15  ;;  %2862 = vmatmul.bf16.vlgmr.msra.gmra.mxu2 %v7126_v20  ;;  %v4709_v15 = vor.u32 %v5258_v3, %v4706_v63  ;;  %v5308_v3 = vld [vmem:[%s7520_s5 + $0x90] sm:$0xff] }
 0x2d3   :  { %3103 = vmatpush.bf16.msrb.mxu2 %v4825_v7  ;;  %3116 = vmatpush.bf16.msrb.mxu3 %v4829_v45  ;;  %v4713_v7 = vor.u32 %v5261_v37, %v4712_v24  ;;  %v4717_v45 = vor.u32 %v5259_v49, %v4714_v54  ;;  %v5316_v63 = vld [vmem:[%s7520_s5 + $0xd0] sm:$0xff]  ;;  %v5298_v24 = vld [vmem:[%s7520_s5 + $0x40] sm:$0xff]  ;;  %v5307_v37 = vld [vmem:[%s7520_s5 + $0x88] sm:$0xff] }
 0x2d4   :  { %2875 = vmatmul.bf16.vlgmr.msra.gmra.mxu3 %v7126_v20  ;;  %v5277_v20 = vld [vmem:[%s7518_s3 + $0x394] sm:$0xf0]  ;;  %v5315_v49 = vld [vmem:[%s7520_s5 + $0xc8] sm:$0xff] }
 0x2d5   :  { %v4777_v41 = vor.u32 %v5277_v20, %v4776_v25 }
 0x2d6   :  { %3091 = vmatpush.bf16.msrb.mxu1 %v4805_v13 }
 0x2d7   :  { %3104 = vmatpush.bf16.msrb.mxu2 %v4809_v12  ;;  %3117 = vmatpush.bf16.msrb.mxu3 %v4813_v44  ;;  %v5292_v12 = vld [vmem:[%s7520_s5 + $0x10] sm:$0xff] }
 0x2d8   :  { %3420 = vmatpush.bf16.msrb.mxu0 %v5292_v12 }
 0x2da   :  { %3092 = vmatpush.bf16.msrb.mxu1 %v4789_v18 }
 0x2db   :  { %3105 = vmatpush.bf16.msrb.mxu2 %v4793_v0  ;;  %3118 = vmatpush.bf16.msrb.mxu3 %v4797_v52 }
 0x2dc   :  { %3421 = vmatpush.bf16.msrb.mxu0 %v5291_v35 }
 0x2de   :  { %3093 = vmatpush.bf16.msrb.mxu1 %v4773_v19  ;;  %v7427_v19 = vld [vmem:[%s7521_s4] sm:$0xf] }
 0x2df   :  { %3106 = vmatpush.bf16.msrb.mxu2 %v4777_v41  ;;  %3119 = vmatpush.bf16.msrb.mxu3 %v4781_v6  ;;  %v5304_v6 = vld [vmem:[%s7520_s5 + $0x70] sm:$0xff]  ;;  %v3135_v8 = vperm.slane %v7427_v19, 0 }
 0x2e0   :  { %3422 = vmatpush.bf16.msrb.mxu0 %v5290_v36 }
 0x2e2   :  { %3094 = vmatpush.bf16.msrb.mxu1 %v4757_v51 }
 0x2e3   :  { %3107 = vmatpush.bf16.msrb.mxu2 %v4761_v58  ;;  %3120 = vmatpush.bf16.msrb.mxu3 %v4765_v38 }
 0x2e6   :  { %3095 = vmatpush.bf16.msrb.mxu1 %v4741_v48 }
 0x2e7   :  { %3108 = vmatpush.bf16.msrb.mxu2 %v4745_v5  ;;  %3121 = vmatpush.bf16.msrb.mxu3 %v4749_v33  ;;  %v5311_v5 = vld [vmem:[%s7520_s5 + $0xa8] sm:$0xff] }
 0x2e8   :  { %v5319_v33 = vld [vmem:[%s7520_s5 + $0xe8] sm:$0xff] }
 0x2ea   :  { %3096 = vmatpush.bf16.msrb.mxu1 %v4725_v2  ;;  %v5317_v2 = vld [vmem:[%s7520_s5 + $0xd8] sm:$0xff] }
 0x2eb   :  { %3109 = vmatpush.bf16.msrb.mxu2 %v4729_v10  ;;  %3122 = vmatpush.bf16.msrb.mxu3 %v4733_v47  ;;  %v5299_v10 = vld [vmem:[%s7520_s5 + $0x48] sm:$0xff] }
 0x2ee   :  { %3097 = vmatpush.bf16.msrb.mxu1 %v4709_v15 }
 0x2ef   :  { %3110 = vmatpush.bf16.msrb.mxu2 %v4713_v7  ;;  %3123 = vmatpush.bf16.msrb.mxu3 %v4717_v45  ;;  %v5306_v45 = vld [vmem:[%s7520_s5 + $0x80] sm:$0xff] }
 0x2f1   :  { %3098 = vmatmul.bf16.vlgmr.msrb.gmra.mxu1 %v7035_v23 }
 0x2f2   :  { %3111 = vmatmul.bf16.vlgmr.msrb.gmra.mxu2 %v7035_v23  ;;  %3124 = vmatmul.bf16.vlgmr.msrb.gmra.mxu3 %v7035_v23 }
 0x2f3   :  { %3428 = vmatpush.bf16.msra.mxu1 %v5305_v17  ;;  %3441 = vmatpush.bf16.msra.mxu2 %v5313_v42 }
 0x2f4   :  { %3454 = vmatpush.bf16.msra.mxu3 %v5321_v57 }
 0x2f7   :  { %3429 = vmatpush.bf16.msra.mxu1 %v5304_v6  ;;  %3442 = vmatpush.bf16.msra.mxu2 %v5312_v22 }
 0x2f8   :  { %3455 = vmatpush.bf16.msra.mxu3 %v5320_v60 }
 0x2fb   :  { %3430 = vmatpush.bf16.msra.mxu1 %v5303_v50  ;;  %3443 = vmatpush.bf16.msra.mxu2 %v5311_v5 }
 0x2fc   :  { %3456 = vmatpush.bf16.msra.mxu3 %v5319_v33 }
 0x2ff   :  { %3431 = vmatpush.bf16.msra.mxu1 %v5302_v43  ;;  %3444 = vmatpush.bf16.msra.mxu2 %v5310_v61 }
 0x300   :  { %3457 = vmatpush.bf16.msra.mxu3 %v5318_v26 }
 0x303   :  { %3432 = vmatpush.bf16.msra.mxu1 %v5301_v53  ;;  %3445 = vmatpush.bf16.msra.mxu2 %v5309_v9 }
 0x304   :  { %3458 = vmatpush.bf16.msra.mxu3 %v5317_v2 }
 0x307   :  { %3433 = vmatpush.bf16.msra.mxu1 %v5300_v55  ;;  %3446 = vmatpush.bf16.msra.mxu2 %v5308_v3 }
 0x308   :  { %3459 = vmatpush.bf16.msra.mxu3 %v5316_v63 }
 0x30b   :  { %3434 = vmatpush.bf16.msra.mxu1 %v5299_v10  ;;  %3447 = vmatpush.bf16.msra.mxu2 %v5307_v37 }
 0x30c   :  { %3460 = vmatpush.bf16.msra.mxu3 %v5315_v49 }
 0x30e   :  { %v2380_v23 = vpop.f32.mrf.mxu1 }
 0x30f   :  { %3435 = vmatpush.bf16.msra.mxu1 %v5298_v24  ;;  %3448 = vmatpush.bf16.msra.mxu2 %v5306_v45 }
 0x310   :  { %3461 = vmatpush.bf16.msra.mxu3 %v5314_v16 }
 0x314   :  { %v2393_v32 = vpop.f32.mrf.mxu2 }
 0x315   :  { %v7404_v13 = vpop.f32.mrf.mxu3 }
 0x316   :  { %v2382_v44 = vpop.f32.mrf.mxu1 }
 0x31c   :  { %v2395_v4 = vpop.f32.mrf.mxu2 }
 0x31d   :  { %v2408_v21 = vpop.f32.mrf.mxu3 }
 0x31e   :  { %v7415_v28 = vpop.f32.mrf.mxu1 }
 0x321   :  { %v3086_v1 = vpop.f32.mrf.mxu0 }
 0x324   :  { %v2592_v18 = vpop.f32.mrf.mxu2 }
 0x325   :  { %v2605_v0 = vpop.f32.mrf.mxu3  ;;  %v2593_v41 = vadd.f32 %v2592_v18, %v2380_v23  ;;  %v3136_v23 = vperm.slane %v7427_v19, 1  ;;  %v3138_v18 = vperm.slane %v7427_v19, 3 }
 0x326   :  { %v7417_v52 = vadd.f32 %v2605_v0, %v2393_v32  ;;  %v2421_v11 = vpop.f32.mrf.mxu1 }
 0x329   :  { %v3088_v34 = vpop.f32.mrf.mxu0 }
 0x32c   :  { %v2594_v25 = vpop.f32.mrf.mxu2 }
 0x32d   :  { %v2607_v20 = vpop.f32.mrf.mxu3 }
 0x32e   :  { %v7419_v40 = vpop.f32.mrf.mxu1 }
 0x32f   :  { %v2619_v44 = vadd.f32 %v7419_v40, %v7404_v13 }
 0x335   :  { %v7438_v30 = vpop.f32.mrf.mxu2 }
 0x336   :  { %v2620_v51 = vpop.f32.mrf.mxu1  ;;  %v2632_v35 = vadd.f32 %v7438_v30, %v7415_v28 }
 0x337   :  { %v2837_v46 = vpop.f32.mrf.mxu3 }
 0x338   :  { %v2880_v31 = vadd.f32 %v2837_v46, %v2593_v41 }
 0x33a   :  { %v3129_v58 = vadd.f32 %v3086_v1, %v2880_v31  ;;  %v3137_v1 = vperm.slane %v7427_v19, 2  ;;  %v5323_v31 = vld [vmem:[%s7519_s6] ss:$0 sm:$0xff] }
 0x33c   :  { %v3143_v38 = vadd.f32 %v3135_v8, %v3129_v58 }
 0x33d   :  { %v2633_v62 = vpop.f32.mrf.mxu2 }
 0x33e   :  { %v3147_v29 = vmax.f32 %v3143_v38, 0.0 }
 0x33f   :  { %v2839_v48 = vpop.f32.mrf.mxu3 }
 0x340   :  { %v3151_v59 = vpack.c.bf16 %v3147_v29, %v3147_v29 }
 0x342   :  { %3423 = vmatmul.bf16.vlgmr.msrb.gmra.mxu0 %v3151_v59 }
 0x34e   :  { %v2850_v47 = vpop.f32.mrf.mxu1 }
 0x34f   :  { %v2881_v56 = vadd.f32 %v2850_v47, %v7417_v52 }
 0x355   :  { %v2863_v54 = vpop.f32.mrf.mxu2 }
 0x356   :  { %v2852_v7 = vpop.f32.mrf.mxu1  ;;  %v2882_v21 = vadd.f32 %v2863_v54, %v2619_v44 }
 0x357   :  { %v2876_v15 = vpop.f32.mrf.mxu3 }
 0x358   :  { %v2883_v36 = vadd.f32 %v2876_v15, %v2632_v35 }
 0x35d   :  { %v2865_v39 = vpop.f32.mrf.mxu2 }
 0x35f   :  { %v2878_v27 = vpop.f32.mrf.mxu3 }
 0x36e   :  { %v3099_v14 = vpop.f32.mrf.mxu1 }
 0x36f   :  { %v3130_v32 = vadd.f32 %v3099_v14, %v2881_v56 }
 0x371   :  { %v3144_v12 = vadd.f32 %v3136_v23, %v3130_v32 }
 0x373   :  { %v3148_v4 = vmax.f32 %v3144_v12, 0.0 }
 0x375   :  { %v3152_v0 = vpack.c.bf16 %v3148_v4, %v3148_v4  ;;  %v3112_v52 = vpop.f32.mrf.mxu2  ;;  %v3125_v11 = vpop.f32.mrf.mxu3 }
 0x376   :  { %v3131_v34 = vadd.f32 %v3112_v52, %v2882_v21  ;;  %v3132_v25 = vadd.f32 %v3125_v11, %v2883_v36  ;;  %v3101_v20 = vpop.f32.mrf.mxu1 }
 0x377   :  { %3436 = vmatmul.bf16.vlgmr.msra.gmra.mxu1 %v3152_v0 }
 0x378   :  { %v3145_v17 = vadd.f32 %v3137_v1, %v3131_v34  ;;  %v3146_v41 = vadd.f32 %v3138_v18, %v3132_v25 }
 0x37a   :  { %v3149_v13 = vmax.f32 %v3145_v17, 0.0  ;;  %v3150_v40 = vmax.f32 %v3146_v41, 0.0 }
 0x37c   :  { %v3153_v6 = vpack.c.bf16 %v3149_v13, %v3149_v13  ;;  %v3154_v28 = vpack.c.bf16 %v3150_v40, %v3150_v40 }
 0x37d   :  { %v3114_v42 = vpop.f32.mrf.mxu2  ;;  %v3127_v57 = vpop.f32.mrf.mxu3 }
 0x37e   :  { %3449 = vmatmul.bf16.vlgmr.msra.gmra.mxu2 %v3153_v6  ;;  %3462 = vmatmul.bf16.vlgmr.msra.gmra.mxu3 %v3154_v28 }
 0x3bf   :  { %v3424_v30 = vpop.f32.mrf.mxu0 }
 0x3c0   :  { %v3425_v51 = vadd.f32 %v5323_v31, %v3424_v30 }
 0x3c7   :  { %v3426_v46 = vpop.f32.mrf.mxu0 }
 0x3f4   :  { %v3437_v19 = vpop.f32.mrf.mxu1 }
 0x3f5   :  { %v3438_v58 = vadd.f32 %v3437_v19, %v3425_v51 }
 0x3fc   :  { %v3439_v8 = vpop.f32.mrf.mxu1 }
 0x401   :  { %v3450_v38 = vpop.f32.mrf.mxu2  ;;  %v3463_v50 = vpop.f32.mrf.mxu3 }
 0x402   :  { %v3451_v22 = vadd.f32 %v3450_v38, %v3438_v58 }
 0x404   :  { %v3464_v60 = vadd.f32 %v3463_v50, %v3451_v22 }
 0x406   :  { %3467 = vmax.xlane.f32.xlu0 %v3464_v60 }
 0x409   :  { %v3452_v29 = vpop.f32.mrf.mxu2  ;;  %v3465_v43 = vpop.f32.mrf.mxu3 }
 0x479   :  { %v3468_v62 = vpop.xlane.xlu0 %3467 }
 0x47a   :  { %v3469_v48 = vsub.f32 %v3464_v60, %v3468_v62 }
 0x47c   :  { %v3470_v5 = vmul.f32 1.442695, %v3469_v48 }
 0x47e   :  { %5324 = vpow2.f32 %v3470_v5 }
 0x484   :  { %v5325_v33 = vpop.eup %5324 }
 0x485   :  { %3472 = vadd.xlane.f32.xlu0 %v5325_v33 }
 0x4f8   :  { %v3473_v59 = vpop.xlane.xlu0 %3472 }
 0x4f9   :  { %5326 = vrcp.f32 %v3473_v59  ;;  %v3485_v55 = vand.u32 2147483648, %v3473_v59  ;;  %v3483_v2 = vand.u32 2147483647, %v3473_v59  ;;  %vm3479_vm2 = vweird.f32 %v3473_v59 }
 0x4fb   :  { %v3486_v47 = vor.u32 1.1754944e-38, %v3485_v55  ;;  %vm3484_vm4 = vcmp.eq.f32.partialorder %v3483_v2, 8.507059e+37 }
 0x4ff   :  { %v5327_v53 = vpop.eup %5326 }
 0x500   :  { %v3475_v61 = vmul.f32 %v5327_v53, %v3473_v59  ;;  %vm3480_vm1 = vweird.f32 %v5327_v53 }
 0x501   :  { %vm3481_vm3 = vmor %vm3479_vm2, %vm3480_vm1 }
 0x502   :  { %v3476_v26 = vsub.f32 1.0, %v3475_v61 }
 0x504   :  { %v3477_v9 = vmul.f32 %v5327_v53, %v3476_v26 }
 0x506   :  { %v3478_v10 = vadd.f32 %v5327_v53, %v3477_v9 }
 0x508   :  { %v3482_v3 = vsel %vm3481_vm3, %v5327_v53, %v3478_v10 }
 0x509   :  { %v3487_v63 = vsel %vm3484_vm4, %v3486_v47, %v3482_v3 }
 0x50a   :  { %v3488_v24 = vmul.f32 %v5325_v33, %v3487_v63 }
 0x50c   :  { %3489 = vst [vmem:[%s7522_s7] sm:$0xff] %v3488_v24 }

</bundles_post_ra>
